<compile_context>
chip_gen: v7x
topology: tpu7x:2x2x1
jax: 0.10.0
libtpu: 0.0.40
codegen_flags: <defaults>
</compile_context>

<pallas_src>
import jax
import jax.numpy as jnp
import numpy as np
from jax.experimental import pallas as pl
from jax.experimental.pallas import tpu as pltpu

NUM_AGES = 10
NUM_GENDERS = 2
NUM_LABELS = NUM_AGES + NUM_GENDERS     # 12
BN_EPS = 1e-5


# -----------------------------------------------------------------------------
# Kernel 1: fused conv stack.  grid = (batch,), one image per step ("parallel"
# so the two images land on the two v7x TensorCores).  All activations stay in
# VMEM; the only HBM store is the lane-dense (64, 128) feature tile.
# -----------------------------------------------------------------------------
def _conv_stack_kernel(x_ref, w1_ref, b1_ref, w2_ref, lb2_ref,
                       w3_ref, b3_ref, w4_ref, b4_ref, o_ref):
    # x_ref: (1, 4096, 12); rows = (h1,w1,h2,w2,h3,w3,h_hi,w_hi), cols = (h0,w0,c)
    x = x_ref[0]                                                    # (4096, 12)

    # conv1 + folded BN + ReLU  (full 2x2 patch lives in the columns)
    h = jnp.dot(x, w1_ref[...], preferred_element_type=jnp.float32)
    h = jnp.maximum(h + b1_ref[...], 0.0)                           # (4096, 16)

    # conv2: the 4 patch positions are 4 contiguous row blocks of h.
    # The concatenated label channels are spatially constant, so their
    # contribution is the per-image bias lb2 (computed outside).
    z = lb2_ref[0]                                                  # (1, 32)
    for p in range(4):
        z = z + jnp.dot(h[p * 1024:(p + 1) * 1024, :], w2_ref[p],
                        preferred_element_type=jnp.float32)
    h = jnp.maximum(z, 0.0)                                         # (1024, 32)

    # conv3
    z = b3_ref[...]                                                 # (1, 64)
    for p in range(4):
        z = z + jnp.dot(h[p * 256:(p + 1) * 256, :], w3_ref[p],
                        preferred_element_type=jnp.float32)
    h = jnp.maximum(z, 0.0)                                         # (256, 64)

    # conv4
    z = b4_ref[...]                                                 # (1, 128)
    for p in range(4):
        z = z + jnp.dot(h[p * 64:(p + 1) * 64, :], w4_ref[p],
                        preferred_element_type=jnp.float32)
    h = jnp.maximum(z, 0.0)                                         # (64, 128)

    o_ref[0] = h                                                    # lane-dense store


def conv_stack(x, w1, b1, w2p, lb2, w3p, b3, w4p, b4):
    n = x.shape[0]
    return pl.pallas_call(
        _conv_stack_kernel,
        out_shape=jax.ShapeDtypeStruct((n, 64, 128), jnp.float32),
        grid_spec=pltpu.PrefetchScalarGridSpec(
            num_scalar_prefetch=0,
            grid=(n,),
            in_specs=[
                pl.BlockSpec((1, 4096, 12), lambda i: (i, 0, 0)),   # per-image input
                pl.BlockSpec((12, 16), lambda i: (0, 0)),           # conv1 weight
                pl.BlockSpec((1, 16), lambda i: (0, 0)),            # conv1 bias (BN folded)
                pl.BlockSpec((4, 16, 32), lambda i: (0, 0, 0)),     # conv2 per-position weights
                pl.BlockSpec((1, 1, 32), lambda i: (i, 0, 0)),      # per-image label+conv2 bias
                pl.BlockSpec((4, 32, 64), lambda i: (0, 0, 0)),     # conv3 weights
                pl.BlockSpec((1, 64), lambda i: (0, 0)),            # conv3 bias
                pl.BlockSpec((4, 64, 128), lambda i: (0, 0, 0)),    # conv4 weights
                pl.BlockSpec((1, 128), lambda i: (0, 0)),           # conv4 bias
            ],
            out_specs=pl.BlockSpec((1, 64, 128), lambda i: (i, 0, 0)),
        ),
        compiler_params=pltpu.CompilerParams(
            dimension_semantics=("parallel",),
            vmem_limit_bytes=32 * 1024 * 1024),
    )(x, w1, b1, w2p, lb2, w3p, b3, w4p, b4)


# -----------------------------------------------------------------------------
# Kernel 2: fc1 (8192 -> 1024) with bf16 weight streaming, f32 accumulation and
# fused bias + LeakyReLU.  grid = (N_blocks=2 [parallel], K_blocks=2 [reduce]).
# -----------------------------------------------------------------------------
def _fc1_kernel(x_ref, w_ref, b_ref, o_ref, acc_ref):
    k = pl.program_id(1)

    @pl.when(k == 0)
    def _():
        acc_ref[...] = jnp.zeros_like(acc_ref)

    acc_ref[...] += jnp.dot(x_ref[...].astype(jnp.bfloat16), w_ref[...],
                            preferred_element_type=jnp.float32)

    @pl.when(k == pl.num_programs(1) - 1)
    def _():
        y = acc_ref[...] + b_ref[...]
        o_ref[...] = jnp.where(y >= 0.0, y, 0.01 * y).astype(o_ref.dtype)


def fc1_leaky(x, w_bf16, b):
    m, kdim = x.shape               # (batch, 8192)
    _, ndim = w_bf16.shape          # (8192, 1024)
    tk, tn = 4096, 512              # 4 MiB bf16 weight tiles, 4-step grid
    grid = (ndim // tn, kdim // tk)
    return pl.pallas_call(
        _fc1_kernel,
        out_shape=jax.ShapeDtypeStruct((m, ndim), jnp.float32),
        grid_spec=pltpu.PrefetchScalarGridSpec(
            num_scalar_prefetch=0,
            grid=grid,
            in_specs=[
                pl.BlockSpec((m, tk), lambda j, k: (0, k)),
                pl.BlockSpec((tk, tn), lambda j, k: (k, j)),
                pl.BlockSpec((1, tn), lambda j, k: (0, j)),
            ],
            out_specs=pl.BlockSpec((m, tn), lambda j, k: (0, j)),
            scratch_shapes=[pltpu.VMEM((m, tn), jnp.float32)],
        ),
        compiler_params=pltpu.CompilerParams(
            dimension_semantics=("parallel", "arbitrary"),
            vmem_limit_bytes=32 * 1024 * 1024),
    )(x, w_bf16, b.reshape(1, ndim))


# -----------------------------------------------------------------------------
# Layout / parameter preparation (done once, outside the hot path)
# -----------------------------------------------------------------------------
def _space_to_depth_input(imgs):
    """(N,3,128,128) NCHW -> (N,4096,12): rows (h1,w1,h2,w2,h3,w3,h_hi,w_hi),
    cols (h0,w0,c).  Makes every 2x2/stride-2 patchify a contiguous row slice."""
    n, c, hgt, wid = imgs.shape
    assert c == 3 and hgt == 128 and wid == 128
    x = imgs.reshape(n, c, 8, 2, 2, 2, 2, 8, 2, 2, 2, 2)
    #           dims: 0  1  2  3  4  5  6  7  8  9 10 11
    #                 n  c hH h3 h2 h1 h0 wH w3 w2 w1 w0
    x = x.transpose(0, 5, 10, 4, 9, 3, 8, 2, 7, 6, 11, 1)
    return x.reshape(n, 4096, 12)


def prepare_params(params):
    """Fold BN(eval) into conv weights, split per-patch-position weights,
    collapse the label concat to a 12x32 matrix, permute+bf16-cast fc1."""
    def fold(p):
        scale = p["gamma"] / jnp.sqrt(p["var"] + BN_EPS)
        return p["w"] * scale[:, None, None, None], (p["b"] - p["mean"]) * scale + p["beta"]

    w1, b1 = fold(params["conv1"])
    w2, b2 = fold(params["conv2"])
    w3, b3 = fold(params["conv3"])
    w4, b4 = fold(params["conv4"])

    P = {
        "w1": w1.transpose(2, 3, 1, 0).reshape(12, 16),          # cols (ky,kx,c)
        "b1": b1.reshape(1, 16),
        "w2p": w2[:, :16].transpose(2, 3, 1, 0).reshape(4, 16, 32),
        "wlab": w2[:, 16:].sum(axis=(2, 3)).T,                   # (12, 32) label path
        "b2": b2,                                                # (32,)
        "w3p": w3.transpose(2, 3, 1, 0).reshape(4, 32, 64),
        "b3": b3.reshape(1, 64),
        "w4p": w4.transpose(2, 3, 1, 0).reshape(4, 64, 128),
        "b4": b4.reshape(1, 128),
    }
    # fc1: permute input-feature order from NCHW-flatten (c*64+s) to the
    # kernel's NHWC-flatten (s*128+c), transpose to (K,N) and cast to bf16.
    wfc1 = params["fc1"]["w"].reshape(1024, 128, 64).transpose(0, 2, 1).reshape(1024, 8192)
    P["fc1_w"] = wfc1.T.astype(jnp.bfloat16)                     # (8192, 1024)
    P["fc1_b"] = params["fc1"]["b"].reshape(1, 1024)
    P["fc2_w"] = params["fc2"]["w"].T                            # (1024, 1)
    P["fc2_b"] = params["fc2"]["b"]
    return P


# -----------------------------------------------------------------------------
# Full forward
# -----------------------------------------------------------------------------
@jax.jit
def discriminator_img_forward(prepped, imgs, labels):
    n = imgs.shape[0]
    x = _space_to_depth_input(imgs)                                    # (N,4096,12)
    # label concat folded to a per-image additive bias on conv2 (+ conv2 bias)
    lb2 = (labels @ prepped["wlab"] + prepped["b2"]).reshape(n, 1, 32)
    feat = conv_stack(x, prepped["w1"], prepped["b1"], prepped["w2p"], lb2,
                      prepped["w3p"], prepped["b3"], prepped["w4p"],
                      prepped["b4"])                                   # (N,64,128)
    feat = feat.reshape(n, 64 * 128)                                   # free (contiguous)
    h = fc1_leaky(feat, prepped["fc1_w"], prepped["fc1_b"])            # (N,1024)
    return h @ prepped["fc2_w"] + prepped["fc2_b"]                     # fc2 in plain JAX


# -----------------------------------------------------------------------------
# Deterministic parameter init (synthetic, matches module shapes)
# -----------------------------------------------------------------------------
def init_params(key):
    in_dims = (3, 16 + NUM_LABELS, 32, 64)
    out_dims = (16, 32, 64, 128)
    keys = iter(jax.random.split(key, 20))
    params = {}
    for i, (cin, cout) in enumerate(zip(in_dims, out_dims), 1):
        w = 0.05 * jax.random.normal(next(keys), (cout, cin, 2, 2), jnp.float32)
        b = 0.05 * jax.random.normal(next(keys), (cout,), jnp.float32)
        gamma = 1.0 + 0.05 * jax.random.normal(next(keys), (cout,), jnp.float32)
        # TODO(synk): BatchNorm implemented in eval mode (running stats); PyTorch
        # training-mode batch statistics are not reproduced inside the kernel.
        params["conv%d" % i] = dict(
            w=w, b=b, gamma=gamma,
            beta=jnp.zeros((cout,), jnp.float32),
            mean=jnp.zeros((cout,), jnp.float32),
            var=jnp.ones((cout,), jnp.float32))
    params["fc1"] = dict(
        w=0.01 * jax.random.normal(next(keys), (1024, 128 * 8 * 8), jnp.float32),
        b=0.01 * jax.random.normal(next(keys), (1024,), jnp.float32))
    params["fc2"] = dict(
        w=0.05 * jax.random.normal(next(keys), (1, 1024), jnp.float32),
        b=0.05 * jax.random.normal(next(keys), (1,), jnp.float32))
    return params


# -----------------------------------------------------------------------------
# Pure-JAX (f32) reference for correctness check
# -----------------------------------------------------------------------------
def reference_forward(params, imgs, labels):
    out = imgs
    for i in range(4):
        p = params["conv%d" % (i + 1)]
        out = jax.lax.conv_general_dilated(
            out, p["w"], window_strides=(2, 2), padding="VALID",
            dimension_numbers=("NCHW", "OIHW", "NCHW"))
        out = out + p["b"][None, :, None, None]
        scale = p["gamma"] / jnp.sqrt(p["var"] + BN_EPS)
        shift = p["beta"] - p["mean"] * scale
        out = jnp.maximum(out * scale[None, :, None, None]
                          + shift[None, :, None, None], 0.0)
        if i == 0:
            n, _, h, w = out.shape
            lab = jnp.broadcast_to(labels[:, :, None, None],
                                   (n, labels.shape[1], h, w))
            out = jnp.concatenate([out, lab], axis=1)
    out = out.reshape(out.shape[0], -1)
    p = params["fc1"]
    out = out @ p["w"].T + p["b"]
    out = jnp.where(out >= 0, out, 0.01 * out)
    p = params["fc2"]
    return out @ p["w"].T + p["b"]


if __name__ == "__main__":
    key = jax.random.PRNGKey(0)
    k_params, k_img, k_lab = jax.random.split(key, 3)

    params = init_params(k_params)
    prepped = prepare_params(params)
    imgs = jax.random.normal(k_img, (2, 3, 128, 128), jnp.float32)       # NCHW
    labels = jax.random.normal(k_lab, (2, NUM_LABELS), jnp.float32)

    out = discriminator_img_forward(prepped, imgs, labels)
    out = jax.block_until_ready(out)

    ref = jax.block_until_ready(reference_forward(params, imgs, labels))
    assert out.shape == (2, 1)
    # Tolerance accounts for bf16 fc1 weights/activations (f32 accumulation).
    np.testing.assert_allclose(np.asarray(out), np.asarray(ref),
                               rtol=1e-2, atol=1e-3)
    print("KERNEL_OK")
</pallas_src>

<mosaic_0001>
module attributes {stable_mosaic.version = 11 : i64} {
  func.func @_conv_stack_kernel(%arg0: i32, %arg1: memref<1x4096x12xf32, #tpu.memory_space<vmem>>, %arg2: memref<12x16xf32, #tpu.memory_space<vmem>>, %arg3: memref<1x16xf32, #tpu.memory_space<vmem>>, %arg4: memref<4x16x32xf32, #tpu.memory_space<vmem>>, %arg5: memref<1x1x32xf32, #tpu.memory_space<vmem>>, %arg6: memref<4x32x64xf32, #tpu.memory_space<vmem>>, %arg7: memref<1x64xf32, #tpu.memory_space<vmem>>, %arg8: memref<4x64x128xf32, #tpu.memory_space<vmem>>, %arg9: memref<1x128xf32, #tpu.memory_space<vmem>>, %arg10: memref<1x64x128xf32, #tpu.memory_space<vmem>>) attributes {dimension_semantics = [#tpu.dimension_semantics<parallel>], iteration_bounds = array<i64: 2>, scalar_prefetch = 0 : i64, scratch_operands = 0 : i64, tpu.core_type = #tpu.core_type<tc>, window_params = [{transform_indices = @transform_0, window_bounds = array<i64: 1, 4096, 12>}, {pipeline_mode = #tpu.pipeline_mode<synchronous>, transform_indices = @transform_1, window_bounds = array<i64: 12, 16>}, {pipeline_mode = #tpu.pipeline_mode<synchronous>, transform_indices = @transform_2, window_bounds = array<i64: 1, 16>}, {pipeline_mode = #tpu.pipeline_mode<synchronous>, transform_indices = @transform_3, window_bounds = array<i64: 4, 16, 32>}, {transform_indices = @transform_4, window_bounds = array<i64: 1, 1, 32>}, {pipeline_mode = #tpu.pipeline_mode<synchronous>, transform_indices = @transform_5, window_bounds = array<i64: 4, 32, 64>}, {pipeline_mode = #tpu.pipeline_mode<synchronous>, transform_indices = @transform_6, window_bounds = array<i64: 1, 64>}, {pipeline_mode = #tpu.pipeline_mode<synchronous>, transform_indices = @transform_7, window_bounds = array<i64: 4, 64, 128>}, {pipeline_mode = #tpu.pipeline_mode<synchronous>, transform_indices = @transform_8, window_bounds = array<i64: 1, 128>}, {transform_indices = @transform_9, window_bounds = array<i64: 1, 64, 128>}]} {
    %c0 = arith.constant 0 : index
    %c0_0 = arith.constant 0 : index
    %c0_1 = arith.constant 0 : index
    %0 = vector.load %arg1[%c0, %c0_0, %c0_1] : memref<1x4096x12xf32, #tpu.memory_space<vmem>>, vector<1x4096x12xf32>
    %1 = vector.shape_cast %0 : vector<1x4096x12xf32> to vector<4096x12xf32>
    %c0_2 = arith.constant 0 : index
    %c0_3 = arith.constant 0 : index
    %2 = vector.load %arg2[%c0_2, %c0_3] : memref<12x16xf32, #tpu.memory_space<vmem>>, vector<12x16xf32>
    %cst = arith.constant dense<0.000000e+00> : vector<4096x16xf32>
    %3 = tpu.matmul %1, %2, %cst {dimension_numbers = #tpu.dot_dimension_numbers<[1], [0], [0], [1], [0, 0, 1, 1], [], []>} : vector<4096x12xf32>, vector<12x16xf32>, vector<4096x16xf32> -> vector<4096x16xf32>
    %c0_4 = arith.constant 0 : index
    %c0_5 = arith.constant 0 : index
    %4 = vector.load %arg3[%c0_4, %c0_5] : memref<1x16xf32, #tpu.memory_space<vmem>>, vector<1x16xf32>
    %5 = vector.broadcast %4 : vector<1x16xf32> to vector<4096x16xf32>
    %6 = arith.addf %3, %5 : vector<4096x16xf32>
    %cst_6 = arith.constant 0.000000e+00 : f32
    %7 = vector.broadcast %cst_6 : f32 to vector<4096x16xf32>
    %8 = arith.maximumf %6, %7 : vector<4096x16xf32>
    %c0_7 = arith.constant 0 : index
    %c0_8 = arith.constant 0 : index
    %c0_9 = arith.constant 0 : index
    %9 = vector.load %arg5[%c0_7, %c0_8, %c0_9] : memref<1x1x32xf32, #tpu.memory_space<vmem>>, vector<1x1x32xf32>
    %10 = vector.shape_cast %9 : vector<1x1x32xf32> to vector<1x32xf32>
    %11 = vector.extract_strided_slice %8 {offsets = [0, 0], sizes = [1024, 16], strides = [1, 1]} : vector<4096x16xf32> to vector<1024x16xf32>
    %c0_10 = arith.constant 0 : index
    %c0_11 = arith.constant 0 : index
    %c0_12 = arith.constant 0 : index
    %12 = vector.load %arg4[%c0_10, %c0_11, %c0_12] : memref<4x16x32xf32, #tpu.memory_space<vmem>>, vector<1x16x32xf32>
    %13 = vector.shape_cast %12 : vector<1x16x32xf32> to vector<16x32xf32>
    %cst_13 = arith.constant dense<0.000000e+00> : vector<1024x32xf32>
    %14 = tpu.matmul %11, %13, %cst_13 {dimension_numbers = #tpu.dot_dimension_numbers<[1], [0], [0], [1], [0, 0, 1, 1], [], []>} : vector<1024x16xf32>, vector<16x32xf32>, vector<1024x32xf32> -> vector<1024x32xf32>
    %15 = vector.broadcast %10 : vector<1x32xf32> to vector<1024x32xf32>
    %16 = arith.addf %15, %14 : vector<1024x32xf32>
    %17 = vector.extract_strided_slice %8 {offsets = [1024, 0], sizes = [1024, 16], strides = [1, 1]} : vector<4096x16xf32> to vector<1024x16xf32>
    %c1 = arith.constant 1 : index
    %c0_14 = arith.constant 0 : index
    %c0_15 = arith.constant 0 : index
    %18 = vector.load %arg4[%c1, %c0_14, %c0_15] : memref<4x16x32xf32, #tpu.memory_space<vmem>>, vector<1x16x32xf32>
    %19 = vector.shape_cast %18 : vector<1x16x32xf32> to vector<16x32xf32>
    %cst_16 = arith.constant dense<0.000000e+00> : vector<1024x32xf32>
    %20 = tpu.matmul %17, %19, %cst_16 {dimension_numbers = #tpu.dot_dimension_numbers<[1], [0], [0], [1], [0, 0, 1, 1], [], []>} : vector<1024x16xf32>, vector<16x32xf32>, vector<1024x32xf32> -> vector<1024x32xf32>
    %21 = arith.addf %16, %20 : vector<1024x32xf32>
    %22 = vector.extract_strided_slice %8 {offsets = [2048, 0], sizes = [1024, 16], strides = [1, 1]} : vector<4096x16xf32> to vector<1024x16xf32>
    %c2 = arith.constant 2 : index
    %c0_17 = arith.constant 0 : index
    %c0_18 = arith.constant 0 : index
    %23 = vector.load %arg4[%c2, %c0_17, %c0_18] : memref<4x16x32xf32, #tpu.memory_space<vmem>>, vector<1x16x32xf32>
    %24 = vector.shape_cast %23 : vector<1x16x32xf32> to vector<16x32xf32>
    %cst_19 = arith.constant dense<0.000000e+00> : vector<1024x32xf32>
    %25 = tpu.matmul %22, %24, %cst_19 {dimension_numbers = #tpu.dot_dimension_numbers<[1], [0], [0], [1], [0, 0, 1, 1], [], []>} : vector<1024x16xf32>, vector<16x32xf32>, vector<1024x32xf32> -> vector<1024x32xf32>
    %26 = arith.addf %21, %25 : vector<1024x32xf32>
    %27 = vector.extract_strided_slice %8 {offsets = [3072, 0], sizes = [1024, 16], strides = [1, 1]} : vector<4096x16xf32> to vector<1024x16xf32>
    %c3 = arith.constant 3 : index
    %c0_20 = arith.constant 0 : index
    %c0_21 = arith.constant 0 : index
    %28 = vector.load %arg4[%c3, %c0_20, %c0_21] : memref<4x16x32xf32, #tpu.memory_space<vmem>>, vector<1x16x32xf32>
    %29 = vector.shape_cast %28 : vector<1x16x32xf32> to vector<16x32xf32>
    %cst_22 = arith.constant dense<0.000000e+00> : vector<1024x32xf32>
    %30 = tpu.matmul %27, %29, %cst_22 {dimension_numbers = #tpu.dot_dimension_numbers<[1], [0], [0], [1], [0, 0, 1, 1], [], []>} : vector<1024x16xf32>, vector<16x32xf32>, vector<1024x32xf32> -> vector<1024x32xf32>
    %31 = arith.addf %26, %30 : vector<1024x32xf32>
    %cst_23 = arith.constant 0.000000e+00 : f32
    %32 = vector.broadcast %cst_23 : f32 to vector<1024x32xf32>
    %33 = arith.maximumf %31, %32 : vector<1024x32xf32>
    %c0_24 = arith.constant 0 : index
    %c0_25 = arith.constant 0 : index
    %34 = vector.load %arg7[%c0_24, %c0_25] : memref<1x64xf32, #tpu.memory_space<vmem>>, vector<1x64xf32>
    %35 = vector.extract_strided_slice %33 {offsets = [0, 0], sizes = [256, 32], strides = [1, 1]} : vector<1024x32xf32> to vector<256x32xf32>
    %c0_26 = arith.constant 0 : index
    %c0_27 = arith.constant 0 : index
    %c0_28 = arith.constant 0 : index
    %36 = vector.load %arg6[%c0_26, %c0_27, %c0_28] : memref<4x32x64xf32, #tpu.memory_space<vmem>>, vector<1x32x64xf32>
    %37 = vector.shape_cast %36 : vector<1x32x64xf32> to vector<32x64xf32>
    %cst_29 = arith.constant dense<0.000000e+00> : vector<256x64xf32>
    %38 = tpu.matmul %35, %37, %cst_29 {dimension_numbers = #tpu.dot_dimension_numbers<[1], [0], [0], [1], [0, 0, 1, 1], [], []>} : vector<256x32xf32>, vector<32x64xf32>, vector<256x64xf32> -> vector<256x64xf32>
    %39 = vector.broadcast %34 : vector<1x64xf32> to vector<256x64xf32>
    %40 = arith.addf %39, %38 : vector<256x64xf32>
    %41 = vector.extract_strided_slice %33 {offsets = [256, 0], sizes = [256, 32], strides = [1, 1]} : vector<1024x32xf32> to vector<256x32xf32>
    %c1_30 = arith.constant 1 : index
    %c0_31 = arith.constant 0 : index
    %c0_32 = arith.constant 0 : index
    %42 = vector.load %arg6[%c1_30, %c0_31, %c0_32] : memref<4x32x64xf32, #tpu.memory_space<vmem>>, vector<1x32x64xf32>
    %43 = vector.shape_cast %42 : vector<1x32x64xf32> to vector<32x64xf32>
    %cst_33 = arith.constant dense<0.000000e+00> : vector<256x64xf32>
    %44 = tpu.matmul %41, %43, %cst_33 {dimension_numbers = #tpu.dot_dimension_numbers<[1], [0], [0], [1], [0, 0, 1, 1], [], []>} : vector<256x32xf32>, vector<32x64xf32>, vector<256x64xf32> -> vector<256x64xf32>
    %45 = arith.addf %40, %44 : vector<256x64xf32>
    %46 = vector.extract_strided_slice %33 {offsets = [512, 0], sizes = [256, 32], strides = [1, 1]} : vector<1024x32xf32> to vector<256x32xf32>
    %c2_34 = arith.constant 2 : index
    %c0_35 = arith.constant 0 : index
    %c0_36 = arith.constant 0 : index
    %47 = vector.load %arg6[%c2_34, %c0_35, %c0_36] : memref<4x32x64xf32, #tpu.memory_space<vmem>>, vector<1x32x64xf32>
    %48 = vector.shape_cast %47 : vector<1x32x64xf32> to vector<32x64xf32>
    %cst_37 = arith.constant dense<0.000000e+00> : vector<256x64xf32>
    %49 = tpu.matmul %46, %48, %cst_37 {dimension_numbers = #tpu.dot_dimension_numbers<[1], [0], [0], [1], [0, 0, 1, 1], [], []>} : vector<256x32xf32>, vector<32x64xf32>, vector<256x64xf32> -> vector<256x64xf32>
    %50 = arith.addf %45, %49 : vector<256x64xf32>
    %51 = vector.extract_strided_slice %33 {offsets = [768, 0], sizes = [256, 32], strides = [1, 1]} : vector<1024x32xf32> to vector<256x32xf32>
    %c3_38 = arith.constant 3 : index
    %c0_39 = arith.constant 0 : index
    %c0_40 = arith.constant 0 : index
    %52 = vector.load %arg6[%c3_38, %c0_39, %c0_40] : memref<4x32x64xf32, #tpu.memory_space<vmem>>, vector<1x32x64xf32>
    %53 = vector.shape_cast %52 : vector<1x32x64xf32> to vector<32x64xf32>
    %cst_41 = arith.constant dense<0.000000e+00> : vector<256x64xf32>
    %54 = tpu.matmul %51, %53, %cst_41 {dimension_numbers = #tpu.dot_dimension_numbers<[1], [0], [0], [1], [0, 0, 1, 1], [], []>} : vector<256x32xf32>, vector<32x64xf32>, vector<256x64xf32> -> vector<256x64xf32>
    %55 = arith.addf %50, %54 : vector<256x64xf32>
    %cst_42 = arith.constant 0.000000e+00 : f32
    %56 = vector.broadcast %cst_42 : f32 to vector<256x64xf32>
    %57 = arith.maximumf %55, %56 : vector<256x64xf32>
    %c0_43 = arith.constant 0 : index
    %c0_44 = arith.constant 0 : index
    %58 = vector.load %arg9[%c0_43, %c0_44] : memref<1x128xf32, #tpu.memory_space<vmem>>, vector<1x128xf32>
    %59 = vector.extract_strided_slice %57 {offsets = [0, 0], sizes = [64, 64], strides = [1, 1]} : vector<256x64xf32> to vector<64x64xf32>
    %c0_45 = arith.constant 0 : index
    %c0_46 = arith.constant 0 : index
    %c0_47 = arith.constant 0 : index
    %60 = vector.load %arg8[%c0_45, %c0_46, %c0_47] : memref<4x64x128xf32, #tpu.memory_space<vmem>>, vector<1x64x128xf32>
    %61 = vector.shape_cast %60 : vector<1x64x128xf32> to vector<64x128xf32>
    %cst_48 = arith.constant dense<0.000000e+00> : vector<64x128xf32>
    %62 = tpu.matmul %59, %61, %cst_48 {dimension_numbers = #tpu.dot_dimension_numbers<[1], [0], [0], [1], [0, 0, 1, 1], [], []>} : vector<64x64xf32>, vector<64x128xf32>, vector<64x128xf32> -> vector<64x128xf32>
    %63 = vector.broadcast %58 : vector<1x128xf32> to vector<64x128xf32>
    %64 = arith.addf %63, %62 : vector<64x128xf32>
    %65 = vector.extract_strided_slice %57 {offsets = [64, 0], sizes = [64, 64], strides = [1, 1]} : vector<256x64xf32> to vector<64x64xf32>
    %c1_49 = arith.constant 1 : index
    %c0_50 = arith.constant 0 : index
    %c0_51 = arith.constant 0 : index
    %66 = vector.load %arg8[%c1_49, %c0_50, %c0_51] : memref<4x64x128xf32, #tpu.memory_space<vmem>>, vector<1x64x128xf32>
    %67 = vector.shape_cast %66 : vector<1x64x128xf32> to vector<64x128xf32>
    %cst_52 = arith.constant dense<0.000000e+00> : vector<64x128xf32>
    %68 = tpu.matmul %65, %67, %cst_52 {dimension_numbers = #tpu.dot_dimension_numbers<[1], [0], [0], [1], [0, 0, 1, 1], [], []>} : vector<64x64xf32>, vector<64x128xf32>, vector<64x128xf32> -> vector<64x128xf32>
    %69 = arith.addf %64, %68 : vector<64x128xf32>
    %70 = vector.extract_strided_slice %57 {offsets = [128, 0], sizes = [64, 64], strides = [1, 1]} : vector<256x64xf32> to vector<64x64xf32>
    %c2_53 = arith.constant 2 : index
    %c0_54 = arith.constant 0 : index
    %c0_55 = arith.constant 0 : index
    %71 = vector.load %arg8[%c2_53, %c0_54, %c0_55] : memref<4x64x128xf32, #tpu.memory_space<vmem>>, vector<1x64x128xf32>
    %72 = vector.shape_cast %71 : vector<1x64x128xf32> to vector<64x128xf32>
    %cst_56 = arith.constant dense<0.000000e+00> : vector<64x128xf32>
    %73 = tpu.matmul %70, %72, %cst_56 {dimension_numbers = #tpu.dot_dimension_numbers<[1], [0], [0], [1], [0, 0, 1, 1], [], []>} : vector<64x64xf32>, vector<64x128xf32>, vector<64x128xf32> -> vector<64x128xf32>
    %74 = arith.addf %69, %73 : vector<64x128xf32>
    %75 = vector.extract_strided_slice %57 {offsets = [192, 0], sizes = [64, 64], strides = [1, 1]} : vector<256x64xf32> to vector<64x64xf32>
    %c3_57 = arith.constant 3 : index
    %c0_58 = arith.constant 0 : index
    %c0_59 = arith.constant 0 : index
    %76 = vector.load %arg8[%c3_57, %c0_58, %c0_59] : memref<4x64x128xf32, #tpu.memory_space<vmem>>, vector<1x64x128xf32>
    %77 = vector.shape_cast %76 : vector<1x64x128xf32> to vector<64x128xf32>
    %cst_60 = arith.constant dense<0.000000e+00> : vector<64x128xf32>
    %78 = tpu.matmul %75, %77, %cst_60 {dimension_numbers = #tpu.dot_dimension_numbers<[1], [0], [0], [1], [0, 0, 1, 1], [], []>} : vector<64x64xf32>, vector<64x128xf32>, vector<64x128xf32> -> vector<64x128xf32>
    %79 = arith.addf %74, %78 : vector<64x128xf32>
    %cst_61 = arith.constant 0.000000e+00 : f32
    %80 = vector.broadcast %cst_61 : f32 to vector<64x128xf32>
    %81 = arith.maximumf %79, %80 : vector<64x128xf32>
    %c0_62 = arith.constant 0 : index
    %c0_63 = arith.constant 0 : index
    %c0_64 = arith.constant 0 : index
    %82 = vector.load %arg10[%c0_62, %c0_63, %c0_64] : memref<1x64x128xf32, #tpu.memory_space<vmem>>, vector<1x64x128xf32>
    %83 = vector.shape_cast %82 : vector<1x64x128xf32> to vector<64x128xf32>
    %84 = vector.shape_cast %81 : vector<64x128xf32> to vector<1x64x128xf32>
    tpu.vector_store %arg10[%c0_62, %c0_63, %c0_64], %84 {strides = array<i32>} : memref<1x64x128xf32, #tpu.memory_space<vmem>>, vector<1x64x128xf32>,
    return
  }
  func.func @transform_0(%arg0: i32) -> (i32, i32, i32) {
    %c0_i32 = arith.constant 0 : i32
    %c0_i32_0 = arith.constant 0 : i32
    %c0_i32_1 = arith.constant 0 : i32
    return %arg0, %c0_i32, %c0_i32_0 : i32, i32, i32
  }
  func.func @transform_1(%arg0: i32) -> (i32, i32) {
    %c0_i32 = arith.constant 0 : i32
    %c0_i32_0 = arith.constant 0 : i32
    %c0_i32_1 = arith.constant 0 : i32
    return %c0_i32, %c0_i32_0 : i32, i32
  }
  func.func @transform_2(%arg0: i32) -> (i32, i32) {
    %c0_i32 = arith.constant 0 : i32
    %c0_i32_0 = arith.constant 0 : i32
    %c0_i32_1 = arith.constant 0 : i32
    return %c0_i32, %c0_i32_0 : i32, i32
  }
  func.func @transform_3(%arg0: i32) -> (i32, i32, i32) {
    %c0_i32 = arith.constant 0 : i32
    %c0_i32_0 = arith.constant 0 : i32
    %c0_i32_1 = arith.constant 0 : i32
    %c0_i32_2 = arith.constant 0 : i32
    return %c0_i32, %c0_i32_0, %c0_i32_1 : i32, i32, i32
  }
  func.func @transform_4(%arg0: i32) -> (i32, i32, i32) {
    %c0_i32 = arith.constant 0 : i32
    %c0_i32_0 = arith.constant 0 : i32
    %c0_i32_1 = arith.constant 0 : i32
    return %arg0, %c0_i32, %c0_i32_0 : i32, i32, i32
  }
  func.func @transform_5(%arg0: i32) -> (i32, i32, i32) {
    %c0_i32 = arith.constant 0 : i32
    %c0_i32_0 = arith.constant 0 : i32
    %c0_i32_1 = arith.constant 0 : i32
    %c0_i32_2 = arith.constant 0 : i32
    return %c0_i32, %c0_i32_0, %c0_i32_1 : i32, i32, i32
  }
  func.func @transform_6(%arg0: i32) -> (i32, i32) {
    %c0_i32 = arith.constant 0 : i32
    %c0_i32_0 = arith.constant 0 : i32
    %c0_i32_1 = arith.constant 0 : i32
    return %c0_i32, %c0_i32_0 : i32, i32
  }
  func.func @transform_7(%arg0: i32) -> (i32, i32, i32) {
    %c0_i32 = arith.constant 0 : i32
    %c0_i32_0 = arith.constant 0 : i32
    %c0_i32_1 = arith.constant 0 : i32
    %c0_i32_2 = arith.constant 0 : i32
    return %c0_i32, %c0_i32_0, %c0_i32_1 : i32, i32, i32
  }
  func.func @transform_8(%arg0: i32) -> (i32, i32) {
    %c0_i32 = arith.constant 0 : i32
    %c0_i32_0 = arith.constant 0 : i32
    %c0_i32_1 = arith.constant 0 : i32
    return %c0_i32, %c0_i32_0 : i32, i32
  }
  func.func @transform_9(%arg0: i32) -> (i32, i32, i32) {
    %c0_i32 = arith.constant 0 : i32
    %c0_i32_0 = arith.constant 0 : i32
    %c0_i32_1 = arith.constant 0 : i32
    return %arg0, %c0_i32, %c0_i32_0 : i32, i32, i32
  }
}

module attributes {stable_mosaic.version = 11 : i64} {
  func.func @_fc1_kernel(%arg0: i32, %arg1: i32, %arg2: memref<2x4096xf32, #tpu.memory_space<vmem>>, %arg3: memref<4096x512xbf16, #tpu.memory_space<vmem>>, %arg4: memref<1x512xf32, #tpu.memory_space<vmem>>, %arg5: memref<2x512xf32, #tpu.memory_space<vmem>>, %arg6: memref<2x512xf32, #tpu.memory_space<vmem>>) attributes {dimension_semantics = [#tpu.dimension_semantics<parallel>, #tpu.dimension_semantics<arbitrary>], iteration_bounds = array<i64: 2, 2>, scalar_prefetch = 0 : i64, scratch_operands = 1 : i64, tpu.core_type = #tpu.core_type<tc>, window_params = [{transform_indices = @transform_0, window_bounds = array<i64: 2, 4096>}, {transform_indices = @transform_1, window_bounds = array<i64: 4096, 512>}, {transform_indices = @transform_2, window_bounds = array<i64: 1, 512>}, {transform_indices = @transform_3, window_bounds = array<i64: 2, 512>}]} {
    %c0_i32 = arith.constant 0 : i32
    %0 = arith.cmpi eq, %arg1, %c0_i32 : i32
    %1 = arith.extui %0 : i1 to i32
    %c0_i32_0 = arith.constant 0 : i32
    %2 = arith.cmpi ne, %1, %c0_i32_0 : i32
    scf.if %2 {
      %cst_9 = arith.constant 0.000000e+00 : f32
      %13 = vector.broadcast %cst_9 : f32 to vector<2x512xf32>
      %c0_10 = arith.constant 0 : index
      %c0_11 = arith.constant 0 : index
      %14 = vector.load %arg6[%c0_10, %c0_11] : memref<2x512xf32, #tpu.memory_space<vmem>>, vector<2x512xf32>
      tpu.vector_store %arg6[%c0_10, %c0_11], %13 {strides = array<i32>} : memref<2x512xf32, #tpu.memory_space<vmem>>, vector<2x512xf32>,
    } else {
    }
    %c0 = arith.constant 0 : index
    %c0_1 = arith.constant 0 : index
    %3 = vector.load %arg6[%c0, %c0_1] : memref<2x512xf32, #tpu.memory_space<vmem>>, vector<2x512xf32>
    %c0_2 = arith.constant 0 : index
    %c0_3 = arith.constant 0 : index
    %4 = vector.load %arg2[%c0_2, %c0_3] : memref<2x4096xf32, #tpu.memory_space<vmem>>, vector<2x4096xf32>
    %5 = arith.truncf %4 : vector<2x4096xf32> to vector<2x4096xbf16>
    %c0_4 = arith.constant 0 : index
    %c0_5 = arith.constant 0 : index
    %6 = vector.load %arg3[%c0_4, %c0_5] : memref<4096x512xbf16, #tpu.memory_space<vmem>>, vector<4096x512xbf16>
    %cst = arith.constant dense<0.000000e+00> : vector<2x512xf32>
    %7 = tpu.matmul %5, %6, %cst {dimension_numbers = #tpu.dot_dimension_numbers<[1], [0], [0], [1], [0, 0, 1, 1], [], []>} : vector<2x4096xbf16>, vector<4096x512xbf16>, vector<2x512xf32> -> vector<2x512xf32>
    %8 = arith.addf %3, %7 : vector<2x512xf32>
    %c0_6 = arith.constant 0 : index
    %c0_7 = arith.constant 0 : index
    %9 = vector.load %arg6[%c0_6, %c0_7] : memref<2x512xf32, #tpu.memory_space<vmem>>, vector<2x512xf32>
    tpu.vector_store %arg6[%c0_6, %c0_7], %8 {strides = array<i32>} : memref<2x512xf32, #tpu.memory_space<vmem>>, vector<2x512xf32>,
    %c1_i32 = arith.constant 1 : i32
    %10 = arith.cmpi eq, %arg1, %c1_i32 : i32
    %11 = arith.extui %10 : i1 to i32
    %c0_i32_8 = arith.constant 0 : i32
    %12 = arith.cmpi ne, %11, %c0_i32_8 : i32
    scf.if %12 {
      %c0_9 = arith.constant 0 : index
      %c0_10 = arith.constant 0 : index
      %13 = vector.load %arg6[%c0_9, %c0_10] : memref<2x512xf32, #tpu.memory_space<vmem>>, vector<2x512xf32>
      %c0_11 = arith.constant 0 : index
      %c0_12 = arith.constant 0 : index
      %14 = vector.load %arg4[%c0_11, %c0_12] : memref<1x512xf32, #tpu.memory_space<vmem>>, vector<1x512xf32>
      %15 = vector.broadcast %14 : vector<1x512xf32> to vector<2x512xf32>
      %16 = arith.addf %13, %15 : vector<2x512xf32>
      %cst_13 = arith.constant 0.000000e+00 : f32
      %17 = vector.broadcast %cst_13 : f32 to vector<2x512xf32>
      %18 = arith.cmpf oge, %16, %17 : vector<2x512xf32>
      %cst_14 = arith.constant 0.00999999977 : f32
      %19 = vector.broadcast %cst_14 : f32 to vector<2x512xf32>
      %20 = arith.mulf %19, %16 : vector<2x512xf32>
      %21 = arith.select %18, %16, %20 : vector<2x512xi1>, vector<2x512xf32>
      %c0_15 = arith.constant 0 : index
      %c0_16 = arith.constant 0 : index
      %22 = vector.load %arg5[%c0_15, %c0_16] : memref<2x512xf32, #tpu.memory_space<vmem>>, vector<2x512xf32>
      tpu.vector_store %arg5[%c0_15, %c0_16], %21 {strides = array<i32>} : memref<2x512xf32, #tpu.memory_space<vmem>>, vector<2x512xf32>,
    } else {
    }
    return
  }
  func.func @transform_0(%arg0: i32, %arg1: i32) -> (i32, i32) {
    %c0_i32 = arith.constant 0 : i32
    %c0_i32_0 = arith.constant 0 : i32
    return %c0_i32, %arg1 : i32, i32
  }
  func.func @transform_1(%arg0: i32, %arg1: i32) -> (i32, i32) {
    %c0_i32 = arith.constant 0 : i32
    return %arg1, %arg0 : i32, i32
  }
  func.func @transform_2(%arg0: i32, %arg1: i32) -> (i32, i32) {
    %c0_i32 = arith.constant 0 : i32
    %c0_i32_0 = arith.constant 0 : i32
    return %c0_i32, %arg0 : i32, i32
  }
  func.func @transform_3(%arg0: i32, %arg1: i32) -> (i32, i32) {
    %c0_i32 = arith.constant 0 : i32
    %c0_i32_0 = arith.constant 0 : i32
    return %c0_i32, %arg0 : i32, i32
  }
}

</mosaic_0001>

<bundles_post_ra>
// kernel: discriminator_img_forward.3
= control target key start
LH: loop header
LB: loop body
LE: loop exit
PB: predicated region body
PF: predicated region fallthrough
CT: control target
= control target key end

     0   :  { %8 = vsyncpa [#allocation4], 0  ;;  %s12371_s0 = inlined_call_operand.vmem [shape: f32[2,8192], index: 0, kind: input, shape index: {}]   ;;  %s12372_s1 = inlined_call_operand.hbm [shape: bf16[8192,1024], index: 1, kind: input, shape index: {}]   ;;  %s12373_s2 = inlined_call_operand.vmem [shape: f32[1,1024], index: 2, kind: input, shape index: {}]   ;;  %s12374_s3 = inlined_call_operand.vmem [shape: f32[2,1024], index: 3, kind: output, shape index: {}]  }
   0x1   :  { %10 = vsyncpa [#allocation4 + $0x1], 0  ;;  %s11012_s12 = smov 0   ;;  %s11014_s13 = smov 0  }
   0x2   :  { %s11016_s14 = smov 0   ;;  %s11018_s15 = smov 0  }
   0x3   :  { %s11020_s16 = smov 0   ;;  %s11022_s17 = smov 0  }
   0x4   :  { %s11024_s18 = smov 0   ;;  %s11026_s19 = smov 0  }
   0x5 LB: > { %s8103_s20 = sadd.s32 4294967295, %s10984_s19   ;;  %s25_s21 = sadd.s32 1, %s10976_s17  ;;  %s10984_s19 = sphi %s11026_s19, %s16_s19   ;;  %s10980_s18 = sphi %s11024_s18, %s12384_s18   ;;  %s10976_s17 = sphi %s11022_s17, %s12383_s17   ;;  %s10972_s16 = sphi %s11020_s16, %s12382_s16   ;;  %s10968_s15 = sphi %s11018_s15, %s12381_s15   ;;  %s10964_s14 = sphi %s11016_s14, %s12380_s14   ;;  %s10960_s13 = sphi %s11014_s13, %s12379_s13   ;;  %s10956_s12 = sphi %s11012_s12, %s12378_s12  }
   0x6   : > { %p26_p0 = scmp.ge.s32.totalorder %s25_s21, 2  ;;  %s28_s22 = sadd.s32 1, %s10980_s18 }
   0x7   : > { %s63_s23 = sadd.s32 1, %s10964_s14  ;;  %p70_p1 = scmp.ne.s32.totalorder %s10964_s14, %s10960_s13 }
   0x8   : > { %s12386_s21 = smov (%p26_p0, %s25_s21), 0  ;;  %s12388_s22 = smov (!%p26_p0, %s28_s22), %s10980_s18 }
   0x9   : > { %s58_s24 = ssub.s32 %s10976_s17, %s12386_s21  ;;  %p71_p2 = scmp.eq.s32.totalorder %s10984_s19, 0 }
   0xa   : > { %p30_p3 = scmp.ge.s32.totalorder %s12388_s22, 2  ;;  %p76_p4 = scmp.ne.s32.totalorder %s10960_s13, %s10956_s12 }
   0xb   : > { %p11063_p5 = por %p71_p2, %p70_p1  ;;  %p77_p6 = scmp.eq.s32.totalorder %s8103_s20, 0 }
   0xc   : > { %s12390_s22 = smov (%p30_p3, %s12388_s22), 0  ;;  %p9274_p8 = scmp.lt.s32.totalorder %s10984_s19, 4 }
   0xd   : > { %p11069_p7 = por %p77_p6, %p76_p4  ;;  %s59_s27 = ssub.s32 %s10980_s18, %s12390_s22 }
   0xe   : > { %s60_s28 = sor.u32 %s59_s27, %s58_s24  ;;  %s161_s29 = sand.u32 1, %s10964_s14  }
   0xf   : > { %p61_p9 = scmp.eq.s32.totalorder %s60_s28, 0  ;;  %s8107_s30 = sshll.u32 %s161_s29, 13 }
  0x10   : > { %s8109_s4 = sshll.u32 %s10980_s18, 2  ;;  %s9147_s6 = sshll.u32 %s10976_s17, 12 }
  0x11   : > { %s11079_s5 = scalar_select %p61_p9, %s10964_s14, %s63_s23  }
  0x12   : > { %s172_s7 = sadd.s32 %s9147_s6, %s8109_s4  ;;  %s165_s8 = scalar_lea.vmem [#allocation3], %s8107_s30 }
  0x13   : > { %s175_s9 = sshll.u32 %s165_s8, 4  ;;  %s8111_s10 = sshll.u32 %s172_s7, 6  ;;  %s11082_s9 = int_to_ptr.vmem [resolvable:$true] %s175_s9 }
  0x14   : > { %s11087_s20 = scalar_lea.hbm %s12372_s1, %s8111_s10  ;;  %p11093_p10 = pnand %p9274_p8, %p11063_p5 }
  0x15   : > { %s11097_s24 = scalar_lea.sflag [#allocation4], %s161_s29  ;;  %s10888_s27 = scalar_lea.hbm %s11087_s20, 131072 }
  0x16   : > { %p10889_p11 = scmp.ne.s32.totalorder %s11087_s20, %s10888_s27  ;;  %p10890_p12 = pneg %p11093_p10 }
  0x17   : > { %s10893_s30 = scalar_lea.hbm %s12372_s1, 524288  ;;  %p10894_p1 = scmp.lt.u32.totalorder %s11087_s20, %s12372_s1 }
  0x18   : > { %p10891_p13 = pnand %p10890_p12, %p10889_p11  ;;  %p10895_p2 = scmp.lt.u32.totalorder %s10893_s30, %s10888_s27 }
  0x19   : > { %p10897_p4 = scmp.lt.u32.totalorder %s10888_s27, %s11087_s20 }
  0x1a   : > { %p10892_p0 = pneg %p10891_p13  ;;  %p10896_p3 = por %p10895_p2, %p10894_p1 }
  0x1c   : > { %p10898_p5 = por %p10897_p4, %p10896_p3 }
  0x1e   : > { %p10899_p6 = pnand %p10898_p5, %p10892_p0 }
  0x20   : > { %10902 = shalt.err (!%p10899_p6)
}
  0x21   : > { %s10903_s29 = scalar_lea.vmem %s11082_s9, 131072  ;;  %s10986_s7 = smov [#allocation3]  }
  0x22   : > { %p10904_p8 = scmp.ne.s32.totalorder %s11082_s9, %s10903_s29  ;;  %s10908_s8 = sshll.u32 %s10986_s7, 4  ;;  %s10909_s8 = int_to_ptr.vmem [resolvable:$false] %s10908_s8 }
  0x23   : > { %s10910_s10 = scalar_lea.vmem %s10909_s8, 262144  ;;  %p10911_p13 = scmp.lt.s32.totalorder %s11082_s9, %s10909_s8 }
  0x24   : > { %p10906_p9 = pnand %p10904_p8, %p10890_p12  ;;  %p10912_p1 = scmp.lt.s32.totalorder %s10910_s10, %s10903_s29 }
  0x26   : > { %p10907_p11 = pneg %p10906_p9  ;;  %p10913_p2 = por %p10912_p1, %p10911_p13 }
  0x28   : > { %p10914_p3 = pnand %p10913_p2, %p10907_p11 }
  0x2a   : > { %10917 = shalt.err (!%p10914_p3)
}
  0x2b   : > { %s10987_s11 = smov 512   ;;  %s10988_s12 = smov 256  }
  0x2c   : > { %s10989_s27 = smov 16   ;;  %p8112_p12 = scmp.ge.s32.totalorder %s10984_s19, 1 }
  0x2d   : > { %9273 = dma.hbm_to_vmem [thread:$0]  (!%p11093_p10), %s11087_s20, 131072, %s11082_s9, %s11097_s24, %s10987_s11, %s10988_s12, %s10989_s27  }
  0x2e   : > { %p191_p0 = scmp.lt.s32.totalorder %s10984_s19, 5 }
  0x30   : > { %p192_p4 = pnand %p8112_p12, %p191_p0 }
  0x31   : > { %s197_s25 = sand.u32 (!%p192_p4), 1, %s10960_s13  }
  0x32   : > { %195 = sbr.rel (%p192_p4) target bundleno = 1331 (0x533), region = 32  ;;  %s8113_s28 = sshll.u32 (!%p192_p4), %s197_s25, 13 }
  0x33   : > { %s198_s30 = scalar_lea.sflag (!%p192_p4), [#allocation4], %s197_s25  ;;  %s11128_s4 = scalar_lea.vmem (!%p192_p4), [#allocation3], %s8113_s28 }
  0x39   : > { %10951 = dma.done.wait (%p11069_p7), %s198_s30, 131072  }
  0x3a   : > { %10953 = vsyncadd (%p11069_p7), %s198_s30, 4294836224  ;;  %s8114_s23 = sshll.u32 %s10968_s15, 5  ;;  %s8116_s9 = sshll.u32 %s10972_s16, 2 }
  0x3b   : > { %p234_p10 = scmp.lt.s32.totalorder %s8114_s23, 63  ;;  %p242_p5 = scmp.lt.s32.totalorder %s8116_s9, 7 }
  0x3c   : > { %p8119_p7 = scmp.ne.s32.totalorder %s10968_s15, 0 }
  0x3d   : > { %s12392_s23 = smov (!%p234_p10, %s8114_s23), 63  ;;  %s12394_s9 = smov (!%p242_p5, %s8116_s9), 7 }
  0x3e   : > { %s8115_s20 = sshll.u32 %s12392_s23, 1  ;;  %s244_s8 = scalar_lea.vmem %s12373_s2, %s12394_s9  ;;  %v10990_v0 = vmov (!%p8119_p7), 0.0  }
  0x3f   : > { %s11141_s29 = scalar_lea.vmem %s12371_s0, %s8115_s20  ;;  %s8118_s10 = sshll.u32 %s12394_s9, 1  ;;  %256 = vst [vmem:[#allocation2] sm:$0xff] (!%p8119_p7), %v10990_v0 }
  0x40   : > { %s11151_s12 = scalar_lea.vmem %s12374_s3, %s8118_s10  ;;  %255 = sbr.rel (%p8119_p7) target bundleno = 71 (0x47), region = 40 }
  0x47 PF: > { %v9344_v1 = vld [vmem:[%s11128_s4 + $0x4] ss:$16 sps:$4 sm:$0xff]   ;;  %v9346_v2 = vld [vmem:[%s11128_s4 + $0xc] ss:$16 sps:$4 sm:$0xff]   ;;  %v9348_v3 = vld [vmem:[%s11128_s4] ss:$16 sps:$4 sm:$0xff]   ;;  %v278_v39 = vlaneseq }
  0x48   : > { %6618 = vmatprep.subr.bf16.mxu0 %v9344_v1  ;;  %v9349_v4 = vld [vmem:[%s11128_s4 + $0x8] ss:$16 sps:$4 sm:$0xff]   ;;  %7274 = vmatprep.subr.bf16.mxu1 %v9346_v2  ;;  %v9350_v5 = vld [vmem:[%s11128_s4 + $0x24] ss:$16 sps:$4 sm:$0xff]   ;;  %v9352_v6 = vld [vmem:[%s11128_s4 + $0x2c] ss:$16 sps:$4 sm:$0xff]  }
  0x49   : > { %6619 = vmatpush1.bf16.msra.mxu0 %v9348_v3  ;;  %7275 = vmatpush1.bf16.msra.mxu1 %v9349_v4  ;;  %v9354_v7 = vld [vmem:[%s11128_s4 + $0x20] ss:$16 sps:$4 sm:$0xff]   ;;  %v9355_v8 = vld [vmem:[%s11128_s4 + $0x28] ss:$16 sps:$4 sm:$0xff]   ;;  %v9356_v9 = vld [vmem:[%s11128_s4 + $0x44] ss:$16 sps:$4 sm:$0xff]  }
  0x4a   : > { %6620 = vmatprep.subr.bf16.mxu0 %v9350_v5  ;;  %7276 = vmatprep.subr.bf16.mxu1 %v9352_v6  ;;  %v9358_v10 = vld [vmem:[%s11128_s4 + $0x4c] ss:$16 sps:$4 sm:$0xff]   ;;  %v9360_v11 = vld [vmem:[%s11128_s4 + $0x40] ss:$16 sps:$4 sm:$0xff]   ;;  %v9361_v12 = vld [vmem:[%s11128_s4 + $0x48] ss:$16 sps:$4 sm:$0xff]  }
  0x4b   : > { %v9362_v13 = vld [vmem:[%s11128_s4 + $0x64] ss:$16 sps:$4 sm:$0xff]   ;;  %v9364_v14 = vld [vmem:[%s11128_s4 + $0x6c] ss:$16 sps:$4 sm:$0xff]   ;;  %v9366_v15 = vld [vmem:[%s11128_s4 + $0x60] ss:$16 sps:$4 sm:$0xff]  }
  0x4c   : > { %v9367_v16 = vld [vmem:[%s11128_s4 + $0x68] ss:$16 sps:$4 sm:$0xff]   ;;  %v9368_v17 = vld [vmem:[%s11128_s4 + $0x84] ss:$16 sps:$4 sm:$0xff]   ;;  %v9370_v18 = vld [vmem:[%s11128_s4 + $0x8c] ss:$16 sps:$4 sm:$0xff]  }
  0x4d   : > { %6621 = vmatpush1.bf16.msra.mxu0 %v9354_v7  ;;  %7277 = vmatpush1.bf16.msra.mxu1 %v9355_v8  ;;  %v9372_v19 = vld [vmem:[%s11128_s4 + $0x80] ss:$16 sps:$4 sm:$0xff]   ;;  %v9373_v20 = vld [vmem:[%s11128_s4 + $0x88] ss:$16 sps:$4 sm:$0xff]   ;;  %v9374_v21 = vld [vmem:[%s11128_s4 + $0xa4] ss:$16 sps:$4 sm:$0xff]  }
  0x4e   : > { %6622 = vmatprep.subr.bf16.mxu0 %v9356_v9  ;;  %7278 = vmatprep.subr.bf16.mxu1 %v9358_v10  ;;  %v9376_v22 = vld [vmem:[%s11128_s4 + $0xac] ss:$16 sps:$4 sm:$0xff]   ;;  %v9378_v23 = vld [vmem:[%s11128_s4 + $0xa0] ss:$16 sps:$4 sm:$0xff]   ;;  %v9379_v24 = vld [vmem:[%s11128_s4 + $0xa8] ss:$16 sps:$4 sm:$0xff]  }
  0x4f   : > { %v9380_v25 = vld [vmem:[%s11128_s4 + $0xc4] ss:$16 sps:$4 sm:$0xff]   ;;  %v9382_v26 = vld [vmem:[%s11128_s4 + $0xcc] ss:$16 sps:$4 sm:$0xff]   ;;  %v9384_v27 = vld [vmem:[%s11128_s4 + $0xc0] ss:$16 sps:$4 sm:$0xff]  }
  0x50   : > { %v9385_v28 = vld [vmem:[%s11128_s4 + $0xc8] ss:$16 sps:$4 sm:$0xff]   ;;  %v9386_v29 = vld [vmem:[%s11128_s4 + $0xe4] ss:$16 sps:$4 sm:$0xff]   ;;  %v9388_v30 = vld [vmem:[%s11128_s4 + $0xec] ss:$16 sps:$4 sm:$0xff]  }
  0x51   : > { %6623 = vmatpush1.bf16.msra.mxu0 %v9360_v11  ;;  %7279 = vmatpush1.bf16.msra.mxu1 %v9361_v12  ;;  %v9390_v31 = vld [vmem:[%s11128_s4 + $0xe0] ss:$16 sps:$4 sm:$0xff]   ;;  %v9391_v32 = vld [vmem:[%s11128_s4 + $0xe8] ss:$16 sps:$4 sm:$0xff]   ;;  %v9392_v33 = vld [vmem:[%s11128_s4 + $0x104] ss:$16 sps:$4 sm:$0xff]  }
  0x52   : > { %6624 = vmatprep.subr.bf16.mxu0 %v9362_v13  ;;  %7280 = vmatprep.subr.bf16.mxu1 %v9364_v14  ;;  %v9394_v34 = vld [vmem:[%s11128_s4 + $0x10c] ss:$16 sps:$4 sm:$0xff]   ;;  %v9396_v35 = vld [vmem:[%s11128_s4 + $0x100] ss:$16 sps:$4 sm:$0xff]   ;;  %v9397_v36 = vld [vmem:[%s11128_s4 + $0x108] ss:$16 sps:$4 sm:$0xff]  }
  0x53   : > { %v10991_v37 = vmov 1983009808   ;;  %v9398_v40 = vld [vmem:[%s11128_s4 + $0x124] ss:$16 sps:$4 sm:$0xff]   ;;  %v9400_v41 = vld [vmem:[%s11128_s4 + $0x12c] ss:$16 sps:$4 sm:$0xff]  }
  0x54   : > { %v276_v38 = vunpack.c.l.s4 %v10991_v37  ;;  %v9402_v42 = vld [vmem:[%s11128_s4 + $0x120] ss:$16 sps:$4 sm:$0xff]   ;;  %v11193_v44 = vshrl.u32 %v278_v39, 7  ;;  %v9403_v45 = vld [vmem:[%s11128_s4 + $0x128] ss:$16 sps:$4 sm:$0xff]   ;;  %p9144_p6 = scmp.ne.s32.totalorder %s10968_s15, 1 }
  0x55   : > { %6625 = vmatpush1.bf16.msra.mxu0 %v9366_v15  ;;  %7281 = vmatpush1.bf16.msra.mxu1 %v9367_v16  ;;  %v9404_v46 = vld [vmem:[%s11128_s4 + $0x144] ss:$16 sps:$4 sm:$0xff]   ;;  %v9406_v47 = vld [vmem:[%s11128_s4 + $0x14c] ss:$16 sps:$4 sm:$0xff]   ;;  %v9408_v48 = vld [vmem:[%s11128_s4 + $0x140] ss:$16 sps:$4 sm:$0xff]  }
  0x56   : > { %6626 = vmatprep.subr.bf16.mxu0 %v9368_v17  ;;  %7282 = vmatprep.subr.bf16.mxu1 %v9370_v18  ;;  %v277_v43 = vunpack.c.0.s8 %v276_v38  ;;  %v9409_v49 = vld [vmem:[%s11128_s4 + $0x148] ss:$16 sps:$4 sm:$0xff]   ;;  %v9410_v51 = vld [vmem:[%s11128_s4 + $0x164] ss:$16 sps:$4 sm:$0xff]   ;;  %v9412_v52 = vld [vmem:[%s11128_s4 + $0x16c] ss:$16 sps:$4 sm:$0xff]  }
  0x57   : > { %v258_v53 = vld [vmem:[%s11141_s29] sm:$0xff]  ;;  %v9414_v54 = vld [vmem:[%s11128_s4 + $0x160] ss:$16 sps:$4 sm:$0xff]   ;;  %v9416_v57 = vld [vmem:[%s11128_s4 + $0x184] ss:$16 sps:$4 sm:$0xff]  }
  0x58   : > { %v11201_v50 = vsub.s32 %v277_v43, %v11193_v44  ;;  %v9415_v56 = vld [vmem:[%s11128_s4 + $0x168] ss:$16 sps:$4 sm:$0xff]   ;;  %v9418_v58 = vld [vmem:[%s11128_s4 + $0x18c] ss:$16 sps:$4 sm:$0xff]   ;;  %v9420_v60 = vld [vmem:[%s11128_s4 + $0x180] ss:$16 sps:$4 sm:$0xff]   ;;  %v274_v5 = vcombine.high %v258_v53, %v258_v53 }
  0x59   : > { %6627 = vmatpush1.bf16.msra.mxu0 %v9372_v19  ;;  %7283 = vmatpush1.bf16.msra.mxu1 %v9373_v20  ;;  %v9421_v62 = vld [vmem:[%s11128_s4 + $0x188] ss:$16 sps:$4 sm:$0xff]   ;;  %v9422_v63 = vld [vmem:[%s11128_s4 + $0x1a4] ss:$16 sps:$4 sm:$0xff]   ;;  %v9424_v0 = vld [vmem:[%s11128_s4 + $0x1ac] ss:$16 sps:$4 sm:$0xff]  }
  0x5a   : > { %6628 = vmatprep.subr.bf16.mxu0 %v9374_v21  ;;  %7284 = vmatprep.subr.bf16.mxu1 %v9376_v22  ;;  %v281_v55 = vrot.slane %v258_v53, %v11201_v50  ;;  %v9426_v1 = vld [vmem:[%s11128_s4 + $0x1a0] ss:$16 sps:$4 sm:$0xff]   ;;  %v9427_v2 = vld [vmem:[%s11128_s4 + $0x1a8] ss:$16 sps:$4 sm:$0xff]   ;;  %v9428_v3 = vld [vmem:[%s11128_s4 + $0x1c4] ss:$16 sps:$4 sm:$0xff]   ;;  %v11224_v10 = vrot.slane %v274_v5, %v11201_v50 }
  0x5b   : > { %v9430_v4 = vld [vmem:[%s11128_s4 + $0x1cc] ss:$16 sps:$4 sm:$0xff]   ;;  %v9432_v6 = vld [vmem:[%s11128_s4 + $0x1c0] ss:$16 sps:$4 sm:$0xff]   ;;  %v9433_v7 = vld [vmem:[%s11128_s4 + $0x1c8] ss:$16 sps:$4 sm:$0xff]  }
  0x5c   : > { %v289_v59 = vcombine.high %v281_v55, %v281_v55  ;;  %v9434_v8 = vld [vmem:[%s11128_s4 + $0x1e4] ss:$16 sps:$4 sm:$0xff]   ;;  %v9436_v9 = vld [vmem:[%s11128_s4 + $0x1ec] ss:$16 sps:$4 sm:$0xff]   ;;  %v9438_v11 = vld [vmem:[%s11128_s4 + $0x1e0] ss:$16 sps:$4 sm:$0xff]   ;;  %v290_v15 = vcombine.high %v11224_v10, %v11224_v10  ;;  %v442_v17 = vpack.c.bf16 %v281_v55, %v281_v55 }
  0x5d   : > { %6629 = vmatpush1.bf16.msra.mxu0 %v9378_v23  ;;  %7285 = vmatpush1.bf16.msra.mxu1 %v9379_v24  ;;  %v9439_v12 = vld [vmem:[%s11128_s4 + $0x1e8] ss:$16 sps:$4 sm:$0xff]   ;;  %v9443_v13 = vld [vmem:[%s11128_s4 + $0x204] ss:$16 sps:$4 sm:$0xff]   ;;  %v9446_v14 = vld [vmem:[%s11128_s4 + $0x20c] ss:$16 sps:$4 sm:$0xff]  }
  0x5e   : > { %6630 = vmatprep.subr.bf16.mxu0 %v9380_v25  ;;  %7286 = vmatprep.subr.bf16.mxu1 %v9382_v26  ;;  %v443_v61 = vpack.c.bf16 %v289_v59, %v289_v59  ;;  %v9441_v16 = vld [vmem:[%s11128_s4 + $0x200] ss:$16 sps:$4 sm:$0xff]   ;;  %v9444_v18 = vld [vmem:[%s11128_s4 + $0x208] ss:$16 sps:$4 sm:$0xff]   ;;  %v9449_v19 = vld [vmem:[%s11128_s4 + $0x224] ss:$16 sps:$4 sm:$0xff]   ;;  %v445_v21 = vpack.c.bf16 %v290_v15, %v290_v15 }
  0x5f   : > { %v9452_v20 = vld [vmem:[%s11128_s4 + $0x22c] ss:$16 sps:$4 sm:$0xff]   ;;  %v9447_v22 = vld [vmem:[%s11128_s4 + $0x220] ss:$16 sps:$4 sm:$0xff]   ;;  %v9450_v23 = vld [vmem:[%s11128_s4 + $0x228] ss:$16 sps:$4 sm:$0xff]  }
  0x60   : > { %6650 = vmatprep.mubr.bf16.mxu0 %v443_v61  ;;  %7306 = vmatprep.mubr.bf16.mxu1 %v443_v61  ;;  %v9455_v24 = vld [vmem:[%s11128_s4 + $0x244] ss:$16 sps:$4 sm:$0xff]   ;;  %v9458_v25 = vld [vmem:[%s11128_s4 + $0x24c] ss:$16 sps:$4 sm:$0xff]   ;;  %v9453_v26 = vld [vmem:[%s11128_s4 + $0x240] ss:$16 sps:$4 sm:$0xff]  }
  0x61   : > { %6631 = vmatpush1.bf16.msra.mxu0 %v9384_v27  ;;  %7287 = vmatpush1.bf16.msra.mxu1 %v9385_v28  ;;  %v9456_v27 = vld [vmem:[%s11128_s4 + $0x248] ss:$16 sps:$4 sm:$0xff]   ;;  %v9461_v28 = vld [vmem:[%s11128_s4 + $0x264] ss:$16 sps:$4 sm:$0xff]   ;;  %v9476_v37 = vld [vmem:[%s11128_s4 + $0x2ac] ss:$16 sps:$4 sm:$0xff]  }
  0x62   : > { %6632 = vmatprep.subr.bf16.mxu0 %v9386_v29  ;;  %7288 = vmatprep.subr.bf16.mxu1 %v9388_v30  ;;  %v9464_v29 = vld [vmem:[%s11128_s4 + $0x26c] ss:$16 sps:$4 sm:$0xff]   ;;  %v9459_v30 = vld [vmem:[%s11128_s4 + $0x260] ss:$16 sps:$4 sm:$0xff]   ;;  %v9474_v39 = vld [vmem:[%s11128_s4 + $0x2a8] ss:$16 sps:$4 sm:$0xff]  }
  0x63   : > { %v9471_v38 = vld [vmem:[%s11128_s4 + $0x2a0] ss:$16 sps:$4 sm:$0xff]   ;;  %v9480_v43 = vld [vmem:[%s11128_s4 + $0x2c8] ss:$16 sps:$4 sm:$0xff]   ;;  %v9500_v55 = vld [vmem:[%s11128_s4 + $0x32c] ss:$16 sps:$4 sm:$0xff]  }
  0x64   : > { %v9492_v53 = vld [vmem:[%s11128_s4 + $0x308] ss:$16 sps:$4 sm:$0xff]   ;;  %v9506_v59 = vld [vmem:[%s11128_s4 + $0x34c] ss:$16 sps:$4 sm:$0xff]   ;;  %v9533_v15 = vld [vmem:[%s11128_s4 + $0x3e4] ss:$16 sps:$4 sm:$0xff]  }
  0x65   : > { %6633 = vmatpush1.bf16.msra.mxu0 %v9390_v31  ;;  %7289 = vmatpush1.bf16.msra.mxu1 %v9391_v32  ;;  %v9462_v31 = vld [vmem:[%s11128_s4 + $0x268] ss:$16 sps:$4 sm:$0xff]   ;;  %v9467_v32 = vld [vmem:[%s11128_s4 + $0x284] ss:$16 sps:$4 sm:$0xff]  }
  0x66   : > { %6634 = vmatprep.subr.bf16.mxu0 %v9392_v33  ;;  %7290 = vmatprep.subr.bf16.mxu1 %v9394_v34  ;;  %v9470_v33 = vld [vmem:[%s11128_s4 + $0x28c] ss:$16 sps:$4 sm:$0xff]   ;;  %v9465_v34 = vld [vmem:[%s11128_s4 + $0x280] ss:$16 sps:$4 sm:$0xff]   ;;  %v9504_v61 = vld [vmem:[%s11128_s4 + $0x348] ss:$16 sps:$4 sm:$0xff]  }
  0x67   : > { %v9516_v5 = vld [vmem:[%s11128_s4 + $0x388] ss:$16 sps:$4 sm:$0xff]  }
  0x69   : > { %6635 = vmatpush1.bf16.msra.mxu0 %v9396_v35  ;;  %7291 = vmatpush1.bf16.msra.mxu1 %v9397_v36  ;;  %v9468_v35 = vld [vmem:[%s11128_s4 + $0x288] ss:$16 sps:$4 sm:$0xff]   ;;  %v9473_v36 = vld [vmem:[%s11128_s4 + $0x2a4] ss:$16 sps:$4 sm:$0xff]  }
  0x6a   : > { %6636 = vmatprep.subr.bf16.mxu0 %v9398_v40  ;;  %7292 = vmatprep.subr.bf16.mxu1 %v9400_v41  ;;  %v9479_v40 = vld [vmem:[%s11128_s4 + $0x2c4] ss:$16 sps:$4 sm:$0xff]   ;;  %v9482_v41 = vld [vmem:[%s11128_s4 + $0x2cc] ss:$16 sps:$4 sm:$0xff]  }
  0x6d   : > { %6637 = vmatpush1.bf16.msra.mxu0 %v9402_v42  ;;  %7293 = vmatpush1.bf16.msra.mxu1 %v9403_v45  ;;  %v9477_v42 = vld [vmem:[%s11128_s4 + $0x2c0] ss:$16 sps:$4 sm:$0xff]   ;;  %v9485_v45 = vld [vmem:[%s11128_s4 + $0x2e4] ss:$16 sps:$4 sm:$0xff]  }
  0x6e   : > { %6638 = vmatprep.subr.bf16.mxu0 %v9404_v46  ;;  %7294 = vmatprep.subr.bf16.mxu1 %v9406_v47  ;;  %v9488_v46 = vld [vmem:[%s11128_s4 + $0x2ec] ss:$16 sps:$4 sm:$0xff]   ;;  %v9483_v47 = vld [vmem:[%s11128_s4 + $0x2e0] ss:$16 sps:$4 sm:$0xff]  }
  0x71   : > { %6639 = vmatpush1.bf16.msra.mxu0 %v9408_v48  ;;  %7295 = vmatpush1.bf16.msra.mxu1 %v9409_v49  ;;  %v9486_v48 = vld [vmem:[%s11128_s4 + $0x2e8] ss:$16 sps:$4 sm:$0xff]   ;;  %v9491_v49 = vld [vmem:[%s11128_s4 + $0x304] ss:$16 sps:$4 sm:$0xff]  }
  0x72   : > { %6640 = vmatprep.subr.bf16.mxu0 %v9410_v51  ;;  %7296 = vmatprep.subr.bf16.mxu1 %v9412_v52  ;;  %v9494_v51 = vld [vmem:[%s11128_s4 + $0x30c] ss:$16 sps:$4 sm:$0xff]   ;;  %v9489_v52 = vld [vmem:[%s11128_s4 + $0x300] ss:$16 sps:$4 sm:$0xff]  }
  0x75   : > { %6641 = vmatpush1.bf16.msra.mxu0 %v9414_v54  ;;  %7297 = vmatpush1.bf16.msra.mxu1 %v9415_v56  ;;  %v9497_v54 = vld [vmem:[%s11128_s4 + $0x324] ss:$16 sps:$4 sm:$0xff]   ;;  %v9495_v56 = vld [vmem:[%s11128_s4 + $0x320] ss:$16 sps:$4 sm:$0xff]  }
  0x76   : > { %6642 = vmatprep.subr.bf16.mxu0 %v9416_v57  ;;  %7298 = vmatprep.subr.bf16.mxu1 %v9418_v58  ;;  %v9498_v57 = vld [vmem:[%s11128_s4 + $0x328] ss:$16 sps:$4 sm:$0xff]   ;;  %v9503_v58 = vld [vmem:[%s11128_s4 + $0x344] ss:$16 sps:$4 sm:$0xff]  }
  0x79   : > { %6643 = vmatpush1.bf16.msra.mxu0 %v9420_v60  ;;  %7299 = vmatpush1.bf16.msra.mxu1 %v9421_v62  ;;  %v9501_v60 = vld [vmem:[%s11128_s4 + $0x340] ss:$16 sps:$4 sm:$0xff]   ;;  %v9509_v62 = vld [vmem:[%s11128_s4 + $0x364] ss:$16 sps:$4 sm:$0xff]  }
  0x7a   : > { %6644 = vmatprep.subr.bf16.mxu0 %v9422_v63  ;;  %7300 = vmatprep.subr.bf16.mxu1 %v9424_v0  ;;  %v9512_v63 = vld [vmem:[%s11128_s4 + $0x36c] ss:$16 sps:$4 sm:$0xff]   ;;  %v9507_v0 = vld [vmem:[%s11128_s4 + $0x360] ss:$16 sps:$4 sm:$0xff]  }
  0x7d   : > { %6645 = vmatpush1.bf16.msra.mxu0 %v9426_v1  ;;  %7301 = vmatpush1.bf16.msra.mxu1 %v9427_v2  ;;  %v9510_v1 = vld [vmem:[%s11128_s4 + $0x368] ss:$16 sps:$4 sm:$0xff]   ;;  %v9515_v2 = vld [vmem:[%s11128_s4 + $0x384] ss:$16 sps:$4 sm:$0xff]  }
  0x7e   : > { %6646 = vmatprep.subr.bf16.mxu0 %v9428_v3  ;;  %7302 = vmatprep.subr.bf16.mxu1 %v9430_v4  ;;  %v9518_v3 = vld [vmem:[%s11128_s4 + $0x38c] ss:$16 sps:$4 sm:$0xff]   ;;  %v9513_v4 = vld [vmem:[%s11128_s4 + $0x380] ss:$16 sps:$4 sm:$0xff]  }
  0x81   : > { %6647 = vmatpush1.bf16.msra.mxu0 %v9432_v6  ;;  %7303 = vmatpush1.bf16.msra.mxu1 %v9433_v7  ;;  %v9521_v6 = vld [vmem:[%s11128_s4 + $0x3a4] ss:$16 sps:$4 sm:$0xff]   ;;  %v9524_v7 = vld [vmem:[%s11128_s4 + $0x3ac] ss:$16 sps:$4 sm:$0xff]  }
  0x82   : > { %6648 = vmatprep.subr.bf16.mxu0 %v9434_v8  ;;  %7304 = vmatprep.subr.bf16.mxu1 %v9436_v9  ;;  %v9519_v8 = vld [vmem:[%s11128_s4 + $0x3a0] ss:$16 sps:$4 sm:$0xff]   ;;  %v9522_v9 = vld [vmem:[%s11128_s4 + $0x3a8] ss:$16 sps:$4 sm:$0xff]  }
  0x85   : > { %6649 = vmatpush1.bf16.msra.mxu0 %v9438_v11  ;;  %7305 = vmatpush1.bf16.msra.mxu1 %v9439_v12  ;;  %v9527_v11 = vld [vmem:[%s11128_s4 + $0x3c4] ss:$16 sps:$4 sm:$0xff]   ;;  %v9530_v12 = vld [vmem:[%s11128_s4 + $0x3cc] ss:$16 sps:$4 sm:$0xff]  }
  0x86   : > { %6659 = vmatprep.subr.bf16.mxu0 %v9443_v13  ;;  %7315 = vmatprep.subr.bf16.mxu1 %v9446_v14  ;;  %v9525_v13 = vld [vmem:[%s11128_s4 + $0x3c0] ss:$16 sps:$4 sm:$0xff]   ;;  %v9528_v14 = vld [vmem:[%s11128_s4 + $0x3c8] ss:$16 sps:$4 sm:$0xff]  }
  0x88   : > { %6651 = vmatmul.mubr.bf16.vlgmr.msra.gmra.mrb[0].mxu0 %v442_v17  ;;  %7307 = vmatmul.mubr.bf16.vlgmr.msra.gmra.mrb[0].mxu1 %v442_v17  ;;  %v9531_v17 = vld [vmem:[%s11128_s4 + $0x3e0] ss:$16 sps:$4 sm:$0xff]  }
  0x89   : > { %6660 = vmatpush1.bf16.msra.mxu0 %v9441_v16  ;;  %7316 = vmatpush1.bf16.msra.mxu1 %v9444_v18  ;;  %v9536_v16 = vld [vmem:[%s11128_s4 + $0x3ec] ss:$16 sps:$4 sm:$0xff]   ;;  %v9534_v18 = vld [vmem:[%s11128_s4 + $0x3e8] ss:$16 sps:$4 sm:$0xff]  }
  0x8a   : > { %6661 = vmatprep.subr.bf16.mxu0 %v9449_v19  ;;  %7317 = vmatprep.subr.bf16.mxu1 %v9452_v20  ;;  %v9539_v19 = vld [vmem:[%s11128_s4 + $0x404] ss:$16 sps:$4 sm:$0xff]   ;;  %v9542_v20 = vld [vmem:[%s11128_s4 + $0x40c] ss:$16 sps:$4 sm:$0xff]  }
  0x8b   : > { %6691 = vmatprep.mubr.bf16.mxu0 %v445_v21  ;;  %7347 = vmatprep.mubr.bf16.mxu1 %v445_v21  ;;  %v9537_v21 = vld [vmem:[%s11128_s4 + $0x400] ss:$16 sps:$4 sm:$0xff]  }
  0x8d   : > { %6662 = vmatpush1.bf16.msra.mxu0 %v9447_v22  ;;  %7318 = vmatpush1.bf16.msra.mxu1 %v9450_v23  ;;  %v444_v22 = vpack.c.bf16 %v11224_v10, %v11224_v10  ;;  %v9540_v23 = vld [vmem:[%s11128_s4 + $0x408] ss:$16 sps:$4 sm:$0xff]  }
  0x8e   : > { %6663 = vmatprep.subr.bf16.mxu0 %v9455_v24  ;;  %7319 = vmatprep.subr.bf16.mxu1 %v9458_v25  ;;  %v11301_v24 = vld [vmem:[%s11141_s29 + $0x8] sm:$0xff] }
  0x8f   : > { %v9545_v25 = vld [vmem:[%s11128_s4 + $0x424] ss:$16 sps:$4 sm:$0xff]  }
  0x91   : > { %6664 = vmatpush1.bf16.msra.mxu0 %v9453_v26  ;;  %7320 = vmatpush1.bf16.msra.mxu1 %v9456_v27  ;;  %v9548_v26 = vld [vmem:[%s11128_s4 + $0x42c] ss:$16 sps:$4 sm:$0xff]   ;;  %v11307_v27 = vrot.slane %v11301_v24, %v11201_v50 }
  0x92   : > { %6665 = vmatprep.subr.bf16.mxu0 %v9461_v28  ;;  %7321 = vmatprep.subr.bf16.mxu1 %v9464_v29  ;;  %v9543_v28 = vld [vmem:[%s11128_s4 + $0x420] ss:$16 sps:$4 sm:$0xff]   ;;  %v9546_v29 = vld [vmem:[%s11128_s4 + $0x428] ss:$16 sps:$4 sm:$0xff]  }
  0x93   : > { %v306_v10 = vcombine.high %v11307_v27, %v11307_v27 }
  0x95   : > { %6666 = vmatpush1.bf16.msra.mxu0 %v9459_v30  ;;  %7322 = vmatpush1.bf16.msra.mxu1 %v9462_v31  ;;  %v9551_v30 = vld [vmem:[%s11128_s4 + $0x444] ss:$16 sps:$4 sm:$0xff]   ;;  %v9554_v31 = vld [vmem:[%s11128_s4 + $0x44c] ss:$16 sps:$4 sm:$0xff]  }
  0x96   : > { %6667 = vmatprep.subr.bf16.mxu0 %v9467_v32  ;;  %7323 = vmatprep.subr.bf16.mxu1 %v9470_v33  ;;  %v447_v32 = vpack.c.bf16 %v306_v10, %v306_v10  ;;  %v9549_v33 = vld [vmem:[%s11128_s4 + $0x440] ss:$16 sps:$4 sm:$0xff]   ;;  %v9630_v10 = vld [vmem:[%s11128_s4 + $0x5e8] ss:$16 sps:$4 sm:$0xff]  }
  0x99   : > { %6668 = vmatpush1.bf16.msra.mxu0 %v9465_v34  ;;  %7324 = vmatpush1.bf16.msra.mxu1 %v9468_v35  ;;  %v9552_v34 = vld [vmem:[%s11128_s4 + $0x448] ss:$16 sps:$4 sm:$0xff]   ;;  %v9557_v35 = vld [vmem:[%s11128_s4 + $0x464] ss:$16 sps:$4 sm:$0xff]  }
  0x9a   : > { %6669 = vmatprep.subr.bf16.mxu0 %v9473_v36  ;;  %7325 = vmatprep.subr.bf16.mxu1 %v9476_v37  ;;  %v9560_v36 = vld [vmem:[%s11128_s4 + $0x46c] ss:$16 sps:$4 sm:$0xff]   ;;  %v9555_v37 = vld [vmem:[%s11128_s4 + $0x460] ss:$16 sps:$4 sm:$0xff]  }
  0x9d   : > { %6670 = vmatpush1.bf16.msra.mxu0 %v9471_v38  ;;  %7326 = vmatpush1.bf16.msra.mxu1 %v9474_v39  ;;  %v9558_v38 = vld [vmem:[%s11128_s4 + $0x468] ss:$16 sps:$4 sm:$0xff]   ;;  %v9563_v39 = vld [vmem:[%s11128_s4 + $0x484] ss:$16 sps:$4 sm:$0xff]  }
  0x9e   : > { %6671 = vmatprep.subr.bf16.mxu0 %v9479_v40  ;;  %7327 = vmatprep.subr.bf16.mxu1 %v9482_v41  ;;  %v9566_v40 = vld [vmem:[%s11128_s4 + $0x48c] ss:$16 sps:$4 sm:$0xff]   ;;  %v9561_v41 = vld [vmem:[%s11128_s4 + $0x480] ss:$16 sps:$4 sm:$0xff]  }
  0xa1   : > { %6672 = vmatpush1.bf16.msra.mxu0 %v9477_v42  ;;  %7328 = vmatpush1.bf16.msra.mxu1 %v9480_v43  ;;  %v9564_v42 = vld [vmem:[%s11128_s4 + $0x488] ss:$16 sps:$4 sm:$0xff]   ;;  %v9569_v43 = vld [vmem:[%s11128_s4 + $0x4a4] ss:$16 sps:$4 sm:$0xff]  }
  0xa2   : > { %6673 = vmatprep.subr.bf16.mxu0 %v9485_v45  ;;  %7329 = vmatprep.subr.bf16.mxu1 %v9488_v46  ;;  %v9572_v45 = vld [vmem:[%s11128_s4 + $0x4ac] ss:$16 sps:$4 sm:$0xff]   ;;  %v9567_v46 = vld [vmem:[%s11128_s4 + $0x4a0] ss:$16 sps:$4 sm:$0xff]  }
  0xa5   : > { %6674 = vmatpush1.bf16.msra.mxu0 %v9483_v47  ;;  %7330 = vmatpush1.bf16.msra.mxu1 %v9486_v48  ;;  %v9570_v47 = vld [vmem:[%s11128_s4 + $0x4a8] ss:$16 sps:$4 sm:$0xff]   ;;  %v9575_v48 = vld [vmem:[%s11128_s4 + $0x4c4] ss:$16 sps:$4 sm:$0xff]  }
  0xa6   : > { %6675 = vmatprep.subr.bf16.mxu0 %v9491_v49  ;;  %7331 = vmatprep.subr.bf16.mxu1 %v9494_v51  ;;  %v9578_v49 = vld [vmem:[%s11128_s4 + $0x4cc] ss:$16 sps:$4 sm:$0xff]   ;;  %v9573_v51 = vld [vmem:[%s11128_s4 + $0x4c0] ss:$16 sps:$4 sm:$0xff]  }
  0xa9   : > { %6676 = vmatpush1.bf16.msra.mxu0 %v9489_v52  ;;  %7332 = vmatpush1.bf16.msra.mxu1 %v9492_v53  ;;  %v9576_v52 = vld [vmem:[%s11128_s4 + $0x4c8] ss:$16 sps:$4 sm:$0xff]   ;;  %v9581_v53 = vld [vmem:[%s11128_s4 + $0x4e4] ss:$16 sps:$4 sm:$0xff]  }
  0xaa   : > { %6677 = vmatprep.subr.bf16.mxu0 %v9497_v54  ;;  %7333 = vmatprep.subr.bf16.mxu1 %v9500_v55  ;;  %v9584_v54 = vld [vmem:[%s11128_s4 + $0x4ec] ss:$16 sps:$4 sm:$0xff]   ;;  %v9579_v55 = vld [vmem:[%s11128_s4 + $0x4e0] ss:$16 sps:$4 sm:$0xff]  }
  0xad   : > { %6678 = vmatpush1.bf16.msra.mxu0 %v9495_v56  ;;  %7334 = vmatpush1.bf16.msra.mxu1 %v9498_v57  ;;  %v9582_v56 = vld [vmem:[%s11128_s4 + $0x4e8] ss:$16 sps:$4 sm:$0xff]   ;;  %v9587_v57 = vld [vmem:[%s11128_s4 + $0x504] ss:$16 sps:$4 sm:$0xff]  }
  0xae   : > { %6679 = vmatprep.subr.bf16.mxu0 %v9503_v58  ;;  %7335 = vmatprep.subr.bf16.mxu1 %v9506_v59  ;;  %v9590_v58 = vld [vmem:[%s11128_s4 + $0x50c] ss:$16 sps:$4 sm:$0xff]   ;;  %v9585_v59 = vld [vmem:[%s11128_s4 + $0x500] ss:$16 sps:$4 sm:$0xff]  }
  0xb1   : > { %6680 = vmatpush1.bf16.msra.mxu0 %v9501_v60  ;;  %7336 = vmatpush1.bf16.msra.mxu1 %v9504_v61  ;;  %v9588_v60 = vld [vmem:[%s11128_s4 + $0x508] ss:$16 sps:$4 sm:$0xff]   ;;  %v9593_v61 = vld [vmem:[%s11128_s4 + $0x524] ss:$16 sps:$4 sm:$0xff]  }
  0xb2   : > { %6681 = vmatprep.subr.bf16.mxu0 %v9509_v62  ;;  %7337 = vmatprep.subr.bf16.mxu1 %v9512_v63  ;;  %v9596_v62 = vld [vmem:[%s11128_s4 + $0x52c] ss:$16 sps:$4 sm:$0xff]   ;;  %v9591_v63 = vld [vmem:[%s11128_s4 + $0x520] ss:$16 sps:$4 sm:$0xff]  }
  0xb5   : > { %6682 = vmatpush1.bf16.msra.mxu0 %v9507_v0  ;;  %7338 = vmatpush1.bf16.msra.mxu1 %v9510_v1  ;;  %v9594_v0 = vld [vmem:[%s11128_s4 + $0x528] ss:$16 sps:$4 sm:$0xff]   ;;  %v9599_v1 = vld [vmem:[%s11128_s4 + $0x544] ss:$16 sps:$4 sm:$0xff]  }
  0xb6   : > { %6683 = vmatprep.subr.bf16.mxu0 %v9515_v2  ;;  %7339 = vmatprep.subr.bf16.mxu1 %v9518_v3  ;;  %v9602_v2 = vld [vmem:[%s11128_s4 + $0x54c] ss:$16 sps:$4 sm:$0xff]   ;;  %v9597_v3 = vld [vmem:[%s11128_s4 + $0x540] ss:$16 sps:$4 sm:$0xff]  }
  0xb9   : > { %6684 = vmatpush1.bf16.msra.mxu0 %v9513_v4  ;;  %7340 = vmatpush1.bf16.msra.mxu1 %v9516_v5  ;;  %v9600_v4 = vld [vmem:[%s11128_s4 + $0x548] ss:$16 sps:$4 sm:$0xff]   ;;  %v9605_v5 = vld [vmem:[%s11128_s4 + $0x564] ss:$16 sps:$4 sm:$0xff]  }
  0xba   : > { %6685 = vmatprep.subr.bf16.mxu0 %v9521_v6  ;;  %7341 = vmatprep.subr.bf16.mxu1 %v9524_v7  ;;  %v9608_v6 = vld [vmem:[%s11128_s4 + $0x56c] ss:$16 sps:$4 sm:$0xff]   ;;  %v9603_v7 = vld [vmem:[%s11128_s4 + $0x560] ss:$16 sps:$4 sm:$0xff]  }
  0xbd   : > { %6686 = vmatpush1.bf16.msra.mxu0 %v9519_v8  ;;  %7342 = vmatpush1.bf16.msra.mxu1 %v9522_v9  ;;  %v9606_v8 = vld [vmem:[%s11128_s4 + $0x568] ss:$16 sps:$4 sm:$0xff]   ;;  %v9611_v9 = vld [vmem:[%s11128_s4 + $0x584] ss:$16 sps:$4 sm:$0xff]  }
  0xbe   : > { %6687 = vmatprep.subr.bf16.mxu0 %v9527_v11  ;;  %7343 = vmatprep.subr.bf16.mxu1 %v9530_v12  ;;  %v9614_v11 = vld [vmem:[%s11128_s4 + $0x58c] ss:$16 sps:$4 sm:$0xff]   ;;  %v9609_v12 = vld [vmem:[%s11128_s4 + $0x580] ss:$16 sps:$4 sm:$0xff]  }
  0xc1   : > { %6688 = vmatpush1.bf16.msra.mxu0 %v9525_v13  ;;  %7344 = vmatpush1.bf16.msra.mxu1 %v9528_v14  ;;  %v9612_v13 = vld [vmem:[%s11128_s4 + $0x588] ss:$16 sps:$4 sm:$0xff]   ;;  %v9617_v14 = vld [vmem:[%s11128_s4 + $0x5a4] ss:$16 sps:$4 sm:$0xff]  }
  0xc2   : > { %6689 = vmatprep.subr.bf16.mxu0 %v9533_v15  ;;  %7345 = vmatprep.subr.bf16.mxu1 %v9536_v16  ;;  %v9620_v15 = vld [vmem:[%s11128_s4 + $0x5ac] ss:$16 sps:$4 sm:$0xff]   ;;  %v9615_v16 = vld [vmem:[%s11128_s4 + $0x5a0] ss:$16 sps:$4 sm:$0xff]  }
  0xc5   : > { %6690 = vmatpush1.bf16.msra.mxu0 %v9531_v17  ;;  %7346 = vmatpush1.bf16.msra.mxu1 %v9534_v18  ;;  %v9618_v17 = vld [vmem:[%s11128_s4 + $0x5a8] ss:$16 sps:$4 sm:$0xff]   ;;  %v9623_v18 = vld [vmem:[%s11128_s4 + $0x5c4] ss:$16 sps:$4 sm:$0xff]  }
  0xc6   : > { %6700 = vmatprep.subr.bf16.mxu0 %v9539_v19  ;;  %7356 = vmatprep.subr.bf16.mxu1 %v9542_v20  ;;  %v9626_v19 = vld [vmem:[%s11128_s4 + $0x5cc] ss:$16 sps:$4 sm:$0xff]   ;;  %v291_v20 = vcombine.high %v11301_v24, %v11301_v24  ;;  %v9627_v24 = vld [vmem:[%s11128_s4 + $0x5e0] ss:$16 sps:$4 sm:$0xff]  }
  0xc8   : > { %6692 = vmatmul.mubr.bf16.vlgmr.msra.gmra.mrb[0].mxu0 %v444_v22  ;;  %7348 = vmatmul.mubr.bf16.vlgmr.msra.gmra.mrb[0].mxu1 %v444_v22  ;;  %v9624_v22 = vld [vmem:[%s11128_s4 + $0x5c8] ss:$16 sps:$4 sm:$0xff]  }
  0xc9   : > { %6701 = vmatpush1.bf16.msra.mxu0 %v9537_v21  ;;  %7357 = vmatpush1.bf16.msra.mxu1 %v9540_v23  ;;  %v9621_v21 = vld [vmem:[%s11128_s4 + $0x5c0] ss:$16 sps:$4 sm:$0xff]   ;;  %v9629_v23 = vld [vmem:[%s11128_s4 + $0x5e4] ss:$16 sps:$4 sm:$0xff]  }
  0xca   : > { %6702 = vmatprep.subr.bf16.mxu0 %v9545_v25  ;;  %7358 = vmatprep.subr.bf16.mxu1 %v9548_v26  ;;  %v9632_v25 = vld [vmem:[%s11128_s4 + $0x5ec] ss:$16 sps:$4 sm:$0xff]   ;;  %v11370_v26 = vrot.slane %v291_v20, %v11201_v50  ;;  %v9708_v20 = vld [vmem:[%s11128_s4 + $0x788] ss:$16 sps:$4 sm:$0xff]  }
  0xcb   : > { %6732 = vmatprep.mubr.bf16.mxu0 %v447_v32  ;;  %7388 = vmatprep.mubr.bf16.mxu1 %v447_v32  ;;  %v9633_v32 = vld [vmem:[%s11128_s4 + $0x600] ss:$16 sps:$4 sm:$0xff]  }
  0xcd   : > { %6703 = vmatpush1.bf16.msra.mxu0 %v9543_v28  ;;  %7359 = vmatpush1.bf16.msra.mxu1 %v9546_v29  ;;  %v9635_v28 = vld [vmem:[%s11128_s4 + $0x604] ss:$16 sps:$4 sm:$0xff]   ;;  %v9638_v29 = vld [vmem:[%s11128_s4 + $0x60c] ss:$16 sps:$4 sm:$0xff]  }
  0xce   : > { %6704 = vmatprep.subr.bf16.mxu0 %v9551_v30  ;;  %7360 = vmatprep.subr.bf16.mxu1 %v9554_v31  ;;  %v307_v30 = vcombine.high %v11370_v26, %v11370_v26  ;;  %v446_v31 = vpack.c.bf16 %v11307_v27, %v11307_v27  ;;  %v9639_v27 = vld [vmem:[%s11128_s4 + $0x620] ss:$16 sps:$4 sm:$0xff]  }
  0xd1   : > { %6705 = vmatpush1.bf16.msra.mxu0 %v9549_v33  ;;  %7361 = vmatpush1.bf16.msra.mxu1 %v9552_v34  ;;  %v9636_v33 = vld [vmem:[%s11128_s4 + $0x608] ss:$16 sps:$4 sm:$0xff]   ;;  %v9641_v34 = vld [vmem:[%s11128_s4 + $0x624] ss:$16 sps:$4 sm:$0xff]  }
  0xd2   : > { %6706 = vmatprep.subr.bf16.mxu0 %v9557_v35  ;;  %7362 = vmatprep.subr.bf16.mxu1 %v9560_v36  ;;  %v9644_v35 = vld [vmem:[%s11128_s4 + $0x62c] ss:$16 sps:$4 sm:$0xff]   ;;  %v449_v36 = vpack.c.bf16 %v307_v30, %v307_v30  ;;  %v9720_v30 = vld [vmem:[%s11128_s4 + $0x7c8] ss:$16 sps:$4 sm:$0xff]  }
  0xd5   : > { %6707 = vmatpush1.bf16.msra.mxu0 %v9555_v37  ;;  %7363 = vmatpush1.bf16.msra.mxu1 %v9558_v38  ;;  %v9642_v37 = vld [vmem:[%s11128_s4 + $0x628] ss:$16 sps:$4 sm:$0xff]   ;;  %v9647_v38 = vld [vmem:[%s11128_s4 + $0x644] ss:$16 sps:$4 sm:$0xff]  }
  0xd6   : > { %6708 = vmatprep.subr.bf16.mxu0 %v9563_v39  ;;  %7364 = vmatprep.subr.bf16.mxu1 %v9566_v40  ;;  %v9650_v39 = vld [vmem:[%s11128_s4 + $0x64c] ss:$16 sps:$4 sm:$0xff]   ;;  %v9645_v40 = vld [vmem:[%s11128_s4 + $0x640] ss:$16 sps:$4 sm:$0xff]  }
  0xd9   : > { %6709 = vmatpush1.bf16.msra.mxu0 %v9561_v41  ;;  %7365 = vmatpush1.bf16.msra.mxu1 %v9564_v42  ;;  %v9648_v41 = vld [vmem:[%s11128_s4 + $0x648] ss:$16 sps:$4 sm:$0xff]   ;;  %v9653_v42 = vld [vmem:[%s11128_s4 + $0x664] ss:$16 sps:$4 sm:$0xff]  }
  0xda   : > { %6710 = vmatprep.subr.bf16.mxu0 %v9569_v43  ;;  %7366 = vmatprep.subr.bf16.mxu1 %v9572_v45  ;;  %v9656_v43 = vld [vmem:[%s11128_s4 + $0x66c] ss:$16 sps:$4 sm:$0xff]   ;;  %v9651_v45 = vld [vmem:[%s11128_s4 + $0x660] ss:$16 sps:$4 sm:$0xff]  }
  0xdd   : > { %6711 = vmatpush1.bf16.msra.mxu0 %v9567_v46  ;;  %7367 = vmatpush1.bf16.msra.mxu1 %v9570_v47  ;;  %v9654_v46 = vld [vmem:[%s11128_s4 + $0x668] ss:$16 sps:$4 sm:$0xff]   ;;  %v9659_v47 = vld [vmem:[%s11128_s4 + $0x684] ss:$16 sps:$4 sm:$0xff]  }
  0xde   : > { %6712 = vmatprep.subr.bf16.mxu0 %v9575_v48  ;;  %7368 = vmatprep.subr.bf16.mxu1 %v9578_v49  ;;  %v9662_v48 = vld [vmem:[%s11128_s4 + $0x68c] ss:$16 sps:$4 sm:$0xff]   ;;  %v9657_v49 = vld [vmem:[%s11128_s4 + $0x680] ss:$16 sps:$4 sm:$0xff]  }
  0xe1   : > { %6713 = vmatpush1.bf16.msra.mxu0 %v9573_v51  ;;  %7369 = vmatpush1.bf16.msra.mxu1 %v9576_v52  ;;  %v9660_v51 = vld [vmem:[%s11128_s4 + $0x688] ss:$16 sps:$4 sm:$0xff]   ;;  %v9665_v52 = vld [vmem:[%s11128_s4 + $0x6a4] ss:$16 sps:$4 sm:$0xff]  }
  0xe2   : > { %6714 = vmatprep.subr.bf16.mxu0 %v9581_v53  ;;  %7370 = vmatprep.subr.bf16.mxu1 %v9584_v54  ;;  %v9668_v53 = vld [vmem:[%s11128_s4 + $0x6ac] ss:$16 sps:$4 sm:$0xff]   ;;  %v9663_v54 = vld [vmem:[%s11128_s4 + $0x6a0] ss:$16 sps:$4 sm:$0xff]  }
  0xe5   : > { %6715 = vmatpush1.bf16.msra.mxu0 %v9579_v55  ;;  %7371 = vmatpush1.bf16.msra.mxu1 %v9582_v56  ;;  %v9666_v55 = vld [vmem:[%s11128_s4 + $0x6a8] ss:$16 sps:$4 sm:$0xff]   ;;  %v9671_v56 = vld [vmem:[%s11128_s4 + $0x6c4] ss:$16 sps:$4 sm:$0xff]  }
  0xe6   : > { %6716 = vmatprep.subr.bf16.mxu0 %v9587_v57  ;;  %7372 = vmatprep.subr.bf16.mxu1 %v9590_v58  ;;  %v9674_v57 = vld [vmem:[%s11128_s4 + $0x6cc] ss:$16 sps:$4 sm:$0xff]   ;;  %v9669_v58 = vld [vmem:[%s11128_s4 + $0x6c0] ss:$16 sps:$4 sm:$0xff]  }
  0xe9   : > { %6717 = vmatpush1.bf16.msra.mxu0 %v9585_v59  ;;  %7373 = vmatpush1.bf16.msra.mxu1 %v9588_v60  ;;  %v9672_v59 = vld [vmem:[%s11128_s4 + $0x6c8] ss:$16 sps:$4 sm:$0xff]   ;;  %v9677_v60 = vld [vmem:[%s11128_s4 + $0x6e4] ss:$16 sps:$4 sm:$0xff]  }
  0xea   : > { %6718 = vmatprep.subr.bf16.mxu0 %v9593_v61  ;;  %7374 = vmatprep.subr.bf16.mxu1 %v9596_v62  ;;  %v9680_v61 = vld [vmem:[%s11128_s4 + $0x6ec] ss:$16 sps:$4 sm:$0xff]   ;;  %v9675_v62 = vld [vmem:[%s11128_s4 + $0x6e0] ss:$16 sps:$4 sm:$0xff]  }
  0xed   : > { %6719 = vmatpush1.bf16.msra.mxu0 %v9591_v63  ;;  %7375 = vmatpush1.bf16.msra.mxu1 %v9594_v0  ;;  %v9678_v63 = vld [vmem:[%s11128_s4 + $0x6e8] ss:$16 sps:$4 sm:$0xff]   ;;  %v9683_v0 = vld [vmem:[%s11128_s4 + $0x704] ss:$16 sps:$4 sm:$0xff]  }
  0xee   : > { %6720 = vmatprep.subr.bf16.mxu0 %v9599_v1  ;;  %7376 = vmatprep.subr.bf16.mxu1 %v9602_v2  ;;  %v9686_v1 = vld [vmem:[%s11128_s4 + $0x70c] ss:$16 sps:$4 sm:$0xff]   ;;  %v9681_v2 = vld [vmem:[%s11128_s4 + $0x700] ss:$16 sps:$4 sm:$0xff]  }
  0xf1   : > { %6721 = vmatpush1.bf16.msra.mxu0 %v9597_v3  ;;  %7377 = vmatpush1.bf16.msra.mxu1 %v9600_v4  ;;  %v9684_v3 = vld [vmem:[%s11128_s4 + $0x708] ss:$16 sps:$4 sm:$0xff]   ;;  %v9689_v4 = vld [vmem:[%s11128_s4 + $0x724] ss:$16 sps:$4 sm:$0xff]  }
  0xf2   : > { %6722 = vmatprep.subr.bf16.mxu0 %v9605_v5  ;;  %7378 = vmatprep.subr.bf16.mxu1 %v9608_v6  ;;  %v9692_v5 = vld [vmem:[%s11128_s4 + $0x72c] ss:$16 sps:$4 sm:$0xff]   ;;  %v9687_v6 = vld [vmem:[%s11128_s4 + $0x720] ss:$16 sps:$4 sm:$0xff]  }
  0xf5   : > { %6723 = vmatpush1.bf16.msra.mxu0 %v9603_v7  ;;  %7379 = vmatpush1.bf16.msra.mxu1 %v9606_v8  ;;  %v9690_v7 = vld [vmem:[%s11128_s4 + $0x728] ss:$16 sps:$4 sm:$0xff]   ;;  %v9695_v8 = vld [vmem:[%s11128_s4 + $0x744] ss:$16 sps:$4 sm:$0xff]  }
  0xf6   : > { %6724 = vmatprep.subr.bf16.mxu0 %v9611_v9  ;;  %7380 = vmatprep.subr.bf16.mxu1 %v9614_v11  ;;  %v9698_v9 = vld [vmem:[%s11128_s4 + $0x74c] ss:$16 sps:$4 sm:$0xff]   ;;  %v9693_v11 = vld [vmem:[%s11128_s4 + $0x740] ss:$16 sps:$4 sm:$0xff]  }
  0xf9   : > { %6725 = vmatpush1.bf16.msra.mxu0 %v9609_v12  ;;  %7381 = vmatpush1.bf16.msra.mxu1 %v9612_v13  ;;  %v9696_v12 = vld [vmem:[%s11128_s4 + $0x748] ss:$16 sps:$4 sm:$0xff]   ;;  %v9701_v13 = vld [vmem:[%s11128_s4 + $0x764] ss:$16 sps:$4 sm:$0xff]  }
  0xfa   : > { %6726 = vmatprep.subr.bf16.mxu0 %v9617_v14  ;;  %7382 = vmatprep.subr.bf16.mxu1 %v9620_v15  ;;  %v9704_v14 = vld [vmem:[%s11128_s4 + $0x76c] ss:$16 sps:$4 sm:$0xff]   ;;  %v9699_v15 = vld [vmem:[%s11128_s4 + $0x760] ss:$16 sps:$4 sm:$0xff]  }
  0xfd   : > { %6727 = vmatpush1.bf16.msra.mxu0 %v9615_v16  ;;  %7383 = vmatpush1.bf16.msra.mxu1 %v9618_v17  ;;  %v9702_v16 = vld [vmem:[%s11128_s4 + $0x768] ss:$16 sps:$4 sm:$0xff]   ;;  %v9707_v17 = vld [vmem:[%s11128_s4 + $0x784] ss:$16 sps:$4 sm:$0xff]  }
  0xfe   : > { %6728 = vmatprep.subr.bf16.mxu0 %v9623_v18  ;;  %7384 = vmatprep.subr.bf16.mxu1 %v9626_v19  ;;  %v9710_v18 = vld [vmem:[%s11128_s4 + $0x78c] ss:$16 sps:$4 sm:$0xff]   ;;  %v9705_v19 = vld [vmem:[%s11128_s4 + $0x780] ss:$16 sps:$4 sm:$0xff]  }
 0x101   : > { %6729 = vmatpush1.bf16.msra.mxu0 %v9621_v21  ;;  %7385 = vmatpush1.bf16.msra.mxu1 %v9624_v22  ;;  %v9713_v21 = vld [vmem:[%s11128_s4 + $0x7a4] ss:$16 sps:$4 sm:$0xff]   ;;  %v9716_v22 = vld [vmem:[%s11128_s4 + $0x7ac] ss:$16 sps:$4 sm:$0xff]  }
 0x102   : > { %6730 = vmatprep.subr.bf16.mxu0 %v9629_v23  ;;  %7386 = vmatprep.subr.bf16.mxu1 %v9632_v25  ;;  %v9711_v23 = vld [vmem:[%s11128_s4 + $0x7a0] ss:$16 sps:$4 sm:$0xff]   ;;  %v9714_v25 = vld [vmem:[%s11128_s4 + $0x7a8] ss:$16 sps:$4 sm:$0xff]  }
 0x105   : > { %6731 = vmatpush1.bf16.msra.mxu0 %v9627_v24  ;;  %7387 = vmatpush1.bf16.msra.mxu1 %v9630_v10  ;;  %v9719_v24 = vld [vmem:[%s11128_s4 + $0x7c4] ss:$16 sps:$4 sm:$0xff]   ;;  %v9722_v10 = vld [vmem:[%s11128_s4 + $0x7cc] ss:$16 sps:$4 sm:$0xff]  }
 0x106   : > { %6741 = vmatprep.subr.bf16.mxu0 %v9635_v28  ;;  %7397 = vmatprep.subr.bf16.mxu1 %v9638_v29  ;;  %v9717_v28 = vld [vmem:[%s11128_s4 + $0x7c0] ss:$16 sps:$4 sm:$0xff]   ;;  %v11438_v29 = vld [vmem:[%s11141_s29 + $0x10] sm:$0xff] }
 0x108   : > { %6733 = vmatmul.mubr.bf16.vlgmr.msra.gmra.mrb[0].mxu0 %v446_v31  ;;  %7389 = vmatmul.mubr.bf16.vlgmr.msra.gmra.mrb[0].mxu1 %v446_v31  ;;  %v9725_v31 = vld [vmem:[%s11128_s4 + $0x7e4] ss:$16 sps:$4 sm:$0xff]  }
 0x109   : > { %6742 = vmatpush1.bf16.msra.mxu0 %v9633_v32  ;;  %7398 = vmatpush1.bf16.msra.mxu1 %v9636_v33  ;;  %v9728_v32 = vld [vmem:[%s11128_s4 + $0x7ec] ss:$16 sps:$4 sm:$0xff]   ;;  %v11445_v33 = vrot.slane %v11438_v29, %v11201_v50 }
 0x10a   : > { %6743 = vmatprep.subr.bf16.mxu0 %v9641_v34  ;;  %7399 = vmatprep.subr.bf16.mxu1 %v9644_v35  ;;  %v9723_v34 = vld [vmem:[%s11128_s4 + $0x7e0] ss:$16 sps:$4 sm:$0xff]   ;;  %v9726_v35 = vld [vmem:[%s11128_s4 + $0x7e8] ss:$16 sps:$4 sm:$0xff]  }
 0x10b   : > { %6773 = vmatprep.mubr.bf16.mxu0 %v449_v36  ;;  %7429 = vmatprep.mubr.bf16.mxu1 %v449_v36  ;;  %v9732_v36 = vld [vmem:[%s11128_s4 + $0x804] ss:$16 sps:$4 sm:$0xff]  }
 0x10d   : > { %6744 = vmatpush1.bf16.msra.mxu0 %v9639_v27  ;;  %7400 = vmatpush1.bf16.msra.mxu1 %v9642_v37  ;;  %v9735_v27 = vld [vmem:[%s11128_s4 + $0x80c] ss:$16 sps:$4 sm:$0xff]   ;;  %v323_v37 = vcombine.high %v11445_v33, %v11445_v33 }
 0x10e   : > { %6745 = vmatprep.subr.bf16.mxu0 %v9647_v38  ;;  %7401 = vmatprep.subr.bf16.mxu1 %v9650_v39  ;;  %v9730_v38 = vld [vmem:[%s11128_s4 + $0x800] ss:$16 sps:$4 sm:$0xff]   ;;  %v448_v39 = vpack.c.bf16 %v11370_v26, %v11370_v26  ;;  %v9744_v26 = vld [vmem:[%s11128_s4 + $0x844] ss:$16 sps:$4 sm:$0xff]  }
 0x111   : > { %6746 = vmatpush1.bf16.msra.mxu0 %v9645_v40  ;;  %7402 = vmatpush1.bf16.msra.mxu1 %v9648_v41  ;;  %v9733_v40 = vld [vmem:[%s11128_s4 + $0x808] ss:$16 sps:$4 sm:$0xff]   ;;  %v9738_v41 = vld [vmem:[%s11128_s4 + $0x824] ss:$16 sps:$4 sm:$0xff]  }
 0x112   : > { %6747 = vmatprep.subr.bf16.mxu0 %v9653_v42  ;;  %7403 = vmatprep.subr.bf16.mxu1 %v9656_v43  ;;  %v9741_v42 = vld [vmem:[%s11128_s4 + $0x82c] ss:$16 sps:$4 sm:$0xff]   ;;  %v451_v43 = vpack.c.bf16 %v323_v37, %v323_v37  ;;  %v9814_v37 = vld [vmem:[%s11128_s4 + $0x9c0] ss:$16 sps:$4 sm:$0xff]  }
 0x115   : > { %6748 = vmatpush1.bf16.msra.mxu0 %v9651_v45  ;;  %7404 = vmatpush1.bf16.msra.mxu1 %v9654_v46  ;;  %v9736_v45 = vld [vmem:[%s11128_s4 + $0x820] ss:$16 sps:$4 sm:$0xff]   ;;  %v9739_v46 = vld [vmem:[%s11128_s4 + $0x828] ss:$16 sps:$4 sm:$0xff]  }
 0x116   : > { %6749 = vmatprep.subr.bf16.mxu0 %v9659_v47  ;;  %7405 = vmatprep.subr.bf16.mxu1 %v9662_v48  ;;  %v9747_v47 = vld [vmem:[%s11128_s4 + $0x84c] ss:$16 sps:$4 sm:$0xff]   ;;  %v9742_v48 = vld [vmem:[%s11128_s4 + $0x840] ss:$16 sps:$4 sm:$0xff]  }
 0x119   : > { %6750 = vmatpush1.bf16.msra.mxu0 %v9657_v49  ;;  %7406 = vmatpush1.bf16.msra.mxu1 %v9660_v51  ;;  %v9745_v49 = vld [vmem:[%s11128_s4 + $0x848] ss:$16 sps:$4 sm:$0xff]   ;;  %v9750_v51 = vld [vmem:[%s11128_s4 + $0x864] ss:$16 sps:$4 sm:$0xff]  }
 0x11a   : > { %6751 = vmatprep.subr.bf16.mxu0 %v9665_v52  ;;  %7407 = vmatprep.subr.bf16.mxu1 %v9668_v53  ;;  %v9753_v52 = vld [vmem:[%s11128_s4 + $0x86c] ss:$16 sps:$4 sm:$0xff]   ;;  %v9748_v53 = vld [vmem:[%s11128_s4 + $0x860] ss:$16 sps:$4 sm:$0xff]  }
 0x11d   : > { %6752 = vmatpush1.bf16.msra.mxu0 %v9663_v54  ;;  %7408 = vmatpush1.bf16.msra.mxu1 %v9666_v55  ;;  %v9751_v54 = vld [vmem:[%s11128_s4 + $0x868] ss:$16 sps:$4 sm:$0xff]   ;;  %v9756_v55 = vld [vmem:[%s11128_s4 + $0x884] ss:$16 sps:$4 sm:$0xff]  }
 0x11e   : > { %6753 = vmatprep.subr.bf16.mxu0 %v9671_v56  ;;  %7409 = vmatprep.subr.bf16.mxu1 %v9674_v57  ;;  %v9759_v56 = vld [vmem:[%s11128_s4 + $0x88c] ss:$16 sps:$4 sm:$0xff]   ;;  %v9754_v57 = vld [vmem:[%s11128_s4 + $0x880] ss:$16 sps:$4 sm:$0xff]  }
 0x121   : > { %6754 = vmatpush1.bf16.msra.mxu0 %v9669_v58  ;;  %7410 = vmatpush1.bf16.msra.mxu1 %v9672_v59  ;;  %v9757_v58 = vld [vmem:[%s11128_s4 + $0x888] ss:$16 sps:$4 sm:$0xff]   ;;  %v9762_v59 = vld [vmem:[%s11128_s4 + $0x8a4] ss:$16 sps:$4 sm:$0xff]  }
 0x122   : > { %6755 = vmatprep.subr.bf16.mxu0 %v9677_v60  ;;  %7411 = vmatprep.subr.bf16.mxu1 %v9680_v61  ;;  %v9765_v60 = vld [vmem:[%s11128_s4 + $0x8ac] ss:$16 sps:$4 sm:$0xff]   ;;  %v9760_v61 = vld [vmem:[%s11128_s4 + $0x8a0] ss:$16 sps:$4 sm:$0xff]  }
 0x125   : > { %6756 = vmatpush1.bf16.msra.mxu0 %v9675_v62  ;;  %7412 = vmatpush1.bf16.msra.mxu1 %v9678_v63  ;;  %v9763_v62 = vld [vmem:[%s11128_s4 + $0x8a8] ss:$16 sps:$4 sm:$0xff]   ;;  %v9768_v63 = vld [vmem:[%s11128_s4 + $0x8c4] ss:$16 sps:$4 sm:$0xff]  }
 0x126   : > { %6757 = vmatprep.subr.bf16.mxu0 %v9683_v0  ;;  %7413 = vmatprep.subr.bf16.mxu1 %v9686_v1  ;;  %v9771_v0 = vld [vmem:[%s11128_s4 + $0x8cc] ss:$16 sps:$4 sm:$0xff]   ;;  %v9766_v1 = vld [vmem:[%s11128_s4 + $0x8c0] ss:$16 sps:$4 sm:$0xff]  }
 0x129   : > { %6758 = vmatpush1.bf16.msra.mxu0 %v9681_v2  ;;  %7414 = vmatpush1.bf16.msra.mxu1 %v9684_v3  ;;  %v9769_v2 = vld [vmem:[%s11128_s4 + $0x8c8] ss:$16 sps:$4 sm:$0xff]   ;;  %v9774_v3 = vld [vmem:[%s11128_s4 + $0x8e4] ss:$16 sps:$4 sm:$0xff]  }
 0x12a   : > { %6759 = vmatprep.subr.bf16.mxu0 %v9689_v4  ;;  %7415 = vmatprep.subr.bf16.mxu1 %v9692_v5  ;;  %v9777_v4 = vld [vmem:[%s11128_s4 + $0x8ec] ss:$16 sps:$4 sm:$0xff]   ;;  %v9772_v5 = vld [vmem:[%s11128_s4 + $0x8e0] ss:$16 sps:$4 sm:$0xff]  }
 0x12d   : > { %6760 = vmatpush1.bf16.msra.mxu0 %v9687_v6  ;;  %7416 = vmatpush1.bf16.msra.mxu1 %v9690_v7  ;;  %v9775_v6 = vld [vmem:[%s11128_s4 + $0x8e8] ss:$16 sps:$4 sm:$0xff]   ;;  %v9780_v7 = vld [vmem:[%s11128_s4 + $0x904] ss:$16 sps:$4 sm:$0xff]  }
 0x12e   : > { %6761 = vmatprep.subr.bf16.mxu0 %v9695_v8  ;;  %7417 = vmatprep.subr.bf16.mxu1 %v9698_v9  ;;  %v9783_v8 = vld [vmem:[%s11128_s4 + $0x90c] ss:$16 sps:$4 sm:$0xff]   ;;  %v9778_v9 = vld [vmem:[%s11128_s4 + $0x900] ss:$16 sps:$4 sm:$0xff]  }
 0x131   : > { %6762 = vmatpush1.bf16.msra.mxu0 %v9693_v11  ;;  %7418 = vmatpush1.bf16.msra.mxu1 %v9696_v12  ;;  %v9781_v11 = vld [vmem:[%s11128_s4 + $0x908] ss:$16 sps:$4 sm:$0xff]   ;;  %v9786_v12 = vld [vmem:[%s11128_s4 + $0x924] ss:$16 sps:$4 sm:$0xff]  }
 0x132   : > { %6763 = vmatprep.subr.bf16.mxu0 %v9701_v13  ;;  %7419 = vmatprep.subr.bf16.mxu1 %v9704_v14  ;;  %v9789_v13 = vld [vmem:[%s11128_s4 + $0x92c] ss:$16 sps:$4 sm:$0xff]   ;;  %v9784_v14 = vld [vmem:[%s11128_s4 + $0x920] ss:$16 sps:$4 sm:$0xff]  }
 0x135   : > { %6764 = vmatpush1.bf16.msra.mxu0 %v9699_v15  ;;  %7420 = vmatpush1.bf16.msra.mxu1 %v9702_v16  ;;  %v9787_v15 = vld [vmem:[%s11128_s4 + $0x928] ss:$16 sps:$4 sm:$0xff]   ;;  %v9792_v16 = vld [vmem:[%s11128_s4 + $0x944] ss:$16 sps:$4 sm:$0xff]  }
 0x136   : > { %6765 = vmatprep.subr.bf16.mxu0 %v9707_v17  ;;  %7421 = vmatprep.subr.bf16.mxu1 %v9710_v18  ;;  %v9795_v17 = vld [vmem:[%s11128_s4 + $0x94c] ss:$16 sps:$4 sm:$0xff]   ;;  %v9790_v18 = vld [vmem:[%s11128_s4 + $0x940] ss:$16 sps:$4 sm:$0xff]  }
 0x139   : > { %6766 = vmatpush1.bf16.msra.mxu0 %v9705_v19  ;;  %7422 = vmatpush1.bf16.msra.mxu1 %v9708_v20  ;;  %v9793_v19 = vld [vmem:[%s11128_s4 + $0x948] ss:$16 sps:$4 sm:$0xff]   ;;  %v9798_v20 = vld [vmem:[%s11128_s4 + $0x964] ss:$16 sps:$4 sm:$0xff]  }
 0x13a   : > { %6767 = vmatprep.subr.bf16.mxu0 %v9713_v21  ;;  %7423 = vmatprep.subr.bf16.mxu1 %v9716_v22  ;;  %v9801_v21 = vld [vmem:[%s11128_s4 + $0x96c] ss:$16 sps:$4 sm:$0xff]   ;;  %v9796_v22 = vld [vmem:[%s11128_s4 + $0x960] ss:$16 sps:$4 sm:$0xff]  }
 0x13d   : > { %6768 = vmatpush1.bf16.msra.mxu0 %v9711_v23  ;;  %7424 = vmatpush1.bf16.msra.mxu1 %v9714_v25  ;;  %v9799_v23 = vld [vmem:[%s11128_s4 + $0x968] ss:$16 sps:$4 sm:$0xff]   ;;  %v9804_v25 = vld [vmem:[%s11128_s4 + $0x984] ss:$16 sps:$4 sm:$0xff]  }
 0x13e   : > { %6769 = vmatprep.subr.bf16.mxu0 %v9719_v24  ;;  %7425 = vmatprep.subr.bf16.mxu1 %v9722_v10  ;;  %v9807_v24 = vld [vmem:[%s11128_s4 + $0x98c] ss:$16 sps:$4 sm:$0xff]   ;;  %v9802_v10 = vld [vmem:[%s11128_s4 + $0x980] ss:$16 sps:$4 sm:$0xff]  }
 0x141   : > { %6770 = vmatpush1.bf16.msra.mxu0 %v9717_v28  ;;  %7426 = vmatpush1.bf16.msra.mxu1 %v9720_v30  ;;  %v9805_v28 = vld [vmem:[%s11128_s4 + $0x988] ss:$16 sps:$4 sm:$0xff]   ;;  %v9810_v30 = vld [vmem:[%s11128_s4 + $0x9a4] ss:$16 sps:$4 sm:$0xff]  }
 0x142   : > { %6771 = vmatprep.subr.bf16.mxu0 %v9725_v31  ;;  %7427 = vmatprep.subr.bf16.mxu1 %v9728_v32  ;;  %v9813_v31 = vld [vmem:[%s11128_s4 + $0x9ac] ss:$16 sps:$4 sm:$0xff]   ;;  %v9808_v32 = vld [vmem:[%s11128_s4 + $0x9a0] ss:$16 sps:$4 sm:$0xff]  }
 0x145   : > { %6772 = vmatpush1.bf16.msra.mxu0 %v9723_v34  ;;  %7428 = vmatpush1.bf16.msra.mxu1 %v9726_v35  ;;  %v9811_v34 = vld [vmem:[%s11128_s4 + $0x9a8] ss:$16 sps:$4 sm:$0xff]   ;;  %v9816_v35 = vld [vmem:[%s11128_s4 + $0x9c4] ss:$16 sps:$4 sm:$0xff]  }
 0x146   : > { %6782 = vmatprep.subr.bf16.mxu0 %v9732_v36  ;;  %7438 = vmatprep.subr.bf16.mxu1 %v9735_v27  ;;  %v9819_v36 = vld [vmem:[%s11128_s4 + $0x9cc] ss:$16 sps:$4 sm:$0xff]   ;;  %v308_v27 = vcombine.high %v11438_v29, %v11438_v29  ;;  %v9820_v29 = vld [vmem:[%s11128_s4 + $0x9e0] ss:$16 sps:$4 sm:$0xff]  }
 0x148   : > { %6774 = vmatmul.mubr.bf16.vlgmr.msra.gmra.mrb[0].mxu0 %v448_v39  ;;  %7430 = vmatmul.mubr.bf16.vlgmr.msra.gmra.mrb[0].mxu1 %v448_v39  ;;  %v9822_v39 = vld [vmem:[%s11128_s4 + $0x9e4] ss:$16 sps:$4 sm:$0xff]  }
 0x149   : > { %6783 = vmatpush1.bf16.msra.mxu0 %v9730_v38  ;;  %7439 = vmatpush1.bf16.msra.mxu1 %v9733_v40  ;;  %v9817_v38 = vld [vmem:[%s11128_s4 + $0x9c8] ss:$16 sps:$4 sm:$0xff]   ;;  %v9825_v40 = vld [vmem:[%s11128_s4 + $0x9ec] ss:$16 sps:$4 sm:$0xff]  }
 0x14a   : > { %6784 = vmatprep.subr.bf16.mxu0 %v9738_v41  ;;  %7440 = vmatprep.subr.bf16.mxu1 %v9741_v42  ;;  %v11518_v41 = vrot.slane %v308_v27, %v11201_v50  ;;  %v9823_v42 = vld [vmem:[%s11128_s4 + $0x9e8] ss:$16 sps:$4 sm:$0xff]  }
 0x14b   : > { %6814 = vmatprep.mubr.bf16.mxu0 %v451_v43  ;;  %7470 = vmatprep.mubr.bf16.mxu1 %v451_v43  ;;  %v9828_v43 = vld [vmem:[%s11128_s4 + $0xa04] ss:$16 sps:$4 sm:$0xff]   ;;  %v9901_v27 = vld [vmem:[%s11128_s4 + $0xb88] ss:$16 sps:$4 sm:$0xff]  }
 0x14d   : > { %6785 = vmatpush1.bf16.msra.mxu0 %v9736_v45  ;;  %7441 = vmatpush1.bf16.msra.mxu1 %v9739_v46  ;;  %v9831_v45 = vld [vmem:[%s11128_s4 + $0xa0c] ss:$16 sps:$4 sm:$0xff]   ;;  %v324_v46 = vcombine.high %v11518_v41, %v11518_v41 }
 0x14e   : > { %6786 = vmatprep.subr.bf16.mxu0 %v9744_v26  ;;  %7442 = vmatprep.subr.bf16.mxu1 %v9747_v47  ;;  %v450_v26 = vpack.c.bf16 %v11445_v33, %v11445_v33  ;;  %v9826_v47 = vld [vmem:[%s11128_s4 + $0xa00] ss:$16 sps:$4 sm:$0xff]  }
 0x14f   : > { %v9832_v33 = vld [vmem:[%s11128_s4 + $0xa20] ss:$16 sps:$4 sm:$0xff]  }
 0x151   : > { %6787 = vmatpush1.bf16.msra.mxu0 %v9742_v48  ;;  %7443 = vmatpush1.bf16.msra.mxu1 %v9745_v49  ;;  %v9829_v48 = vld [vmem:[%s11128_s4 + $0xa08] ss:$16 sps:$4 sm:$0xff]   ;;  %v9834_v49 = vld [vmem:[%s11128_s4 + $0xa24] ss:$16 sps:$4 sm:$0xff]  }
 0x152   : > { %6788 = vmatprep.subr.bf16.mxu0 %v9750_v51  ;;  %7444 = vmatprep.subr.bf16.mxu1 %v9753_v52  ;;  %v9837_v51 = vld [vmem:[%s11128_s4 + $0xa2c] ss:$16 sps:$4 sm:$0xff]   ;;  %v453_v52 = vpack.c.bf16 %v324_v46, %v324_v46  ;;  %v9913_v46 = vld [vmem:[%s11128_s4 + $0xbc8] ss:$16 sps:$4 sm:$0xff]  }
 0x155   : > { %6789 = vmatpush1.bf16.msra.mxu0 %v9748_v53  ;;  %7445 = vmatpush1.bf16.msra.mxu1 %v9751_v54  ;;  %v9835_v53 = vld [vmem:[%s11128_s4 + $0xa28] ss:$16 sps:$4 sm:$0xff]   ;;  %v9840_v54 = vld [vmem:[%s11128_s4 + $0xa44] ss:$16 sps:$4 sm:$0xff]  }
 0x156   : > { %6790 = vmatprep.subr.bf16.mxu0 %v9756_v55  ;;  %7446 = vmatprep.subr.bf16.mxu1 %v9759_v56  ;;  %v9843_v55 = vld [vmem:[%s11128_s4 + $0xa4c] ss:$16 sps:$4 sm:$0xff]   ;;  %v9838_v56 = vld [vmem:[%s11128_s4 + $0xa40] ss:$16 sps:$4 sm:$0xff]  }
 0x159   : > { %6791 = vmatpush1.bf16.msra.mxu0 %v9754_v57  ;;  %7447 = vmatpush1.bf16.msra.mxu1 %v9757_v58  ;;  %v9841_v57 = vld [vmem:[%s11128_s4 + $0xa48] ss:$16 sps:$4 sm:$0xff]   ;;  %v9846_v58 = vld [vmem:[%s11128_s4 + $0xa64] ss:$16 sps:$4 sm:$0xff]  }
 0x15a   : > { %6792 = vmatprep.subr.bf16.mxu0 %v9762_v59  ;;  %7448 = vmatprep.subr.bf16.mxu1 %v9765_v60  ;;  %v9849_v59 = vld [vmem:[%s11128_s4 + $0xa6c] ss:$16 sps:$4 sm:$0xff]   ;;  %v9844_v60 = vld [vmem:[%s11128_s4 + $0xa60] ss:$16 sps:$4 sm:$0xff]  }
 0x15d   : > { %6793 = vmatpush1.bf16.msra.mxu0 %v9760_v61  ;;  %7449 = vmatpush1.bf16.msra.mxu1 %v9763_v62  ;;  %v9847_v61 = vld [vmem:[%s11128_s4 + $0xa68] ss:$16 sps:$4 sm:$0xff]   ;;  %v9852_v62 = vld [vmem:[%s11128_s4 + $0xa84] ss:$16 sps:$4 sm:$0xff]  }
 0x15e   : > { %6794 = vmatprep.subr.bf16.mxu0 %v9768_v63  ;;  %7450 = vmatprep.subr.bf16.mxu1 %v9771_v0  ;;  %v9855_v63 = vld [vmem:[%s11128_s4 + $0xa8c] ss:$16 sps:$4 sm:$0xff]   ;;  %v9850_v0 = vld [vmem:[%s11128_s4 + $0xa80] ss:$16 sps:$4 sm:$0xff]  }
 0x161   : > { %6795 = vmatpush1.bf16.msra.mxu0 %v9766_v1  ;;  %7451 = vmatpush1.bf16.msra.mxu1 %v9769_v2  ;;  %v9853_v1 = vld [vmem:[%s11128_s4 + $0xa88] ss:$16 sps:$4 sm:$0xff]   ;;  %v9858_v2 = vld [vmem:[%s11128_s4 + $0xaa4] ss:$16 sps:$4 sm:$0xff]  }
 0x162   : > { %6796 = vmatprep.subr.bf16.mxu0 %v9774_v3  ;;  %7452 = vmatprep.subr.bf16.mxu1 %v9777_v4  ;;  %v9861_v3 = vld [vmem:[%s11128_s4 + $0xaac] ss:$16 sps:$4 sm:$0xff]   ;;  %v9856_v4 = vld [vmem:[%s11128_s4 + $0xaa0] ss:$16 sps:$4 sm:$0xff]  }
 0x165   : > { %6797 = vmatpush1.bf16.msra.mxu0 %v9772_v5  ;;  %7453 = vmatpush1.bf16.msra.mxu1 %v9775_v6  ;;  %v9859_v5 = vld [vmem:[%s11128_s4 + $0xaa8] ss:$16 sps:$4 sm:$0xff]   ;;  %v9864_v6 = vld [vmem:[%s11128_s4 + $0xac4] ss:$16 sps:$4 sm:$0xff]  }
 0x166   : > { %6798 = vmatprep.subr.bf16.mxu0 %v9780_v7  ;;  %7454 = vmatprep.subr.bf16.mxu1 %v9783_v8  ;;  %v9867_v7 = vld [vmem:[%s11128_s4 + $0xacc] ss:$16 sps:$4 sm:$0xff]   ;;  %v9862_v8 = vld [vmem:[%s11128_s4 + $0xac0] ss:$16 sps:$4 sm:$0xff]  }
 0x169   : > { %6799 = vmatpush1.bf16.msra.mxu0 %v9778_v9  ;;  %7455 = vmatpush1.bf16.msra.mxu1 %v9781_v11  ;;  %v9865_v9 = vld [vmem:[%s11128_s4 + $0xac8] ss:$16 sps:$4 sm:$0xff]   ;;  %v9870_v11 = vld [vmem:[%s11128_s4 + $0xae4] ss:$16 sps:$4 sm:$0xff]  }
 0x16a   : > { %6800 = vmatprep.subr.bf16.mxu0 %v9786_v12  ;;  %7456 = vmatprep.subr.bf16.mxu1 %v9789_v13  ;;  %v9873_v12 = vld [vmem:[%s11128_s4 + $0xaec] ss:$16 sps:$4 sm:$0xff]   ;;  %v9868_v13 = vld [vmem:[%s11128_s4 + $0xae0] ss:$16 sps:$4 sm:$0xff]  }
 0x16d   : > { %6801 = vmatpush1.bf16.msra.mxu0 %v9784_v14  ;;  %7457 = vmatpush1.bf16.msra.mxu1 %v9787_v15  ;;  %v9871_v14 = vld [vmem:[%s11128_s4 + $0xae8] ss:$16 sps:$4 sm:$0xff]   ;;  %v9876_v15 = vld [vmem:[%s11128_s4 + $0xb04] ss:$16 sps:$4 sm:$0xff]  }
 0x16e   : > { %6802 = vmatprep.subr.bf16.mxu0 %v9792_v16  ;;  %7458 = vmatprep.subr.bf16.mxu1 %v9795_v17  ;;  %v9879_v16 = vld [vmem:[%s11128_s4 + $0xb0c] ss:$16 sps:$4 sm:$0xff]   ;;  %v9874_v17 = vld [vmem:[%s11128_s4 + $0xb00] ss:$16 sps:$4 sm:$0xff]  }
 0x171   : > { %6803 = vmatpush1.bf16.msra.mxu0 %v9790_v18  ;;  %7459 = vmatpush1.bf16.msra.mxu1 %v9793_v19  ;;  %v9877_v18 = vld [vmem:[%s11128_s4 + $0xb08] ss:$16 sps:$4 sm:$0xff]   ;;  %v9882_v19 = vld [vmem:[%s11128_s4 + $0xb24] ss:$16 sps:$4 sm:$0xff]  }
 0x172   : > { %6804 = vmatprep.subr.bf16.mxu0 %v9798_v20  ;;  %7460 = vmatprep.subr.bf16.mxu1 %v9801_v21  ;;  %v9885_v20 = vld [vmem:[%s11128_s4 + $0xb2c] ss:$16 sps:$4 sm:$0xff]   ;;  %v9880_v21 = vld [vmem:[%s11128_s4 + $0xb20] ss:$16 sps:$4 sm:$0xff]  }
 0x175   : > { %6805 = vmatpush1.bf16.msra.mxu0 %v9796_v22  ;;  %7461 = vmatpush1.bf16.msra.mxu1 %v9799_v23  ;;  %v9883_v22 = vld [vmem:[%s11128_s4 + $0xb28] ss:$16 sps:$4 sm:$0xff]   ;;  %v9888_v23 = vld [vmem:[%s11128_s4 + $0xb44] ss:$16 sps:$4 sm:$0xff]  }
 0x176   : > { %6806 = vmatprep.subr.bf16.mxu0 %v9804_v25  ;;  %7462 = vmatprep.subr.bf16.mxu1 %v9807_v24  ;;  %v9891_v25 = vld [vmem:[%s11128_s4 + $0xb4c] ss:$16 sps:$4 sm:$0xff]   ;;  %v9886_v24 = vld [vmem:[%s11128_s4 + $0xb40] ss:$16 sps:$4 sm:$0xff]  }
 0x179   : > { %6807 = vmatpush1.bf16.msra.mxu0 %v9802_v10  ;;  %7463 = vmatpush1.bf16.msra.mxu1 %v9805_v28  ;;  %v9889_v10 = vld [vmem:[%s11128_s4 + $0xb48] ss:$16 sps:$4 sm:$0xff]   ;;  %v9894_v28 = vld [vmem:[%s11128_s4 + $0xb64] ss:$16 sps:$4 sm:$0xff]  }
 0x17a   : > { %6808 = vmatprep.subr.bf16.mxu0 %v9810_v30  ;;  %7464 = vmatprep.subr.bf16.mxu1 %v9813_v31  ;;  %v9897_v30 = vld [vmem:[%s11128_s4 + $0xb6c] ss:$16 sps:$4 sm:$0xff]   ;;  %v9892_v31 = vld [vmem:[%s11128_s4 + $0xb60] ss:$16 sps:$4 sm:$0xff]  }
 0x17d   : > { %6809 = vmatpush1.bf16.msra.mxu0 %v9808_v32  ;;  %7465 = vmatpush1.bf16.msra.mxu1 %v9811_v34  ;;  %v9895_v32 = vld [vmem:[%s11128_s4 + $0xb68] ss:$16 sps:$4 sm:$0xff]   ;;  %v9900_v34 = vld [vmem:[%s11128_s4 + $0xb84] ss:$16 sps:$4 sm:$0xff]  }
 0x17e   : > { %6810 = vmatprep.subr.bf16.mxu0 %v9816_v35  ;;  %7466 = vmatprep.subr.bf16.mxu1 %v9819_v36  ;;  %v9903_v35 = vld [vmem:[%s11128_s4 + $0xb8c] ss:$16 sps:$4 sm:$0xff]   ;;  %v9898_v36 = vld [vmem:[%s11128_s4 + $0xb80] ss:$16 sps:$4 sm:$0xff]  }
 0x181   : > { %6811 = vmatpush1.bf16.msra.mxu0 %v9814_v37  ;;  %7467 = vmatpush1.bf16.msra.mxu1 %v9817_v38  ;;  %v9906_v37 = vld [vmem:[%s11128_s4 + $0xba4] ss:$16 sps:$4 sm:$0xff]   ;;  %v9909_v38 = vld [vmem:[%s11128_s4 + $0xbac] ss:$16 sps:$4 sm:$0xff]  }
 0x182   : > { %6812 = vmatprep.subr.bf16.mxu0 %v9822_v39  ;;  %7468 = vmatprep.subr.bf16.mxu1 %v9825_v40  ;;  %v9904_v39 = vld [vmem:[%s11128_s4 + $0xba0] ss:$16 sps:$4 sm:$0xff]   ;;  %v9907_v40 = vld [vmem:[%s11128_s4 + $0xba8] ss:$16 sps:$4 sm:$0xff]  }
 0x185   : > { %6813 = vmatpush1.bf16.msra.mxu0 %v9820_v29  ;;  %7469 = vmatpush1.bf16.msra.mxu1 %v9823_v42  ;;  %v9912_v29 = vld [vmem:[%s11128_s4 + $0xbc4] ss:$16 sps:$4 sm:$0xff]   ;;  %v9915_v42 = vld [vmem:[%s11128_s4 + $0xbcc] ss:$16 sps:$4 sm:$0xff]  }
 0x186   : > { %6823 = vmatprep.subr.bf16.mxu0 %v9828_v43  ;;  %7479 = vmatprep.subr.bf16.mxu1 %v9831_v45  ;;  %v11585_v43 = vld [vmem:[%s11141_s29 + $0x18] sm:$0xff] }
 0x187   : > { %v9910_v45 = vld [vmem:[%s11128_s4 + $0xbc0] ss:$16 sps:$4 sm:$0xff]  }
 0x188   : > { %6815 = vmatmul.mubr.bf16.vlgmr.msra.gmra.mrb[0].mxu0 %v450_v26  ;;  %7471 = vmatmul.mubr.bf16.vlgmr.msra.gmra.mrb[0].mxu1 %v450_v26  ;;  %v9918_v26 = vld [vmem:[%s11128_s4 + $0xbe4] ss:$16 sps:$4 sm:$0xff]  }
 0x189   : > { %6824 = vmatpush1.bf16.msra.mxu0 %v9826_v47  ;;  %7480 = vmatpush1.bf16.msra.mxu1 %v9829_v48  ;;  %v9921_v47 = vld [vmem:[%s11128_s4 + $0xbec] ss:$16 sps:$4 sm:$0xff]   ;;  %v11593_v48 = vrot.slane %v11585_v43, %v11201_v50 }
 0x18a   : > { %6825 = vmatprep.subr.bf16.mxu0 %v9834_v49  ;;  %7481 = vmatprep.subr.bf16.mxu1 %v9837_v51  ;;  %v9916_v49 = vld [vmem:[%s11128_s4 + $0xbe0] ss:$16 sps:$4 sm:$0xff]   ;;  %v9919_v51 = vld [vmem:[%s11128_s4 + $0xbe8] ss:$16 sps:$4 sm:$0xff]  }
 0x18b   : > { %6855 = vmatprep.mubr.bf16.mxu0 %v453_v52  ;;  %7511 = vmatprep.mubr.bf16.mxu1 %v453_v52  ;;  %v9925_v52 = vld [vmem:[%s11128_s4 + $0xc04] ss:$16 sps:$4 sm:$0xff]  }
 0x18d   : > { %6826 = vmatpush1.bf16.msra.mxu0 %v9832_v33  ;;  %7482 = vmatpush1.bf16.msra.mxu1 %v9835_v53  ;;  %v9928_v33 = vld [vmem:[%s11128_s4 + $0xc0c] ss:$16 sps:$4 sm:$0xff]   ;;  %v340_v53 = vcombine.high %v11593_v48, %v11593_v48 }
 0x18e   : > { %6827 = vmatprep.subr.bf16.mxu0 %v9840_v54  ;;  %7483 = vmatprep.subr.bf16.mxu1 %v9843_v55  ;;  %v452_v54 = vpack.c.bf16 %v11518_v41, %v11518_v41  ;;  %v9923_v55 = vld [vmem:[%s11128_s4 + $0xc00] ss:$16 sps:$4 sm:$0xff]  }
 0x18f   : > { %v9929_v41 = vld [vmem:[%s11128_s4 + $0xc20] ss:$16 sps:$4 sm:$0xff]  }
 0x191   : > { %6828 = vmatpush1.bf16.msra.mxu0 %v9838_v56  ;;  %7484 = vmatpush1.bf16.msra.mxu1 %v9841_v57  ;;  %v9926_v56 = vld [vmem:[%s11128_s4 + $0xc08] ss:$16 sps:$4 sm:$0xff]   ;;  %v9931_v57 = vld [vmem:[%s11128_s4 + $0xc24] ss:$16 sps:$4 sm:$0xff]  }
 0x192   : > { %6829 = vmatprep.subr.bf16.mxu0 %v9846_v58  ;;  %7485 = vmatprep.subr.bf16.mxu1 %v9849_v59  ;;  %v9934_v58 = vld [vmem:[%s11128_s4 + $0xc2c] ss:$16 sps:$4 sm:$0xff]   ;;  %v455_v59 = vpack.c.bf16 %v340_v53, %v340_v53  ;;  %v10007_v53 = vld [vmem:[%s11128_s4 + $0xdc0] ss:$16 sps:$4 sm:$0xff]  }
 0x195   : > { %6830 = vmatpush1.bf16.msra.mxu0 %v9844_v60  ;;  %7486 = vmatpush1.bf16.msra.mxu1 %v9847_v61  ;;  %v9932_v60 = vld [vmem:[%s11128_s4 + $0xc28] ss:$16 sps:$4 sm:$0xff]   ;;  %v9937_v61 = vld [vmem:[%s11128_s4 + $0xc44] ss:$16 sps:$4 sm:$0xff]  }
 0x196   : > { %6831 = vmatprep.subr.bf16.mxu0 %v9852_v62  ;;  %7487 = vmatprep.subr.bf16.mxu1 %v9855_v63  ;;  %v9940_v62 = vld [vmem:[%s11128_s4 + $0xc4c] ss:$16 sps:$4 sm:$0xff]   ;;  %v9935_v63 = vld [vmem:[%s11128_s4 + $0xc40] ss:$16 sps:$4 sm:$0xff]  }
 0x199   : > { %6832 = vmatpush1.bf16.msra.mxu0 %v9850_v0  ;;  %7488 = vmatpush1.bf16.msra.mxu1 %v9853_v1  ;;  %v9938_v0 = vld [vmem:[%s11128_s4 + $0xc48] ss:$16 sps:$4 sm:$0xff]   ;;  %v9943_v1 = vld [vmem:[%s11128_s4 + $0xc64] ss:$16 sps:$4 sm:$0xff]  }
 0x19a   : > { %6833 = vmatprep.subr.bf16.mxu0 %v9858_v2  ;;  %7489 = vmatprep.subr.bf16.mxu1 %v9861_v3  ;;  %v9946_v2 = vld [vmem:[%s11128_s4 + $0xc6c] ss:$16 sps:$4 sm:$0xff]   ;;  %v9941_v3 = vld [vmem:[%s11128_s4 + $0xc60] ss:$16 sps:$4 sm:$0xff]  }
 0x19d   : > { %6834 = vmatpush1.bf16.msra.mxu0 %v9856_v4  ;;  %7490 = vmatpush1.bf16.msra.mxu1 %v9859_v5  ;;  %v9944_v4 = vld [vmem:[%s11128_s4 + $0xc68] ss:$16 sps:$4 sm:$0xff]   ;;  %v9949_v5 = vld [vmem:[%s11128_s4 + $0xc84] ss:$16 sps:$4 sm:$0xff]  }
 0x19e   : > { %6835 = vmatprep.subr.bf16.mxu0 %v9864_v6  ;;  %7491 = vmatprep.subr.bf16.mxu1 %v9867_v7  ;;  %v9952_v6 = vld [vmem:[%s11128_s4 + $0xc8c] ss:$16 sps:$4 sm:$0xff]   ;;  %v9947_v7 = vld [vmem:[%s11128_s4 + $0xc80] ss:$16 sps:$4 sm:$0xff]  }
 0x1a1   : > { %6836 = vmatpush1.bf16.msra.mxu0 %v9862_v8  ;;  %7492 = vmatpush1.bf16.msra.mxu1 %v9865_v9  ;;  %v9950_v8 = vld [vmem:[%s11128_s4 + $0xc88] ss:$16 sps:$4 sm:$0xff]   ;;  %v9955_v9 = vld [vmem:[%s11128_s4 + $0xca4] ss:$16 sps:$4 sm:$0xff]  }
 0x1a2   : > { %6837 = vmatprep.subr.bf16.mxu0 %v9870_v11  ;;  %7493 = vmatprep.subr.bf16.mxu1 %v9873_v12  ;;  %v9958_v11 = vld [vmem:[%s11128_s4 + $0xcac] ss:$16 sps:$4 sm:$0xff]   ;;  %v9953_v12 = vld [vmem:[%s11128_s4 + $0xca0] ss:$16 sps:$4 sm:$0xff]  }
 0x1a5   : > { %6838 = vmatpush1.bf16.msra.mxu0 %v9868_v13  ;;  %7494 = vmatpush1.bf16.msra.mxu1 %v9871_v14  ;;  %v9956_v13 = vld [vmem:[%s11128_s4 + $0xca8] ss:$16 sps:$4 sm:$0xff]   ;;  %v9961_v14 = vld [vmem:[%s11128_s4 + $0xcc4] ss:$16 sps:$4 sm:$0xff]  }
 0x1a6   : > { %6839 = vmatprep.subr.bf16.mxu0 %v9876_v15  ;;  %7495 = vmatprep.subr.bf16.mxu1 %v9879_v16  ;;  %v9964_v15 = vld [vmem:[%s11128_s4 + $0xccc] ss:$16 sps:$4 sm:$0xff]   ;;  %v9959_v16 = vld [vmem:[%s11128_s4 + $0xcc0] ss:$16 sps:$4 sm:$0xff]  }
 0x1a9   : > { %6840 = vmatpush1.bf16.msra.mxu0 %v9874_v17  ;;  %7496 = vmatpush1.bf16.msra.mxu1 %v9877_v18  ;;  %v9962_v17 = vld [vmem:[%s11128_s4 + $0xcc8] ss:$16 sps:$4 sm:$0xff]   ;;  %v9967_v18 = vld [vmem:[%s11128_s4 + $0xce4] ss:$16 sps:$4 sm:$0xff]  }
 0x1aa   : > { %6841 = vmatprep.subr.bf16.mxu0 %v9882_v19  ;;  %7497 = vmatprep.subr.bf16.mxu1 %v9885_v20  ;;  %v9970_v19 = vld [vmem:[%s11128_s4 + $0xcec] ss:$16 sps:$4 sm:$0xff]   ;;  %v9965_v20 = vld [vmem:[%s11128_s4 + $0xce0] ss:$16 sps:$4 sm:$0xff]  }
 0x1ad   : > { %6842 = vmatpush1.bf16.msra.mxu0 %v9880_v21  ;;  %7498 = vmatpush1.bf16.msra.mxu1 %v9883_v22  ;;  %v9968_v21 = vld [vmem:[%s11128_s4 + $0xce8] ss:$16 sps:$4 sm:$0xff]   ;;  %v9973_v22 = vld [vmem:[%s11128_s4 + $0xd04] ss:$16 sps:$4 sm:$0xff]  }
 0x1ae   : > { %6843 = vmatprep.subr.bf16.mxu0 %v9888_v23  ;;  %7499 = vmatprep.subr.bf16.mxu1 %v9891_v25  ;;  %v9976_v23 = vld [vmem:[%s11128_s4 + $0xd0c] ss:$16 sps:$4 sm:$0xff]   ;;  %v9971_v25 = vld [vmem:[%s11128_s4 + $0xd00] ss:$16 sps:$4 sm:$0xff]  }
 0x1b1   : > { %6844 = vmatpush1.bf16.msra.mxu0 %v9886_v24  ;;  %7500 = vmatpush1.bf16.msra.mxu1 %v9889_v10  ;;  %v9974_v24 = vld [vmem:[%s11128_s4 + $0xd08] ss:$16 sps:$4 sm:$0xff]   ;;  %v9979_v10 = vld [vmem:[%s11128_s4 + $0xd24] ss:$16 sps:$4 sm:$0xff]  }
 0x1b2   : > { %6845 = vmatprep.subr.bf16.mxu0 %v9894_v28  ;;  %7501 = vmatprep.subr.bf16.mxu1 %v9897_v30  ;;  %v9982_v28 = vld [vmem:[%s11128_s4 + $0xd2c] ss:$16 sps:$4 sm:$0xff]   ;;  %v9977_v30 = vld [vmem:[%s11128_s4 + $0xd20] ss:$16 sps:$4 sm:$0xff]  }
 0x1b5   : > { %6846 = vmatpush1.bf16.msra.mxu0 %v9892_v31  ;;  %7502 = vmatpush1.bf16.msra.mxu1 %v9895_v32  ;;  %v9980_v31 = vld [vmem:[%s11128_s4 + $0xd28] ss:$16 sps:$4 sm:$0xff]   ;;  %v9985_v32 = vld [vmem:[%s11128_s4 + $0xd44] ss:$16 sps:$4 sm:$0xff]  }
 0x1b6   : > { %6847 = vmatprep.subr.bf16.mxu0 %v9900_v34  ;;  %7503 = vmatprep.subr.bf16.mxu1 %v9903_v35  ;;  %v9988_v34 = vld [vmem:[%s11128_s4 + $0xd4c] ss:$16 sps:$4 sm:$0xff]   ;;  %v9983_v35 = vld [vmem:[%s11128_s4 + $0xd40] ss:$16 sps:$4 sm:$0xff]  }
 0x1b9   : > { %6848 = vmatpush1.bf16.msra.mxu0 %v9898_v36  ;;  %7504 = vmatpush1.bf16.msra.mxu1 %v9901_v27  ;;  %v9986_v36 = vld [vmem:[%s11128_s4 + $0xd48] ss:$16 sps:$4 sm:$0xff]   ;;  %v9991_v27 = vld [vmem:[%s11128_s4 + $0xd64] ss:$16 sps:$4 sm:$0xff]  }
 0x1ba   : > { %6849 = vmatprep.subr.bf16.mxu0 %v9906_v37  ;;  %7505 = vmatprep.subr.bf16.mxu1 %v9909_v38  ;;  %v9994_v37 = vld [vmem:[%s11128_s4 + $0xd6c] ss:$16 sps:$4 sm:$0xff]   ;;  %v9989_v38 = vld [vmem:[%s11128_s4 + $0xd60] ss:$16 sps:$4 sm:$0xff]  }
 0x1bd   : > { %6850 = vmatpush1.bf16.msra.mxu0 %v9904_v39  ;;  %7506 = vmatpush1.bf16.msra.mxu1 %v9907_v40  ;;  %v9992_v39 = vld [vmem:[%s11128_s4 + $0xd68] ss:$16 sps:$4 sm:$0xff]   ;;  %v9997_v40 = vld [vmem:[%s11128_s4 + $0xd84] ss:$16 sps:$4 sm:$0xff]  }
 0x1be   : > { %6851 = vmatprep.subr.bf16.mxu0 %v9912_v29  ;;  %7507 = vmatprep.subr.bf16.mxu1 %v9915_v42  ;;  %v10000_v29 = vld [vmem:[%s11128_s4 + $0xd8c] ss:$16 sps:$4 sm:$0xff]   ;;  %v9995_v42 = vld [vmem:[%s11128_s4 + $0xd80] ss:$16 sps:$4 sm:$0xff]  }
 0x1c1   : > { %6852 = vmatpush1.bf16.msra.mxu0 %v9910_v45  ;;  %7508 = vmatpush1.bf16.msra.mxu1 %v9913_v46  ;;  %v9998_v45 = vld [vmem:[%s11128_s4 + $0xd88] ss:$16 sps:$4 sm:$0xff]   ;;  %v10003_v46 = vld [vmem:[%s11128_s4 + $0xda4] ss:$16 sps:$4 sm:$0xff]  }
 0x1c2   : > { %6853 = vmatprep.subr.bf16.mxu0 %v9918_v26  ;;  %7509 = vmatprep.subr.bf16.mxu1 %v9921_v47  ;;  %v10006_v26 = vld [vmem:[%s11128_s4 + $0xdac] ss:$16 sps:$4 sm:$0xff]   ;;  %v10001_v47 = vld [vmem:[%s11128_s4 + $0xda0] ss:$16 sps:$4 sm:$0xff]  }
 0x1c5   : > { %6854 = vmatpush1.bf16.msra.mxu0 %v9916_v49  ;;  %7510 = vmatpush1.bf16.msra.mxu1 %v9919_v51  ;;  %v10004_v49 = vld [vmem:[%s11128_s4 + $0xda8] ss:$16 sps:$4 sm:$0xff]   ;;  %v10009_v51 = vld [vmem:[%s11128_s4 + $0xdc4] ss:$16 sps:$4 sm:$0xff]  }
 0x1c6   : > { %6864 = vmatprep.subr.bf16.mxu0 %v9925_v52  ;;  %7520 = vmatprep.subr.bf16.mxu1 %v9928_v33  ;;  %v10012_v52 = vld [vmem:[%s11128_s4 + $0xdcc] ss:$16 sps:$4 sm:$0xff]   ;;  %v325_v33 = vcombine.high %v11585_v43, %v11585_v43  ;;  %v10013_v43 = vld [vmem:[%s11128_s4 + $0xde0] ss:$16 sps:$4 sm:$0xff]  }
 0x1c8   : > { %6856 = vmatmul.mubr.bf16.vlgmr.msra.gmra.mrb[0].mxu0 %v452_v54  ;;  %7512 = vmatmul.mubr.bf16.vlgmr.msra.gmra.mrb[0].mxu1 %v452_v54  ;;  %v10010_v54 = vld [vmem:[%s11128_s4 + $0xdc8] ss:$16 sps:$4 sm:$0xff]  }
 0x1c9   : > { %6865 = vmatpush1.bf16.msra.mxu0 %v9923_v55  ;;  %7521 = vmatpush1.bf16.msra.mxu1 %v9926_v56  ;;  %v10015_v55 = vld [vmem:[%s11128_s4 + $0xde4] ss:$16 sps:$4 sm:$0xff]   ;;  %v10018_v56 = vld [vmem:[%s11128_s4 + $0xdec] ss:$16 sps:$4 sm:$0xff]  }
 0x1ca   : > { %6866 = vmatprep.subr.bf16.mxu0 %v9931_v57  ;;  %7522 = vmatprep.subr.bf16.mxu1 %v9934_v58  ;;  %v11666_v57 = vrot.slane %v325_v33, %v11201_v50  ;;  %v10016_v58 = vld [vmem:[%s11128_s4 + $0xde8] ss:$16 sps:$4 sm:$0xff]  }
 0x1cb   : > { %6896 = vmatprep.mubr.bf16.mxu0 %v455_v59  ;;  %7552 = vmatprep.mubr.bf16.mxu1 %v455_v59  ;;  %v10021_v59 = vld [vmem:[%s11128_s4 + $0xe04] ss:$16 sps:$4 sm:$0xff]   ;;  %v10094_v33 = vld [vmem:[%s11128_s4 + $0xf88] ss:$16 sps:$4 sm:$0xff]  }
 0x1cd   : > { %6867 = vmatpush1.bf16.msra.mxu0 %v9929_v41  ;;  %7523 = vmatpush1.bf16.msra.mxu1 %v9932_v60  ;;  %v10024_v41 = vld [vmem:[%s11128_s4 + $0xe0c] ss:$16 sps:$4 sm:$0xff]   ;;  %v341_v60 = vcombine.high %v11666_v57, %v11666_v57 }
 0x1ce   : > { %6868 = vmatprep.subr.bf16.mxu0 %v9937_v61  ;;  %7524 = vmatprep.subr.bf16.mxu1 %v9940_v62  ;;  %v454_v61 = vpack.c.bf16 %v11593_v48, %v11593_v48  ;;  %v10019_v62 = vld [vmem:[%s11128_s4 + $0xe00] ss:$16 sps:$4 sm:$0xff]  }
 0x1cf   : > { %v10025_v48 = vld [vmem:[%s11128_s4 + $0xe20] ss:$16 sps:$4 sm:$0xff]  }
 0x1d1   : > { %6869 = vmatpush1.bf16.msra.mxu0 %v9935_v63  ;;  %7525 = vmatpush1.bf16.msra.mxu1 %v9938_v0  ;;  %v10022_v63 = vld [vmem:[%s11128_s4 + $0xe08] ss:$16 sps:$4 sm:$0xff]   ;;  %v10027_v0 = vld [vmem:[%s11128_s4 + $0xe24] ss:$16 sps:$4 sm:$0xff]  }
 0x1d2   : > { %6870 = vmatprep.subr.bf16.mxu0 %v9943_v1  ;;  %7526 = vmatprep.subr.bf16.mxu1 %v9946_v2  ;;  %v10030_v1 = vld [vmem:[%s11128_s4 + $0xe2c] ss:$16 sps:$4 sm:$0xff]   ;;  %v457_v2 = vpack.c.bf16 %v341_v60, %v341_v60  ;;  %v10106_v60 = vld [vmem:[%s11128_s4 + $0xfc8] ss:$16 sps:$4 sm:$0xff]  }
 0x1d5   : > { %6871 = vmatpush1.bf16.msra.mxu0 %v9941_v3  ;;  %7527 = vmatpush1.bf16.msra.mxu1 %v9944_v4  ;;  %v10028_v3 = vld [vmem:[%s11128_s4 + $0xe28] ss:$16 sps:$4 sm:$0xff]   ;;  %v10033_v4 = vld [vmem:[%s11128_s4 + $0xe44] ss:$16 sps:$4 sm:$0xff]  }
 0x1d6   : > { %6872 = vmatprep.subr.bf16.mxu0 %v9949_v5  ;;  %7528 = vmatprep.subr.bf16.mxu1 %v9952_v6  ;;  %v10036_v5 = vld [vmem:[%s11128_s4 + $0xe4c] ss:$16 sps:$4 sm:$0xff]   ;;  %v10031_v6 = vld [vmem:[%s11128_s4 + $0xe40] ss:$16 sps:$4 sm:$0xff]  }
 0x1d9   : > { %6873 = vmatpush1.bf16.msra.mxu0 %v9947_v7  ;;  %7529 = vmatpush1.bf16.msra.mxu1 %v9950_v8  ;;  %v10034_v7 = vld [vmem:[%s11128_s4 + $0xe48] ss:$16 sps:$4 sm:$0xff]   ;;  %v10039_v8 = vld [vmem:[%s11128_s4 + $0xe64] ss:$16 sps:$4 sm:$0xff]  }
 0x1da   : > { %6874 = vmatprep.subr.bf16.mxu0 %v9955_v9  ;;  %7530 = vmatprep.subr.bf16.mxu1 %v9958_v11  ;;  %v10042_v9 = vld [vmem:[%s11128_s4 + $0xe6c] ss:$16 sps:$4 sm:$0xff]   ;;  %v10037_v11 = vld [vmem:[%s11128_s4 + $0xe60] ss:$16 sps:$4 sm:$0xff]  }
 0x1dd   : > { %6875 = vmatpush1.bf16.msra.mxu0 %v9953_v12  ;;  %7531 = vmatpush1.bf16.msra.mxu1 %v9956_v13  ;;  %v10040_v12 = vld [vmem:[%s11128_s4 + $0xe68] ss:$16 sps:$4 sm:$0xff]   ;;  %v10045_v13 = vld [vmem:[%s11128_s4 + $0xe84] ss:$16 sps:$4 sm:$0xff]  }
 0x1de   : > { %6876 = vmatprep.subr.bf16.mxu0 %v9961_v14  ;;  %7532 = vmatprep.subr.bf16.mxu1 %v9964_v15  ;;  %v10048_v14 = vld [vmem:[%s11128_s4 + $0xe8c] ss:$16 sps:$4 sm:$0xff]   ;;  %v10043_v15 = vld [vmem:[%s11128_s4 + $0xe80] ss:$16 sps:$4 sm:$0xff]  }
 0x1e1   : > { %6877 = vmatpush1.bf16.msra.mxu0 %v9959_v16  ;;  %7533 = vmatpush1.bf16.msra.mxu1 %v9962_v17  ;;  %v10046_v16 = vld [vmem:[%s11128_s4 + $0xe88] ss:$16 sps:$4 sm:$0xff]   ;;  %v10051_v17 = vld [vmem:[%s11128_s4 + $0xea4] ss:$16 sps:$4 sm:$0xff]  }
 0x1e2   : > { %6878 = vmatprep.subr.bf16.mxu0 %v9967_v18  ;;  %7534 = vmatprep.subr.bf16.mxu1 %v9970_v19  ;;  %v10054_v18 = vld [vmem:[%s11128_s4 + $0xeac] ss:$16 sps:$4 sm:$0xff]   ;;  %v10049_v19 = vld [vmem:[%s11128_s4 + $0xea0] ss:$16 sps:$4 sm:$0xff]  }
 0x1e5   : > { %6879 = vmatpush1.bf16.msra.mxu0 %v9965_v20  ;;  %7535 = vmatpush1.bf16.msra.mxu1 %v9968_v21  ;;  %v10052_v20 = vld [vmem:[%s11128_s4 + $0xea8] ss:$16 sps:$4 sm:$0xff]   ;;  %v10057_v21 = vld [vmem:[%s11128_s4 + $0xec4] ss:$16 sps:$4 sm:$0xff]  }
 0x1e6   : > { %6880 = vmatprep.subr.bf16.mxu0 %v9973_v22  ;;  %7536 = vmatprep.subr.bf16.mxu1 %v9976_v23  ;;  %v10060_v22 = vld [vmem:[%s11128_s4 + $0xecc] ss:$16 sps:$4 sm:$0xff]   ;;  %v10055_v23 = vld [vmem:[%s11128_s4 + $0xec0] ss:$16 sps:$4 sm:$0xff]  }
 0x1e9   : > { %6881 = vmatpush1.bf16.msra.mxu0 %v9971_v25  ;;  %7537 = vmatpush1.bf16.msra.mxu1 %v9974_v24  ;;  %v10058_v25 = vld [vmem:[%s11128_s4 + $0xec8] ss:$16 sps:$4 sm:$0xff]   ;;  %v10063_v24 = vld [vmem:[%s11128_s4 + $0xee4] ss:$16 sps:$4 sm:$0xff]  }
 0x1ea   : > { %6882 = vmatprep.subr.bf16.mxu0 %v9979_v10  ;;  %7538 = vmatprep.subr.bf16.mxu1 %v9982_v28  ;;  %v10066_v10 = vld [vmem:[%s11128_s4 + $0xeec] ss:$16 sps:$4 sm:$0xff]   ;;  %v10061_v28 = vld [vmem:[%s11128_s4 + $0xee0] ss:$16 sps:$4 sm:$0xff]  }
 0x1ed   : > { %6883 = vmatpush1.bf16.msra.mxu0 %v9977_v30  ;;  %7539 = vmatpush1.bf16.msra.mxu1 %v9980_v31  ;;  %v10064_v30 = vld [vmem:[%s11128_s4 + $0xee8] ss:$16 sps:$4 sm:$0xff]   ;;  %v10069_v31 = vld [vmem:[%s11128_s4 + $0xf04] ss:$16 sps:$4 sm:$0xff]  }
 0x1ee   : > { %6884 = vmatprep.subr.bf16.mxu0 %v9985_v32  ;;  %7540 = vmatprep.subr.bf16.mxu1 %v9988_v34  ;;  %v10072_v32 = vld [vmem:[%s11128_s4 + $0xf0c] ss:$16 sps:$4 sm:$0xff]   ;;  %v10067_v34 = vld [vmem:[%s11128_s4 + $0xf00] ss:$16 sps:$4 sm:$0xff]  }
 0x1f1   : > { %6885 = vmatpush1.bf16.msra.mxu0 %v9983_v35  ;;  %7541 = vmatpush1.bf16.msra.mxu1 %v9986_v36  ;;  %v10070_v35 = vld [vmem:[%s11128_s4 + $0xf08] ss:$16 sps:$4 sm:$0xff]   ;;  %v10075_v36 = vld [vmem:[%s11128_s4 + $0xf24] ss:$16 sps:$4 sm:$0xff]  }
 0x1f2   : > { %6886 = vmatprep.subr.bf16.mxu0 %v9991_v27  ;;  %7542 = vmatprep.subr.bf16.mxu1 %v9994_v37  ;;  %v10078_v27 = vld [vmem:[%s11128_s4 + $0xf2c] ss:$16 sps:$4 sm:$0xff]   ;;  %v10073_v37 = vld [vmem:[%s11128_s4 + $0xf20] ss:$16 sps:$4 sm:$0xff]  }
 0x1f5   : > { %6887 = vmatpush1.bf16.msra.mxu0 %v9989_v38  ;;  %7543 = vmatpush1.bf16.msra.mxu1 %v9992_v39  ;;  %v10076_v38 = vld [vmem:[%s11128_s4 + $0xf28] ss:$16 sps:$4 sm:$0xff]   ;;  %v10081_v39 = vld [vmem:[%s11128_s4 + $0xf44] ss:$16 sps:$4 sm:$0xff]  }
 0x1f6   : > { %6888 = vmatprep.subr.bf16.mxu0 %v9997_v40  ;;  %7544 = vmatprep.subr.bf16.mxu1 %v10000_v29  ;;  %v10084_v40 = vld [vmem:[%s11128_s4 + $0xf4c] ss:$16 sps:$4 sm:$0xff]   ;;  %v10079_v29 = vld [vmem:[%s11128_s4 + $0xf40] ss:$16 sps:$4 sm:$0xff]  }
 0x1f9   : > { %6889 = vmatpush1.bf16.msra.mxu0 %v9995_v42  ;;  %7545 = vmatpush1.bf16.msra.mxu1 %v9998_v45  ;;  %v10082_v42 = vld [vmem:[%s11128_s4 + $0xf48] ss:$16 sps:$4 sm:$0xff]   ;;  %v10087_v45 = vld [vmem:[%s11128_s4 + $0xf64] ss:$16 sps:$4 sm:$0xff]  }
 0x1fa   : > { %6890 = vmatprep.subr.bf16.mxu0 %v10003_v46  ;;  %7546 = vmatprep.subr.bf16.mxu1 %v10006_v26  ;;  %v10090_v46 = vld [vmem:[%s11128_s4 + $0xf6c] ss:$16 sps:$4 sm:$0xff]   ;;  %v10085_v26 = vld [vmem:[%s11128_s4 + $0xf60] ss:$16 sps:$4 sm:$0xff]  }
 0x1fd   : > { %6891 = vmatpush1.bf16.msra.mxu0 %v10001_v47  ;;  %7547 = vmatpush1.bf16.msra.mxu1 %v10004_v49  ;;  %v10088_v47 = vld [vmem:[%s11128_s4 + $0xf68] ss:$16 sps:$4 sm:$0xff]   ;;  %v10093_v49 = vld [vmem:[%s11128_s4 + $0xf84] ss:$16 sps:$4 sm:$0xff]  }
 0x1fe   : > { %6892 = vmatprep.subr.bf16.mxu0 %v10009_v51  ;;  %7548 = vmatprep.subr.bf16.mxu1 %v10012_v52  ;;  %v10096_v51 = vld [vmem:[%s11128_s4 + $0xf8c] ss:$16 sps:$4 sm:$0xff]   ;;  %v10091_v52 = vld [vmem:[%s11128_s4 + $0xf80] ss:$16 sps:$4 sm:$0xff]  }
 0x201   : > { %6893 = vmatpush1.bf16.msra.mxu0 %v10007_v53  ;;  %7549 = vmatpush1.bf16.msra.mxu1 %v10010_v54  ;;  %v10099_v53 = vld [vmem:[%s11128_s4 + $0xfa4] ss:$16 sps:$4 sm:$0xff]   ;;  %v10102_v54 = vld [vmem:[%s11128_s4 + $0xfac] ss:$16 sps:$4 sm:$0xff]  }
 0x202   : > { %6894 = vmatprep.subr.bf16.mxu0 %v10015_v55  ;;  %7550 = vmatprep.subr.bf16.mxu1 %v10018_v56  ;;  %v10097_v55 = vld [vmem:[%s11128_s4 + $0xfa0] ss:$16 sps:$4 sm:$0xff]   ;;  %v10100_v56 = vld [vmem:[%s11128_s4 + $0xfa8] ss:$16 sps:$4 sm:$0xff]  }
 0x205   : > { %6895 = vmatpush1.bf16.msra.mxu0 %v10013_v43  ;;  %7551 = vmatpush1.bf16.msra.mxu1 %v10016_v58  ;;  %v10105_v43 = vld [vmem:[%s11128_s4 + $0xfc4] ss:$16 sps:$4 sm:$0xff]   ;;  %v10108_v58 = vld [vmem:[%s11128_s4 + $0xfcc] ss:$16 sps:$4 sm:$0xff]  }
 0x206   : > { %6905 = vmatprep.subr.bf16.mxu0 %v10021_v59  ;;  %7561 = vmatprep.subr.bf16.mxu1 %v10024_v41  ;;  %v11733_v59 = vld [vmem:[%s11141_s29 + $0x20] sm:$0xff]  ;;  %v10103_v41 = vld [vmem:[%s11128_s4 + $0xfc0] ss:$16 sps:$4 sm:$0xff]  }
 0x208   : > { %6897 = vmatmul.mubr.bf16.vlgmr.msra.gmra.mrb[0].mxu0 %v454_v61  ;;  %7553 = vmatmul.mubr.bf16.vlgmr.msra.gmra.mrb[0].mxu1 %v454_v61  ;;  %v10111_v61 = vld [vmem:[%s11128_s4 + $0xfe4] ss:$16 sps:$4 sm:$0xff]  }
 0x209   : > { %6906 = vmatpush1.bf16.msra.mxu0 %v10019_v62  ;;  %7562 = vmatpush1.bf16.msra.mxu1 %v10022_v63  ;;  %v10114_v62 = vld [vmem:[%s11128_s4 + $0xfec] ss:$16 sps:$4 sm:$0xff]   ;;  %v11741_v63 = vrot.slane %v11733_v59, %v11201_v50 }
 0x20a   : > { %6907 = vmatprep.subr.bf16.mxu0 %v10027_v0  ;;  %7563 = vmatprep.subr.bf16.mxu1 %v10030_v1  ;;  %v10109_v0 = vld [vmem:[%s11128_s4 + $0xfe0] ss:$16 sps:$4 sm:$0xff]   ;;  %v10112_v1 = vld [vmem:[%s11128_s4 + $0xfe8] ss:$16 sps:$4 sm:$0xff]  }
 0x20b   : > { %6937 = vmatprep.mubr.bf16.mxu0 %v457_v2  ;;  %7593 = vmatprep.mubr.bf16.mxu1 %v457_v2  ;;  %v10118_v2 = vld [vmem:[%s11128_s4 + $0x1004] ss:$16 sps:$4 sm:$0xff]  }
 0x20d   : > { %6908 = vmatpush1.bf16.msra.mxu0 %v10025_v48  ;;  %7564 = vmatpush1.bf16.msra.mxu1 %v10028_v3  ;;  %v10121_v48 = vld [vmem:[%s11128_s4 + $0x100c] ss:$16 sps:$4 sm:$0xff]   ;;  %v357_v3 = vcombine.high %v11741_v63, %v11741_v63 }
 0x20e   : > { %6909 = vmatprep.subr.bf16.mxu0 %v10033_v4  ;;  %7565 = vmatprep.subr.bf16.mxu1 %v10036_v5  ;;  %v456_v4 = vpack.c.bf16 %v11666_v57, %v11666_v57  ;;  %v10116_v5 = vld [vmem:[%s11128_s4 + $0x1000] ss:$16 sps:$4 sm:$0xff]  }
 0x20f   : > { %v10122_v57 = vld [vmem:[%s11128_s4 + $0x1020] ss:$16 sps:$4 sm:$0xff]  }
 0x211   : > { %6910 = vmatpush1.bf16.msra.mxu0 %v10031_v6  ;;  %7566 = vmatpush1.bf16.msra.mxu1 %v10034_v7  ;;  %v10119_v6 = vld [vmem:[%s11128_s4 + $0x1008] ss:$16 sps:$4 sm:$0xff]   ;;  %v10124_v7 = vld [vmem:[%s11128_s4 + $0x1024] ss:$16 sps:$4 sm:$0xff]  }
 0x212   : > { %6911 = vmatprep.subr.bf16.mxu0 %v10039_v8  ;;  %7567 = vmatprep.subr.bf16.mxu1 %v10042_v9  ;;  %v10127_v8 = vld [vmem:[%s11128_s4 + $0x102c] ss:$16 sps:$4 sm:$0xff]   ;;  %v459_v9 = vpack.c.bf16 %v357_v3, %v357_v3  ;;  %v10200_v3 = vld [vmem:[%s11128_s4 + $0x11c0] ss:$16 sps:$4 sm:$0xff]  }
 0x215   : > { %6912 = vmatpush1.bf16.msra.mxu0 %v10037_v11  ;;  %7568 = vmatpush1.bf16.msra.mxu1 %v10040_v12  ;;  %v10125_v11 = vld [vmem:[%s11128_s4 + $0x1028] ss:$16 sps:$4 sm:$0xff]   ;;  %v10130_v12 = vld [vmem:[%s11128_s4 + $0x1044] ss:$16 sps:$4 sm:$0xff]  }
 0x216   : > { %6913 = vmatprep.subr.bf16.mxu0 %v10045_v13  ;;  %7569 = vmatprep.subr.bf16.mxu1 %v10048_v14  ;;  %v10133_v13 = vld [vmem:[%s11128_s4 + $0x104c] ss:$16 sps:$4 sm:$0xff]   ;;  %v10128_v14 = vld [vmem:[%s11128_s4 + $0x1040] ss:$16 sps:$4 sm:$0xff]  }
 0x219   : > { %6914 = vmatpush1.bf16.msra.mxu0 %v10043_v15  ;;  %7570 = vmatpush1.bf16.msra.mxu1 %v10046_v16  ;;  %v10131_v15 = vld [vmem:[%s11128_s4 + $0x1048] ss:$16 sps:$4 sm:$0xff]   ;;  %v10136_v16 = vld [vmem:[%s11128_s4 + $0x1064] ss:$16 sps:$4 sm:$0xff]  }
 0x21a   : > { %6915 = vmatprep.subr.bf16.mxu0 %v10051_v17  ;;  %7571 = vmatprep.subr.bf16.mxu1 %v10054_v18  ;;  %v10139_v17 = vld [vmem:[%s11128_s4 + $0x106c] ss:$16 sps:$4 sm:$0xff]   ;;  %v10134_v18 = vld [vmem:[%s11128_s4 + $0x1060] ss:$16 sps:$4 sm:$0xff]  }
 0x21d   : > { %6916 = vmatpush1.bf16.msra.mxu0 %v10049_v19  ;;  %7572 = vmatpush1.bf16.msra.mxu1 %v10052_v20  ;;  %v10137_v19 = vld [vmem:[%s11128_s4 + $0x1068] ss:$16 sps:$4 sm:$0xff]   ;;  %v10142_v20 = vld [vmem:[%s11128_s4 + $0x1084] ss:$16 sps:$4 sm:$0xff]  }
 0x21e   : > { %6917 = vmatprep.subr.bf16.mxu0 %v10057_v21  ;;  %7573 = vmatprep.subr.bf16.mxu1 %v10060_v22  ;;  %v10145_v21 = vld [vmem:[%s11128_s4 + $0x108c] ss:$16 sps:$4 sm:$0xff]   ;;  %v10140_v22 = vld [vmem:[%s11128_s4 + $0x1080] ss:$16 sps:$4 sm:$0xff]  }
 0x221   : > { %6918 = vmatpush1.bf16.msra.mxu0 %v10055_v23  ;;  %7574 = vmatpush1.bf16.msra.mxu1 %v10058_v25  ;;  %v10143_v23 = vld [vmem:[%s11128_s4 + $0x1088] ss:$16 sps:$4 sm:$0xff]   ;;  %v10148_v25 = vld [vmem:[%s11128_s4 + $0x10a4] ss:$16 sps:$4 sm:$0xff]  }
 0x222   : > { %6919 = vmatprep.subr.bf16.mxu0 %v10063_v24  ;;  %7575 = vmatprep.subr.bf16.mxu1 %v10066_v10  ;;  %v10151_v24 = vld [vmem:[%s11128_s4 + $0x10ac] ss:$16 sps:$4 sm:$0xff]   ;;  %v10146_v10 = vld [vmem:[%s11128_s4 + $0x10a0] ss:$16 sps:$4 sm:$0xff]  }
 0x225   : > { %6920 = vmatpush1.bf16.msra.mxu0 %v10061_v28  ;;  %7576 = vmatpush1.bf16.msra.mxu1 %v10064_v30  ;;  %v10149_v28 = vld [vmem:[%s11128_s4 + $0x10a8] ss:$16 sps:$4 sm:$0xff]   ;;  %v10154_v30 = vld [vmem:[%s11128_s4 + $0x10c4] ss:$16 sps:$4 sm:$0xff]  }
 0x226   : > { %6921 = vmatprep.subr.bf16.mxu0 %v10069_v31  ;;  %7577 = vmatprep.subr.bf16.mxu1 %v10072_v32  ;;  %v10157_v31 = vld [vmem:[%s11128_s4 + $0x10cc] ss:$16 sps:$4 sm:$0xff]   ;;  %v10152_v32 = vld [vmem:[%s11128_s4 + $0x10c0] ss:$16 sps:$4 sm:$0xff]  }
 0x229   : > { %6922 = vmatpush1.bf16.msra.mxu0 %v10067_v34  ;;  %7578 = vmatpush1.bf16.msra.mxu1 %v10070_v35  ;;  %v10155_v34 = vld [vmem:[%s11128_s4 + $0x10c8] ss:$16 sps:$4 sm:$0xff]   ;;  %v10160_v35 = vld [vmem:[%s11128_s4 + $0x10e4] ss:$16 sps:$4 sm:$0xff]  }
 0x22a   : > { %6923 = vmatprep.subr.bf16.mxu0 %v10075_v36  ;;  %7579 = vmatprep.subr.bf16.mxu1 %v10078_v27  ;;  %v10163_v36 = vld [vmem:[%s11128_s4 + $0x10ec] ss:$16 sps:$4 sm:$0xff]   ;;  %v10158_v27 = vld [vmem:[%s11128_s4 + $0x10e0] ss:$16 sps:$4 sm:$0xff]  }
 0x22d   : > { %6924 = vmatpush1.bf16.msra.mxu0 %v10073_v37  ;;  %7580 = vmatpush1.bf16.msra.mxu1 %v10076_v38  ;;  %v10161_v37 = vld [vmem:[%s11128_s4 + $0x10e8] ss:$16 sps:$4 sm:$0xff]   ;;  %v10166_v38 = vld [vmem:[%s11128_s4 + $0x1104] ss:$16 sps:$4 sm:$0xff]  }
 0x22e   : > { %6925 = vmatprep.subr.bf16.mxu0 %v10081_v39  ;;  %7581 = vmatprep.subr.bf16.mxu1 %v10084_v40  ;;  %v10169_v39 = vld [vmem:[%s11128_s4 + $0x110c] ss:$16 sps:$4 sm:$0xff]   ;;  %v10164_v40 = vld [vmem:[%s11128_s4 + $0x1100] ss:$16 sps:$4 sm:$0xff]  }
 0x231   : > { %6926 = vmatpush1.bf16.msra.mxu0 %v10079_v29  ;;  %7582 = vmatpush1.bf16.msra.mxu1 %v10082_v42  ;;  %v10167_v29 = vld [vmem:[%s11128_s4 + $0x1108] ss:$16 sps:$4 sm:$0xff]   ;;  %v10172_v42 = vld [vmem:[%s11128_s4 + $0x1124] ss:$16 sps:$4 sm:$0xff]  }
 0x232   : > { %6927 = vmatprep.subr.bf16.mxu0 %v10087_v45  ;;  %7583 = vmatprep.subr.bf16.mxu1 %v10090_v46  ;;  %v10175_v45 = vld [vmem:[%s11128_s4 + $0x112c] ss:$16 sps:$4 sm:$0xff]   ;;  %v10170_v46 = vld [vmem:[%s11128_s4 + $0x1120] ss:$16 sps:$4 sm:$0xff]  }
 0x235   : > { %6928 = vmatpush1.bf16.msra.mxu0 %v10085_v26  ;;  %7584 = vmatpush1.bf16.msra.mxu1 %v10088_v47  ;;  %v10173_v26 = vld [vmem:[%s11128_s4 + $0x1128] ss:$16 sps:$4 sm:$0xff]   ;;  %v10178_v47 = vld [vmem:[%s11128_s4 + $0x1144] ss:$16 sps:$4 sm:$0xff]  }
 0x236   : > { %6929 = vmatprep.subr.bf16.mxu0 %v10093_v49  ;;  %7585 = vmatprep.subr.bf16.mxu1 %v10096_v51  ;;  %v10181_v49 = vld [vmem:[%s11128_s4 + $0x114c] ss:$16 sps:$4 sm:$0xff]   ;;  %v10176_v51 = vld [vmem:[%s11128_s4 + $0x1140] ss:$16 sps:$4 sm:$0xff]  }
 0x239   : > { %6930 = vmatpush1.bf16.msra.mxu0 %v10091_v52  ;;  %7586 = vmatpush1.bf16.msra.mxu1 %v10094_v33  ;;  %v10179_v52 = vld [vmem:[%s11128_s4 + $0x1148] ss:$16 sps:$4 sm:$0xff]   ;;  %v10184_v33 = vld [vmem:[%s11128_s4 + $0x1164] ss:$16 sps:$4 sm:$0xff]  }
 0x23a   : > { %6931 = vmatprep.subr.bf16.mxu0 %v10099_v53  ;;  %7587 = vmatprep.subr.bf16.mxu1 %v10102_v54  ;;  %v10187_v53 = vld [vmem:[%s11128_s4 + $0x116c] ss:$16 sps:$4 sm:$0xff]   ;;  %v10182_v54 = vld [vmem:[%s11128_s4 + $0x1160] ss:$16 sps:$4 sm:$0xff]  }
 0x23d   : > { %6932 = vmatpush1.bf16.msra.mxu0 %v10097_v55  ;;  %7588 = vmatpush1.bf16.msra.mxu1 %v10100_v56  ;;  %v10185_v55 = vld [vmem:[%s11128_s4 + $0x1168] ss:$16 sps:$4 sm:$0xff]   ;;  %v10190_v56 = vld [vmem:[%s11128_s4 + $0x1184] ss:$16 sps:$4 sm:$0xff]  }
 0x23e   : > { %6933 = vmatprep.subr.bf16.mxu0 %v10105_v43  ;;  %7589 = vmatprep.subr.bf16.mxu1 %v10108_v58  ;;  %v10193_v43 = vld [vmem:[%s11128_s4 + $0x118c] ss:$16 sps:$4 sm:$0xff]   ;;  %v10188_v58 = vld [vmem:[%s11128_s4 + $0x1180] ss:$16 sps:$4 sm:$0xff]  }
 0x241   : > { %6934 = vmatpush1.bf16.msra.mxu0 %v10103_v41  ;;  %7590 = vmatpush1.bf16.msra.mxu1 %v10106_v60  ;;  %v10191_v41 = vld [vmem:[%s11128_s4 + $0x1188] ss:$16 sps:$4 sm:$0xff]   ;;  %v10196_v60 = vld [vmem:[%s11128_s4 + $0x11a4] ss:$16 sps:$4 sm:$0xff]  }
 0x242   : > { %6935 = vmatprep.subr.bf16.mxu0 %v10111_v61  ;;  %7591 = vmatprep.subr.bf16.mxu1 %v10114_v62  ;;  %v10199_v61 = vld [vmem:[%s11128_s4 + $0x11ac] ss:$16 sps:$4 sm:$0xff]   ;;  %v10194_v62 = vld [vmem:[%s11128_s4 + $0x11a0] ss:$16 sps:$4 sm:$0xff]  }
 0x245   : > { %6936 = vmatpush1.bf16.msra.mxu0 %v10109_v0  ;;  %7592 = vmatpush1.bf16.msra.mxu1 %v10112_v1  ;;  %v10197_v0 = vld [vmem:[%s11128_s4 + $0x11a8] ss:$16 sps:$4 sm:$0xff]   ;;  %v10202_v1 = vld [vmem:[%s11128_s4 + $0x11c4] ss:$16 sps:$4 sm:$0xff]  }
 0x246   : > { %6946 = vmatprep.subr.bf16.mxu0 %v10118_v2  ;;  %7602 = vmatprep.subr.bf16.mxu1 %v10121_v48  ;;  %v10205_v2 = vld [vmem:[%s11128_s4 + $0x11cc] ss:$16 sps:$4 sm:$0xff]   ;;  %v342_v48 = vcombine.high %v11733_v59, %v11733_v59  ;;  %v10206_v59 = vld [vmem:[%s11128_s4 + $0x11e0] ss:$16 sps:$4 sm:$0xff]  }
 0x248   : > { %6938 = vmatmul.mubr.bf16.vlgmr.msra.gmra.mrb[0].mxu0 %v456_v4  ;;  %7594 = vmatmul.mubr.bf16.vlgmr.msra.gmra.mrb[0].mxu1 %v456_v4  ;;  %v10203_v4 = vld [vmem:[%s11128_s4 + $0x11c8] ss:$16 sps:$4 sm:$0xff]  }
 0x249   : > { %6947 = vmatpush1.bf16.msra.mxu0 %v10116_v5  ;;  %7603 = vmatpush1.bf16.msra.mxu1 %v10119_v6  ;;  %v10208_v5 = vld [vmem:[%s11128_s4 + $0x11e4] ss:$16 sps:$4 sm:$0xff]   ;;  %v10211_v6 = vld [vmem:[%s11128_s4 + $0x11ec] ss:$16 sps:$4 sm:$0xff]  }
 0x24a   : > { %6948 = vmatprep.subr.bf16.mxu0 %v10124_v7  ;;  %7604 = vmatprep.subr.bf16.mxu1 %v10127_v8  ;;  %v11814_v7 = vrot.slane %v342_v48, %v11201_v50  ;;  %v10209_v8 = vld [vmem:[%s11128_s4 + $0x11e8] ss:$16 sps:$4 sm:$0xff]  }
 0x24b   : > { %6978 = vmatprep.mubr.bf16.mxu0 %v459_v9  ;;  %7634 = vmatprep.mubr.bf16.mxu1 %v459_v9  ;;  %v10214_v9 = vld [vmem:[%s11128_s4 + $0x1204] ss:$16 sps:$4 sm:$0xff]   ;;  %v10287_v48 = vld [vmem:[%s11128_s4 + $0x1388] ss:$16 sps:$4 sm:$0xff]  }
 0x24d   : > { %6949 = vmatpush1.bf16.msra.mxu0 %v10122_v57  ;;  %7605 = vmatpush1.bf16.msra.mxu1 %v10125_v11  ;;  %v10217_v57 = vld [vmem:[%s11128_s4 + $0x120c] ss:$16 sps:$4 sm:$0xff]   ;;  %v358_v11 = vcombine.high %v11814_v7, %v11814_v7 }
 0x24e   : > { %6950 = vmatprep.subr.bf16.mxu0 %v10130_v12  ;;  %7606 = vmatprep.subr.bf16.mxu1 %v10133_v13  ;;  %v458_v12 = vpack.c.bf16 %v11741_v63, %v11741_v63  ;;  %v10212_v13 = vld [vmem:[%s11128_s4 + $0x1200] ss:$16 sps:$4 sm:$0xff]  }
 0x24f   : > { %v10218_v63 = vld [vmem:[%s11128_s4 + $0x1220] ss:$16 sps:$4 sm:$0xff]  }
 0x251   : > { %6951 = vmatpush1.bf16.msra.mxu0 %v10128_v14  ;;  %7607 = vmatpush1.bf16.msra.mxu1 %v10131_v15  ;;  %v10215_v14 = vld [vmem:[%s11128_s4 + $0x1208] ss:$16 sps:$4 sm:$0xff]   ;;  %v10220_v15 = vld [vmem:[%s11128_s4 + $0x1224] ss:$16 sps:$4 sm:$0xff]  }
 0x252   : > { %6952 = vmatprep.subr.bf16.mxu0 %v10136_v16  ;;  %7608 = vmatprep.subr.bf16.mxu1 %v10139_v17  ;;  %v10223_v16 = vld [vmem:[%s11128_s4 + $0x122c] ss:$16 sps:$4 sm:$0xff]   ;;  %v461_v17 = vpack.c.bf16 %v358_v11, %v358_v11  ;;  %v10299_v11 = vld [vmem:[%s11128_s4 + $0x13c8] ss:$16 sps:$4 sm:$0xff]  }
 0x255   : > { %6953 = vmatpush1.bf16.msra.mxu0 %v10134_v18  ;;  %7609 = vmatpush1.bf16.msra.mxu1 %v10137_v19  ;;  %v10221_v18 = vld [vmem:[%s11128_s4 + $0x1228] ss:$16 sps:$4 sm:$0xff]   ;;  %v10226_v19 = vld [vmem:[%s11128_s4 + $0x1244] ss:$16 sps:$4 sm:$0xff]  }
 0x256   : > { %6954 = vmatprep.subr.bf16.mxu0 %v10142_v20  ;;  %7610 = vmatprep.subr.bf16.mxu1 %v10145_v21  ;;  %v10229_v20 = vld [vmem:[%s11128_s4 + $0x124c] ss:$16 sps:$4 sm:$0xff]   ;;  %v10224_v21 = vld [vmem:[%s11128_s4 + $0x1240] ss:$16 sps:$4 sm:$0xff]  }
 0x259   : > { %6955 = vmatpush1.bf16.msra.mxu0 %v10140_v22  ;;  %7611 = vmatpush1.bf16.msra.mxu1 %v10143_v23  ;;  %v10227_v22 = vld [vmem:[%s11128_s4 + $0x1248] ss:$16 sps:$4 sm:$0xff]   ;;  %v10232_v23 = vld [vmem:[%s11128_s4 + $0x1264] ss:$16 sps:$4 sm:$0xff]  }
 0x25a   : > { %6956 = vmatprep.subr.bf16.mxu0 %v10148_v25  ;;  %7612 = vmatprep.subr.bf16.mxu1 %v10151_v24  ;;  %v10235_v25 = vld [vmem:[%s11128_s4 + $0x126c] ss:$16 sps:$4 sm:$0xff]   ;;  %v10230_v24 = vld [vmem:[%s11128_s4 + $0x1260] ss:$16 sps:$4 sm:$0xff]  }
 0x25d   : > { %6957 = vmatpush1.bf16.msra.mxu0 %v10146_v10  ;;  %7613 = vmatpush1.bf16.msra.mxu1 %v10149_v28  ;;  %v10233_v10 = vld [vmem:[%s11128_s4 + $0x1268] ss:$16 sps:$4 sm:$0xff]   ;;  %v10238_v28 = vld [vmem:[%s11128_s4 + $0x1284] ss:$16 sps:$4 sm:$0xff]  }
 0x25e   : > { %6958 = vmatprep.subr.bf16.mxu0 %v10154_v30  ;;  %7614 = vmatprep.subr.bf16.mxu1 %v10157_v31  ;;  %v10241_v30 = vld [vmem:[%s11128_s4 + $0x128c] ss:$16 sps:$4 sm:$0xff]   ;;  %v10236_v31 = vld [vmem:[%s11128_s4 + $0x1280] ss:$16 sps:$4 sm:$0xff]  }
 0x261   : > { %6959 = vmatpush1.bf16.msra.mxu0 %v10152_v32  ;;  %7615 = vmatpush1.bf16.msra.mxu1 %v10155_v34  ;;  %v10239_v32 = vld [vmem:[%s11128_s4 + $0x1288] ss:$16 sps:$4 sm:$0xff]   ;;  %v10244_v34 = vld [vmem:[%s11128_s4 + $0x12a4] ss:$16 sps:$4 sm:$0xff]  }
 0x262   : > { %6960 = vmatprep.subr.bf16.mxu0 %v10160_v35  ;;  %7616 = vmatprep.subr.bf16.mxu1 %v10163_v36  ;;  %v10247_v35 = vld [vmem:[%s11128_s4 + $0x12ac] ss:$16 sps:$4 sm:$0xff]   ;;  %v10242_v36 = vld [vmem:[%s11128_s4 + $0x12a0] ss:$16 sps:$4 sm:$0xff]  }
 0x265   : > { %6961 = vmatpush1.bf16.msra.mxu0 %v10158_v27  ;;  %7617 = vmatpush1.bf16.msra.mxu1 %v10161_v37  ;;  %v10245_v27 = vld [vmem:[%s11128_s4 + $0x12a8] ss:$16 sps:$4 sm:$0xff]   ;;  %v10250_v37 = vld [vmem:[%s11128_s4 + $0x12c4] ss:$16 sps:$4 sm:$0xff]  }
 0x266   : > { %6962 = vmatprep.subr.bf16.mxu0 %v10166_v38  ;;  %7618 = vmatprep.subr.bf16.mxu1 %v10169_v39  ;;  %v10253_v38 = vld [vmem:[%s11128_s4 + $0x12cc] ss:$16 sps:$4 sm:$0xff]   ;;  %v10248_v39 = vld [vmem:[%s11128_s4 + $0x12c0] ss:$16 sps:$4 sm:$0xff]  }
 0x269   : > { %6963 = vmatpush1.bf16.msra.mxu0 %v10164_v40  ;;  %7619 = vmatpush1.bf16.msra.mxu1 %v10167_v29  ;;  %v10251_v40 = vld [vmem:[%s11128_s4 + $0x12c8] ss:$16 sps:$4 sm:$0xff]   ;;  %v10256_v29 = vld [vmem:[%s11128_s4 + $0x12e4] ss:$16 sps:$4 sm:$0xff]  }
 0x26a   : > { %6964 = vmatprep.subr.bf16.mxu0 %v10172_v42  ;;  %7620 = vmatprep.subr.bf16.mxu1 %v10175_v45  ;;  %v10259_v42 = vld [vmem:[%s11128_s4 + $0x12ec] ss:$16 sps:$4 sm:$0xff]   ;;  %v10254_v45 = vld [vmem:[%s11128_s4 + $0x12e0] ss:$16 sps:$4 sm:$0xff]  }
 0x26d   : > { %6965 = vmatpush1.bf16.msra.mxu0 %v10170_v46  ;;  %7621 = vmatpush1.bf16.msra.mxu1 %v10173_v26  ;;  %v10257_v46 = vld [vmem:[%s11128_s4 + $0x12e8] ss:$16 sps:$4 sm:$0xff]   ;;  %v10262_v26 = vld [vmem:[%s11128_s4 + $0x1304] ss:$16 sps:$4 sm:$0xff]  }
 0x26e   : > { %6966 = vmatprep.subr.bf16.mxu0 %v10178_v47  ;;  %7622 = vmatprep.subr.bf16.mxu1 %v10181_v49  ;;  %v10265_v47 = vld [vmem:[%s11128_s4 + $0x130c] ss:$16 sps:$4 sm:$0xff]   ;;  %v10260_v49 = vld [vmem:[%s11128_s4 + $0x1300] ss:$16 sps:$4 sm:$0xff]  }
 0x271   : > { %6967 = vmatpush1.bf16.msra.mxu0 %v10176_v51  ;;  %7623 = vmatpush1.bf16.msra.mxu1 %v10179_v52  ;;  %v10263_v51 = vld [vmem:[%s11128_s4 + $0x1308] ss:$16 sps:$4 sm:$0xff]   ;;  %v10268_v52 = vld [vmem:[%s11128_s4 + $0x1324] ss:$16 sps:$4 sm:$0xff]  }
 0x272   : > { %6968 = vmatprep.subr.bf16.mxu0 %v10184_v33  ;;  %7624 = vmatprep.subr.bf16.mxu1 %v10187_v53  ;;  %v10271_v33 = vld [vmem:[%s11128_s4 + $0x132c] ss:$16 sps:$4 sm:$0xff]   ;;  %v10266_v53 = vld [vmem:[%s11128_s4 + $0x1320] ss:$16 sps:$4 sm:$0xff]  }
 0x275   : > { %6969 = vmatpush1.bf16.msra.mxu0 %v10182_v54  ;;  %7625 = vmatpush1.bf16.msra.mxu1 %v10185_v55  ;;  %v10269_v54 = vld [vmem:[%s11128_s4 + $0x1328] ss:$16 sps:$4 sm:$0xff]   ;;  %v10274_v55 = vld [vmem:[%s11128_s4 + $0x1344] ss:$16 sps:$4 sm:$0xff]  }
 0x276   : > { %6970 = vmatprep.subr.bf16.mxu0 %v10190_v56  ;;  %7626 = vmatprep.subr.bf16.mxu1 %v10193_v43  ;;  %v10277_v56 = vld [vmem:[%s11128_s4 + $0x134c] ss:$16 sps:$4 sm:$0xff]   ;;  %v10272_v43 = vld [vmem:[%s11128_s4 + $0x1340] ss:$16 sps:$4 sm:$0xff]  }
 0x279   : > { %6971 = vmatpush1.bf16.msra.mxu0 %v10188_v58  ;;  %7627 = vmatpush1.bf16.msra.mxu1 %v10191_v41  ;;  %v10275_v58 = vld [vmem:[%s11128_s4 + $0x1348] ss:$16 sps:$4 sm:$0xff]   ;;  %v10280_v41 = vld [vmem:[%s11128_s4 + $0x1364] ss:$16 sps:$4 sm:$0xff]  }
 0x27a   : > { %6972 = vmatprep.subr.bf16.mxu0 %v10196_v60  ;;  %7628 = vmatprep.subr.bf16.mxu1 %v10199_v61  ;;  %v10283_v60 = vld [vmem:[%s11128_s4 + $0x136c] ss:$16 sps:$4 sm:$0xff]   ;;  %v10278_v61 = vld [vmem:[%s11128_s4 + $0x1360] ss:$16 sps:$4 sm:$0xff]  }
 0x27d   : > { %6973 = vmatpush1.bf16.msra.mxu0 %v10194_v62  ;;  %7629 = vmatpush1.bf16.msra.mxu1 %v10197_v0  ;;  %v10281_v62 = vld [vmem:[%s11128_s4 + $0x1368] ss:$16 sps:$4 sm:$0xff]   ;;  %v10286_v0 = vld [vmem:[%s11128_s4 + $0x1384] ss:$16 sps:$4 sm:$0xff]  }
 0x27e   : > { %6974 = vmatprep.subr.bf16.mxu0 %v10202_v1  ;;  %7630 = vmatprep.subr.bf16.mxu1 %v10205_v2  ;;  %v10289_v1 = vld [vmem:[%s11128_s4 + $0x138c] ss:$16 sps:$4 sm:$0xff]   ;;  %v10284_v2 = vld [vmem:[%s11128_s4 + $0x1380] ss:$16 sps:$4 sm:$0xff]  }
 0x281   : > { %6975 = vmatpush1.bf16.msra.mxu0 %v10200_v3  ;;  %7631 = vmatpush1.bf16.msra.mxu1 %v10203_v4  ;;  %v10292_v3 = vld [vmem:[%s11128_s4 + $0x13a4] ss:$16 sps:$4 sm:$0xff]   ;;  %v10295_v4 = vld [vmem:[%s11128_s4 + $0x13ac] ss:$16 sps:$4 sm:$0xff]  }
 0x282   : > { %6976 = vmatprep.subr.bf16.mxu0 %v10208_v5  ;;  %7632 = vmatprep.subr.bf16.mxu1 %v10211_v6  ;;  %v10290_v5 = vld [vmem:[%s11128_s4 + $0x13a0] ss:$16 sps:$4 sm:$0xff]   ;;  %v10293_v6 = vld [vmem:[%s11128_s4 + $0x13a8] ss:$16 sps:$4 sm:$0xff]  }
 0x285   : > { %6977 = vmatpush1.bf16.msra.mxu0 %v10206_v59  ;;  %7633 = vmatpush1.bf16.msra.mxu1 %v10209_v8  ;;  %v10298_v59 = vld [vmem:[%s11128_s4 + $0x13c4] ss:$16 sps:$4 sm:$0xff]   ;;  %v10301_v8 = vld [vmem:[%s11128_s4 + $0x13cc] ss:$16 sps:$4 sm:$0xff]  }
 0x286   : > { %6987 = vmatprep.subr.bf16.mxu0 %v10214_v9  ;;  %7643 = vmatprep.subr.bf16.mxu1 %v10217_v57  ;;  %v11881_v9 = vld [vmem:[%s11141_s29 + $0x28] sm:$0xff] }
 0x287   : > { %v10296_v57 = vld [vmem:[%s11128_s4 + $0x13c0] ss:$16 sps:$4 sm:$0xff]  }
 0x288   : > { %6979 = vmatmul.mubr.bf16.vlgmr.msra.gmra.mrb[0].mxu0 %v458_v12  ;;  %7635 = vmatmul.mubr.bf16.vlgmr.msra.gmra.mrb[0].mxu1 %v458_v12  ;;  %v10304_v12 = vld [vmem:[%s11128_s4 + $0x13e4] ss:$16 sps:$4 sm:$0xff]  }
 0x289   : > { %6988 = vmatpush1.bf16.msra.mxu0 %v10212_v13  ;;  %7644 = vmatpush1.bf16.msra.mxu1 %v10215_v14  ;;  %v10307_v13 = vld [vmem:[%s11128_s4 + $0x13ec] ss:$16 sps:$4 sm:$0xff]   ;;  %v11889_v14 = vrot.slane %v11881_v9, %v11201_v50 }
 0x28a   : > { %6989 = vmatprep.subr.bf16.mxu0 %v10220_v15  ;;  %7645 = vmatprep.subr.bf16.mxu1 %v10223_v16  ;;  %v10302_v15 = vld [vmem:[%s11128_s4 + $0x13e0] ss:$16 sps:$4 sm:$0xff]   ;;  %v10305_v16 = vld [vmem:[%s11128_s4 + $0x13e8] ss:$16 sps:$4 sm:$0xff]  }
 0x28b   : > { %7019 = vmatprep.mubr.bf16.mxu0 %v461_v17  ;;  %7675 = vmatprep.mubr.bf16.mxu1 %v461_v17  ;;  %v10311_v17 = vld [vmem:[%s11128_s4 + $0x1404] ss:$16 sps:$4 sm:$0xff]  }
 0x28d   : > { %6990 = vmatpush1.bf16.msra.mxu0 %v10218_v63  ;;  %7646 = vmatpush1.bf16.msra.mxu1 %v10221_v18  ;;  %v10314_v63 = vld [vmem:[%s11128_s4 + $0x140c] ss:$16 sps:$4 sm:$0xff]   ;;  %v374_v18 = vcombine.high %v11889_v14, %v11889_v14 }
 0x28e   : > { %6991 = vmatprep.subr.bf16.mxu0 %v10226_v19  ;;  %7647 = vmatprep.subr.bf16.mxu1 %v10229_v20  ;;  %v460_v19 = vpack.c.bf16 %v11814_v7, %v11814_v7  ;;  %v10309_v20 = vld [vmem:[%s11128_s4 + $0x1400] ss:$16 sps:$4 sm:$0xff]  }
 0x28f   : > { %v10315_v7 = vld [vmem:[%s11128_s4 + $0x1420] ss:$16 sps:$4 sm:$0xff]  }
 0x291   : > { %6992 = vmatpush1.bf16.msra.mxu0 %v10224_v21  ;;  %7648 = vmatpush1.bf16.msra.mxu1 %v10227_v22  ;;  %v10312_v21 = vld [vmem:[%s11128_s4 + $0x1408] ss:$16 sps:$4 sm:$0xff]   ;;  %v10317_v22 = vld [vmem:[%s11128_s4 + $0x1424] ss:$16 sps:$4 sm:$0xff]  }
 0x292   : > { %6993 = vmatprep.subr.bf16.mxu0 %v10232_v23  ;;  %7649 = vmatprep.subr.bf16.mxu1 %v10235_v25  ;;  %v10320_v23 = vld [vmem:[%s11128_s4 + $0x142c] ss:$16 sps:$4 sm:$0xff]   ;;  %v463_v25 = vpack.c.bf16 %v374_v18, %v374_v18  ;;  %v10393_v18 = vld [vmem:[%s11128_s4 + $0x15c0] ss:$16 sps:$4 sm:$0xff]  }
 0x295   : > { %6994 = vmatpush1.bf16.msra.mxu0 %v10230_v24  ;;  %7650 = vmatpush1.bf16.msra.mxu1 %v10233_v10  ;;  %v10318_v24 = vld [vmem:[%s11128_s4 + $0x1428] ss:$16 sps:$4 sm:$0xff]   ;;  %v10323_v10 = vld [vmem:[%s11128_s4 + $0x1444] ss:$16 sps:$4 sm:$0xff]  }
 0x296   : > { %6995 = vmatprep.subr.bf16.mxu0 %v10238_v28  ;;  %7651 = vmatprep.subr.bf16.mxu1 %v10241_v30  ;;  %v10326_v28 = vld [vmem:[%s11128_s4 + $0x144c] ss:$16 sps:$4 sm:$0xff]   ;;  %v10321_v30 = vld [vmem:[%s11128_s4 + $0x1440] ss:$16 sps:$4 sm:$0xff]  }
 0x299   : > { %6996 = vmatpush1.bf16.msra.mxu0 %v10236_v31  ;;  %7652 = vmatpush1.bf16.msra.mxu1 %v10239_v32  ;;  %v10324_v31 = vld [vmem:[%s11128_s4 + $0x1448] ss:$16 sps:$4 sm:$0xff]   ;;  %v10329_v32 = vld [vmem:[%s11128_s4 + $0x1464] ss:$16 sps:$4 sm:$0xff]  }
 0x29a   : > { %6997 = vmatprep.subr.bf16.mxu0 %v10244_v34  ;;  %7653 = vmatprep.subr.bf16.mxu1 %v10247_v35  ;;  %v10332_v34 = vld [vmem:[%s11128_s4 + $0x146c] ss:$16 sps:$4 sm:$0xff]   ;;  %v10327_v35 = vld [vmem:[%s11128_s4 + $0x1460] ss:$16 sps:$4 sm:$0xff]  }
 0x29d   : > { %6998 = vmatpush1.bf16.msra.mxu0 %v10242_v36  ;;  %7654 = vmatpush1.bf16.msra.mxu1 %v10245_v27  ;;  %v10330_v36 = vld [vmem:[%s11128_s4 + $0x1468] ss:$16 sps:$4 sm:$0xff]   ;;  %v10335_v27 = vld [vmem:[%s11128_s4 + $0x1484] ss:$16 sps:$4 sm:$0xff]  }
 0x29e   : > { %6999 = vmatprep.subr.bf16.mxu0 %v10250_v37  ;;  %7655 = vmatprep.subr.bf16.mxu1 %v10253_v38  ;;  %v10338_v37 = vld [vmem:[%s11128_s4 + $0x148c] ss:$16 sps:$4 sm:$0xff]   ;;  %v10333_v38 = vld [vmem:[%s11128_s4 + $0x1480] ss:$16 sps:$4 sm:$0xff]  }
 0x2a1   : > { %7000 = vmatpush1.bf16.msra.mxu0 %v10248_v39  ;;  %7656 = vmatpush1.bf16.msra.mxu1 %v10251_v40  ;;  %v10336_v39 = vld [vmem:[%s11128_s4 + $0x1488] ss:$16 sps:$4 sm:$0xff]   ;;  %v10341_v40 = vld [vmem:[%s11128_s4 + $0x14a4] ss:$16 sps:$4 sm:$0xff]  }
 0x2a2   : > { %7001 = vmatprep.subr.bf16.mxu0 %v10256_v29  ;;  %7657 = vmatprep.subr.bf16.mxu1 %v10259_v42  ;;  %v10344_v29 = vld [vmem:[%s11128_s4 + $0x14ac] ss:$16 sps:$4 sm:$0xff]   ;;  %v10339_v42 = vld [vmem:[%s11128_s4 + $0x14a0] ss:$16 sps:$4 sm:$0xff]  }
 0x2a5   : > { %7002 = vmatpush1.bf16.msra.mxu0 %v10254_v45  ;;  %7658 = vmatpush1.bf16.msra.mxu1 %v10257_v46  ;;  %v10342_v45 = vld [vmem:[%s11128_s4 + $0x14a8] ss:$16 sps:$4 sm:$0xff]   ;;  %v10347_v46 = vld [vmem:[%s11128_s4 + $0x14c4] ss:$16 sps:$4 sm:$0xff]  }
 0x2a6   : > { %7003 = vmatprep.subr.bf16.mxu0 %v10262_v26  ;;  %7659 = vmatprep.subr.bf16.mxu1 %v10265_v47  ;;  %v10350_v26 = vld [vmem:[%s11128_s4 + $0x14cc] ss:$16 sps:$4 sm:$0xff]   ;;  %v10345_v47 = vld [vmem:[%s11128_s4 + $0x14c0] ss:$16 sps:$4 sm:$0xff]  }
 0x2a9   : > { %7004 = vmatpush1.bf16.msra.mxu0 %v10260_v49  ;;  %7660 = vmatpush1.bf16.msra.mxu1 %v10263_v51  ;;  %v10348_v49 = vld [vmem:[%s11128_s4 + $0x14c8] ss:$16 sps:$4 sm:$0xff]   ;;  %v10353_v51 = vld [vmem:[%s11128_s4 + $0x14e4] ss:$16 sps:$4 sm:$0xff]  }
 0x2aa   : > { %7005 = vmatprep.subr.bf16.mxu0 %v10268_v52  ;;  %7661 = vmatprep.subr.bf16.mxu1 %v10271_v33  ;;  %v10356_v52 = vld [vmem:[%s11128_s4 + $0x14ec] ss:$16 sps:$4 sm:$0xff]   ;;  %v10351_v33 = vld [vmem:[%s11128_s4 + $0x14e0] ss:$16 sps:$4 sm:$0xff]  }
 0x2ad   : > { %7006 = vmatpush1.bf16.msra.mxu0 %v10266_v53  ;;  %7662 = vmatpush1.bf16.msra.mxu1 %v10269_v54  ;;  %v10354_v53 = vld [vmem:[%s11128_s4 + $0x14e8] ss:$16 sps:$4 sm:$0xff]   ;;  %v10359_v54 = vld [vmem:[%s11128_s4 + $0x1504] ss:$16 sps:$4 sm:$0xff]  }
 0x2ae   : > { %7007 = vmatprep.subr.bf16.mxu0 %v10274_v55  ;;  %7663 = vmatprep.subr.bf16.mxu1 %v10277_v56  ;;  %v10362_v55 = vld [vmem:[%s11128_s4 + $0x150c] ss:$16 sps:$4 sm:$0xff]   ;;  %v10357_v56 = vld [vmem:[%s11128_s4 + $0x1500] ss:$16 sps:$4 sm:$0xff]  }
 0x2b1   : > { %7008 = vmatpush1.bf16.msra.mxu0 %v10272_v43  ;;  %7664 = vmatpush1.bf16.msra.mxu1 %v10275_v58  ;;  %v10360_v43 = vld [vmem:[%s11128_s4 + $0x1508] ss:$16 sps:$4 sm:$0xff]   ;;  %v10365_v58 = vld [vmem:[%s11128_s4 + $0x1524] ss:$16 sps:$4 sm:$0xff]  }
 0x2b2   : > { %7009 = vmatprep.subr.bf16.mxu0 %v10280_v41  ;;  %7665 = vmatprep.subr.bf16.mxu1 %v10283_v60  ;;  %v10368_v41 = vld [vmem:[%s11128_s4 + $0x152c] ss:$16 sps:$4 sm:$0xff]   ;;  %v10363_v60 = vld [vmem:[%s11128_s4 + $0x1520] ss:$16 sps:$4 sm:$0xff]  }
 0x2b5   : > { %7010 = vmatpush1.bf16.msra.mxu0 %v10278_v61  ;;  %7666 = vmatpush1.bf16.msra.mxu1 %v10281_v62  ;;  %v10366_v61 = vld [vmem:[%s11128_s4 + $0x1528] ss:$16 sps:$4 sm:$0xff]   ;;  %v10371_v62 = vld [vmem:[%s11128_s4 + $0x1544] ss:$16 sps:$4 sm:$0xff]  }
 0x2b6   : > { %7011 = vmatprep.subr.bf16.mxu0 %v10286_v0  ;;  %7667 = vmatprep.subr.bf16.mxu1 %v10289_v1  ;;  %v10374_v0 = vld [vmem:[%s11128_s4 + $0x154c] ss:$16 sps:$4 sm:$0xff]   ;;  %v10369_v1 = vld [vmem:[%s11128_s4 + $0x1540] ss:$16 sps:$4 sm:$0xff]  }
 0x2b9   : > { %7012 = vmatpush1.bf16.msra.mxu0 %v10284_v2  ;;  %7668 = vmatpush1.bf16.msra.mxu1 %v10287_v48  ;;  %v10372_v2 = vld [vmem:[%s11128_s4 + $0x1548] ss:$16 sps:$4 sm:$0xff]   ;;  %v10377_v48 = vld [vmem:[%s11128_s4 + $0x1564] ss:$16 sps:$4 sm:$0xff]  }
 0x2ba   : > { %7013 = vmatprep.subr.bf16.mxu0 %v10292_v3  ;;  %7669 = vmatprep.subr.bf16.mxu1 %v10295_v4  ;;  %v10380_v3 = vld [vmem:[%s11128_s4 + $0x156c] ss:$16 sps:$4 sm:$0xff]   ;;  %v10375_v4 = vld [vmem:[%s11128_s4 + $0x1560] ss:$16 sps:$4 sm:$0xff]  }
 0x2bd   : > { %7014 = vmatpush1.bf16.msra.mxu0 %v10290_v5  ;;  %7670 = vmatpush1.bf16.msra.mxu1 %v10293_v6  ;;  %v10378_v5 = vld [vmem:[%s11128_s4 + $0x1568] ss:$16 sps:$4 sm:$0xff]   ;;  %v10383_v6 = vld [vmem:[%s11128_s4 + $0x1584] ss:$16 sps:$4 sm:$0xff]  }
 0x2be   : > { %7015 = vmatprep.subr.bf16.mxu0 %v10298_v59  ;;  %7671 = vmatprep.subr.bf16.mxu1 %v10301_v8  ;;  %v10386_v59 = vld [vmem:[%s11128_s4 + $0x158c] ss:$16 sps:$4 sm:$0xff]   ;;  %v10381_v8 = vld [vmem:[%s11128_s4 + $0x1580] ss:$16 sps:$4 sm:$0xff]  }
 0x2c1   : > { %7016 = vmatpush1.bf16.msra.mxu0 %v10296_v57  ;;  %7672 = vmatpush1.bf16.msra.mxu1 %v10299_v11  ;;  %v10384_v57 = vld [vmem:[%s11128_s4 + $0x1588] ss:$16 sps:$4 sm:$0xff]   ;;  %v10389_v11 = vld [vmem:[%s11128_s4 + $0x15a4] ss:$16 sps:$4 sm:$0xff]  }
 0x2c2   : > { %7017 = vmatprep.subr.bf16.mxu0 %v10304_v12  ;;  %7673 = vmatprep.subr.bf16.mxu1 %v10307_v13  ;;  %v10392_v12 = vld [vmem:[%s11128_s4 + $0x15ac] ss:$16 sps:$4 sm:$0xff]   ;;  %v10387_v13 = vld [vmem:[%s11128_s4 + $0x15a0] ss:$16 sps:$4 sm:$0xff]  }
 0x2c5   : > { %7018 = vmatpush1.bf16.msra.mxu0 %v10302_v15  ;;  %7674 = vmatpush1.bf16.msra.mxu1 %v10305_v16  ;;  %v10390_v15 = vld [vmem:[%s11128_s4 + $0x15a8] ss:$16 sps:$4 sm:$0xff]   ;;  %v10395_v16 = vld [vmem:[%s11128_s4 + $0x15c4] ss:$16 sps:$4 sm:$0xff]  }
 0x2c6   : > { %7028 = vmatprep.subr.bf16.mxu0 %v10311_v17  ;;  %7684 = vmatprep.subr.bf16.mxu1 %v10314_v63  ;;  %v10398_v17 = vld [vmem:[%s11128_s4 + $0x15cc] ss:$16 sps:$4 sm:$0xff]   ;;  %v359_v63 = vcombine.high %v11881_v9, %v11881_v9  ;;  %v10399_v9 = vld [vmem:[%s11128_s4 + $0x15e0] ss:$16 sps:$4 sm:$0xff]  }
 0x2c8   : > { %7020 = vmatmul.mubr.bf16.vlgmr.msra.gmra.mrb[0].mxu0 %v460_v19  ;;  %7676 = vmatmul.mubr.bf16.vlgmr.msra.gmra.mrb[0].mxu1 %v460_v19  ;;  %v10396_v19 = vld [vmem:[%s11128_s4 + $0x15c8] ss:$16 sps:$4 sm:$0xff]  }
 0x2c9   : > { %7029 = vmatpush1.bf16.msra.mxu0 %v10309_v20  ;;  %7685 = vmatpush1.bf16.msra.mxu1 %v10312_v21  ;;  %v10401_v20 = vld [vmem:[%s11128_s4 + $0x15e4] ss:$16 sps:$4 sm:$0xff]   ;;  %v10404_v21 = vld [vmem:[%s11128_s4 + $0x15ec] ss:$16 sps:$4 sm:$0xff]  }
 0x2ca   : > { %7030 = vmatprep.subr.bf16.mxu0 %v10317_v22  ;;  %7686 = vmatprep.subr.bf16.mxu1 %v10320_v23  ;;  %v11962_v22 = vrot.slane %v359_v63, %v11201_v50  ;;  %v10402_v23 = vld [vmem:[%s11128_s4 + $0x15e8] ss:$16 sps:$4 sm:$0xff]  }
 0x2cb   : > { %7060 = vmatprep.mubr.bf16.mxu0 %v463_v25  ;;  %7716 = vmatprep.mubr.bf16.mxu1 %v463_v25  ;;  %v10407_v25 = vld [vmem:[%s11128_s4 + $0x1604] ss:$16 sps:$4 sm:$0xff]   ;;  %v10480_v63 = vld [vmem:[%s11128_s4 + $0x1788] ss:$16 sps:$4 sm:$0xff]  }
 0x2cd   : > { %7031 = vmatpush1.bf16.msra.mxu0 %v10315_v7  ;;  %7687 = vmatpush1.bf16.msra.mxu1 %v10318_v24  ;;  %v10410_v7 = vld [vmem:[%s11128_s4 + $0x160c] ss:$16 sps:$4 sm:$0xff]   ;;  %v375_v24 = vcombine.high %v11962_v22, %v11962_v22 }
 0x2ce   : > { %7032 = vmatprep.subr.bf16.mxu0 %v10323_v10  ;;  %7688 = vmatprep.subr.bf16.mxu1 %v10326_v28  ;;  %v462_v10 = vpack.c.bf16 %v11889_v14, %v11889_v14  ;;  %v10405_v28 = vld [vmem:[%s11128_s4 + $0x1600] ss:$16 sps:$4 sm:$0xff]  }
 0x2cf   : > { %v10411_v14 = vld [vmem:[%s11128_s4 + $0x1620] ss:$16 sps:$4 sm:$0xff]  }
 0x2d1   : > { %7033 = vmatpush1.bf16.msra.mxu0 %v10321_v30  ;;  %7689 = vmatpush1.bf16.msra.mxu1 %v10324_v31  ;;  %v10408_v30 = vld [vmem:[%s11128_s4 + $0x1608] ss:$16 sps:$4 sm:$0xff]   ;;  %v10413_v31 = vld [vmem:[%s11128_s4 + $0x1624] ss:$16 sps:$4 sm:$0xff]  }
 0x2d2   : > { %7034 = vmatprep.subr.bf16.mxu0 %v10329_v32  ;;  %7690 = vmatprep.subr.bf16.mxu1 %v10332_v34  ;;  %v10416_v32 = vld [vmem:[%s11128_s4 + $0x162c] ss:$16 sps:$4 sm:$0xff]   ;;  %v465_v34 = vpack.c.bf16 %v375_v24, %v375_v24  ;;  %v10492_v24 = vld [vmem:[%s11128_s4 + $0x17c8] ss:$16 sps:$4 sm:$0xff]  }
 0x2d5   : > { %7035 = vmatpush1.bf16.msra.mxu0 %v10327_v35  ;;  %7691 = vmatpush1.bf16.msra.mxu1 %v10330_v36  ;;  %v10414_v35 = vld [vmem:[%s11128_s4 + $0x1628] ss:$16 sps:$4 sm:$0xff]   ;;  %v10419_v36 = vld [vmem:[%s11128_s4 + $0x1644] ss:$16 sps:$4 sm:$0xff]  }
 0x2d6   : > { %7036 = vmatprep.subr.bf16.mxu0 %v10335_v27  ;;  %7692 = vmatprep.subr.bf16.mxu1 %v10338_v37  ;;  %v10422_v27 = vld [vmem:[%s11128_s4 + $0x164c] ss:$16 sps:$4 sm:$0xff]   ;;  %v10417_v37 = vld [vmem:[%s11128_s4 + $0x1640] ss:$16 sps:$4 sm:$0xff]  }
 0x2d9   : > { %7037 = vmatpush1.bf16.msra.mxu0 %v10333_v38  ;;  %7693 = vmatpush1.bf16.msra.mxu1 %v10336_v39  ;;  %v10420_v38 = vld [vmem:[%s11128_s4 + $0x1648] ss:$16 sps:$4 sm:$0xff]   ;;  %v10425_v39 = vld [vmem:[%s11128_s4 + $0x1664] ss:$16 sps:$4 sm:$0xff]  }
 0x2da   : > { %7038 = vmatprep.subr.bf16.mxu0 %v10341_v40  ;;  %7694 = vmatprep.subr.bf16.mxu1 %v10344_v29  ;;  %v10428_v40 = vld [vmem:[%s11128_s4 + $0x166c] ss:$16 sps:$4 sm:$0xff]   ;;  %v10423_v29 = vld [vmem:[%s11128_s4 + $0x1660] ss:$16 sps:$4 sm:$0xff]  }
 0x2dd   : > { %7039 = vmatpush1.bf16.msra.mxu0 %v10339_v42  ;;  %7695 = vmatpush1.bf16.msra.mxu1 %v10342_v45  ;;  %v10426_v42 = vld [vmem:[%s11128_s4 + $0x1668] ss:$16 sps:$4 sm:$0xff]   ;;  %v10431_v45 = vld [vmem:[%s11128_s4 + $0x1684] ss:$16 sps:$4 sm:$0xff]  }
 0x2de   : > { %7040 = vmatprep.subr.bf16.mxu0 %v10347_v46  ;;  %7696 = vmatprep.subr.bf16.mxu1 %v10350_v26  ;;  %v10434_v46 = vld [vmem:[%s11128_s4 + $0x168c] ss:$16 sps:$4 sm:$0xff]   ;;  %v10429_v26 = vld [vmem:[%s11128_s4 + $0x1680] ss:$16 sps:$4 sm:$0xff]  }
 0x2e1   : > { %7041 = vmatpush1.bf16.msra.mxu0 %v10345_v47  ;;  %7697 = vmatpush1.bf16.msra.mxu1 %v10348_v49  ;;  %v10432_v47 = vld [vmem:[%s11128_s4 + $0x1688] ss:$16 sps:$4 sm:$0xff]   ;;  %v10437_v49 = vld [vmem:[%s11128_s4 + $0x16a4] ss:$16 sps:$4 sm:$0xff]  }
 0x2e2   : > { %7042 = vmatprep.subr.bf16.mxu0 %v10353_v51  ;;  %7698 = vmatprep.subr.bf16.mxu1 %v10356_v52  ;;  %v10440_v51 = vld [vmem:[%s11128_s4 + $0x16ac] ss:$16 sps:$4 sm:$0xff]   ;;  %v10435_v52 = vld [vmem:[%s11128_s4 + $0x16a0] ss:$16 sps:$4 sm:$0xff]  }
 0x2e5   : > { %7043 = vmatpush1.bf16.msra.mxu0 %v10351_v33  ;;  %7699 = vmatpush1.bf16.msra.mxu1 %v10354_v53  ;;  %v10438_v33 = vld [vmem:[%s11128_s4 + $0x16a8] ss:$16 sps:$4 sm:$0xff]   ;;  %v10443_v53 = vld [vmem:[%s11128_s4 + $0x16c4] ss:$16 sps:$4 sm:$0xff]  }
 0x2e6   : > { %7044 = vmatprep.subr.bf16.mxu0 %v10359_v54  ;;  %7700 = vmatprep.subr.bf16.mxu1 %v10362_v55  ;;  %v10446_v54 = vld [vmem:[%s11128_s4 + $0x16cc] ss:$16 sps:$4 sm:$0xff]   ;;  %v10441_v55 = vld [vmem:[%s11128_s4 + $0x16c0] ss:$16 sps:$4 sm:$0xff]  }
 0x2e9   : > { %7045 = vmatpush1.bf16.msra.mxu0 %v10357_v56  ;;  %7701 = vmatpush1.bf16.msra.mxu1 %v10360_v43  ;;  %v10444_v56 = vld [vmem:[%s11128_s4 + $0x16c8] ss:$16 sps:$4 sm:$0xff]   ;;  %v10449_v43 = vld [vmem:[%s11128_s4 + $0x16e4] ss:$16 sps:$4 sm:$0xff]  }
 0x2ea   : > { %7046 = vmatprep.subr.bf16.mxu0 %v10365_v58  ;;  %7702 = vmatprep.subr.bf16.mxu1 %v10368_v41  ;;  %v10452_v58 = vld [vmem:[%s11128_s4 + $0x16ec] ss:$16 sps:$4 sm:$0xff]   ;;  %v10447_v41 = vld [vmem:[%s11128_s4 + $0x16e0] ss:$16 sps:$4 sm:$0xff]  }
 0x2ed   : > { %7047 = vmatpush1.bf16.msra.mxu0 %v10363_v60  ;;  %7703 = vmatpush1.bf16.msra.mxu1 %v10366_v61  ;;  %v10450_v60 = vld [vmem:[%s11128_s4 + $0x16e8] ss:$16 sps:$4 sm:$0xff]   ;;  %v10455_v61 = vld [vmem:[%s11128_s4 + $0x1704] ss:$16 sps:$4 sm:$0xff]  }
 0x2ee   : > { %7048 = vmatprep.subr.bf16.mxu0 %v10371_v62  ;;  %7704 = vmatprep.subr.bf16.mxu1 %v10374_v0  ;;  %v10458_v62 = vld [vmem:[%s11128_s4 + $0x170c] ss:$16 sps:$4 sm:$0xff]   ;;  %v10453_v0 = vld [vmem:[%s11128_s4 + $0x1700] ss:$16 sps:$4 sm:$0xff]  }
 0x2f1   : > { %7049 = vmatpush1.bf16.msra.mxu0 %v10369_v1  ;;  %7705 = vmatpush1.bf16.msra.mxu1 %v10372_v2  ;;  %v10456_v1 = vld [vmem:[%s11128_s4 + $0x1708] ss:$16 sps:$4 sm:$0xff]   ;;  %v10461_v2 = vld [vmem:[%s11128_s4 + $0x1724] ss:$16 sps:$4 sm:$0xff]  }
 0x2f2   : > { %7050 = vmatprep.subr.bf16.mxu0 %v10377_v48  ;;  %7706 = vmatprep.subr.bf16.mxu1 %v10380_v3  ;;  %v10464_v48 = vld [vmem:[%s11128_s4 + $0x172c] ss:$16 sps:$4 sm:$0xff]   ;;  %v10459_v3 = vld [vmem:[%s11128_s4 + $0x1720] ss:$16 sps:$4 sm:$0xff]  }
 0x2f5   : > { %7051 = vmatpush1.bf16.msra.mxu0 %v10375_v4  ;;  %7707 = vmatpush1.bf16.msra.mxu1 %v10378_v5  ;;  %v10462_v4 = vld [vmem:[%s11128_s4 + $0x1728] ss:$16 sps:$4 sm:$0xff]   ;;  %v10467_v5 = vld [vmem:[%s11128_s4 + $0x1744] ss:$16 sps:$4 sm:$0xff]  }
 0x2f6   : > { %7052 = vmatprep.subr.bf16.mxu0 %v10383_v6  ;;  %7708 = vmatprep.subr.bf16.mxu1 %v10386_v59  ;;  %v10470_v6 = vld [vmem:[%s11128_s4 + $0x174c] ss:$16 sps:$4 sm:$0xff]   ;;  %v10465_v59 = vld [vmem:[%s11128_s4 + $0x1740] ss:$16 sps:$4 sm:$0xff]  }
 0x2f9   : > { %7053 = vmatpush1.bf16.msra.mxu0 %v10381_v8  ;;  %7709 = vmatpush1.bf16.msra.mxu1 %v10384_v57  ;;  %v10468_v8 = vld [vmem:[%s11128_s4 + $0x1748] ss:$16 sps:$4 sm:$0xff]   ;;  %v10473_v57 = vld [vmem:[%s11128_s4 + $0x1764] ss:$16 sps:$4 sm:$0xff]  }
 0x2fa   : > { %7054 = vmatprep.subr.bf16.mxu0 %v10389_v11  ;;  %7710 = vmatprep.subr.bf16.mxu1 %v10392_v12  ;;  %v10476_v11 = vld [vmem:[%s11128_s4 + $0x176c] ss:$16 sps:$4 sm:$0xff]   ;;  %v10471_v12 = vld [vmem:[%s11128_s4 + $0x1760] ss:$16 sps:$4 sm:$0xff]  }
 0x2fd   : > { %7055 = vmatpush1.bf16.msra.mxu0 %v10387_v13  ;;  %7711 = vmatpush1.bf16.msra.mxu1 %v10390_v15  ;;  %v10474_v13 = vld [vmem:[%s11128_s4 + $0x1768] ss:$16 sps:$4 sm:$0xff]   ;;  %v10479_v15 = vld [vmem:[%s11128_s4 + $0x1784] ss:$16 sps:$4 sm:$0xff]  }
 0x2fe   : > { %7056 = vmatprep.subr.bf16.mxu0 %v10395_v16  ;;  %7712 = vmatprep.subr.bf16.mxu1 %v10398_v17  ;;  %v10482_v16 = vld [vmem:[%s11128_s4 + $0x178c] ss:$16 sps:$4 sm:$0xff]   ;;  %v10477_v17 = vld [vmem:[%s11128_s4 + $0x1780] ss:$16 sps:$4 sm:$0xff]  }
 0x301   : > { %7057 = vmatpush1.bf16.msra.mxu0 %v10393_v18  ;;  %7713 = vmatpush1.bf16.msra.mxu1 %v10396_v19  ;;  %v10485_v18 = vld [vmem:[%s11128_s4 + $0x17a4] ss:$16 sps:$4 sm:$0xff]   ;;  %v10488_v19 = vld [vmem:[%s11128_s4 + $0x17ac] ss:$16 sps:$4 sm:$0xff]  }
 0x302   : > { %7058 = vmatprep.subr.bf16.mxu0 %v10401_v20  ;;  %7714 = vmatprep.subr.bf16.mxu1 %v10404_v21  ;;  %v10483_v20 = vld [vmem:[%s11128_s4 + $0x17a0] ss:$16 sps:$4 sm:$0xff]   ;;  %v10486_v21 = vld [vmem:[%s11128_s4 + $0x17a8] ss:$16 sps:$4 sm:$0xff]  }
 0x305   : > { %7059 = vmatpush1.bf16.msra.mxu0 %v10399_v9  ;;  %7715 = vmatpush1.bf16.msra.mxu1 %v10402_v23  ;;  %v10491_v9 = vld [vmem:[%s11128_s4 + $0x17c4] ss:$16 sps:$4 sm:$0xff]   ;;  %v10494_v23 = vld [vmem:[%s11128_s4 + $0x17cc] ss:$16 sps:$4 sm:$0xff]  }
 0x306   : > { %7069 = vmatprep.subr.bf16.mxu0 %v10407_v25  ;;  %7725 = vmatprep.subr.bf16.mxu1 %v10410_v7  ;;  %v12029_v25 = vld [vmem:[%s11141_s29 + $0x30] sm:$0xff]  ;;  %v10489_v7 = vld [vmem:[%s11128_s4 + $0x17c0] ss:$16 sps:$4 sm:$0xff]  }
 0x308   : > { %7061 = vmatmul.mubr.bf16.vlgmr.msra.gmra.mrb[0].mxu0 %v462_v10  ;;  %7717 = vmatmul.mubr.bf16.vlgmr.msra.gmra.mrb[0].mxu1 %v462_v10  ;;  %v10497_v10 = vld [vmem:[%s11128_s4 + $0x17e4] ss:$16 sps:$4 sm:$0xff]  }
 0x309   : > { %7070 = vmatpush1.bf16.msra.mxu0 %v10405_v28  ;;  %7726 = vmatpush1.bf16.msra.mxu1 %v10408_v30  ;;  %v10500_v28 = vld [vmem:[%s11128_s4 + $0x17ec] ss:$16 sps:$4 sm:$0xff]   ;;  %v12037_v30 = vrot.slane %v12029_v25, %v11201_v50 }
 0x30a   : > { %7071 = vmatprep.subr.bf16.mxu0 %v10413_v31  ;;  %7727 = vmatprep.subr.bf16.mxu1 %v10416_v32  ;;  %v10495_v31 = vld [vmem:[%s11128_s4 + $0x17e0] ss:$16 sps:$4 sm:$0xff]   ;;  %v10498_v32 = vld [vmem:[%s11128_s4 + $0x17e8] ss:$16 sps:$4 sm:$0xff]  }
 0x30b   : > { %7101 = vmatprep.mubr.bf16.mxu0 %v465_v34  ;;  %7757 = vmatprep.mubr.bf16.mxu1 %v465_v34  ;;  %v10504_v34 = vld [vmem:[%s11128_s4 + $0x1804] ss:$16 sps:$4 sm:$0xff]  }
 0x30d   : > { %7072 = vmatpush1.bf16.msra.mxu0 %v10411_v14  ;;  %7728 = vmatpush1.bf16.msra.mxu1 %v10414_v35  ;;  %v10507_v14 = vld [vmem:[%s11128_s4 + $0x180c] ss:$16 sps:$4 sm:$0xff]   ;;  %v391_v35 = vcombine.high %v12037_v30, %v12037_v30 }
 0x30e   : > { %7073 = vmatprep.subr.bf16.mxu0 %v10419_v36  ;;  %7729 = vmatprep.subr.bf16.mxu1 %v10422_v27  ;;  %v464_v36 = vpack.c.bf16 %v11962_v22, %v11962_v22  ;;  %v10502_v27 = vld [vmem:[%s11128_s4 + $0x1800] ss:$16 sps:$4 sm:$0xff]  }
 0x30f   : > { %v10508_v22 = vld [vmem:[%s11128_s4 + $0x1820] ss:$16 sps:$4 sm:$0xff]  }
 0x311   : > { %7074 = vmatpush1.bf16.msra.mxu0 %v10417_v37  ;;  %7730 = vmatpush1.bf16.msra.mxu1 %v10420_v38  ;;  %v10505_v37 = vld [vmem:[%s11128_s4 + $0x1808] ss:$16 sps:$4 sm:$0xff]   ;;  %v10510_v38 = vld [vmem:[%s11128_s4 + $0x1824] ss:$16 sps:$4 sm:$0xff]  }
 0x312   : > { %7075 = vmatprep.subr.bf16.mxu0 %v10425_v39  ;;  %7731 = vmatprep.subr.bf16.mxu1 %v10428_v40  ;;  %v10513_v39 = vld [vmem:[%s11128_s4 + $0x182c] ss:$16 sps:$4 sm:$0xff]   ;;  %v467_v40 = vpack.c.bf16 %v391_v35, %v391_v35  ;;  %v10586_v35 = vld [vmem:[%s11128_s4 + $0x19c0] ss:$16 sps:$4 sm:$0xff]  }
 0x315   : > { %7076 = vmatpush1.bf16.msra.mxu0 %v10423_v29  ;;  %7732 = vmatpush1.bf16.msra.mxu1 %v10426_v42  ;;  %v10511_v29 = vld [vmem:[%s11128_s4 + $0x1828] ss:$16 sps:$4 sm:$0xff]   ;;  %v10516_v42 = vld [vmem:[%s11128_s4 + $0x1844] ss:$16 sps:$4 sm:$0xff]  }
 0x316   : > { %7077 = vmatprep.subr.bf16.mxu0 %v10431_v45  ;;  %7733 = vmatprep.subr.bf16.mxu1 %v10434_v46  ;;  %v10519_v45 = vld [vmem:[%s11128_s4 + $0x184c] ss:$16 sps:$4 sm:$0xff]   ;;  %v10514_v46 = vld [vmem:[%s11128_s4 + $0x1840] ss:$16 sps:$4 sm:$0xff]  }
 0x319   : > { %7078 = vmatpush1.bf16.msra.mxu0 %v10429_v26  ;;  %7734 = vmatpush1.bf16.msra.mxu1 %v10432_v47  ;;  %v10517_v26 = vld [vmem:[%s11128_s4 + $0x1848] ss:$16 sps:$4 sm:$0xff]   ;;  %v10522_v47 = vld [vmem:[%s11128_s4 + $0x1864] ss:$16 sps:$4 sm:$0xff]  }
 0x31a   : > { %7079 = vmatprep.subr.bf16.mxu0 %v10437_v49  ;;  %7735 = vmatprep.subr.bf16.mxu1 %v10440_v51  ;;  %v10525_v49 = vld [vmem:[%s11128_s4 + $0x186c] ss:$16 sps:$4 sm:$0xff]   ;;  %v10520_v51 = vld [vmem:[%s11128_s4 + $0x1860] ss:$16 sps:$4 sm:$0xff]  }
 0x31d   : > { %7080 = vmatpush1.bf16.msra.mxu0 %v10435_v52  ;;  %7736 = vmatpush1.bf16.msra.mxu1 %v10438_v33  ;;  %v10523_v52 = vld [vmem:[%s11128_s4 + $0x1868] ss:$16 sps:$4 sm:$0xff]   ;;  %v10528_v33 = vld [vmem:[%s11128_s4 + $0x1884] ss:$16 sps:$4 sm:$0xff]  }
 0x31e   : > { %7081 = vmatprep.subr.bf16.mxu0 %v10443_v53  ;;  %7737 = vmatprep.subr.bf16.mxu1 %v10446_v54  ;;  %v10531_v53 = vld [vmem:[%s11128_s4 + $0x188c] ss:$16 sps:$4 sm:$0xff]   ;;  %v10526_v54 = vld [vmem:[%s11128_s4 + $0x1880] ss:$16 sps:$4 sm:$0xff]  }
 0x321   : > { %7082 = vmatpush1.bf16.msra.mxu0 %v10441_v55  ;;  %7738 = vmatpush1.bf16.msra.mxu1 %v10444_v56  ;;  %v10529_v55 = vld [vmem:[%s11128_s4 + $0x1888] ss:$16 sps:$4 sm:$0xff]   ;;  %v10534_v56 = vld [vmem:[%s11128_s4 + $0x18a4] ss:$16 sps:$4 sm:$0xff]  }
 0x322   : > { %7083 = vmatprep.subr.bf16.mxu0 %v10449_v43  ;;  %7739 = vmatprep.subr.bf16.mxu1 %v10452_v58  ;;  %v10537_v43 = vld [vmem:[%s11128_s4 + $0x18ac] ss:$16 sps:$4 sm:$0xff]   ;;  %v10532_v58 = vld [vmem:[%s11128_s4 + $0x18a0] ss:$16 sps:$4 sm:$0xff]  }
 0x325   : > { %7084 = vmatpush1.bf16.msra.mxu0 %v10447_v41  ;;  %7740 = vmatpush1.bf16.msra.mxu1 %v10450_v60  ;;  %v10535_v41 = vld [vmem:[%s11128_s4 + $0x18a8] ss:$16 sps:$4 sm:$0xff]   ;;  %v10540_v60 = vld [vmem:[%s11128_s4 + $0x18c4] ss:$16 sps:$4 sm:$0xff]  }
 0x326   : > { %7085 = vmatprep.subr.bf16.mxu0 %v10455_v61  ;;  %7741 = vmatprep.subr.bf16.mxu1 %v10458_v62  ;;  %v10543_v61 = vld [vmem:[%s11128_s4 + $0x18cc] ss:$16 sps:$4 sm:$0xff]   ;;  %v10538_v62 = vld [vmem:[%s11128_s4 + $0x18c0] ss:$16 sps:$4 sm:$0xff]  }
 0x329   : > { %7086 = vmatpush1.bf16.msra.mxu0 %v10453_v0  ;;  %7742 = vmatpush1.bf16.msra.mxu1 %v10456_v1  ;;  %v10541_v0 = vld [vmem:[%s11128_s4 + $0x18c8] ss:$16 sps:$4 sm:$0xff]   ;;  %v10546_v1 = vld [vmem:[%s11128_s4 + $0x18e4] ss:$16 sps:$4 sm:$0xff]  }
 0x32a   : > { %7087 = vmatprep.subr.bf16.mxu0 %v10461_v2  ;;  %7743 = vmatprep.subr.bf16.mxu1 %v10464_v48  ;;  %v10549_v2 = vld [vmem:[%s11128_s4 + $0x18ec] ss:$16 sps:$4 sm:$0xff]   ;;  %v10544_v48 = vld [vmem:[%s11128_s4 + $0x18e0] ss:$16 sps:$4 sm:$0xff]  }
 0x32d   : > { %7088 = vmatpush1.bf16.msra.mxu0 %v10459_v3  ;;  %7744 = vmatpush1.bf16.msra.mxu1 %v10462_v4  ;;  %v10547_v3 = vld [vmem:[%s11128_s4 + $0x18e8] ss:$16 sps:$4 sm:$0xff]   ;;  %v10552_v4 = vld [vmem:[%s11128_s4 + $0x1904] ss:$16 sps:$4 sm:$0xff]  }
 0x32e   : > { %7089 = vmatprep.subr.bf16.mxu0 %v10467_v5  ;;  %7745 = vmatprep.subr.bf16.mxu1 %v10470_v6  ;;  %v10555_v5 = vld [vmem:[%s11128_s4 + $0x190c] ss:$16 sps:$4 sm:$0xff]   ;;  %v10550_v6 = vld [vmem:[%s11128_s4 + $0x1900] ss:$16 sps:$4 sm:$0xff]  }
 0x331   : > { %7090 = vmatpush1.bf16.msra.mxu0 %v10465_v59  ;;  %7746 = vmatpush1.bf16.msra.mxu1 %v10468_v8  ;;  %v10553_v59 = vld [vmem:[%s11128_s4 + $0x1908] ss:$16 sps:$4 sm:$0xff]   ;;  %v10558_v8 = vld [vmem:[%s11128_s4 + $0x1924] ss:$16 sps:$4 sm:$0xff]  }
 0x332   : > { %7091 = vmatprep.subr.bf16.mxu0 %v10473_v57  ;;  %7747 = vmatprep.subr.bf16.mxu1 %v10476_v11  ;;  %v10561_v57 = vld [vmem:[%s11128_s4 + $0x192c] ss:$16 sps:$4 sm:$0xff]   ;;  %v10556_v11 = vld [vmem:[%s11128_s4 + $0x1920] ss:$16 sps:$4 sm:$0xff]  }
 0x335   : > { %7092 = vmatpush1.bf16.msra.mxu0 %v10471_v12  ;;  %7748 = vmatpush1.bf16.msra.mxu1 %v10474_v13  ;;  %v10559_v12 = vld [vmem:[%s11128_s4 + $0x1928] ss:$16 sps:$4 sm:$0xff]   ;;  %v10564_v13 = vld [vmem:[%s11128_s4 + $0x1944] ss:$16 sps:$4 sm:$0xff]  }
 0x336   : > { %7093 = vmatprep.subr.bf16.mxu0 %v10479_v15  ;;  %7749 = vmatprep.subr.bf16.mxu1 %v10482_v16  ;;  %v10567_v15 = vld [vmem:[%s11128_s4 + $0x194c] ss:$16 sps:$4 sm:$0xff]   ;;  %v10562_v16 = vld [vmem:[%s11128_s4 + $0x1940] ss:$16 sps:$4 sm:$0xff]  }
 0x339   : > { %7094 = vmatpush1.bf16.msra.mxu0 %v10477_v17  ;;  %7750 = vmatpush1.bf16.msra.mxu1 %v10480_v63  ;;  %v10565_v17 = vld [vmem:[%s11128_s4 + $0x1948] ss:$16 sps:$4 sm:$0xff]   ;;  %v10570_v63 = vld [vmem:[%s11128_s4 + $0x1964] ss:$16 sps:$4 sm:$0xff]  }
 0x33a   : > { %7095 = vmatprep.subr.bf16.mxu0 %v10485_v18  ;;  %7751 = vmatprep.subr.bf16.mxu1 %v10488_v19  ;;  %v10573_v18 = vld [vmem:[%s11128_s4 + $0x196c] ss:$16 sps:$4 sm:$0xff]   ;;  %v10568_v19 = vld [vmem:[%s11128_s4 + $0x1960] ss:$16 sps:$4 sm:$0xff]  }
 0x33d   : > { %7096 = vmatpush1.bf16.msra.mxu0 %v10483_v20  ;;  %7752 = vmatpush1.bf16.msra.mxu1 %v10486_v21  ;;  %v10571_v20 = vld [vmem:[%s11128_s4 + $0x1968] ss:$16 sps:$4 sm:$0xff]   ;;  %v10576_v21 = vld [vmem:[%s11128_s4 + $0x1984] ss:$16 sps:$4 sm:$0xff]  }
 0x33e   : > { %7097 = vmatprep.subr.bf16.mxu0 %v10491_v9  ;;  %7753 = vmatprep.subr.bf16.mxu1 %v10494_v23  ;;  %v10579_v9 = vld [vmem:[%s11128_s4 + $0x198c] ss:$16 sps:$4 sm:$0xff]   ;;  %v10574_v23 = vld [vmem:[%s11128_s4 + $0x1980] ss:$16 sps:$4 sm:$0xff]  }
 0x341   : > { %7098 = vmatpush1.bf16.msra.mxu0 %v10489_v7  ;;  %7754 = vmatpush1.bf16.msra.mxu1 %v10492_v24  ;;  %v10577_v7 = vld [vmem:[%s11128_s4 + $0x1988] ss:$16 sps:$4 sm:$0xff]   ;;  %v10582_v24 = vld [vmem:[%s11128_s4 + $0x19a4] ss:$16 sps:$4 sm:$0xff]  }
 0x342   : > { %7099 = vmatprep.subr.bf16.mxu0 %v10497_v10  ;;  %7755 = vmatprep.subr.bf16.mxu1 %v10500_v28  ;;  %v10585_v10 = vld [vmem:[%s11128_s4 + $0x19ac] ss:$16 sps:$4 sm:$0xff]   ;;  %v10580_v28 = vld [vmem:[%s11128_s4 + $0x19a0] ss:$16 sps:$4 sm:$0xff]  }
 0x345   : > { %7100 = vmatpush1.bf16.msra.mxu0 %v10495_v31  ;;  %7756 = vmatpush1.bf16.msra.mxu1 %v10498_v32  ;;  %v10583_v31 = vld [vmem:[%s11128_s4 + $0x19a8] ss:$16 sps:$4 sm:$0xff]   ;;  %v10588_v32 = vld [vmem:[%s11128_s4 + $0x19c4] ss:$16 sps:$4 sm:$0xff]  }
 0x346   : > { %7110 = vmatprep.subr.bf16.mxu0 %v10504_v34  ;;  %7766 = vmatprep.subr.bf16.mxu1 %v10507_v14  ;;  %v10591_v34 = vld [vmem:[%s11128_s4 + $0x19cc] ss:$16 sps:$4 sm:$0xff]   ;;  %v376_v14 = vcombine.high %v12029_v25, %v12029_v25  ;;  %v10592_v25 = vld [vmem:[%s11128_s4 + $0x19e0] ss:$16 sps:$4 sm:$0xff]  }
 0x348   : > { %7102 = vmatmul.mubr.bf16.vlgmr.msra.gmra.mrb[0].mxu0 %v464_v36  ;;  %7758 = vmatmul.mubr.bf16.vlgmr.msra.gmra.mrb[0].mxu1 %v464_v36  ;;  %v10589_v36 = vld [vmem:[%s11128_s4 + $0x19c8] ss:$16 sps:$4 sm:$0xff]  }
 0x349   : > { %7111 = vmatpush1.bf16.msra.mxu0 %v10502_v27  ;;  %7767 = vmatpush1.bf16.msra.mxu1 %v10505_v37  ;;  %v10594_v27 = vld [vmem:[%s11128_s4 + $0x19e4] ss:$16 sps:$4 sm:$0xff]   ;;  %v10597_v37 = vld [vmem:[%s11128_s4 + $0x19ec] ss:$16 sps:$4 sm:$0xff]  }
 0x34a   : > { %7112 = vmatprep.subr.bf16.mxu0 %v10510_v38  ;;  %7768 = vmatprep.subr.bf16.mxu1 %v10513_v39  ;;  %v12110_v38 = vrot.slane %v376_v14, %v11201_v50  ;;  %v10595_v39 = vld [vmem:[%s11128_s4 + $0x19e8] ss:$16 sps:$4 sm:$0xff]  }
 0x34b   : > { %7142 = vmatprep.mubr.bf16.mxu0 %v467_v40  ;;  %7798 = vmatprep.mubr.bf16.mxu1 %v467_v40  ;;  %v10600_v40 = vld [vmem:[%s11128_s4 + $0x1a04] ss:$16 sps:$4 sm:$0xff]   ;;  %v10673_v14 = vld [vmem:[%s11128_s4 + $0x1b88] ss:$16 sps:$4 sm:$0xff]  }
 0x34d   : > { %7113 = vmatpush1.bf16.msra.mxu0 %v10508_v22  ;;  %7769 = vmatpush1.bf16.msra.mxu1 %v10511_v29  ;;  %v10603_v22 = vld [vmem:[%s11128_s4 + $0x1a0c] ss:$16 sps:$4 sm:$0xff]   ;;  %v392_v29 = vcombine.high %v12110_v38, %v12110_v38 }
 0x34e   : > { %7114 = vmatprep.subr.bf16.mxu0 %v10516_v42  ;;  %7770 = vmatprep.subr.bf16.mxu1 %v10519_v45  ;;  %v466_v42 = vpack.c.bf16 %v12037_v30, %v12037_v30  ;;  %v10598_v45 = vld [vmem:[%s11128_s4 + $0x1a00] ss:$16 sps:$4 sm:$0xff]  }
 0x34f   : > { %v10604_v30 = vld [vmem:[%s11128_s4 + $0x1a20] ss:$16 sps:$4 sm:$0xff]  }
 0x351   : > { %7115 = vmatpush1.bf16.msra.mxu0 %v10514_v46  ;;  %7771 = vmatpush1.bf16.msra.mxu1 %v10517_v26  ;;  %v10601_v46 = vld [vmem:[%s11128_s4 + $0x1a08] ss:$16 sps:$4 sm:$0xff]   ;;  %v10606_v26 = vld [vmem:[%s11128_s4 + $0x1a24] ss:$16 sps:$4 sm:$0xff]  }
 0x352   : > { %7116 = vmatprep.subr.bf16.mxu0 %v10522_v47  ;;  %7772 = vmatprep.subr.bf16.mxu1 %v10525_v49  ;;  %v10609_v47 = vld [vmem:[%s11128_s4 + $0x1a2c] ss:$16 sps:$4 sm:$0xff]   ;;  %v469_v49 = vpack.c.bf16 %v392_v29, %v392_v29  ;;  %v10685_v29 = vld [vmem:[%s11128_s4 + $0x1bc8] ss:$16 sps:$4 sm:$0xff]  }
 0x355   : > { %7117 = vmatpush1.bf16.msra.mxu0 %v10520_v51  ;;  %7773 = vmatpush1.bf16.msra.mxu1 %v10523_v52  ;;  %v10607_v51 = vld [vmem:[%s11128_s4 + $0x1a28] ss:$16 sps:$4 sm:$0xff]   ;;  %v10612_v52 = vld [vmem:[%s11128_s4 + $0x1a44] ss:$16 sps:$4 sm:$0xff]  }
 0x356   : > { %7118 = vmatprep.subr.bf16.mxu0 %v10528_v33  ;;  %7774 = vmatprep.subr.bf16.mxu1 %v10531_v53  ;;  %v10615_v33 = vld [vmem:[%s11128_s4 + $0x1a4c] ss:$16 sps:$4 sm:$0xff]   ;;  %v10610_v53 = vld [vmem:[%s11128_s4 + $0x1a40] ss:$16 sps:$4 sm:$0xff]  }
 0x359   : > { %7119 = vmatpush1.bf16.msra.mxu0 %v10526_v54  ;;  %7775 = vmatpush1.bf16.msra.mxu1 %v10529_v55  ;;  %v10613_v54 = vld [vmem:[%s11128_s4 + $0x1a48] ss:$16 sps:$4 sm:$0xff]   ;;  %v10618_v55 = vld [vmem:[%s11128_s4 + $0x1a64] ss:$16 sps:$4 sm:$0xff]  }
 0x35a   : > { %7120 = vmatprep.subr.bf16.mxu0 %v10534_v56  ;;  %7776 = vmatprep.subr.bf16.mxu1 %v10537_v43  ;;  %v10621_v56 = vld [vmem:[%s11128_s4 + $0x1a6c] ss:$16 sps:$4 sm:$0xff]   ;;  %v10616_v43 = vld [vmem:[%s11128_s4 + $0x1a60] ss:$16 sps:$4 sm:$0xff]  }
 0x35d   : > { %7121 = vmatpush1.bf16.msra.mxu0 %v10532_v58  ;;  %7777 = vmatpush1.bf16.msra.mxu1 %v10535_v41  ;;  %v10619_v58 = vld [vmem:[%s11128_s4 + $0x1a68] ss:$16 sps:$4 sm:$0xff]   ;;  %v10624_v41 = vld [vmem:[%s11128_s4 + $0x1a84] ss:$16 sps:$4 sm:$0xff]  }
 0x35e   : > { %7122 = vmatprep.subr.bf16.mxu0 %v10540_v60  ;;  %7778 = vmatprep.subr.bf16.mxu1 %v10543_v61  ;;  %v10627_v60 = vld [vmem:[%s11128_s4 + $0x1a8c] ss:$16 sps:$4 sm:$0xff]   ;;  %v10622_v61 = vld [vmem:[%s11128_s4 + $0x1a80] ss:$16 sps:$4 sm:$0xff]  }
 0x361   : > { %7123 = vmatpush1.bf16.msra.mxu0 %v10538_v62  ;;  %7779 = vmatpush1.bf16.msra.mxu1 %v10541_v0  ;;  %v10625_v62 = vld [vmem:[%s11128_s4 + $0x1a88] ss:$16 sps:$4 sm:$0xff]   ;;  %v10630_v0 = vld [vmem:[%s11128_s4 + $0x1aa4] ss:$16 sps:$4 sm:$0xff]  }
 0x362   : > { %7124 = vmatprep.subr.bf16.mxu0 %v10546_v1  ;;  %7780 = vmatprep.subr.bf16.mxu1 %v10549_v2  ;;  %v10633_v1 = vld [vmem:[%s11128_s4 + $0x1aac] ss:$16 sps:$4 sm:$0xff]   ;;  %v10628_v2 = vld [vmem:[%s11128_s4 + $0x1aa0] ss:$16 sps:$4 sm:$0xff]  }
 0x365   : > { %7125 = vmatpush1.bf16.msra.mxu0 %v10544_v48  ;;  %7781 = vmatpush1.bf16.msra.mxu1 %v10547_v3  ;;  %v10631_v48 = vld [vmem:[%s11128_s4 + $0x1aa8] ss:$16 sps:$4 sm:$0xff]   ;;  %v10636_v3 = vld [vmem:[%s11128_s4 + $0x1ac4] ss:$16 sps:$4 sm:$0xff]  }
 0x366   : > { %7126 = vmatprep.subr.bf16.mxu0 %v10552_v4  ;;  %7782 = vmatprep.subr.bf16.mxu1 %v10555_v5  ;;  %v10639_v4 = vld [vmem:[%s11128_s4 + $0x1acc] ss:$16 sps:$4 sm:$0xff]   ;;  %v10634_v5 = vld [vmem:[%s11128_s4 + $0x1ac0] ss:$16 sps:$4 sm:$0xff]  }
 0x369   : > { %7127 = vmatpush1.bf16.msra.mxu0 %v10550_v6  ;;  %7783 = vmatpush1.bf16.msra.mxu1 %v10553_v59  ;;  %v10637_v6 = vld [vmem:[%s11128_s4 + $0x1ac8] ss:$16 sps:$4 sm:$0xff]   ;;  %v10642_v59 = vld [vmem:[%s11128_s4 + $0x1ae4] ss:$16 sps:$4 sm:$0xff]  }
 0x36a   : > { %7128 = vmatprep.subr.bf16.mxu0 %v10558_v8  ;;  %7784 = vmatprep.subr.bf16.mxu1 %v10561_v57  ;;  %v10645_v8 = vld [vmem:[%s11128_s4 + $0x1aec] ss:$16 sps:$4 sm:$0xff]   ;;  %v10640_v57 = vld [vmem:[%s11128_s4 + $0x1ae0] ss:$16 sps:$4 sm:$0xff]  }
 0x36d   : > { %7129 = vmatpush1.bf16.msra.mxu0 %v10556_v11  ;;  %7785 = vmatpush1.bf16.msra.mxu1 %v10559_v12  ;;  %v10643_v11 = vld [vmem:[%s11128_s4 + $0x1ae8] ss:$16 sps:$4 sm:$0xff]   ;;  %v10648_v12 = vld [vmem:[%s11128_s4 + $0x1b04] ss:$16 sps:$4 sm:$0xff]  }
 0x36e   : > { %7130 = vmatprep.subr.bf16.mxu0 %v10564_v13  ;;  %7786 = vmatprep.subr.bf16.mxu1 %v10567_v15  ;;  %v10651_v13 = vld [vmem:[%s11128_s4 + $0x1b0c] ss:$16 sps:$4 sm:$0xff]   ;;  %v10646_v15 = vld [vmem:[%s11128_s4 + $0x1b00] ss:$16 sps:$4 sm:$0xff]  }
 0x371   : > { %7131 = vmatpush1.bf16.msra.mxu0 %v10562_v16  ;;  %7787 = vmatpush1.bf16.msra.mxu1 %v10565_v17  ;;  %v10649_v16 = vld [vmem:[%s11128_s4 + $0x1b08] ss:$16 sps:$4 sm:$0xff]   ;;  %v10654_v17 = vld [vmem:[%s11128_s4 + $0x1b24] ss:$16 sps:$4 sm:$0xff]  }
 0x372   : > { %7132 = vmatprep.subr.bf16.mxu0 %v10570_v63  ;;  %7788 = vmatprep.subr.bf16.mxu1 %v10573_v18  ;;  %v10657_v63 = vld [vmem:[%s11128_s4 + $0x1b2c] ss:$16 sps:$4 sm:$0xff]   ;;  %v10652_v18 = vld [vmem:[%s11128_s4 + $0x1b20] ss:$16 sps:$4 sm:$0xff]  }
 0x375   : > { %7133 = vmatpush1.bf16.msra.mxu0 %v10568_v19  ;;  %7789 = vmatpush1.bf16.msra.mxu1 %v10571_v20  ;;  %v10655_v19 = vld [vmem:[%s11128_s4 + $0x1b28] ss:$16 sps:$4 sm:$0xff]   ;;  %v10660_v20 = vld [vmem:[%s11128_s4 + $0x1b44] ss:$16 sps:$4 sm:$0xff]  }
 0x376   : > { %7134 = vmatprep.subr.bf16.mxu0 %v10576_v21  ;;  %7790 = vmatprep.subr.bf16.mxu1 %v10579_v9  ;;  %v10663_v21 = vld [vmem:[%s11128_s4 + $0x1b4c] ss:$16 sps:$4 sm:$0xff]   ;;  %v10658_v9 = vld [vmem:[%s11128_s4 + $0x1b40] ss:$16 sps:$4 sm:$0xff]  }
 0x379   : > { %7135 = vmatpush1.bf16.msra.mxu0 %v10574_v23  ;;  %7791 = vmatpush1.bf16.msra.mxu1 %v10577_v7  ;;  %v10661_v23 = vld [vmem:[%s11128_s4 + $0x1b48] ss:$16 sps:$4 sm:$0xff]   ;;  %v10666_v7 = vld [vmem:[%s11128_s4 + $0x1b64] ss:$16 sps:$4 sm:$0xff]  }
 0x37a   : > { %7136 = vmatprep.subr.bf16.mxu0 %v10582_v24  ;;  %7792 = vmatprep.subr.bf16.mxu1 %v10585_v10  ;;  %v10669_v24 = vld [vmem:[%s11128_s4 + $0x1b6c] ss:$16 sps:$4 sm:$0xff]   ;;  %v10664_v10 = vld [vmem:[%s11128_s4 + $0x1b60] ss:$16 sps:$4 sm:$0xff]  }
 0x37d   : > { %7137 = vmatpush1.bf16.msra.mxu0 %v10580_v28  ;;  %7793 = vmatpush1.bf16.msra.mxu1 %v10583_v31  ;;  %v10667_v28 = vld [vmem:[%s11128_s4 + $0x1b68] ss:$16 sps:$4 sm:$0xff]   ;;  %v10672_v31 = vld [vmem:[%s11128_s4 + $0x1b84] ss:$16 sps:$4 sm:$0xff]  }
 0x37e   : > { %7138 = vmatprep.subr.bf16.mxu0 %v10588_v32  ;;  %7794 = vmatprep.subr.bf16.mxu1 %v10591_v34  ;;  %v10675_v32 = vld [vmem:[%s11128_s4 + $0x1b8c] ss:$16 sps:$4 sm:$0xff]   ;;  %v10670_v34 = vld [vmem:[%s11128_s4 + $0x1b80] ss:$16 sps:$4 sm:$0xff]  }
 0x381   : > { %7139 = vmatpush1.bf16.msra.mxu0 %v10586_v35  ;;  %7795 = vmatpush1.bf16.msra.mxu1 %v10589_v36  ;;  %v10678_v35 = vld [vmem:[%s11128_s4 + $0x1ba4] ss:$16 sps:$4 sm:$0xff]   ;;  %v10681_v36 = vld [vmem:[%s11128_s4 + $0x1bac] ss:$16 sps:$4 sm:$0xff]  }
 0x382   : > { %7140 = vmatprep.subr.bf16.mxu0 %v10594_v27  ;;  %7796 = vmatprep.subr.bf16.mxu1 %v10597_v37  ;;  %v10676_v27 = vld [vmem:[%s11128_s4 + $0x1ba0] ss:$16 sps:$4 sm:$0xff]   ;;  %v10679_v37 = vld [vmem:[%s11128_s4 + $0x1ba8] ss:$16 sps:$4 sm:$0xff]  }
 0x385   : > { %7141 = vmatpush1.bf16.msra.mxu0 %v10592_v25  ;;  %7797 = vmatpush1.bf16.msra.mxu1 %v10595_v39  ;;  %v10684_v25 = vld [vmem:[%s11128_s4 + $0x1bc4] ss:$16 sps:$4 sm:$0xff]   ;;  %v10687_v39 = vld [vmem:[%s11128_s4 + $0x1bcc] ss:$16 sps:$4 sm:$0xff]  }
 0x386   : > { %7151 = vmatprep.subr.bf16.mxu0 %v10600_v40  ;;  %7807 = vmatprep.subr.bf16.mxu1 %v10603_v22  ;;  %v12177_v40 = vld [vmem:[%s11141_s29 + $0x38] sm:$0xff] }
 0x387   : > { %v10682_v22 = vld [vmem:[%s11128_s4 + $0x1bc0] ss:$16 sps:$4 sm:$0xff]  }
 0x388   : > { %7143 = vmatmul.mubr.bf16.vlgmr.msra.gmra.mrb[0].mxu0 %v466_v42  ;;  %7799 = vmatmul.mubr.bf16.vlgmr.msra.gmra.mrb[0].mxu1 %v466_v42  ;;  %v10690_v42 = vld [vmem:[%s11128_s4 + $0x1be4] ss:$16 sps:$4 sm:$0xff]  }
 0x389   : > { %7152 = vmatpush1.bf16.msra.mxu0 %v10598_v45  ;;  %7808 = vmatpush1.bf16.msra.mxu1 %v10601_v46  ;;  %v10693_v45 = vld [vmem:[%s11128_s4 + $0x1bec] ss:$16 sps:$4 sm:$0xff]   ;;  %v12185_v46 = vrot.slane %v12177_v40, %v11201_v50 }
 0x38a   : > { %7153 = vmatprep.subr.bf16.mxu0 %v10606_v26  ;;  %7809 = vmatprep.subr.bf16.mxu1 %v10609_v47  ;;  %v10688_v26 = vld [vmem:[%s11128_s4 + $0x1be0] ss:$16 sps:$4 sm:$0xff]   ;;  %v10691_v47 = vld [vmem:[%s11128_s4 + $0x1be8] ss:$16 sps:$4 sm:$0xff]  }
 0x38b   : > { %7183 = vmatprep.mubr.bf16.mxu0 %v469_v49  ;;  %7839 = vmatprep.mubr.bf16.mxu1 %v469_v49  ;;  %v10697_v49 = vld [vmem:[%s11128_s4 + $0x1c04] ss:$16 sps:$4 sm:$0xff]  }
 0x38d   : > { %7154 = vmatpush1.bf16.msra.mxu0 %v10604_v30  ;;  %7810 = vmatpush1.bf16.msra.mxu1 %v10607_v51  ;;  %v10700_v30 = vld [vmem:[%s11128_s4 + $0x1c0c] ss:$16 sps:$4 sm:$0xff]   ;;  %v408_v51 = vcombine.high %v12185_v46, %v12185_v46 }
 0x38e   : > { %7155 = vmatprep.subr.bf16.mxu0 %v10612_v52  ;;  %7811 = vmatprep.subr.bf16.mxu1 %v10615_v33  ;;  %v468_v52 = vpack.c.bf16 %v12110_v38, %v12110_v38  ;;  %v10695_v33 = vld [vmem:[%s11128_s4 + $0x1c00] ss:$16 sps:$4 sm:$0xff]  }
 0x38f   : > { %v10701_v38 = vld [vmem:[%s11128_s4 + $0x1c20] ss:$16 sps:$4 sm:$0xff]  }
 0x391   : > { %7156 = vmatpush1.bf16.msra.mxu0 %v10610_v53  ;;  %7812 = vmatpush1.bf16.msra.mxu1 %v10613_v54  ;;  %v10698_v53 = vld [vmem:[%s11128_s4 + $0x1c08] ss:$16 sps:$4 sm:$0xff]   ;;  %v10703_v54 = vld [vmem:[%s11128_s4 + $0x1c24] ss:$16 sps:$4 sm:$0xff]  }
 0x392   : > { %7157 = vmatprep.subr.bf16.mxu0 %v10618_v55  ;;  %7813 = vmatprep.subr.bf16.mxu1 %v10621_v56  ;;  %v10706_v55 = vld [vmem:[%s11128_s4 + $0x1c2c] ss:$16 sps:$4 sm:$0xff]   ;;  %v471_v56 = vpack.c.bf16 %v408_v51, %v408_v51  ;;  %v10779_v51 = vld [vmem:[%s11128_s4 + $0x1dc0] ss:$16 sps:$4 sm:$0xff]  }
 0x395   : > { %7158 = vmatpush1.bf16.msra.mxu0 %v10616_v43  ;;  %7814 = vmatpush1.bf16.msra.mxu1 %v10619_v58  ;;  %v10704_v43 = vld [vmem:[%s11128_s4 + $0x1c28] ss:$16 sps:$4 sm:$0xff]   ;;  %v10709_v58 = vld [vmem:[%s11128_s4 + $0x1c44] ss:$16 sps:$4 sm:$0xff]  }
 0x396   : > { %7159 = vmatprep.subr.bf16.mxu0 %v10624_v41  ;;  %7815 = vmatprep.subr.bf16.mxu1 %v10627_v60  ;;  %v10712_v41 = vld [vmem:[%s11128_s4 + $0x1c4c] ss:$16 sps:$4 sm:$0xff]   ;;  %v10707_v60 = vld [vmem:[%s11128_s4 + $0x1c40] ss:$16 sps:$4 sm:$0xff]  }
 0x399   : > { %7160 = vmatpush1.bf16.msra.mxu0 %v10622_v61  ;;  %7816 = vmatpush1.bf16.msra.mxu1 %v10625_v62  ;;  %v10710_v61 = vld [vmem:[%s11128_s4 + $0x1c48] ss:$16 sps:$4 sm:$0xff]   ;;  %v10715_v62 = vld [vmem:[%s11128_s4 + $0x1c64] ss:$16 sps:$4 sm:$0xff]  }
 0x39a   : > { %7161 = vmatprep.subr.bf16.mxu0 %v10630_v0  ;;  %7817 = vmatprep.subr.bf16.mxu1 %v10633_v1  ;;  %v10718_v0 = vld [vmem:[%s11128_s4 + $0x1c6c] ss:$16 sps:$4 sm:$0xff]   ;;  %v10713_v1 = vld [vmem:[%s11128_s4 + $0x1c60] ss:$16 sps:$4 sm:$0xff]  }
 0x39d   : > { %7162 = vmatpush1.bf16.msra.mxu0 %v10628_v2  ;;  %7818 = vmatpush1.bf16.msra.mxu1 %v10631_v48  ;;  %v10716_v2 = vld [vmem:[%s11128_s4 + $0x1c68] ss:$16 sps:$4 sm:$0xff]   ;;  %v10721_v48 = vld [vmem:[%s11128_s4 + $0x1c84] ss:$16 sps:$4 sm:$0xff]  }
 0x39e   : > { %7163 = vmatprep.subr.bf16.mxu0 %v10636_v3  ;;  %7819 = vmatprep.subr.bf16.mxu1 %v10639_v4  ;;  %v10724_v3 = vld [vmem:[%s11128_s4 + $0x1c8c] ss:$16 sps:$4 sm:$0xff]   ;;  %v10719_v4 = vld [vmem:[%s11128_s4 + $0x1c80] ss:$16 sps:$4 sm:$0xff]  }
 0x3a1   : > { %7164 = vmatpush1.bf16.msra.mxu0 %v10634_v5  ;;  %7820 = vmatpush1.bf16.msra.mxu1 %v10637_v6  ;;  %v10722_v5 = vld [vmem:[%s11128_s4 + $0x1c88] ss:$16 sps:$4 sm:$0xff]   ;;  %v10727_v6 = vld [vmem:[%s11128_s4 + $0x1ca4] ss:$16 sps:$4 sm:$0xff]  }
 0x3a2   : > { %7165 = vmatprep.subr.bf16.mxu0 %v10642_v59  ;;  %7821 = vmatprep.subr.bf16.mxu1 %v10645_v8  ;;  %v10730_v59 = vld [vmem:[%s11128_s4 + $0x1cac] ss:$16 sps:$4 sm:$0xff]   ;;  %v10725_v8 = vld [vmem:[%s11128_s4 + $0x1ca0] ss:$16 sps:$4 sm:$0xff]  }
 0x3a5   : > { %7166 = vmatpush1.bf16.msra.mxu0 %v10640_v57  ;;  %7822 = vmatpush1.bf16.msra.mxu1 %v10643_v11  ;;  %v10728_v57 = vld [vmem:[%s11128_s4 + $0x1ca8] ss:$16 sps:$4 sm:$0xff]   ;;  %v10733_v11 = vld [vmem:[%s11128_s4 + $0x1cc4] ss:$16 sps:$4 sm:$0xff]  }
 0x3a6   : > { %7167 = vmatprep.subr.bf16.mxu0 %v10648_v12  ;;  %7823 = vmatprep.subr.bf16.mxu1 %v10651_v13  ;;  %v10736_v12 = vld [vmem:[%s11128_s4 + $0x1ccc] ss:$16 sps:$4 sm:$0xff]   ;;  %v10731_v13 = vld [vmem:[%s11128_s4 + $0x1cc0] ss:$16 sps:$4 sm:$0xff]  }
 0x3a9   : > { %7168 = vmatpush1.bf16.msra.mxu0 %v10646_v15  ;;  %7824 = vmatpush1.bf16.msra.mxu1 %v10649_v16  ;;  %v10734_v15 = vld [vmem:[%s11128_s4 + $0x1cc8] ss:$16 sps:$4 sm:$0xff]   ;;  %v10739_v16 = vld [vmem:[%s11128_s4 + $0x1ce4] ss:$16 sps:$4 sm:$0xff]  }
 0x3aa   : > { %7169 = vmatprep.subr.bf16.mxu0 %v10654_v17  ;;  %7825 = vmatprep.subr.bf16.mxu1 %v10657_v63  ;;  %v10742_v17 = vld [vmem:[%s11128_s4 + $0x1cec] ss:$16 sps:$4 sm:$0xff]   ;;  %v10737_v63 = vld [vmem:[%s11128_s4 + $0x1ce0] ss:$16 sps:$4 sm:$0xff]  }
 0x3ad   : > { %7170 = vmatpush1.bf16.msra.mxu0 %v10652_v18  ;;  %7826 = vmatpush1.bf16.msra.mxu1 %v10655_v19  ;;  %v10740_v18 = vld [vmem:[%s11128_s4 + $0x1ce8] ss:$16 sps:$4 sm:$0xff]   ;;  %v10745_v19 = vld [vmem:[%s11128_s4 + $0x1d04] ss:$16 sps:$4 sm:$0xff]  }
 0x3ae   : > { %7171 = vmatprep.subr.bf16.mxu0 %v10660_v20  ;;  %7827 = vmatprep.subr.bf16.mxu1 %v10663_v21  ;;  %v10748_v20 = vld [vmem:[%s11128_s4 + $0x1d0c] ss:$16 sps:$4 sm:$0xff]   ;;  %v10743_v21 = vld [vmem:[%s11128_s4 + $0x1d00] ss:$16 sps:$4 sm:$0xff]  }
 0x3b1   : > { %7172 = vmatpush1.bf16.msra.mxu0 %v10658_v9  ;;  %7828 = vmatpush1.bf16.msra.mxu1 %v10661_v23  ;;  %v10746_v9 = vld [vmem:[%s11128_s4 + $0x1d08] ss:$16 sps:$4 sm:$0xff]   ;;  %v10751_v23 = vld [vmem:[%s11128_s4 + $0x1d24] ss:$16 sps:$4 sm:$0xff]  }
 0x3b2   : > { %7173 = vmatprep.subr.bf16.mxu0 %v10666_v7  ;;  %7829 = vmatprep.subr.bf16.mxu1 %v10669_v24  ;;  %v10754_v7 = vld [vmem:[%s11128_s4 + $0x1d2c] ss:$16 sps:$4 sm:$0xff]   ;;  %v10749_v24 = vld [vmem:[%s11128_s4 + $0x1d20] ss:$16 sps:$4 sm:$0xff]  }
 0x3b5   : > { %7174 = vmatpush1.bf16.msra.mxu0 %v10664_v10  ;;  %7830 = vmatpush1.bf16.msra.mxu1 %v10667_v28  ;;  %v10752_v10 = vld [vmem:[%s11128_s4 + $0x1d28] ss:$16 sps:$4 sm:$0xff]   ;;  %v10757_v28 = vld [vmem:[%s11128_s4 + $0x1d44] ss:$16 sps:$4 sm:$0xff]  }
 0x3b6   : > { %7175 = vmatprep.subr.bf16.mxu0 %v10672_v31  ;;  %7831 = vmatprep.subr.bf16.mxu1 %v10675_v32  ;;  %v10760_v31 = vld [vmem:[%s11128_s4 + $0x1d4c] ss:$16 sps:$4 sm:$0xff]   ;;  %v10755_v32 = vld [vmem:[%s11128_s4 + $0x1d40] ss:$16 sps:$4 sm:$0xff]  }
 0x3b9   : > { %7176 = vmatpush1.bf16.msra.mxu0 %v10670_v34  ;;  %7832 = vmatpush1.bf16.msra.mxu1 %v10673_v14  ;;  %v10758_v34 = vld [vmem:[%s11128_s4 + $0x1d48] ss:$16 sps:$4 sm:$0xff]   ;;  %v10763_v14 = vld [vmem:[%s11128_s4 + $0x1d64] ss:$16 sps:$4 sm:$0xff]  }
 0x3ba   : > { %7177 = vmatprep.subr.bf16.mxu0 %v10678_v35  ;;  %7833 = vmatprep.subr.bf16.mxu1 %v10681_v36  ;;  %v10766_v35 = vld [vmem:[%s11128_s4 + $0x1d6c] ss:$16 sps:$4 sm:$0xff]   ;;  %v10761_v36 = vld [vmem:[%s11128_s4 + $0x1d60] ss:$16 sps:$4 sm:$0xff]  }
 0x3bd   : > { %7178 = vmatpush1.bf16.msra.mxu0 %v10676_v27  ;;  %7834 = vmatpush1.bf16.msra.mxu1 %v10679_v37  ;;  %v10764_v27 = vld [vmem:[%s11128_s4 + $0x1d68] ss:$16 sps:$4 sm:$0xff]   ;;  %v10769_v37 = vld [vmem:[%s11128_s4 + $0x1d84] ss:$16 sps:$4 sm:$0xff]  }
 0x3be   : > { %7179 = vmatprep.subr.bf16.mxu0 %v10684_v25  ;;  %7835 = vmatprep.subr.bf16.mxu1 %v10687_v39  ;;  %v10772_v25 = vld [vmem:[%s11128_s4 + $0x1d8c] ss:$16 sps:$4 sm:$0xff]   ;;  %v10767_v39 = vld [vmem:[%s11128_s4 + $0x1d80] ss:$16 sps:$4 sm:$0xff]  }
 0x3c1   : > { %7180 = vmatpush1.bf16.msra.mxu0 %v10682_v22  ;;  %7836 = vmatpush1.bf16.msra.mxu1 %v10685_v29  ;;  %v10770_v22 = vld [vmem:[%s11128_s4 + $0x1d88] ss:$16 sps:$4 sm:$0xff]   ;;  %v10775_v29 = vld [vmem:[%s11128_s4 + $0x1da4] ss:$16 sps:$4 sm:$0xff]  }
 0x3c2   : > { %7181 = vmatprep.subr.bf16.mxu0 %v10690_v42  ;;  %7837 = vmatprep.subr.bf16.mxu1 %v10693_v45  ;;  %v10778_v42 = vld [vmem:[%s11128_s4 + $0x1dac] ss:$16 sps:$4 sm:$0xff]   ;;  %v10773_v45 = vld [vmem:[%s11128_s4 + $0x1da0] ss:$16 sps:$4 sm:$0xff]  }
 0x3c5   : > { %7182 = vmatpush1.bf16.msra.mxu0 %v10688_v26  ;;  %7838 = vmatpush1.bf16.msra.mxu1 %v10691_v47  ;;  %v10776_v26 = vld [vmem:[%s11128_s4 + $0x1da8] ss:$16 sps:$4 sm:$0xff]   ;;  %v10781_v47 = vld [vmem:[%s11128_s4 + $0x1dc4] ss:$16 sps:$4 sm:$0xff]  }
 0x3c6   : > { %7192 = vmatprep.subr.bf16.mxu0 %v10697_v49  ;;  %7848 = vmatprep.subr.bf16.mxu1 %v10700_v30  ;;  %v10784_v49 = vld [vmem:[%s11128_s4 + $0x1dcc] ss:$16 sps:$4 sm:$0xff]   ;;  %v393_v30 = vcombine.high %v12177_v40, %v12177_v40  ;;  %v10785_v40 = vld [vmem:[%s11128_s4 + $0x1de0] ss:$16 sps:$4 sm:$0xff]  }
 0x3c8   : > { %7184 = vmatmul.mubr.bf16.vlgmr.msra.gmra.mrb[0].mxu0 %v468_v52  ;;  %7840 = vmatmul.mubr.bf16.vlgmr.msra.gmra.mrb[0].mxu1 %v468_v52  ;;  %v10782_v52 = vld [vmem:[%s11128_s4 + $0x1dc8] ss:$16 sps:$4 sm:$0xff]  }
 0x3c9   : > { %7193 = vmatpush1.bf16.msra.mxu0 %v10695_v33  ;;  %7849 = vmatpush1.bf16.msra.mxu1 %v10698_v53  ;;  %v10787_v33 = vld [vmem:[%s11128_s4 + $0x1de4] ss:$16 sps:$4 sm:$0xff]   ;;  %v10790_v53 = vld [vmem:[%s11128_s4 + $0x1dec] ss:$16 sps:$4 sm:$0xff]  }
 0x3ca   : > { %7194 = vmatprep.subr.bf16.mxu0 %v10703_v54  ;;  %7850 = vmatprep.subr.bf16.mxu1 %v10706_v55  ;;  %v12258_v54 = vrot.slane %v393_v30, %v11201_v50  ;;  %v10788_v55 = vld [vmem:[%s11128_s4 + $0x1de8] ss:$16 sps:$4 sm:$0xff]  }
 0x3cb   : > { %7224 = vmatprep.mubr.bf16.mxu0 %v471_v56  ;;  %7880 = vmatprep.mubr.bf16.mxu1 %v471_v56  ;;  %v10793_v56 = vld [vmem:[%s11128_s4 + $0x1e04] ss:$16 sps:$4 sm:$0xff]   ;;  %v10866_v30 = vld [vmem:[%s11128_s4 + $0x1f88] ss:$16 sps:$4 sm:$0xff]  }
 0x3cd   : > { %7195 = vmatpush1.bf16.msra.mxu0 %v10701_v38  ;;  %7851 = vmatpush1.bf16.msra.mxu1 %v10704_v43  ;;  %v10796_v38 = vld [vmem:[%s11128_s4 + $0x1e0c] ss:$16 sps:$4 sm:$0xff]   ;;  %v409_v43 = vcombine.high %v12258_v54, %v12258_v54 }
 0x3ce   : > { %7196 = vmatprep.subr.bf16.mxu0 %v10709_v58  ;;  %7852 = vmatprep.subr.bf16.mxu1 %v10712_v41  ;;  %v470_v58 = vpack.c.bf16 %v12185_v46, %v12185_v46  ;;  %v10791_v41 = vld [vmem:[%s11128_s4 + $0x1e00] ss:$16 sps:$4 sm:$0xff]  }
 0x3cf   : > { %v10797_v46 = vld [vmem:[%s11128_s4 + $0x1e20] ss:$16 sps:$4 sm:$0xff]  }
 0x3d1   : > { %7197 = vmatpush1.bf16.msra.mxu0 %v10707_v60  ;;  %7853 = vmatpush1.bf16.msra.mxu1 %v10710_v61  ;;  %v10794_v60 = vld [vmem:[%s11128_s4 + $0x1e08] ss:$16 sps:$4 sm:$0xff]   ;;  %v10799_v61 = vld [vmem:[%s11128_s4 + $0x1e24] ss:$16 sps:$4 sm:$0xff]  }
 0x3d2   : > { %7198 = vmatprep.subr.bf16.mxu0 %v10715_v62  ;;  %7854 = vmatprep.subr.bf16.mxu1 %v10718_v0  ;;  %v10802_v62 = vld [vmem:[%s11128_s4 + $0x1e2c] ss:$16 sps:$4 sm:$0xff]   ;;  %v473_v0 = vpack.c.bf16 %v409_v43, %v409_v43  ;;  %v10883_v43 = vld [vmem:[%s11128_s4 + $0x1fe4] ss:$16 sps:$4 sm:$0xff]  }
 0x3d5   : > { %7199 = vmatpush1.bf16.msra.mxu0 %v10713_v1  ;;  %7855 = vmatpush1.bf16.msra.mxu1 %v10716_v2  ;;  %v10800_v1 = vld [vmem:[%s11128_s4 + $0x1e28] ss:$16 sps:$4 sm:$0xff]   ;;  %v10805_v2 = vld [vmem:[%s11128_s4 + $0x1e44] ss:$16 sps:$4 sm:$0xff]  }
 0x3d6   : > { %7200 = vmatprep.subr.bf16.mxu0 %v10721_v48  ;;  %7856 = vmatprep.subr.bf16.mxu1 %v10724_v3  ;;  %v10808_v48 = vld [vmem:[%s11128_s4 + $0x1e4c] ss:$16 sps:$4 sm:$0xff]   ;;  %v10803_v3 = vld [vmem:[%s11128_s4 + $0x1e40] ss:$16 sps:$4 sm:$0xff]  }
 0x3d9   : > { %7201 = vmatpush1.bf16.msra.mxu0 %v10719_v4  ;;  %7857 = vmatpush1.bf16.msra.mxu1 %v10722_v5  ;;  %v10806_v4 = vld [vmem:[%s11128_s4 + $0x1e48] ss:$16 sps:$4 sm:$0xff]   ;;  %v10811_v5 = vld [vmem:[%s11128_s4 + $0x1e64] ss:$16 sps:$4 sm:$0xff]  }
 0x3da   : > { %7202 = vmatprep.subr.bf16.mxu0 %v10727_v6  ;;  %7858 = vmatprep.subr.bf16.mxu1 %v10730_v59  ;;  %v10814_v6 = vld [vmem:[%s11128_s4 + $0x1e6c] ss:$16 sps:$4 sm:$0xff]   ;;  %v10809_v59 = vld [vmem:[%s11128_s4 + $0x1e60] ss:$16 sps:$4 sm:$0xff]  }
 0x3dd   : > { %7203 = vmatpush1.bf16.msra.mxu0 %v10725_v8  ;;  %7859 = vmatpush1.bf16.msra.mxu1 %v10728_v57  ;;  %v10812_v8 = vld [vmem:[%s11128_s4 + $0x1e68] ss:$16 sps:$4 sm:$0xff]   ;;  %v10817_v57 = vld [vmem:[%s11128_s4 + $0x1e84] ss:$16 sps:$4 sm:$0xff]  }
 0x3de   : > { %7204 = vmatprep.subr.bf16.mxu0 %v10733_v11  ;;  %7860 = vmatprep.subr.bf16.mxu1 %v10736_v12  ;;  %v10820_v11 = vld [vmem:[%s11128_s4 + $0x1e8c] ss:$16 sps:$4 sm:$0xff]   ;;  %v10815_v12 = vld [vmem:[%s11128_s4 + $0x1e80] ss:$16 sps:$4 sm:$0xff]  }
 0x3e1   : > { %7205 = vmatpush1.bf16.msra.mxu0 %v10731_v13  ;;  %7861 = vmatpush1.bf16.msra.mxu1 %v10734_v15  ;;  %v10818_v13 = vld [vmem:[%s11128_s4 + $0x1e88] ss:$16 sps:$4 sm:$0xff]   ;;  %v10823_v15 = vld [vmem:[%s11128_s4 + $0x1ea4] ss:$16 sps:$4 sm:$0xff]  }
 0x3e2   : > { %7206 = vmatprep.subr.bf16.mxu0 %v10739_v16  ;;  %7862 = vmatprep.subr.bf16.mxu1 %v10742_v17  ;;  %v10826_v16 = vld [vmem:[%s11128_s4 + $0x1eac] ss:$16 sps:$4 sm:$0xff]   ;;  %v10821_v17 = vld [vmem:[%s11128_s4 + $0x1ea0] ss:$16 sps:$4 sm:$0xff]  }
 0x3e5   : > { %7207 = vmatpush1.bf16.msra.mxu0 %v10737_v63  ;;  %7863 = vmatpush1.bf16.msra.mxu1 %v10740_v18  ;;  %v10824_v63 = vld [vmem:[%s11128_s4 + $0x1ea8] ss:$16 sps:$4 sm:$0xff]   ;;  %v10829_v18 = vld [vmem:[%s11128_s4 + $0x1ec4] ss:$16 sps:$4 sm:$0xff]  }
 0x3e6   : > { %7208 = vmatprep.subr.bf16.mxu0 %v10745_v19  ;;  %7864 = vmatprep.subr.bf16.mxu1 %v10748_v20  ;;  %v10832_v19 = vld [vmem:[%s11128_s4 + $0x1ecc] ss:$16 sps:$4 sm:$0xff]   ;;  %v10827_v20 = vld [vmem:[%s11128_s4 + $0x1ec0] ss:$16 sps:$4 sm:$0xff]  }
 0x3e9   : > { %7209 = vmatpush1.bf16.msra.mxu0 %v10743_v21  ;;  %7865 = vmatpush1.bf16.msra.mxu1 %v10746_v9  ;;  %v10830_v21 = vld [vmem:[%s11128_s4 + $0x1ec8] ss:$16 sps:$4 sm:$0xff]   ;;  %v10835_v9 = vld [vmem:[%s11128_s4 + $0x1ee4] ss:$16 sps:$4 sm:$0xff]  }
 0x3ea   : > { %7210 = vmatprep.subr.bf16.mxu0 %v10751_v23  ;;  %7866 = vmatprep.subr.bf16.mxu1 %v10754_v7  ;;  %v10838_v23 = vld [vmem:[%s11128_s4 + $0x1eec] ss:$16 sps:$4 sm:$0xff]   ;;  %v10833_v7 = vld [vmem:[%s11128_s4 + $0x1ee0] ss:$16 sps:$4 sm:$0xff]  }
 0x3ed   : > { %7211 = vmatpush1.bf16.msra.mxu0 %v10749_v24  ;;  %7867 = vmatpush1.bf16.msra.mxu1 %v10752_v10  ;;  %v10836_v24 = vld [vmem:[%s11128_s4 + $0x1ee8] ss:$16 sps:$4 sm:$0xff]   ;;  %v10841_v10 = vld [vmem:[%s11128_s4 + $0x1f04] ss:$16 sps:$4 sm:$0xff]  }
 0x3ee   : > { %7212 = vmatprep.subr.bf16.mxu0 %v10757_v28  ;;  %7868 = vmatprep.subr.bf16.mxu1 %v10760_v31  ;;  %v10844_v28 = vld [vmem:[%s11128_s4 + $0x1f0c] ss:$16 sps:$4 sm:$0xff]   ;;  %v10839_v31 = vld [vmem:[%s11128_s4 + $0x1f00] ss:$16 sps:$4 sm:$0xff]  }
 0x3f1   : > { %7213 = vmatpush1.bf16.msra.mxu0 %v10755_v32  ;;  %7869 = vmatpush1.bf16.msra.mxu1 %v10758_v34  ;;  %v10842_v32 = vld [vmem:[%s11128_s4 + $0x1f08] ss:$16 sps:$4 sm:$0xff]   ;;  %v10847_v34 = vld [vmem:[%s11128_s4 + $0x1f24] ss:$16 sps:$4 sm:$0xff]  }
 0x3f2   : > { %7214 = vmatprep.subr.bf16.mxu0 %v10763_v14  ;;  %7870 = vmatprep.subr.bf16.mxu1 %v10766_v35  ;;  %v10850_v14 = vld [vmem:[%s11128_s4 + $0x1f2c] ss:$16 sps:$4 sm:$0xff]   ;;  %v10845_v35 = vld [vmem:[%s11128_s4 + $0x1f20] ss:$16 sps:$4 sm:$0xff]  }
 0x3f5   : > { %7215 = vmatpush1.bf16.msra.mxu0 %v10761_v36  ;;  %7871 = vmatpush1.bf16.msra.mxu1 %v10764_v27  ;;  %v10848_v36 = vld [vmem:[%s11128_s4 + $0x1f28] ss:$16 sps:$4 sm:$0xff]   ;;  %v10853_v27 = vld [vmem:[%s11128_s4 + $0x1f44] ss:$16 sps:$4 sm:$0xff]  }
 0x3f6   : > { %7216 = vmatprep.subr.bf16.mxu0 %v10769_v37  ;;  %7872 = vmatprep.subr.bf16.mxu1 %v10772_v25  ;;  %v10856_v37 = vld [vmem:[%s11128_s4 + $0x1f4c] ss:$16 sps:$4 sm:$0xff]   ;;  %v10851_v25 = vld [vmem:[%s11128_s4 + $0x1f40] ss:$16 sps:$4 sm:$0xff]  }
 0x3f9   : > { %7217 = vmatpush1.bf16.msra.mxu0 %v10767_v39  ;;  %7873 = vmatpush1.bf16.msra.mxu1 %v10770_v22  ;;  %v10854_v39 = vld [vmem:[%s11128_s4 + $0x1f48] ss:$16 sps:$4 sm:$0xff]   ;;  %v10859_v22 = vld [vmem:[%s11128_s4 + $0x1f64] ss:$16 sps:$4 sm:$0xff]  }
 0x3fa   : > { %7218 = vmatprep.subr.bf16.mxu0 %v10775_v29  ;;  %7874 = vmatprep.subr.bf16.mxu1 %v10778_v42  ;;  %v10862_v29 = vld [vmem:[%s11128_s4 + $0x1f6c] ss:$16 sps:$4 sm:$0xff]   ;;  %v10857_v42 = vld [vmem:[%s11128_s4 + $0x1f60] ss:$16 sps:$4 sm:$0xff]  }
 0x3fd   : > { %7219 = vmatpush1.bf16.msra.mxu0 %v10773_v45  ;;  %7875 = vmatpush1.bf16.msra.mxu1 %v10776_v26  ;;  %v10860_v45 = vld [vmem:[%s11128_s4 + $0x1f68] ss:$16 sps:$4 sm:$0xff]   ;;  %v10865_v26 = vld [vmem:[%s11128_s4 + $0x1f84] ss:$16 sps:$4 sm:$0xff]  }
 0x3fe   : > { %7220 = vmatprep.subr.bf16.mxu0 %v10781_v47  ;;  %7876 = vmatprep.subr.bf16.mxu1 %v10784_v49  ;;  %v10868_v47 = vld [vmem:[%s11128_s4 + $0x1f8c] ss:$16 sps:$4 sm:$0xff]   ;;  %v10863_v49 = vld [vmem:[%s11128_s4 + $0x1f80] ss:$16 sps:$4 sm:$0xff]  }
 0x401   : > { %7221 = vmatpush1.bf16.msra.mxu0 %v10779_v51  ;;  %7877 = vmatpush1.bf16.msra.mxu1 %v10782_v52  ;;  %v10871_v51 = vld [vmem:[%s11128_s4 + $0x1fa4] ss:$16 sps:$4 sm:$0xff]   ;;  %v10874_v52 = vld [vmem:[%s11128_s4 + $0x1fac] ss:$16 sps:$4 sm:$0xff]  }
 0x402   : > { %7222 = vmatprep.subr.bf16.mxu0 %v10787_v33  ;;  %7878 = vmatprep.subr.bf16.mxu1 %v10790_v53  ;;  %v10869_v33 = vld [vmem:[%s11128_s4 + $0x1fa0] ss:$16 sps:$4 sm:$0xff]   ;;  %v10872_v53 = vld [vmem:[%s11128_s4 + $0x1fa8] ss:$16 sps:$4 sm:$0xff]  }
 0x405   : > { %7223 = vmatpush1.bf16.msra.mxu0 %v10785_v40  ;;  %7879 = vmatpush1.bf16.msra.mxu1 %v10788_v55  ;;  %v10877_v40 = vld [vmem:[%s11128_s4 + $0x1fc4] ss:$16 sps:$4 sm:$0xff]   ;;  %v10880_v55 = vld [vmem:[%s11128_s4 + $0x1fcc] ss:$16 sps:$4 sm:$0xff]  }
 0x406   : > { %7233 = vmatprep.subr.bf16.mxu0 %v10793_v56  ;;  %7889 = vmatprep.subr.bf16.mxu1 %v10796_v38  ;;  %v10875_v56 = vld [vmem:[%s11128_s4 + $0x1fc0] ss:$16 sps:$4 sm:$0xff]   ;;  %v10878_v38 = vld [vmem:[%s11128_s4 + $0x1fc8] ss:$16 sps:$4 sm:$0xff]  }
 0x408   : > { %7225 = vmatmul.mubr.bf16.vlgmr.msra.gmra.mrb[0].mxu0 %v470_v58  ;;  %7881 = vmatmul.mubr.bf16.vlgmr.msra.gmra.mrb[0].mxu1 %v470_v58  ;;  %v10886_v58 = vld [vmem:[%s11128_s4 + $0x1fec] ss:$16 sps:$4 sm:$0xff]  }
 0x409   : > { %7234 = vmatpush1.bf16.msra.mxu0 %v10791_v41  ;;  %7890 = vmatpush1.bf16.msra.mxu1 %v10794_v60  ;;  %v10881_v41 = vld [vmem:[%s11128_s4 + $0x1fe0] ss:$16 sps:$4 sm:$0xff]   ;;  %v10884_v60 = vld [vmem:[%s11128_s4 + $0x1fe8] ss:$16 sps:$4 sm:$0xff]  }
 0x40a   : > { %7235 = vmatprep.subr.bf16.mxu0 %v10799_v61  ;;  %7891 = vmatprep.subr.bf16.mxu1 %v10802_v62  ;;  %v472_v61 = vpack.c.bf16 %v12258_v54, %v12258_v54 }
 0x40b   : > { %7265 = vmatprep.mubr.bf16.mxu0 %v473_v0  ;;  %7921 = vmatprep.mubr.bf16.mxu1 %v473_v0 }
 0x40d   : > { %7236 = vmatpush1.bf16.msra.mxu0 %v10797_v46  ;;  %7892 = vmatpush1.bf16.msra.mxu1 %v10800_v1 }
 0x40e   : > { %7237 = vmatprep.subr.bf16.mxu0 %v10805_v2  ;;  %7893 = vmatprep.subr.bf16.mxu1 %v10808_v48 }
 0x411   : > { %7238 = vmatpush1.bf16.msra.mxu0 %v10803_v3  ;;  %7894 = vmatpush1.bf16.msra.mxu1 %v10806_v4 }
 0x412   : > { %7239 = vmatprep.subr.bf16.mxu0 %v10811_v5  ;;  %7895 = vmatprep.subr.bf16.mxu1 %v10814_v6 }
 0x415   : > { %7240 = vmatpush1.bf16.msra.mxu0 %v10809_v59  ;;  %7896 = vmatpush1.bf16.msra.mxu1 %v10812_v8 }
 0x416   : > { %7241 = vmatprep.subr.bf16.mxu0 %v10817_v57  ;;  %7897 = vmatprep.subr.bf16.mxu1 %v10820_v11  ;;  %v257_v57 = vld [vmem:[#allocation2] sm:$0xff] }
 0x419   : > { %7242 = vmatpush1.bf16.msra.mxu0 %v10815_v12  ;;  %7898 = vmatpush1.bf16.msra.mxu1 %v10818_v13  ;;  %v7959_v12 = vld [vmem:[%s244_s8] sm:$0xf] (!%p9144_p6)  ;;  %v7963_v13 = vsub.s32 (!%p9144_p6), 0, %v11193_v44 }
 0x41a   : > { %7243 = vmatprep.subr.bf16.mxu0 %v10823_v15  ;;  %7899 = vmatprep.subr.bf16.mxu1 %v10826_v16  ;;  %v7967_v15 = vsub.s32 (!%p9144_p6), 1, %v11193_v44  ;;  %v7971_v16 = vsub.s32 (!%p9144_p6), 2, %v11193_v44 }
 0x41d   : > { %7244 = vmatpush1.bf16.msra.mxu0 %v10821_v17  ;;  %7900 = vmatpush1.bf16.msra.mxu1 %v10824_v63  ;;  %v7975_v17 = vsub.s32 (!%p9144_p6), 3, %v11193_v44  ;;  %v7964_v63 = vrot.slane (!%p9144_p6), %v7959_v12, %v7963_v13 }
 0x41e   : > { %7245 = vmatprep.subr.bf16.mxu0 %v10829_v18  ;;  %7901 = vmatprep.subr.bf16.mxu1 %v10832_v19  ;;  %v7968_v18 = vrot.slane (!%p9144_p6), %v7959_v12, %v7967_v15  ;;  %v7972_v19 = vrot.slane (!%p9144_p6), %v7959_v12, %v7971_v16 }
 0x421   : > { %7246 = vmatpush1.bf16.msra.mxu0 %v10827_v20  ;;  %7902 = vmatpush1.bf16.msra.mxu1 %v10830_v21  ;;  %v7976_v20 = vrot.slane (!%p9144_p6), %v7959_v12, %v7975_v17  ;;  %v7977_v21 = vcombine.low (!%p9144_p6), %v7964_v63, %v7968_v18 }
 0x422   : > { %7247 = vmatprep.subr.bf16.mxu0 %v10835_v9  ;;  %7903 = vmatprep.subr.bf16.mxu1 %v10838_v23 }
 0x423   : > { %v7978_v9 = vcombine.low (!%p9144_p6), %v7972_v19, %v7976_v20  ;;  %v7985_v23 = vrot.slane (!%p9144_p6), %v7977_v21, %v11201_v50 }
 0x425   : > { %7248 = vmatpush1.bf16.msra.mxu0 %v10833_v7  ;;  %7904 = vmatpush1.bf16.msra.mxu1 %v10836_v24  ;;  %v7992_v7 = vrot.slane (!%p9144_p6), %v7978_v9, %v11201_v50 }
 0x426   : > { %7249 = vmatprep.subr.bf16.mxu0 %v10841_v10  ;;  %7905 = vmatprep.subr.bf16.mxu1 %v10844_v28 }
 0x427   : > { %v7993_v10 = vcombine.low (!%p9144_p6), %v7985_v23, %v7992_v7 }
 0x429   : > { %7250 = vmatpush1.bf16.msra.mxu0 %v10839_v31  ;;  %7906 = vmatpush1.bf16.msra.mxu1 %v10842_v32 }
 0x42a   : > { %7251 = vmatprep.subr.bf16.mxu0 %v10847_v34  ;;  %7907 = vmatprep.subr.bf16.mxu1 %v10850_v14 }
 0x42d   : > { %7252 = vmatpush1.bf16.msra.mxu0 %v10845_v35  ;;  %7908 = vmatpush1.bf16.msra.mxu1 %v10848_v36 }
 0x42e   : > { %7253 = vmatprep.subr.bf16.mxu0 %v10853_v27  ;;  %7909 = vmatprep.subr.bf16.mxu1 %v10856_v37 }
 0x431   : > { %7254 = vmatpush1.bf16.msra.mxu0 %v10851_v25  ;;  %7910 = vmatpush1.bf16.msra.mxu1 %v10854_v39 }
 0x432   : > { %7255 = vmatprep.subr.bf16.mxu0 %v10859_v22  ;;  %7911 = vmatprep.subr.bf16.mxu1 %v10862_v29 }
 0x435   : > { %7256 = vmatpush1.bf16.msra.mxu0 %v10857_v42  ;;  %7912 = vmatpush1.bf16.msra.mxu1 %v10860_v45 }
 0x436   : > { %7257 = vmatprep.subr.bf16.mxu0 %v10865_v26  ;;  %7913 = vmatprep.subr.bf16.mxu1 %v10868_v47 }
 0x439   : > { %7258 = vmatpush1.bf16.msra.mxu0 %v10863_v49  ;;  %7914 = vmatpush1.bf16.msra.mxu1 %v10866_v30 }
 0x43a   : > { %7259 = vmatprep.subr.bf16.mxu0 %v10871_v51  ;;  %7915 = vmatprep.subr.bf16.mxu1 %v10874_v52 }
 0x43d   : > { %7260 = vmatpush1.bf16.msra.mxu0 %v10869_v33  ;;  %7916 = vmatpush1.bf16.msra.mxu1 %v10872_v53 }
 0x43e   : > { %7261 = vmatprep.subr.bf16.mxu0 %v10877_v40  ;;  %7917 = vmatprep.subr.bf16.mxu1 %v10880_v55 }
 0x441   : > { %7262 = vmatpush1.bf16.msra.mxu0 %v10875_v56  ;;  %7918 = vmatpush1.bf16.msra.mxu1 %v10878_v38 }
 0x442   : > { %7263 = vmatprep.subr.bf16.mxu0 %v10883_v43  ;;  %7919 = vmatprep.subr.bf16.mxu1 %v10886_v58 }
 0x445   : > { %7264 = vmatpush1.bf16.msra.mxu0 %v10881_v41  ;;  %7920 = vmatpush1.bf16.msra.mxu1 %v10884_v60 }
 0x448   : > { %7266 = vmatmul.mubr.bf16.vlgmr.msra.gmra.mrb[0].mxu0 %v472_v61  ;;  %7922 = vmatmul.mubr.bf16.vlgmr.msra.gmra.mrb[0].mxu1 %v472_v61 }
 0x51b   : > { %v7267_v62 = vpop.f32.mrb[0].mxu0  ;;  %v7923_v0 = vpop.f32.mrb[0].mxu1 }
 0x51c   : > { %v7269_v46 = vpop.f32.mrb[1].mxu0  ;;  %v7925_v1 = vpop.f32.mrb[1].mxu1 }
 0x51d   : > { %v7934_v2 = vcombine.low %v7267_v62, %v7269_v46  ;;  %v7935_v48 = vcombine.low %v7923_v0, %v7925_v1  ;;  %v7271_v3 = vpop.f32.mrb[2].mxu0  ;;  %v7927_v4 = vpop.f32.mrb[2].mxu1 }
 0x51e   : > { %v7272_v5 = vpop.f32.mrb[3].mxu0  ;;  %v7928_v6 = vpop.f32.mrb[3].mxu1 }
 0x51f   : > { %v7942_v59 = vrot.slane %v7934_v2, %v11201_v50  ;;  %v7949_v8 = vrot.slane %v7935_v48, %v11201_v50  ;;  %7957 = sbr.rel (%p9144_p6) target bundleno = 1331 (0x533), region = 44 }
 0x521   : > { %v7950_v54 = vcombine.low %v7942_v59, %v7949_v8 }
 0x523   : > { %v7952_v11 = vadd.f32 %v7950_v54, %v257_v57 }
 0x525   : > { %7953 = vst [vmem:[#allocation2] sm:$0xff] %v7952_v11 }
 0x52c   : > { %v7958_v24 = vld [vmem:[#allocation2] sm:$0xff] }
 0x52d   : > { %v7995_v28 = vadd.f32 %v7993_v10, %v7958_v24 }
 0x52f   : > { %vm7996_vm0 = vcmp.ge.f32.partialorder %v7995_v28, 0.0  ;;  %v7997_v31 = vmul.f32 0.01, %v7995_v28 }
 0x531   : > { %v7998_v32 = vsel %vm7996_vm0, %v7995_v28, %v7997_v31 }
 0x532   : > { %7999 = vst [vmem:[%s11151_s12] sm:$0xff] %v7998_v32 }
 0x533 PF: > { %s16_s19 = sadd.s32 1, %s10984_s19   ;;  %s12378_s12 = smov %s10960_s13 }
 0x534   : > { %p13_p8 = scmp.ge.s32.totalorder %s16_s19, 6   ;;  %s12379_s13 = smov %s10964_s14 }
 0x535   : > { %s12380_s14 = smov %s11079_s5  ;;  %s12381_s15 = smov %s10976_s17 }
 0x536   : > { %s12382_s16 = smov %s10980_s18  ;;  %s12383_s17 = smov %s12386_s21 }
 0x537   : > { %s12384_s18 = smov %s12390_s22  ;;  %15 = sbr.rel (!%p13_p8) target bundleno = 5 (0x5), region = 86 }
 0x53e   :  { %8022 = vsyncpa [#allocation4], 1 }
 0x53f   :  { %8024 = vsyncpa [#allocation4 + $0x1], 1 }

// kernel: discriminator_img_forward.2
= control target key start
LH: loop header
LB: loop body
LE: loop exit
PB: predicated region body
PF: predicated region fallthrough
CT: control target
= control target key end

     0   :  { %s17947_s30 = smov 0   ;;  %s20730_s0 = inlined_call_operand.vmem [shape: f32[2,4096,12], index: 0, kind: input, shape index: {}]   ;;  %s20731_s1 = inlined_call_operand.vmem [shape: f32[12,16], index: 1, kind: input, shape index: {}]   ;;  %s20732_s2 = inlined_call_operand.vmem [shape: f32[1,16], index: 2, kind: input, shape index: {}]   ;;  %s20733_s3 = inlined_call_operand.vmem [shape: f32[4,16,32], index: 3, kind: input, shape index: {}]   ;;  %s20734_s4 = inlined_call_operand.vmem [shape: f32[2,1,32], index: 4, kind: input, shape index: {}]   ;;  %s20735_s5 = inlined_call_operand.vmem [shape: f32[4,32,64], index: 5, kind: input, shape index: {}]   ;;  %s20736_s6 = inlined_call_operand.vmem [shape: f32[1,64], index: 6, kind: input, shape index: {}]   ;;  %s20737_s7 = inlined_call_operand.vmem [shape: f32[4,64,128], index: 7, kind: input, shape index: {}]   ;;  %s20738_s8 = inlined_call_operand.vmem [shape: f32[1,128], index: 8, kind: input, shape index: {}]   ;;  %s20739_s9 = inlined_call_operand.vmem [shape: f32[2,64,128], index: 9, kind: output, shape index: {}]  }
   0x1 LB: > { %s12703_s10 = sadd.s32 4294967295, %s17894_s30   ;;  %p12707_p0 = scmp.ge.s32.totalorder %s17894_s30, 1  ;;  %s17894_s30 = sphi %s17947_s30, %s19_s30  }
   0x2   : > { %p295_p1 = scmp.lt.s32.totalorder %s17894_s30, 3 }
   0x4   : > { %p296_p2 = pnand %p12707_p0, %p295_p1 }
   0x6   : > { %299 = sbr.rel (%p296_p2) target bundleno = 1912 (0x778), region = 56 }
   0xd   : > { %v859_v0 = vld [vmem:[%s20731_s1] sm:$0xff]  ;;  %v860_v1 = vld [vmem:[%s20731_s1 + $0x8] sm:$0xf]  ;;  %vm2405_vm0 = vcmask 1043456   ;;  %p334_p3 = scmp.lt.s32.totalorder %s12703_s10, 1  ;;  %vm17896_vm1 = vmmov 1  }
   0xe   : > { %v17081_v2 = vpack.c.bf16 %v860_v1, %v859_v0  ;;  %vm17082_vm2 = vmpackc.low %vm2405_vm0, %vm17896_vm1  ;;  %v5547_v3 = vld [vmem:[%s20733_s3] sm:$0xff]  ;;  %v5548_v4 = vld [vmem:[%s20733_s3 + $0x8] sm:$0xff]  ;;  %vm868_vm3 = vcmask 97280   ;;  %vm5549_vm4 = vcmask 130048   ;;  %vm10566_vm5 = vcmask 261120  }
   0xf   : > { %s20743_s10 = smov (!%p334_p3, %s12703_s10), 1  ;;  %v17087_v5 = vpack.c.bf16 %v5548_v4, %v5547_v3  ;;  %vm12041_vm6 = vcmask 523264  }
  0x10   : > { %17083 = vmatprep.subr.msk.bf16.mxu0 %vm17082_vm2, %v17081_v2  ;;  %17199 = vmatprep.subr.msk.bf16.mxu1 %vm17082_vm2, %v17081_v2  ;;  %s13945_s19 = sshll.u32 %s20743_s10, 12  ;;  %s20189_s24 = scalar_lea.vmem %s20734_s4, %s20743_s10 }
  0x11   : > { %17086 = vmatpush3.bf16.msk.msra.mxu0 %vm17082_vm2, %v17081_v2  ;;  %17200 = vmatpush3.bf16.msk.msra.mxu1 %vm17082_vm2, %v17081_v2  ;;  %s17973_s22 = scalar_lea.vmem %s20730_s0, %s13945_s19  ;;  %s13946_s18 = sshll.u32 %s20743_s10, 6 }
  0x12   : > { %17088 = vmatprep.subr.bf16.mxu1 %v17087_v5  ;;  %v347_v6 = vld [vmem:[%s17973_s22] sm:$0xff]  ;;  %v348_v7 = vld [vmem:[%s17973_s22 + $0x8] sm:$0xff]  ;;  %v349_v8 = vld [vmem:[%s17973_s22 + $0x10] sm:$0xff]  ;;  %s346_s21 = scalar_lea.vmem %s20739_s9, %s13946_s18 }
  0x13   : > { %15193 = vmatprep.mubr.msk.f32.mxu0 %vm868_vm3, %v347_v6  ;;  %v350_v9 = vld [vmem:[%s17973_s22 + $0x18] sm:$0xff]  ;;  %v351_v10 = vld [vmem:[%s17973_s22 + $0x20] sm:$0xff]  ;;  %v352_v11 = vld [vmem:[%s17973_s22 + $0x28] sm:$0xff] }
  0x14   : > { %15194 = vmatmul.mubr.msk.f32.vlgmr.msra.gmra.mrb[0].mxu0 %vm868_vm3, %v348_v7  ;;  %v353_v12 = vld [vmem:[%s17973_s22 + $0x30] sm:$0xff]  ;;  %v354_v13 = vld [vmem:[%s17973_s22 + $0x38] sm:$0xff]  ;;  %v355_v14 = vld [vmem:[%s17973_s22 + $0x40] sm:$0xff] }
  0x15   : > { %15196 = vmatprep.mubr.msk.f32.mxu0 %vm868_vm3, %v349_v8  ;;  %v356_v15 = vld [vmem:[%s17973_s22 + $0x48] sm:$0xff]  ;;  %v357_v16 = vld [vmem:[%s17973_s22 + $0x50] sm:$0xff]  ;;  %v358_v17 = vld [vmem:[%s17973_s22 + $0x58] sm:$0xff] }
  0x16   : > { %v359_v18 = vld [vmem:[%s17973_s22 + $0x60] sm:$0xff]  ;;  %v812_v20 = vld [vmem:[%s17973_s22 + $0xe88] sm:$0xff]  ;;  %v813_v21 = vld [vmem:[%s17973_s22 + $0xe90] sm:$0xff] }
  0x17   : > { %v811_v19 = vld [vmem:[%s17973_s22 + $0xe80] sm:$0xff]  ;;  %v360_v22 = vld [vmem:[%s17973_s22 + $0x68] sm:$0xff]  ;;  %v814_v23 = vld [vmem:[%s17973_s22 + $0xe98] sm:$0xff] }
  0x18   : > { %15197 = vmatmul.mubr.msk.f32.gmra.mrb[2].mxu0 %vm868_vm3, %v350_v9  ;;  %15889 = vmatprep.mubr.msk.f32.mxu1 %vm868_vm3, %v811_v19  ;;  %v361_v24 = vld [vmem:[%s17973_s22 + $0x70] sm:$0xff]  ;;  %v815_v25 = vld [vmem:[%s17973_s22 + $0xea0] sm:$0xff]  ;;  %v362_v26 = vld [vmem:[%s17973_s22 + $0x78] sm:$0xff] }
  0x19   : > { %15199 = vmatprep.mubr.msk.f32.mxu0 %vm868_vm3, %v351_v10  ;;  %15890 = vmatmul.mubr.msk.f32.vlgmr.msra.gmra.mrb[0].mxu1 %vm868_vm3, %v812_v20  ;;  %v816_v27 = vld [vmem:[%s17973_s22 + $0xea8] sm:$0xff]  ;;  %v363_v28 = vld [vmem:[%s17973_s22 + $0x80] sm:$0xff]  ;;  %v817_v29 = vld [vmem:[%s17973_s22 + $0xeb0] sm:$0xff] }
  0x1a   : > { %17090 = vmatpush3.bf16.msra.mxu1 %v17087_v5  ;;  %15892 = vmatprep.mubr.msk.f32.mxu1 %vm868_vm3, %v813_v21  ;;  %v364_v30 = vld [vmem:[%s17973_s22 + $0x88] sm:$0xff]  ;;  %v818_v31 = vld [vmem:[%s17973_s22 + $0xeb8] sm:$0xff]  ;;  %v365_v32 = vld [vmem:[%s17973_s22 + $0x90] sm:$0xff] }
  0x1b   : > { %v819_v33 = vld [vmem:[%s17973_s22 + $0xec0] sm:$0xff]  ;;  %v366_v34 = vld [vmem:[%s17973_s22 + $0x98] sm:$0xff]  ;;  %v820_v35 = vld [vmem:[%s17973_s22 + $0xec8] sm:$0xff] }
  0x1c   : > { %15200 = vmatmul.mubr.msk.f32.gmra.mrb[4].mxu0 %vm868_vm3, %v352_v11  ;;  %v367_v36 = vld [vmem:[%s17973_s22 + $0xa0] sm:$0xff]  ;;  %v821_v37 = vld [vmem:[%s17973_s22 + $0xed0] sm:$0xff]  ;;  %v368_v38 = vld [vmem:[%s17973_s22 + $0xa8] sm:$0xff] }
  0x1d   : > { %15202 = vmatprep.mubr.msk.f32.mxu0 %vm868_vm3, %v353_v12  ;;  %15893 = vmatmul.mubr.msk.f32.gmra.mrb[2].mxu1 %vm868_vm3, %v814_v23  ;;  %v822_v39 = vld [vmem:[%s17973_s22 + $0xed8] sm:$0xff]  ;;  %v369_v40 = vld [vmem:[%s17973_s22 + $0xb0] sm:$0xff]  ;;  %v823_v41 = vld [vmem:[%s17973_s22 + $0xee0] sm:$0xff] }
  0x1e   : > { %15895 = vmatprep.mubr.msk.f32.mxu1 %vm868_vm3, %v815_v25  ;;  %v370_v42 = vld [vmem:[%s17973_s22 + $0xb8] sm:$0xff]  ;;  %v824_v43 = vld [vmem:[%s17973_s22 + $0xee8] sm:$0xff]  ;;  %v371_v44 = vld [vmem:[%s17973_s22 + $0xc0] sm:$0xff] }
  0x1f   : > { %v825_v45 = vld [vmem:[%s17973_s22 + $0xef0] sm:$0xff]  ;;  %v372_v46 = vld [vmem:[%s17973_s22 + $0xc8] sm:$0xff]  ;;  %v826_v47 = vld [vmem:[%s17973_s22 + $0xef8] sm:$0xff] }
  0x20   : > { %15203 = vmatmul.mubr.msk.f32.gmra.mrb[6].mxu0 %vm868_vm3, %v354_v13  ;;  %v373_v48 = vld [vmem:[%s17973_s22 + $0xd0] sm:$0xff]  ;;  %v827_v49 = vld [vmem:[%s17973_s22 + $0xf00] sm:$0xff]  ;;  %v374_v50 = vld [vmem:[%s17973_s22 + $0xd8] sm:$0xff] }
  0x21   : > { %15205 = vmatprep.mubr.msk.f32.mxu0 %vm868_vm3, %v355_v14  ;;  %15896 = vmatmul.mubr.msk.f32.gmra.mrb[4].mxu1 %vm868_vm3, %v816_v27  ;;  %v828_v51 = vld [vmem:[%s17973_s22 + $0xf08] sm:$0xff]  ;;  %v375_v52 = vld [vmem:[%s17973_s22 + $0xe0] sm:$0xff]  ;;  %v829_v53 = vld [vmem:[%s17973_s22 + $0xf10] sm:$0xff] }
  0x22   : > { %15898 = vmatprep.mubr.msk.f32.mxu1 %vm868_vm3, %v817_v29  ;;  %v376_v54 = vld [vmem:[%s17973_s22 + $0xe8] sm:$0xff]  ;;  %v830_v55 = vld [vmem:[%s17973_s22 + $0xf18] sm:$0xff]  ;;  %v377_v56 = vld [vmem:[%s17973_s22 + $0xf0] sm:$0xff] }
  0x23   : > { %v831_v57 = vld [vmem:[%s17973_s22 + $0xf20] sm:$0xff]  ;;  %v378_v58 = vld [vmem:[%s17973_s22 + $0xf8] sm:$0xff]  ;;  %v832_v59 = vld [vmem:[%s17973_s22 + $0xf28] sm:$0xff] }
  0x24   : > { %15206 = vmatmul.mubr.msk.f32.gmra.mrb[8].mxu0 %vm868_vm3, %v356_v15  ;;  %v379_v60 = vld [vmem:[%s17973_s22 + $0x100] sm:$0xff]  ;;  %v833_v61 = vld [vmem:[%s17973_s22 + $0xf30] sm:$0xff]  ;;  %v380_v62 = vld [vmem:[%s17973_s22 + $0x108] sm:$0xff] }
  0x25   : > { %15208 = vmatprep.mubr.msk.f32.mxu0 %vm868_vm3, %v357_v16  ;;  %15899 = vmatmul.mubr.msk.f32.gmra.mrb[6].mxu1 %vm868_vm3, %v818_v31  ;;  %v834_v63 = vld [vmem:[%s17973_s22 + $0xf38] sm:$0xff]  ;;  %v381_v0 = vld [vmem:[%s17973_s22 + $0x110] sm:$0xff]  ;;  %v835_v1 = vld [vmem:[%s17973_s22 + $0xf40] sm:$0xff] }
  0x26   : > { %15901 = vmatprep.mubr.msk.f32.mxu1 %vm868_vm3, %v819_v33  ;;  %v382_v2 = vld [vmem:[%s17973_s22 + $0x118] sm:$0xff]  ;;  %v836_v3 = vld [vmem:[%s17973_s22 + $0xf48] sm:$0xff]  ;;  %v383_v4 = vld [vmem:[%s17973_s22 + $0x120] sm:$0xff] }
  0x27   : > { %v837_v5 = vld [vmem:[%s17973_s22 + $0xf50] sm:$0xff]  ;;  %v384_v6 = vld [vmem:[%s17973_s22 + $0x128] sm:$0xff]  ;;  %v838_v7 = vld [vmem:[%s17973_s22 + $0xf58] sm:$0xff] }
  0x28   : > { %15209 = vmatmul.mubr.msk.f32.gmra.mrb[10].mxu0 %vm868_vm3, %v358_v17  ;;  %v385_v8 = vld [vmem:[%s17973_s22 + $0x130] sm:$0xff]  ;;  %v839_v9 = vld [vmem:[%s17973_s22 + $0xf60] sm:$0xff]  ;;  %v386_v10 = vld [vmem:[%s17973_s22 + $0x138] sm:$0xff] }
  0x29   : > { %15211 = vmatprep.mubr.msk.f32.mxu0 %vm868_vm3, %v359_v18  ;;  %15902 = vmatmul.mubr.msk.f32.gmra.mrb[8].mxu1 %vm868_vm3, %v820_v35  ;;  %v840_v11 = vld [vmem:[%s17973_s22 + $0xf68] sm:$0xff]  ;;  %v387_v12 = vld [vmem:[%s17973_s22 + $0x140] sm:$0xff]  ;;  %v841_v13 = vld [vmem:[%s17973_s22 + $0xf70] sm:$0xff] }
  0x2a   : > { %15904 = vmatprep.mubr.msk.f32.mxu1 %vm868_vm3, %v821_v37  ;;  %v388_v14 = vld [vmem:[%s17973_s22 + $0x148] sm:$0xff]  ;;  %v842_v15 = vld [vmem:[%s17973_s22 + $0xf78] sm:$0xff]  ;;  %v389_v16 = vld [vmem:[%s17973_s22 + $0x150] sm:$0xff] }
  0x2b   : > { %v843_v17 = vld [vmem:[%s17973_s22 + $0xf80] sm:$0xff]  ;;  %v390_v18 = vld [vmem:[%s17973_s22 + $0x158] sm:$0xff]  ;;  %v844_v19 = vld [vmem:[%s17973_s22 + $0xf88] sm:$0xff] }
  0x2c   : > { %15212 = vmatmul.mubr.msk.f32.gmra.mrb[12].mxu0 %vm868_vm3, %v360_v22  ;;  %v391_v20 = vld [vmem:[%s17973_s22 + $0x160] sm:$0xff]  ;;  %v845_v21 = vld [vmem:[%s17973_s22 + $0xf90] sm:$0xff]  ;;  %v392_v22 = vld [vmem:[%s17973_s22 + $0x168] sm:$0xff] }
  0x2d   : > { %15214 = vmatprep.mubr.msk.f32.mxu0 %vm868_vm3, %v361_v24  ;;  %15905 = vmatmul.mubr.msk.f32.gmra.mrb[10].mxu1 %vm868_vm3, %v822_v39  ;;  %v846_v23 = vld [vmem:[%s17973_s22 + $0xf98] sm:$0xff]  ;;  %v393_v24 = vld [vmem:[%s17973_s22 + $0x170] sm:$0xff]  ;;  %v847_v25 = vld [vmem:[%s17973_s22 + $0xfa0] sm:$0xff] }
  0x2e   : > { %15907 = vmatprep.mubr.msk.f32.mxu1 %vm868_vm3, %v823_v41  ;;  %v848_v27 = vld [vmem:[%s17973_s22 + $0xfa8] sm:$0xff]  ;;  %v849_v29 = vld [vmem:[%s17973_s22 + $0xfb0] sm:$0xff]  ;;  %v13356_v31 = vld [vmem:[%s20733_s3 + $0x18] sm:$0xff] }
  0x2f   : > { %v396_v33 = vld [vmem:[%s17973_s22 + $0x188] sm:$0xff]  ;;  %v397_v35 = vld [vmem:[%s17973_s22 + $0x190] sm:$0xff]  ;;  %v398_v37 = vld [vmem:[%s17973_s22 + $0x198] sm:$0xff] }
  0x30   : > { %15215 = vmatmul.mubr.msk.f32.gmra.mrb[14].mxu0 %vm868_vm3, %v362_v26  ;;  %v394_v26 = vld [vmem:[%s17973_s22 + $0x178] sm:$0xff]  ;;  %v399_v39 = vld [vmem:[%s17973_s22 + $0x1a0] sm:$0xff]  ;;  %v400_v41 = vld [vmem:[%s17973_s22 + $0x1a8] sm:$0xff] }
  0x31   : > { %15217 = vmatprep.mubr.msk.f32.mxu0 %vm868_vm3, %v363_v28  ;;  %15908 = vmatmul.mubr.msk.f32.gmra.mrb[12].mxu1 %vm868_vm3, %v824_v43  ;;  %v395_v28 = vld [vmem:[%s17973_s22 + $0x180] sm:$0xff]  ;;  %v401_v43 = vld [vmem:[%s17973_s22 + $0x1b0] sm:$0xff] }
  0x32   : > { %15910 = vmatprep.mubr.msk.f32.mxu1 %vm868_vm3, %v825_v45  ;;  %v402_v45 = vld [vmem:[%s17973_s22 + $0x1b8] sm:$0xff] }
  0x34   : > { %15218 = vmatmul.mubr.msk.f32.gmra.mrb[16].mxu0 %vm868_vm3, %v364_v30  ;;  %v13355_v30 = vld [vmem:[%s20733_s3 + $0x10] sm:$0xff] }
  0x35   : > { %15220 = vmatprep.mubr.msk.f32.mxu0 %vm868_vm3, %v365_v32  ;;  %15911 = vmatmul.mubr.msk.f32.gmra.mrb[14].mxu1 %vm868_vm3, %v826_v47  ;;  %v18155_v32 = vpack.c.bf16 %v13356_v31, %v13355_v30  ;;  %v403_v47 = vld [vmem:[%s17973_s22 + $0x1c0] sm:$0xff]  ;;  %v445_v30 = vld [vmem:[%s17973_s22 + $0x310] sm:$0xff]  ;;  %v446_v31 = vld [vmem:[%s17973_s22 + $0x318] sm:$0xff] }
  0x36   : > { %15913 = vmatprep.mubr.msk.f32.mxu1 %vm868_vm3, %v827_v49  ;;  %v404_v49 = vld [vmem:[%s17973_s22 + $0x1c8] sm:$0xff] }
  0x37   : > { %17092 = vmatprep.subr.bf16.mxu1 %v18155_v32 }
  0x38   : > { %15221 = vmatmul.mubr.msk.f32.gmra.mrb[18].mxu0 %vm868_vm3, %v366_v34  ;;  %v850_v34 = vld [vmem:[%s17973_s22 + $0xfb8] sm:$0xff] }
  0x39   : > { %15223 = vmatprep.mubr.msk.f32.mxu0 %vm868_vm3, %v367_v36  ;;  %15914 = vmatmul.mubr.msk.f32.gmra.mrb[16].mxu1 %vm868_vm3, %v828_v51  ;;  %v851_v36 = vld [vmem:[%s17973_s22 + $0xfc0] sm:$0xff]  ;;  %v405_v51 = vld [vmem:[%s17973_s22 + $0x1d0] sm:$0xff] }
  0x3a   : > { %15916 = vmatprep.mubr.msk.f32.mxu1 %vm868_vm3, %v829_v53  ;;  %v407_v53 = vld [vmem:[%s17973_s22 + $0x1e0] sm:$0xff] }
  0x3c   : > { %15224 = vmatmul.mubr.msk.f32.gmra.mrb[20].mxu0 %vm868_vm3, %v368_v38  ;;  %v852_v38 = vld [vmem:[%s17973_s22 + $0xfc8] sm:$0xff] }
  0x3d   : > { %15226 = vmatprep.mubr.msk.f32.mxu0 %vm868_vm3, %v369_v40  ;;  %15917 = vmatmul.mubr.msk.f32.gmra.mrb[18].mxu1 %vm868_vm3, %v830_v55  ;;  %v853_v40 = vld [vmem:[%s17973_s22 + $0xfd0] sm:$0xff] }
  0x3e   : > { %15919 = vmatprep.mubr.msk.f32.mxu1 %vm868_vm3, %v831_v57  ;;  %v409_v55 = vld [vmem:[%s17973_s22 + $0x1f0] sm:$0xff]  ;;  %v411_v57 = vld [vmem:[%s17973_s22 + $0x200] sm:$0xff] }
  0x40   : > { %15227 = vmatmul.mubr.msk.f32.gmra.mrb[22].mxu0 %vm868_vm3, %v370_v42  ;;  %v854_v42 = vld [vmem:[%s17973_s22 + $0xfd8] sm:$0xff] }
  0x41   : > { %15229 = vmatprep.mubr.msk.f32.mxu0 %vm868_vm3, %v371_v44  ;;  %15920 = vmatmul.mubr.msk.f32.gmra.mrb[20].mxu1 %vm868_vm3, %v832_v59  ;;  %v855_v44 = vld [vmem:[%s17973_s22 + $0xfe0] sm:$0xff]  ;;  %v413_v59 = vld [vmem:[%s17973_s22 + $0x210] sm:$0xff] }
  0x42   : > { %15922 = vmatprep.mubr.msk.f32.mxu1 %vm868_vm3, %v833_v61  ;;  %v415_v61 = vld [vmem:[%s17973_s22 + $0x220] sm:$0xff] }
  0x44   : > { %15230 = vmatmul.mubr.msk.f32.gmra.mrb[24].mxu0 %vm868_vm3, %v372_v46  ;;  %v856_v46 = vld [vmem:[%s17973_s22 + $0xfe8] sm:$0xff] }
  0x45   : > { %15232 = vmatprep.mubr.msk.f32.mxu0 %vm868_vm3, %v373_v48  ;;  %15923 = vmatmul.mubr.msk.f32.gmra.mrb[22].mxu1 %vm868_vm3, %v834_v63  ;;  %v857_v48 = vld [vmem:[%s17973_s22 + $0xff0] sm:$0xff] }
  0x46   : > { %15925 = vmatprep.mubr.msk.f32.mxu1 %vm868_vm3, %v835_v1  ;;  %v417_v63 = vld [vmem:[%s17973_s22 + $0x230] sm:$0xff]  ;;  %v419_v1 = vld [vmem:[%s17973_s22 + $0x240] sm:$0xff] }
  0x48   : > { %15233 = vmatmul.mubr.msk.f32.gmra.mrb[26].mxu0 %vm868_vm3, %v374_v50  ;;  %v858_v50 = vld [vmem:[%s17973_s22 + $0xff8] sm:$0xff] }
  0x49   : > { %15235 = vmatprep.mubr.msk.f32.mxu0 %vm868_vm3, %v375_v52  ;;  %15926 = vmatmul.mubr.msk.f32.gmra.mrb[24].mxu1 %vm868_vm3, %v836_v3  ;;  %v406_v52 = vld [vmem:[%s17973_s22 + $0x1d8] sm:$0xff]  ;;  %v421_v3 = vld [vmem:[%s17973_s22 + $0x250] sm:$0xff] }
  0x4a   : > { %15928 = vmatprep.mubr.msk.f32.mxu1 %vm868_vm3, %v837_v5  ;;  %v423_v5 = vld [vmem:[%s17973_s22 + $0x260] sm:$0xff] }
  0x4c   : > { %15236 = vmatmul.mubr.msk.f32.gmra.mrb[28].mxu0 %vm868_vm3, %v376_v54  ;;  %v408_v54 = vld [vmem:[%s17973_s22 + $0x1e8] sm:$0xff] }
  0x4d   : > { %15238 = vmatprep.mubr.msk.f32.mxu0 %vm868_vm3, %v377_v56  ;;  %15929 = vmatmul.mubr.msk.f32.gmra.mrb[26].mxu1 %vm868_vm3, %v838_v7  ;;  %v410_v56 = vld [vmem:[%s17973_s22 + $0x1f8] sm:$0xff]  ;;  %v425_v7 = vld [vmem:[%s17973_s22 + $0x270] sm:$0xff] }
  0x4e   : > { %15931 = vmatprep.mubr.msk.f32.mxu1 %vm868_vm3, %v839_v9  ;;  %v10563_v9 = vld [vmem:[%s20735_s5 + $0x8] sm:$0xff] }
  0x50   : > { %15239 = vmatmul.mubr.msk.f32.gmra.mrb[30].mxu0 %vm868_vm3, %v378_v58  ;;  %v412_v58 = vld [vmem:[%s17973_s22 + $0x208] sm:$0xff] }
  0x51   : > { %15241 = vmatprep.mubr.msk.f32.mxu0 %vm868_vm3, %v379_v60  ;;  %15932 = vmatmul.mubr.msk.f32.gmra.mrb[28].mxu1 %vm868_vm3, %v840_v11  ;;  %v414_v60 = vld [vmem:[%s17973_s22 + $0x218] sm:$0xff] }
  0x52   : > { %15934 = vmatprep.mubr.msk.f32.mxu1 %vm868_vm3, %v841_v13  ;;  %v426_v11 = vld [vmem:[%s17973_s22 + $0x278] sm:$0xff]  ;;  %v428_v13 = vld [vmem:[%s17973_s22 + $0x288] sm:$0xff] }
  0x54   : > { %15242 = vmatmul.mubr.msk.f32.gmra.mrb[32].mxu0 %vm868_vm3, %v380_v62  ;;  %v416_v62 = vld [vmem:[%s17973_s22 + $0x228] sm:$0xff] }
  0x55   : > { %15244 = vmatprep.mubr.msk.f32.mxu0 %vm868_vm3, %v381_v0  ;;  %15935 = vmatmul.mubr.msk.f32.gmra.mrb[30].mxu1 %vm868_vm3, %v842_v15  ;;  %v418_v0 = vld [vmem:[%s17973_s22 + $0x238] sm:$0xff] }
  0x56   : > { %15937 = vmatprep.mubr.msk.f32.mxu1 %vm868_vm3, %v843_v17  ;;  %v430_v15 = vld [vmem:[%s17973_s22 + $0x298] sm:$0xff]  ;;  %v432_v17 = vld [vmem:[%s17973_s22 + $0x2a8] sm:$0xff] }
  0x58   : > { %15245 = vmatmul.mubr.msk.f32.gmra.mrb[34].mxu0 %vm868_vm3, %v382_v2  ;;  %v420_v2 = vld [vmem:[%s17973_s22 + $0x248] sm:$0xff] }
  0x59   : > { %15247 = vmatprep.mubr.msk.f32.mxu0 %vm868_vm3, %v383_v4  ;;  %15938 = vmatmul.mubr.msk.f32.gmra.mrb[32].mxu1 %vm868_vm3, %v844_v19  ;;  %v422_v4 = vld [vmem:[%s17973_s22 + $0x258] sm:$0xff] }
  0x5a   : > { %15940 = vmatprep.mubr.msk.f32.mxu1 %vm868_vm3, %v845_v21  ;;  %v434_v19 = vld [vmem:[%s17973_s22 + $0x2b8] sm:$0xff]  ;;  %v436_v21 = vld [vmem:[%s17973_s22 + $0x2c8] sm:$0xff] }
  0x5c   : > { %15248 = vmatmul.mubr.msk.f32.gmra.mrb[36].mxu0 %vm868_vm3, %v384_v6  ;;  %v424_v6 = vld [vmem:[%s17973_s22 + $0x268] sm:$0xff] }
  0x5d   : > { %15250 = vmatprep.mubr.msk.f32.mxu0 %vm868_vm3, %v385_v8  ;;  %15941 = vmatmul.mubr.msk.f32.gmra.mrb[34].mxu1 %vm868_vm3, %v846_v23  ;;  %v10562_v8 = vld [vmem:[%s20735_s5] sm:$0xff]  ;;  %v438_v23 = vld [vmem:[%s17973_s22 + $0x2d8] sm:$0xff] }
  0x5e   : > { %15943 = vmatprep.mubr.msk.f32.mxu1 %vm868_vm3, %v847_v25  ;;  %v440_v25 = vld [vmem:[%s17973_s22 + $0x2e8] sm:$0xff] }
  0x60   : > { %15251 = vmatmul.mubr.msk.f32.gmra.mrb[38].mxu0 %vm868_vm3, %v386_v10  ;;  %v17103_v10 = vpack.c.bf16 %v10563_v9, %v10562_v8 }
  0x61   : > { %15253 = vmatprep.mubr.msk.f32.mxu0 %vm868_vm3, %v387_v12  ;;  %15944 = vmatmul.mubr.msk.f32.gmra.mrb[36].mxu1 %vm868_vm3, %v848_v27  ;;  %v427_v12 = vld [vmem:[%s17973_s22 + $0x280] sm:$0xff]  ;;  %v442_v27 = vld [vmem:[%s17973_s22 + $0x2f8] sm:$0xff] }
  0x62   : > { %15946 = vmatprep.mubr.msk.f32.mxu1 %vm868_vm3, %v849_v29  ;;  %17104 = vmatprep.subr.bf16.mxu0 %v17103_v10  ;;  %v444_v29 = vld [vmem:[%s17973_s22 + $0x308] sm:$0xff] }
  0x63   : > { %17106 = vmatpush3.bf16.msra.mxu0 %v17103_v10 }
  0x64   : > { %15254 = vmatmul.mubr.msk.f32.gmra.mrb[40].mxu0 %vm868_vm3, %v388_v14  ;;  %v429_v14 = vld [vmem:[%s17973_s22 + $0x290] sm:$0xff] }
  0x65   : > { %15256 = vmatprep.mubr.msk.f32.mxu0 %vm868_vm3, %v389_v16  ;;  %15947 = vmatmul.mubr.msk.f32.gmra.mrb[38].mxu1 %vm868_vm3, %v850_v34  ;;  %v431_v16 = vld [vmem:[%s17973_s22 + $0x2a0] sm:$0xff]  ;;  %v448_v34 = vld [vmem:[%s17973_s22 + $0x328] sm:$0xff] }
  0x66   : > { %15949 = vmatprep.mubr.msk.f32.mxu1 %vm868_vm3, %v851_v36  ;;  %v450_v36 = vld [vmem:[%s17973_s22 + $0x338] sm:$0xff] }
  0x68   : > { %15257 = vmatmul.mubr.msk.f32.gmra.mrb[42].mxu0 %vm868_vm3, %v390_v18  ;;  %v433_v18 = vld [vmem:[%s17973_s22 + $0x2b0] sm:$0xff] }
  0x69   : > { %15259 = vmatprep.mubr.msk.f32.mxu0 %vm868_vm3, %v391_v20  ;;  %15950 = vmatmul.mubr.msk.f32.gmra.mrb[40].mxu1 %vm868_vm3, %v852_v38  ;;  %v435_v20 = vld [vmem:[%s17973_s22 + $0x2c0] sm:$0xff]  ;;  %v452_v38 = vld [vmem:[%s17973_s22 + $0x348] sm:$0xff] }
  0x6a   : > { %15952 = vmatprep.mubr.msk.f32.mxu1 %vm868_vm3, %v853_v40  ;;  %v18302_v40 = vld [vmem:[%s20732_s2] ss:$0 sm:$0xff] }
  0x6c   : > { %15260 = vmatmul.mubr.msk.f32.gmra.mrb[44].mxu0 %vm868_vm3, %v392_v22  ;;  %v437_v22 = vld [vmem:[%s17973_s22 + $0x2d0] sm:$0xff] }
  0x6d   : > { %15262 = vmatprep.mubr.msk.f32.mxu0 %vm868_vm3, %v393_v24  ;;  %15953 = vmatmul.mubr.msk.f32.gmra.mrb[42].mxu1 %vm868_vm3, %v854_v42  ;;  %v439_v24 = vld [vmem:[%s17973_s22 + $0x2e0] sm:$0xff] }
  0x6e   : > { %15955 = vmatprep.mubr.msk.f32.mxu1 %vm868_vm3, %v855_v44  ;;  %v455_v42 = vld [vmem:[%s17973_s22 + $0x360] sm:$0xff] }
  0x70   : > { %15263 = vmatmul.mubr.msk.f32.gmra.mrb[46].mxu0 %vm868_vm3, %v394_v26  ;;  %v441_v26 = vld [vmem:[%s17973_s22 + $0x2f0] sm:$0xff] }
  0x71   : > { %15265 = vmatprep.mubr.msk.f32.mxu0 %vm868_vm3, %v395_v28  ;;  %15956 = vmatmul.mubr.msk.f32.gmra.mrb[44].mxu1 %vm868_vm3, %v856_v46  ;;  %v443_v28 = vld [vmem:[%s17973_s22 + $0x300] sm:$0xff] }
  0x72   : > { %15958 = vmatprep.mubr.msk.f32.mxu1 %vm868_vm3, %v857_v48  ;;  %v457_v48 = vld [vmem:[%s17973_s22 + $0x370] sm:$0xff] }
  0x74   : > { %15266 = vmatmul.mubr.msk.f32.gmra.mrb[48].mxu0 %vm868_vm3, %v396_v33  ;;  %v447_v33 = vld [vmem:[%s17973_s22 + $0x320] sm:$0xff] }
  0x75   : > { %15268 = vmatprep.mubr.msk.f32.mxu0 %vm868_vm3, %v397_v35  ;;  %15959 = vmatmul.mubr.msk.f32.gmra.mrb[46].mxu1 %vm868_vm3, %v858_v50  ;;  %v449_v35 = vld [vmem:[%s17973_s22 + $0x330] sm:$0xff] }
  0x78   : > { %15269 = vmatmul.mubr.msk.f32.gmra.mrb[50].mxu0 %vm868_vm3, %v398_v37  ;;  %v451_v37 = vld [vmem:[%s17973_s22 + $0x340] sm:$0xff] }
  0x79   : > { %15271 = vmatprep.mubr.msk.f32.mxu0 %vm868_vm3, %v399_v39  ;;  %v453_v39 = vld [vmem:[%s17973_s22 + $0x350] sm:$0xff] }
  0x7c   : > { %15272 = vmatmul.mubr.msk.f32.gmra.mrb[52].mxu0 %vm868_vm3, %v400_v41  ;;  %v454_v41 = vld [vmem:[%s17973_s22 + $0x358] sm:$0xff] }
  0x7d   : > { %15274 = vmatprep.mubr.msk.f32.mxu0 %vm868_vm3, %v401_v43 }
  0x80   : > { %15275 = vmatmul.mubr.msk.f32.gmra.mrb[54].mxu0 %vm868_vm3, %v402_v45 }
  0x81   : > { %15277 = vmatprep.mubr.msk.f32.mxu0 %vm868_vm3, %v403_v47  ;;  %v456_v47 = vld [vmem:[%s17973_s22 + $0x368] sm:$0xff] }
  0x84   : > { %15278 = vmatmul.mubr.msk.f32.gmra.mrb[56].mxu0 %vm868_vm3, %v404_v49 }
  0x85   : > { %15280 = vmatprep.mubr.msk.f32.mxu0 %vm868_vm3, %v405_v51 }
  0x88   : > { %15281 = vmatmul.mubr.msk.f32.gmra.mrb[58].mxu0 %vm868_vm3, %v406_v52 }
  0x89   : > { %15283 = vmatprep.mubr.msk.f32.mxu0 %vm868_vm3, %v407_v53 }
  0x8c   : > { %15284 = vmatmul.mubr.msk.f32.gmra.mrb[60].mxu0 %vm868_vm3, %v408_v54 }
  0x8d   : > { %15286 = vmatprep.mubr.msk.f32.mxu0 %vm868_vm3, %v409_v55  ;;  %v458_v55 = vld [vmem:[%s17973_s22 + $0x378] sm:$0xff] }
  0x90   : > { %15287 = vmatmul.mubr.msk.f32.gmra.mrb[62].mxu0 %vm868_vm3, %v410_v56  ;;  %v459_v56 = vld [vmem:[%s17973_s22 + $0x380] sm:$0xff] }
  0x91   : > { %15289 = vmatprep.mubr.msk.f32.mxu0 %vm868_vm3, %v411_v57 }
  0x94   : > { %15290 = vmatmul.mubr.msk.f32.gmra.mrb[64].mxu0 %vm868_vm3, %v412_v58 }
  0x95   : > { %15292 = vmatprep.mubr.msk.f32.mxu0 %vm868_vm3, %v413_v59 }
  0x98   : > { %15293 = vmatmul.mubr.msk.f32.gmra.mrb[66].mxu0 %vm868_vm3, %v414_v60 }
  0x99   : > { %15295 = vmatprep.mubr.msk.f32.mxu0 %vm868_vm3, %v415_v61 }
  0x9c   : > { %15296 = vmatmul.mubr.msk.f32.gmra.mrb[68].mxu0 %vm868_vm3, %v416_v62 }
  0x9d   : > { %15298 = vmatprep.mubr.msk.f32.mxu0 %vm868_vm3, %v417_v63  ;;  %v460_v63 = vld [vmem:[%s17973_s22 + $0x388] sm:$0xff] }
  0xa0   : > { %15299 = vmatmul.mubr.msk.f32.gmra.mrb[70].mxu0 %vm868_vm3, %v418_v0  ;;  %v461_v0 = vld [vmem:[%s17973_s22 + $0x390] sm:$0xff] }
  0xa1   : > { %15301 = vmatprep.mubr.msk.f32.mxu0 %vm868_vm3, %v419_v1 }
  0xa4   : > { %15302 = vmatmul.mubr.msk.f32.gmra.mrb[72].mxu0 %vm868_vm3, %v420_v2 }
  0xa5   : > { %15304 = vmatprep.mubr.msk.f32.mxu0 %vm868_vm3, %v421_v3 }
  0xa8   : > { %15305 = vmatmul.mubr.msk.f32.gmra.mrb[74].mxu0 %vm868_vm3, %v422_v4 }
  0xa9   : > { %15307 = vmatprep.mubr.msk.f32.mxu0 %vm868_vm3, %v423_v5 }
  0xac   : > { %15308 = vmatmul.mubr.msk.f32.gmra.mrb[76].mxu0 %vm868_vm3, %v424_v6  ;;  %v462_v6 = vld [vmem:[%s17973_s22 + $0x398] sm:$0xff] }
  0xad   : > { %15310 = vmatprep.mubr.msk.f32.mxu0 %vm868_vm3, %v425_v7  ;;  %v463_v7 = vld [vmem:[%s17973_s22 + $0x3a0] sm:$0xff] }
  0xb0   : > { %15311 = vmatmul.mubr.msk.f32.gmra.mrb[78].mxu0 %vm868_vm3, %v426_v11 }
  0xb1   : > { %15313 = vmatprep.mubr.msk.f32.mxu0 %vm868_vm3, %v427_v12 }
  0xb4   : > { %15314 = vmatmul.mubr.msk.f32.gmra.mrb[80].mxu0 %vm868_vm3, %v428_v13 }
  0xb5   : > { %15316 = vmatprep.mubr.msk.f32.mxu0 %vm868_vm3, %v429_v14  ;;  %v464_v14 = vld [vmem:[%s17973_s22 + $0x3a8] sm:$0xff] }
  0xb8   : > { %15317 = vmatmul.mubr.msk.f32.gmra.mrb[82].mxu0 %vm868_vm3, %v430_v15  ;;  %v465_v15 = vld [vmem:[%s17973_s22 + $0x3b0] sm:$0xff] }
  0xb9   : > { %15319 = vmatprep.mubr.msk.f32.mxu0 %vm868_vm3, %v431_v16 }
  0xbc   : > { %15320 = vmatmul.mubr.msk.f32.gmra.mrb[84].mxu0 %vm868_vm3, %v432_v17 }
  0xbd   : > { %15322 = vmatprep.mubr.msk.f32.mxu0 %vm868_vm3, %v433_v18 }
  0xc0   : > { %15323 = vmatmul.mubr.msk.f32.gmra.mrb[86].mxu0 %vm868_vm3, %v434_v19 }
  0xc1   : > { %15325 = vmatprep.mubr.msk.f32.mxu0 %vm868_vm3, %v435_v20 }
  0xc4   : > { %15326 = vmatmul.mubr.msk.f32.gmra.mrb[88].mxu0 %vm868_vm3, %v436_v21 }
  0xc5   : > { %15328 = vmatprep.mubr.msk.f32.mxu0 %vm868_vm3, %v437_v22 }
  0xc8   : > { %15329 = vmatmul.mubr.msk.f32.gmra.mrb[90].mxu0 %vm868_vm3, %v438_v23 }
  0xc9   : > { %15331 = vmatprep.mubr.msk.f32.mxu0 %vm868_vm3, %v439_v24  ;;  %v466_v24 = vld [vmem:[%s17973_s22 + $0x3b8] sm:$0xff] }
  0xcc   : > { %15332 = vmatmul.mubr.msk.f32.gmra.mrb[92].mxu0 %vm868_vm3, %v440_v25  ;;  %v467_v25 = vld [vmem:[%s17973_s22 + $0x3c0] sm:$0xff] }
  0xcd   : > { %15334 = vmatprep.mubr.msk.f32.mxu0 %vm868_vm3, %v441_v26 }
  0xd0   : > { %15335 = vmatmul.mubr.msk.f32.gmra.mrb[94].mxu0 %vm868_vm3, %v442_v27 }
  0xd1   : > { %15337 = vmatprep.mubr.msk.f32.mxu0 %vm868_vm3, %v443_v28 }
  0xd4   : > { %15338 = vmatmul.mubr.msk.f32.gmra.mrb[96].mxu0 %vm868_vm3, %v444_v29 }
  0xd5   : > { %15340 = vmatprep.mubr.msk.f32.mxu0 %vm868_vm3, %v445_v30 }
  0xd8   : > { %15341 = vmatmul.mubr.msk.f32.gmra.mrb[98].mxu0 %vm868_vm3, %v446_v31 }
  0xd9   : > { %15343 = vmatprep.mubr.msk.f32.mxu0 %vm868_vm3, %v447_v33 }
  0xdc   : > { %15344 = vmatmul.mubr.msk.f32.gmra.mrb[100].mxu0 %vm868_vm3, %v448_v34 }
  0xdd   : > { %15346 = vmatprep.mubr.msk.f32.mxu0 %vm868_vm3, %v449_v35  ;;  %v468_v35 = vld [vmem:[%s17973_s22 + $0x3c8] sm:$0xff] }
  0xe0   : > { %15347 = vmatmul.mubr.msk.f32.gmra.mrb[102].mxu0 %vm868_vm3, %v450_v36  ;;  %v469_v36 = vld [vmem:[%s17973_s22 + $0x3d0] sm:$0xff] }
  0xe1   : > { %15349 = vmatprep.mubr.msk.f32.mxu0 %vm868_vm3, %v451_v37 }
  0xe4   : > { %15350 = vmatmul.mubr.msk.f32.gmra.mrb[104].mxu0 %vm868_vm3, %v452_v38 }
  0xe5   : > { %15352 = vmatprep.mubr.msk.f32.mxu0 %vm868_vm3, %v453_v39 }
  0xe7   : > { %v15195_v43 = vpop.f32.mrb[0].mxu0 }
  0xe8   : > { %v2481_v44 = vadd.f32 %v15195_v43, %v18302_v40  ;;  %v2475_v45 = vpop.f32.mrb[1].mxu0  ;;  %15353 = vmatmul.mubr.msk.f32.gmra.mrb[106].mxu0 %vm868_vm3, %v454_v41 }
  0xe9   : > { %v2476_v46 = vadd.f32 %v18302_v40, %v2475_v45  ;;  %15355 = vmatprep.mubr.msk.f32.mxu0 %vm868_vm3, %v455_v42 }
  0xea   : > { %v5035_v51 = vmax.f32 %v2481_v44, 0.0 }
  0xeb   : > { %v5034_v49 = vmax.f32 %v2476_v46, 0.0  ;;  %v15198_v50 = vpop.f32.mrb[2].mxu0  ;;  %v470_v46 = vld [vmem:[%s17973_s22 + $0x3d8] sm:$0xff] }
  0xec   : > { %v2491_v52 = vadd.f32 %v15198_v50, %v18302_v40  ;;  %v2485_v53 = vpop.f32.mrb[3].mxu0  ;;  %15356 = vmatmul.mubr.msk.f32.gmra.mrb[108].mxu0 %vm868_vm3, %v456_v47  ;;  %v18346_v18 = vpop.f32.mrb[0].mxu1  ;;  %v471_v47 = vld [vmem:[%s17973_s22 + $0x3e0] sm:$0xff] }
  0xed   : > { %v2486_v54 = vadd.f32 %v18302_v40, %v2485_v53  ;;  %15965 = vmatprep.mubr.msk.f32.mxu1 %vm5549_vm4, %v5034_v49  ;;  %15358 = vmatprep.mubr.msk.f32.mxu0 %vm868_vm3, %v457_v48  ;;  %v18350_v22 = vpop.f32.mrb[1].mxu1 }
  0xee   : > { %15966 = vmatmul.mubr.msk.f32.vlgmr.msra.gmra.mrb[48].mxu1 %vm5549_vm4, %v5035_v51  ;;  %v5037_v59 = vmax.f32 %v2491_v52, 0.0 }
  0xef   : > { %v5036_v57 = vmax.f32 %v2486_v54, 0.0  ;;  %17094 = vmatpush3.bf16.msra.mxu1 %v18155_v32  ;;  %v15201_v58 = vpop.f32.mrb[4].mxu0 }
  0xf0   : > { %v2501_v60 = vadd.f32 %v15201_v58, %v18302_v40  ;;  %v2495_v61 = vpop.f32.mrb[5].mxu0  ;;  %15359 = vmatmul.mubr.msk.f32.gmra.mrb[110].mxu0 %vm868_vm3, %v458_v55  ;;  %v18358_v28 = vpop.f32.mrb[2].mxu1 }
  0xf1   : > { %v2496_v62 = vadd.f32 %v18302_v40, %v2495_v61  ;;  %15968 = vmatprep.mubr.msk.f32.mxu1 %vm5549_vm4, %v5036_v57  ;;  %15361 = vmatprep.mubr.msk.f32.mxu0 %vm868_vm3, %v459_v56  ;;  %v18362_v33 = vpop.f32.mrb[3].mxu1  ;;  %v472_v56 = vld [vmem:[%s17973_s22 + $0x3e8] sm:$0xff]  ;;  %v473_v57 = vld [vmem:[%s17973_s22 + $0x3f0] sm:$0xff] }
  0xf2   : > { %15969 = vmatmul.mubr.msk.f32.gmra.mrb[50].mxu1 %vm5549_vm4, %v5037_v59  ;;  %v5039_v2 = vmax.f32 %v2501_v60, 0.0 }
  0xf3   : > { %v5038_v32 = vmax.f32 %v2496_v62, 0.0  ;;  %v15204_v1 = vpop.f32.mrb[6].mxu0 }
  0xf4   : > { %v2511_v3 = vadd.f32 %v15204_v1, %v18302_v40  ;;  %v2505_v4 = vpop.f32.mrb[7].mxu0  ;;  %15362 = vmatmul.mubr.msk.f32.gmra.mrb[112].mxu0 %vm868_vm3, %v460_v63  ;;  %v18370_v39 = vpop.f32.mrb[4].mxu1  ;;  %v474_v1 = vld [vmem:[%s17973_s22 + $0x3f8] sm:$0xff] }
  0xf5   : > { %v2506_v5 = vadd.f32 %v18302_v40, %v2505_v4  ;;  %15971 = vmatprep.mubr.msk.f32.mxu1 %vm5549_vm4, %v5038_v32  ;;  %15364 = vmatprep.mubr.msk.f32.mxu0 %vm868_vm3, %v461_v0  ;;  %v18374_v44 = vpop.f32.mrb[5].mxu1 }
  0xf6   : > { %15972 = vmatmul.mubr.msk.f32.gmra.mrb[52].mxu1 %vm5549_vm4, %v5039_v2  ;;  %v5041_v10 = vmax.f32 %v2511_v3, 0.0  ;;  %v475_v2 = vld [vmem:[%s17973_s22 + $0x400] sm:$0xff] }
  0xf7   : > { %v5040_v8 = vmax.f32 %v2506_v5, 0.0  ;;  %v15207_v9 = vpop.f32.mrb[8].mxu0 }
  0xf8   : > { %v2521_v11 = vadd.f32 %v15207_v9, %v18302_v40  ;;  %v2515_v12 = vpop.f32.mrb[9].mxu0  ;;  %15365 = vmatmul.mubr.msk.f32.gmra.mrb[114].mxu0 %vm868_vm3, %v462_v6  ;;  %v18382_v50 = vpop.f32.mrb[6].mxu1 }
  0xf9   : > { %v2516_v13 = vadd.f32 %v18302_v40, %v2515_v12  ;;  %15974 = vmatprep.mubr.msk.f32.mxu1 %vm5549_vm4, %v5040_v8  ;;  %15367 = vmatprep.mubr.msk.f32.mxu0 %vm868_vm3, %v463_v7  ;;  %v18386_v54 = vpop.f32.mrb[7].mxu1  ;;  %v477_v12 = vld [vmem:[%s17973_s22 + $0x410] sm:$0xff] }
  0xfa   : > { %15975 = vmatmul.mubr.msk.f32.gmra.mrb[54].mxu1 %vm5549_vm4, %v5041_v10  ;;  %v5043_v19 = vmax.f32 %v2521_v11, 0.0  ;;  %v476_v11 = vld [vmem:[%s17973_s22 + $0x408] sm:$0xff] }
  0xfb   : > { %v5042_v16 = vmax.f32 %v2516_v13, 0.0  ;;  %v15210_v17 = vpop.f32.mrb[10].mxu0 }
  0xfc   : > { %v2531_v20 = vadd.f32 %v15210_v17, %v18302_v40  ;;  %v2525_v21 = vpop.f32.mrb[11].mxu0  ;;  %15368 = vmatmul.mubr.msk.f32.gmra.mrb[116].mxu0 %vm868_vm3, %v464_v14  ;;  %v18394_v60 = vpop.f32.mrb[8].mxu1 }
  0xfd   : > { %v2526_v23 = vadd.f32 %v18302_v40, %v2525_v21  ;;  %15977 = vmatprep.mubr.msk.f32.mxu1 %vm5549_vm4, %v5042_v16  ;;  %15370 = vmatprep.mubr.msk.f32.mxu0 %vm868_vm3, %v465_v15  ;;  %v18398_v0 = vpop.f32.mrb[9].mxu1 }
  0xfe   : > { %15978 = vmatmul.mubr.msk.f32.gmra.mrb[56].mxu1 %vm5549_vm4, %v5043_v19  ;;  %v5045_v29 = vmax.f32 %v2531_v20, 0.0 }
  0xff   : > { %v5044_v26 = vmax.f32 %v2526_v23, 0.0  ;;  %v15213_v27 = vpop.f32.mrb[12].mxu0  ;;  %v478_v23 = vld [vmem:[%s17973_s22 + $0x418] sm:$0xff] }
 0x100   : > { %v2541_v30 = vadd.f32 %v15213_v27, %v18302_v40  ;;  %v2535_v31 = vpop.f32.mrb[13].mxu0  ;;  %15371 = vmatmul.mubr.msk.f32.gmra.mrb[118].mxu0 %vm868_vm3, %v466_v24  ;;  %v18406_v5 = vpop.f32.mrb[10].mxu1  ;;  %v479_v24 = vld [vmem:[%s17973_s22 + $0x420] sm:$0xff] }
 0x101   : > { %v2536_v34 = vadd.f32 %v18302_v40, %v2535_v31  ;;  %15980 = vmatprep.mubr.msk.f32.mxu1 %vm5549_vm4, %v5044_v26  ;;  %15373 = vmatprep.mubr.msk.f32.mxu0 %vm868_vm3, %v467_v25  ;;  %v18410_v9 = vpop.f32.mrb[11].mxu1 }
 0x102   : > { %15981 = vmatmul.mubr.msk.f32.gmra.mrb[58].mxu1 %vm5549_vm4, %v5045_v29  ;;  %v5047_v41 = vmax.f32 %v2541_v30, 0.0 }
 0x103   : > { %v5046_v37 = vmax.f32 %v2536_v34, 0.0  ;;  %v15216_v38 = vpop.f32.mrb[14].mxu0 }
 0x104   : > { %v2551_v42 = vadd.f32 %v15216_v38, %v18302_v40  ;;  %v2545_v43 = vpop.f32.mrb[15].mxu0  ;;  %15374 = vmatmul.mubr.msk.f32.gmra.mrb[120].mxu0 %vm868_vm3, %v468_v35  ;;  %v18418_v15 = vpop.f32.mrb[12].mxu1 }
 0x105   : > { %v2546_v45 = vadd.f32 %v18302_v40, %v2545_v43  ;;  %15983 = vmatprep.mubr.msk.f32.mxu1 %vm5549_vm4, %v5046_v37  ;;  %15376 = vmatprep.mubr.msk.f32.mxu0 %vm868_vm3, %v469_v36  ;;  %v18422_v20 = vpop.f32.mrb[13].mxu1  ;;  %v480_v36 = vld [vmem:[%s17973_s22 + $0x428] sm:$0xff]  ;;  %v481_v37 = vld [vmem:[%s17973_s22 + $0x430] sm:$0xff] }
 0x106   : > { %15984 = vmatmul.mubr.msk.f32.gmra.mrb[60].mxu1 %vm5549_vm4, %v5047_v41  ;;  %v5049_v51 = vmax.f32 %v2551_v42, 0.0 }
 0x107   : > { %v5048_v48 = vmax.f32 %v2546_v45, 0.0  ;;  %v15219_v49 = vpop.f32.mrb[16].mxu0 }
 0x108   : > { %v2561_v52 = vadd.f32 %v15219_v49, %v18302_v40  ;;  %v2555_v53 = vpop.f32.mrb[17].mxu0  ;;  %15377 = vmatmul.mubr.msk.f32.gmra.mrb[122].mxu0 %vm868_vm3, %v470_v46  ;;  %v18430_v27 = vpop.f32.mrb[14].mxu1  ;;  %v482_v49 = vld [vmem:[%s17973_s22 + $0x438] sm:$0xff] }
 0x109   : > { %v2556_v55 = vadd.f32 %v18302_v40, %v2555_v53  ;;  %15986 = vmatprep.mubr.msk.f32.mxu1 %vm5549_vm4, %v5048_v48  ;;  %15379 = vmatprep.mubr.msk.f32.mxu0 %vm868_vm3, %v471_v47  ;;  %v18434_v34 = vpop.f32.mrb[15].mxu1 }
 0x10a   : > { %15987 = vmatmul.mubr.msk.f32.gmra.mrb[62].mxu1 %vm5549_vm4, %v5049_v51  ;;  %v5051_v61 = vmax.f32 %v2561_v52, 0.0  ;;  %v483_v51 = vld [vmem:[%s17973_s22 + $0x440] sm:$0xff] }
 0x10b   : > { %v5050_v58 = vmax.f32 %v2556_v55, 0.0  ;;  %v15222_v59 = vpop.f32.mrb[18].mxu0 }
 0x10c   : > { %v2571_v62 = vadd.f32 %v15222_v59, %v18302_v40  ;;  %v2565_v63 = vpop.f32.mrb[19].mxu0  ;;  %15380 = vmatmul.mubr.msk.f32.gmra.mrb[124].mxu0 %vm868_vm3, %v472_v56  ;;  %v18442_v42 = vpop.f32.mrb[16].mxu1 }
 0x10d   : > { %v2566_v32 = vadd.f32 %v18302_v40, %v2565_v63  ;;  %15989 = vmatprep.mubr.msk.f32.mxu1 %vm5549_vm4, %v5050_v58  ;;  %15382 = vmatprep.mubr.msk.f32.mxu0 %vm868_vm3, %v473_v57  ;;  %v18446_v47 = vpop.f32.mrb[17].mxu1  ;;  %v485_v63 = vld [vmem:[%s17973_s22 + $0x450] sm:$0xff] }
 0x10e   : > { %15990 = vmatmul.mubr.msk.f32.gmra.mrb[64].mxu1 %vm5549_vm4, %v5051_v61  ;;  %v5053_v6 = vmax.f32 %v2571_v62, 0.0  ;;  %v484_v62 = vld [vmem:[%s17973_s22 + $0x448] sm:$0xff] }
 0x10f   : > { %v5052_v3 = vmax.f32 %v2566_v32, 0.0  ;;  %v15225_v4 = vpop.f32.mrb[20].mxu0 }
 0x110   : > { %v2581_v7 = vadd.f32 %v15225_v4, %v18302_v40  ;;  %v2575_v8 = vpop.f32.mrb[21].mxu0  ;;  %15383 = vmatmul.mubr.msk.f32.gmra.mrb[126].mxu0 %vm868_vm3, %v474_v1  ;;  %v18454_v55 = vpop.f32.mrb[18].mxu1 }
 0x111   : > { %v2576_v10 = vadd.f32 %v18302_v40, %v2575_v8  ;;  %15992 = vmatprep.mubr.msk.f32.mxu1 %vm5549_vm4, %v5052_v3  ;;  %15385 = vmatprep.mubr.msk.f32.mxu0 %vm868_vm3, %v475_v2  ;;  %v18458_v59 = vpop.f32.mrb[19].mxu1 }
 0x112   : > { %15993 = vmatmul.mubr.msk.f32.gmra.mrb[66].mxu1 %vm5549_vm4, %v5053_v6  ;;  %v5055_v16 = vmax.f32 %v2581_v7, 0.0 }
 0x113   : > { %v5054_v13 = vmax.f32 %v2576_v10, 0.0  ;;  %v15228_v14 = vpop.f32.mrb[22].mxu0  ;;  %v486_v10 = vld [vmem:[%s17973_s22 + $0x458] sm:$0xff] }
 0x114   : > { %v2591_v17 = vadd.f32 %v15228_v14, %v18302_v40  ;;  %v2585_v19 = vpop.f32.mrb[23].mxu0  ;;  %15386 = vmatmul.mubr.msk.f32.gmra.mrb[128].mxu0 %vm868_vm3, %v476_v11  ;;  %v18466_v2 = vpop.f32.mrb[20].mxu1  ;;  %v487_v11 = vld [vmem:[%s17973_s22 + $0x460] sm:$0xff] }
 0x115   : > { %v2586_v21 = vadd.f32 %v18302_v40, %v2585_v19  ;;  %15995 = vmatprep.mubr.msk.f32.mxu1 %vm5549_vm4, %v5054_v13  ;;  %15388 = vmatprep.mubr.msk.f32.mxu0 %vm868_vm3, %v477_v12  ;;  %v18470_v7 = vpop.f32.mrb[21].mxu1 }
 0x116   : > { %15996 = vmatmul.mubr.msk.f32.gmra.mrb[68].mxu1 %vm5549_vm4, %v5055_v16  ;;  %v5057_v29 = vmax.f32 %v2591_v17, 0.0 }
 0x117   : > { %v5056_v25 = vmax.f32 %v2586_v21, 0.0  ;;  %v15231_v26 = vpop.f32.mrb[24].mxu0 }
 0x118   : > { %v2601_v30 = vadd.f32 %v15231_v26, %v18302_v40  ;;  %v2595_v31 = vpop.f32.mrb[25].mxu0  ;;  %15389 = vmatmul.mubr.msk.f32.gmra.mrb[130].mxu0 %vm868_vm3, %v478_v23  ;;  %v18478_v14 = vpop.f32.mrb[22].mxu1 }
 0x119   : > { %v2596_v35 = vadd.f32 %v18302_v40, %v2595_v31  ;;  %15998 = vmatprep.mubr.msk.f32.mxu1 %vm5549_vm4, %v5056_v25  ;;  %15391 = vmatprep.mubr.msk.f32.mxu0 %vm868_vm3, %v479_v24  ;;  %v18482_v21 = vpop.f32.mrb[23].mxu1  ;;  %v488_v24 = vld [vmem:[%s17973_s22 + $0x468] sm:$0xff]  ;;  %v489_v25 = vld [vmem:[%s17973_s22 + $0x470] sm:$0xff] }
 0x11a   : > { %15999 = vmatmul.mubr.msk.f32.gmra.mrb[70].mxu1 %vm5549_vm4, %v5057_v29  ;;  %v5059_v43 = vmax.f32 %v2601_v30, 0.0 }
 0x11b   : > { %v5058_v38 = vmax.f32 %v2596_v35, 0.0  ;;  %v15234_v41 = vpop.f32.mrb[26].mxu0 }
 0x11c   : > { %v2611_v45 = vadd.f32 %v15234_v41, %v18302_v40  ;;  %v2605_v46 = vpop.f32.mrb[27].mxu0  ;;  %15392 = vmatmul.mubr.msk.f32.gmra.mrb[132].mxu0 %vm868_vm3, %v480_v36  ;;  %v18490_v30 = vpop.f32.mrb[24].mxu1  ;;  %v490_v41 = vld [vmem:[%s17973_s22 + $0x478] sm:$0xff] }
 0x11d   : > { %v2606_v48 = vadd.f32 %v18302_v40, %v2605_v46  ;;  %16001 = vmatprep.mubr.msk.f32.mxu1 %vm5549_vm4, %v5058_v38  ;;  %15394 = vmatprep.mubr.msk.f32.mxu0 %vm868_vm3, %v481_v37  ;;  %v18494_v37 = vpop.f32.mrb[25].mxu1 }
 0x11e   : > { %16002 = vmatmul.mubr.msk.f32.gmra.mrb[72].mxu1 %vm5549_vm4, %v5059_v43  ;;  %v5061_v56 = vmax.f32 %v2611_v45, 0.0  ;;  %v491_v43 = vld [vmem:[%s17973_s22 + $0x480] sm:$0xff] }
 0x11f   : > { %v5060_v52 = vmax.f32 %v2606_v48, 0.0  ;;  %v15237_v53 = vpop.f32.mrb[28].mxu0 }
 0x120   : > { %v2621_v57 = vadd.f32 %v15237_v53, %v18302_v40  ;;  %v2615_v58 = vpop.f32.mrb[29].mxu0  ;;  %15395 = vmatmul.mubr.msk.f32.gmra.mrb[134].mxu0 %vm868_vm3, %v482_v49  ;;  %v18502_v48 = vpop.f32.mrb[26].mxu1 }
 0x121   : > { %v2616_v61 = vadd.f32 %v18302_v40, %v2615_v58  ;;  %16004 = vmatprep.mubr.msk.f32.mxu1 %vm5549_vm4, %v5060_v52  ;;  %15397 = vmatprep.mubr.msk.f32.mxu0 %vm868_vm3, %v483_v51  ;;  %v18506_v53 = vpop.f32.mrb[27].mxu1  ;;  %v493_v58 = vld [vmem:[%s17973_s22 + $0x490] sm:$0xff] }
 0x122   : > { %16005 = vmatmul.mubr.msk.f32.gmra.mrb[74].mxu1 %vm5549_vm4, %v5061_v56  ;;  %v5063_v3 = vmax.f32 %v2621_v57, 0.0  ;;  %v492_v57 = vld [vmem:[%s17973_s22 + $0x488] sm:$0xff] }
 0x123   : > { %v5062_v32 = vmax.f32 %v2616_v61, 0.0  ;;  %v15240_v1 = vpop.f32.mrb[30].mxu0 }
 0x124   : > { %v2631_v4 = vadd.f32 %v15240_v1, %v18302_v40  ;;  %v2625_v6 = vpop.f32.mrb[31].mxu0  ;;  %15398 = vmatmul.mubr.msk.f32.gmra.mrb[136].mxu0 %vm868_vm3, %v484_v62 }
 0x125   : > { %v2626_v8 = vadd.f32 %v18302_v40, %v2625_v6  ;;  %16007 = vmatprep.mubr.msk.f32.mxu1 %vm5549_vm4, %v5062_v32  ;;  %15400 = vmatprep.mubr.msk.f32.mxu0 %vm868_vm3, %v485_v63  ;;  %v18514_v63 = vpop.f32.mrb[28].mxu1 }
 0x126   : > { %16008 = vmatmul.mubr.msk.f32.gmra.mrb[76].mxu1 %vm5549_vm4, %v5063_v3  ;;  %v5065_v16 = vmax.f32 %v2631_v4, 0.0  ;;  %v18518_v4 = vpop.f32.mrb[29].mxu1 }
 0x127   : > { %v5064_v12 = vmax.f32 %v2626_v8, 0.0  ;;  %v15243_v13 = vpop.f32.mrb[32].mxu0  ;;  %v494_v8 = vld [vmem:[%s17973_s22 + $0x498] sm:$0xff] }
 0x128   : > { %v2641_v17 = vadd.f32 %v15243_v13, %v18302_v40  ;;  %v2635_v19 = vpop.f32.mrb[33].mxu0  ;;  %15401 = vmatmul.mubr.msk.f32.gmra.mrb[138].mxu0 %vm868_vm3, %v486_v10  ;;  %v495_v10 = vld [vmem:[%s17973_s22 + $0x4a0] sm:$0xff]  ;;  %v18526_v13 = vpop.f32.mrb[30].mxu1 }
 0x129   : > { %v2636_v23 = vadd.f32 %v18302_v40, %v2635_v19  ;;  %16010 = vmatprep.mubr.msk.f32.mxu1 %vm5549_vm4, %v5064_v12  ;;  %15403 = vmatprep.mubr.msk.f32.mxu0 %vm868_vm3, %v487_v11 }
 0x12a   : > { %16011 = vmatmul.mubr.msk.f32.gmra.mrb[78].mxu1 %vm5549_vm4, %v5065_v16  ;;  %v5067_v31 = vmax.f32 %v2641_v17, 0.0 }
 0x12b   : > { %v5066_v26 = vmax.f32 %v2636_v23, 0.0  ;;  %v15246_v29 = vpop.f32.mrb[34].mxu0  ;;  %v18530_v23 = vpop.f32.mrb[31].mxu1 }
 0x12c   : > { %v2651_v35 = vadd.f32 %v15246_v29, %v18302_v40  ;;  %v2645_v36 = vpop.f32.mrb[35].mxu0  ;;  %15404 = vmatmul.mubr.msk.f32.gmra.mrb[140].mxu0 %vm868_vm3, %v488_v24 }
 0x12d   : > { %v2646_v38 = vadd.f32 %v18302_v40, %v2645_v36  ;;  %16013 = vmatprep.mubr.msk.f32.mxu1 %vm5549_vm4, %v5066_v26  ;;  %15406 = vmatprep.mubr.msk.f32.mxu0 %vm868_vm3, %v489_v25  ;;  %v496_v25 = vld [vmem:[%s17973_s22 + $0x4a8] sm:$0xff]  ;;  %v497_v26 = vld [vmem:[%s17973_s22 + $0x4b0] sm:$0xff] }
 0x12e   : > { %16014 = vmatmul.mubr.msk.f32.gmra.mrb[80].mxu1 %vm5549_vm4, %v5067_v31  ;;  %v5069_v49 = vmax.f32 %v2651_v35, 0.0  ;;  %v18538_v35 = vpop.f32.mrb[32].mxu1 }
 0x12f   : > { %v5068_v45 = vmax.f32 %v2646_v38, 0.0  ;;  %v15249_v46 = vpop.f32.mrb[36].mxu0 }
 0x130   : > { %v2661_v51 = vadd.f32 %v15249_v46, %v18302_v40  ;;  %v2655_v52 = vpop.f32.mrb[37].mxu0  ;;  %15407 = vmatmul.mubr.msk.f32.gmra.mrb[142].mxu0 %vm868_vm3, %v490_v41  ;;  %v498_v46 = vld [vmem:[%s17973_s22 + $0x4b8] sm:$0xff] }
 0x131   : > { %v2656_v56 = vadd.f32 %v18302_v40, %v2655_v52  ;;  %16016 = vmatprep.mubr.msk.f32.mxu1 %vm5549_vm4, %v5068_v45  ;;  %15409 = vmatprep.mubr.msk.f32.mxu0 %vm868_vm3, %v491_v43  ;;  %v18542_v43 = vpop.f32.mrb[33].mxu1 }
 0x132   : > { %16017 = vmatmul.mubr.msk.f32.gmra.mrb[82].mxu1 %vm5549_vm4, %v5069_v49  ;;  %v5071_v32 = vmax.f32 %v2661_v51, 0.0  ;;  %v499_v49 = vld [vmem:[%s17973_s22 + $0x4c0] sm:$0xff] }
 0x133   : > { %v5070_v61 = vmax.f32 %v2656_v56, 0.0  ;;  %v15252_v62 = vpop.f32.mrb[38].mxu0  ;;  %v18550_v56 = vpop.f32.mrb[34].mxu1 }
 0x134   : > { %v2671_v1 = vadd.f32 %v15252_v62, %v18302_v40  ;;  %v2665_v3 = vpop.f32.mrb[39].mxu0  ;;  %15410 = vmatmul.mubr.msk.f32.gmra.mrb[144].mxu0 %vm868_vm3, %v492_v57  ;;  %v18554_v62 = vpop.f32.mrb[35].mxu1 }
 0x135   : > { %v2666_v6 = vadd.f32 %v18302_v40, %v2665_v3  ;;  %16019 = vmatprep.mubr.msk.f32.mxu1 %vm5549_vm4, %v5070_v61  ;;  %15412 = vmatprep.mubr.msk.f32.mxu0 %vm868_vm3, %v493_v58  ;;  %v501_v3 = vld [vmem:[%s17973_s22 + $0x4d0] sm:$0xff] }
 0x136   : > { %16020 = vmatmul.mubr.msk.f32.gmra.mrb[84].mxu1 %vm5549_vm4, %v5071_v32  ;;  %v5073_v16 = vmax.f32 %v2671_v1, 0.0  ;;  %v500_v1 = vld [vmem:[%s17973_s22 + $0x4c8] sm:$0xff] }
 0x137   : > { %v5072_v11 = vmax.f32 %v2666_v6, 0.0  ;;  %v15255_v12 = vpop.f32.mrb[40].mxu0 }
 0x138   : > { %v2681_v17 = vadd.f32 %v15255_v12, %v18302_v40  ;;  %v2675_v19 = vpop.f32.mrb[41].mxu0  ;;  %15413 = vmatmul.mubr.msk.f32.gmra.mrb[146].mxu0 %vm868_vm3, %v494_v8 }
 0x139   : > { %v2676_v24 = vadd.f32 %v18302_v40, %v2675_v19  ;;  %16022 = vmatprep.mubr.msk.f32.mxu1 %vm5549_vm4, %v5072_v11  ;;  %15415 = vmatprep.mubr.msk.f32.mxu0 %vm868_vm3, %v495_v10  ;;  %v18562_v10 = vpop.f32.mrb[36].mxu1 }
 0x13a   : > { %16023 = vmatmul.mubr.msk.f32.gmra.mrb[86].mxu1 %vm5549_vm4, %v5073_v16  ;;  %v5075_v36 = vmax.f32 %v2681_v17, 0.0  ;;  %v18566_v17 = vpop.f32.mrb[37].mxu1 }
 0x13b   : > { %v5074_v29 = vmax.f32 %v2676_v24, 0.0  ;;  %v15258_v31 = vpop.f32.mrb[42].mxu0  ;;  %v502_v24 = vld [vmem:[%s17973_s22 + $0x4d8] sm:$0xff] }
 0x13c   : > { %v2691_v38 = vadd.f32 %v15258_v31, %v18302_v40  ;;  %v2685_v41 = vpop.f32.mrb[43].mxu0  ;;  %15416 = vmatmul.mubr.msk.f32.gmra.mrb[148].mxu0 %vm868_vm3, %v496_v25  ;;  %v503_v25 = vld [vmem:[%s17973_s22 + $0x4e0] sm:$0xff]  ;;  %v18574_v31 = vpop.f32.mrb[38].mxu1 }
 0x13d   : > { %v2686_v45 = vadd.f32 %v18302_v40, %v2685_v41  ;;  %16025 = vmatprep.mubr.msk.f32.mxu1 %vm5549_vm4, %v5074_v29  ;;  %15418 = vmatprep.mubr.msk.f32.mxu0 %vm868_vm3, %v497_v26 }
 0x13e   : > { %16026 = vmatmul.mubr.msk.f32.gmra.mrb[88].mxu1 %vm5549_vm4, %v5075_v36  ;;  %v5077_v57 = vmax.f32 %v2691_v38, 0.0 }
 0x13f   : > { %v5076_v51 = vmax.f32 %v2686_v45, 0.0  ;;  %v15261_v52 = vpop.f32.mrb[44].mxu0  ;;  %v18578_v45 = vpop.f32.mrb[39].mxu1 }
 0x140   : > { %v2701_v58 = vadd.f32 %v15261_v52, %v18302_v40  ;;  %v2695_v61 = vpop.f32.mrb[45].mxu0  ;;  %15419 = vmatmul.mubr.msk.f32.gmra.mrb[150].mxu0 %vm868_vm3, %v498_v46 }
 0x141   : > { %v2696_v32 = vadd.f32 %v18302_v40, %v2695_v61  ;;  %16028 = vmatprep.mubr.msk.f32.mxu1 %vm5549_vm4, %v5076_v51  ;;  %15421 = vmatprep.mubr.msk.f32.mxu0 %vm868_vm3, %v499_v49  ;;  %v504_v49 = vld [vmem:[%s17973_s22 + $0x4e8] sm:$0xff]  ;;  %v505_v51 = vld [vmem:[%s17973_s22 + $0x4f0] sm:$0xff] }
 0x142   : > { %16029 = vmatmul.mubr.msk.f32.gmra.mrb[90].mxu1 %vm5549_vm4, %v5077_v57  ;;  %v5079_v11 = vmax.f32 %v2701_v58, 0.0  ;;  %v18586_v58 = vpop.f32.mrb[40].mxu1 }
 0x143   : > { %v5078_v6 = vmax.f32 %v2696_v32, 0.0  ;;  %v15264_v8 = vpop.f32.mrb[46].mxu0 }
 0x144   : > { %v2711_v12 = vadd.f32 %v15264_v8, %v18302_v40  ;;  %v2705_v16 = vpop.f32.mrb[47].mxu0  ;;  %15422 = vmatmul.mubr.msk.f32.gmra.mrb[152].mxu0 %vm868_vm3, %v500_v1  ;;  %v506_v8 = vld [vmem:[%s17973_s22 + $0x4f8] sm:$0xff] }
 0x145   : > { %v2706_v19 = vadd.f32 %v18302_v40, %v2705_v16  ;;  %16031 = vmatprep.mubr.msk.f32.mxu1 %vm5549_vm4, %v5078_v6  ;;  %15424 = vmatprep.mubr.msk.f32.mxu0 %vm868_vm3, %v501_v3  ;;  %v18590_v3 = vpop.f32.mrb[41].mxu1 }
 0x146   : > { %16032 = vmatmul.mubr.msk.f32.gmra.mrb[92].mxu1 %vm5549_vm4, %v5079_v11  ;;  %v5081_v36 = vmax.f32 %v2711_v12, 0.0  ;;  %v507_v11 = vld [vmem:[%s17973_s22 + $0x500] sm:$0xff] }
 0x147   : > { %v5080_v26 = vmax.f32 %v2706_v19, 0.0  ;;  %v15267_v29 = vpop.f32.mrb[48].mxu0  ;;  %v18598_v19 = vpop.f32.mrb[42].mxu1 }
 0x148   : > { %v2721_v38 = vadd.f32 %v15267_v29, %v18302_v40  ;;  %v2715_v41 = vpop.f32.mrb[49].mxu0  ;;  %15425 = vmatmul.mubr.msk.f32.gmra.mrb[154].mxu0 %vm868_vm3, %v502_v24  ;;  %v18602_v29 = vpop.f32.mrb[43].mxu1 }
 0x149   : > { %v2716_v46 = vadd.f32 %v18302_v40, %v2715_v41  ;;  %16034 = vmatprep.mubr.msk.f32.mxu1 %vm5549_vm4, %v5080_v26  ;;  %15427 = vmatprep.mubr.msk.f32.mxu0 %vm868_vm3, %v503_v25  ;;  %v509_v41 = vld [vmem:[%s17973_s22 + $0x510] sm:$0xff] }
 0x14a   : > { %16035 = vmatmul.mubr.msk.f32.gmra.mrb[94].mxu1 %vm5549_vm4, %v5081_v36  ;;  %v5083_v61 = vmax.f32 %v2721_v38, 0.0  ;;  %v508_v38 = vld [vmem:[%s17973_s22 + $0x508] sm:$0xff] }
 0x14b   : > { %v5082_v52 = vmax.f32 %v2716_v46, 0.0  ;;  %v15270_v57 = vpop.f32.mrb[50].mxu0 }
 0x14c   : > { %v2731_v32 = vadd.f32 %v15270_v57, %v18302_v40  ;;  %v2725_v1 = vpop.f32.mrb[51].mxu0  ;;  %15428 = vmatmul.mubr.msk.f32.gmra.mrb[156].mxu0 %vm868_vm3, %v504_v49 }
 0x14d   : > { %v2726_v6 = vadd.f32 %v18302_v40, %v2725_v1  ;;  %16037 = vmatprep.mubr.msk.f32.mxu1 %vm5549_vm4, %v5082_v52  ;;  %15430 = vmatprep.mubr.msk.f32.mxu0 %vm868_vm3, %v505_v51  ;;  %v18610_v51 = vpop.f32.mrb[44].mxu1 }
 0x14e   : > { %16038 = vmatmul.mubr.msk.f32.gmra.mrb[96].mxu1 %vm5549_vm4, %v5083_v61  ;;  %v5085_v24 = vmax.f32 %v2731_v32, 0.0  ;;  %v18614_v32 = vpop.f32.mrb[45].mxu1 }
 0x14f   : > { %v5084_v12 = vmax.f32 %v2726_v6, 0.0  ;;  %v15273_v16 = vpop.f32.mrb[52].mxu0  ;;  %v510_v6 = vld [vmem:[%s17973_s22 + $0x518] sm:$0xff] }
 0x150   : > { %v2741_v25 = vadd.f32 %v15273_v16, %v18302_v40  ;;  %v2735_v26 = vpop.f32.mrb[53].mxu0  ;;  %15431 = vmatmul.mubr.msk.f32.gmra.mrb[158].mxu0 %vm868_vm3, %v506_v8  ;;  %v511_v8 = vld [vmem:[%s17973_s22 + $0x520] sm:$0xff]  ;;  %v18622_v16 = vpop.f32.mrb[46].mxu1 }
 0x151   : > { %v2736_v36 = vadd.f32 %v18302_v40, %v2735_v26  ;;  %16040 = vmatprep.mubr.msk.f32.mxu1 %vm5549_vm4, %v5084_v12  ;;  %15433 = vmatprep.mubr.msk.f32.mxu0 %vm868_vm3, %v507_v11  ;;  %20740 = vst [vmem:[#allocation2_spill] sm:$0xff] %v18622_v16 }
 0x152   : > { %16041 = vmatmul.mubr.msk.f32.gmra.mrb[98].mxu1 %vm5549_vm4, %v5085_v24  ;;  %v5087_v52 = vmax.f32 %v2741_v25, 0.0 }
 0x153   : > { %v5086_v46 = vmax.f32 %v2736_v36, 0.0  ;;  %v15276_v49 = vpop.f32.mrb[54].mxu0  ;;  %v18626_v36 = vpop.f32.mrb[47].mxu1 }
 0x154   : > { %v2751_v57 = vadd.f32 %v15276_v49, %v18302_v40  ;;  %v2745_v61 = vpop.f32.mrb[55].mxu0  ;;  %15434 = vmatmul.mubr.msk.f32.gmra.mrb[160].mxu0 %vm868_vm3, %v508_v38 }
 0x155   : > { %v2746_v1 = vadd.f32 %v18302_v40, %v2745_v61  ;;  %16043 = vmatprep.mubr.msk.f32.mxu1 %vm5549_vm4, %v5086_v46  ;;  %15436 = vmatprep.mubr.msk.f32.mxu0 %vm868_vm3, %v509_v41  ;;  %v512_v41 = vld [vmem:[%s17973_s22 + $0x528] sm:$0xff]  ;;  %v513_v46 = vld [vmem:[%s17973_s22 + $0x530] sm:$0xff] }
 0x156   : > { %16044 = vmatmul.mubr.msk.f32.gmra.mrb[100].mxu1 %vm5549_vm4, %v5087_v52  ;;  %v5089_v24 = vmax.f32 %v2751_v57, 0.0 }
 0x157   : > { %v5088_v11 = vmax.f32 %v2746_v1, 0.0  ;;  %v15279_v12 = vpop.f32.mrb[56].mxu0 }
 0x158   : > { %v2761_v25 = vadd.f32 %v15279_v12, %v18302_v40  ;;  %v2755_v26 = vpop.f32.mrb[57].mxu0  ;;  %15437 = vmatmul.mubr.msk.f32.gmra.mrb[162].mxu0 %vm868_vm3, %v510_v6 }
 0x159   : > { %v2756_v38 = vadd.f32 %v18302_v40, %v2755_v26  ;;  %16046 = vmatprep.mubr.msk.f32.mxu1 %vm5549_vm4, %v5088_v11  ;;  %15439 = vmatprep.mubr.msk.f32.mxu0 %vm868_vm3, %v511_v8  ;;  %v514_v8 = vld [vmem:[%s17973_s22 + $0x538] sm:$0xff]  ;;  %v515_v11 = vld [vmem:[%s17973_s22 + $0x540] sm:$0xff] }
 0x15a   : > { %16047 = vmatmul.mubr.msk.f32.gmra.mrb[102].mxu1 %vm5549_vm4, %v5089_v24  ;;  %v5091_v57 = vmax.f32 %v2761_v25, 0.0 }
 0x15b   : > { %v5090_v49 = vmax.f32 %v2756_v38, 0.0  ;;  %v15282_v52 = vpop.f32.mrb[58].mxu0 }
 0x15c   : > { %v2771_v61 = vadd.f32 %v15282_v52, %v18302_v40  ;;  %v2765_v1 = vpop.f32.mrb[59].mxu0  ;;  %15440 = vmatmul.mubr.msk.f32.gmra.mrb[164].mxu0 %vm868_vm3, %v512_v41 }
 0x15d   : > { %v2766_v6 = vadd.f32 %v18302_v40, %v2765_v1  ;;  %16049 = vmatprep.mubr.msk.f32.mxu1 %vm5549_vm4, %v5090_v49  ;;  %15442 = vmatprep.mubr.msk.f32.mxu0 %vm868_vm3, %v513_v46  ;;  %v516_v46 = vld [vmem:[%s17973_s22 + $0x548] sm:$0xff]  ;;  %v517_v49 = vld [vmem:[%s17973_s22 + $0x550] sm:$0xff] }
 0x15e   : > { %16050 = vmatmul.mubr.msk.f32.gmra.mrb[104].mxu1 %vm5549_vm4, %v5091_v57  ;;  %v5093_v25 = vmax.f32 %v2771_v61, 0.0 }
 0x15f   : > { %v5092_v12 = vmax.f32 %v2766_v6, 0.0  ;;  %v15285_v24 = vpop.f32.mrb[60].mxu0 }
 0x160   : > { %v2781_v26 = vadd.f32 %v15285_v24, %v18302_v40  ;;  %v2775_v38 = vpop.f32.mrb[61].mxu0  ;;  %15443 = vmatmul.mubr.msk.f32.gmra.mrb[166].mxu0 %vm868_vm3, %v514_v8 }
 0x161   : > { %v2776_v41 = vadd.f32 %v18302_v40, %v2775_v38  ;;  %16052 = vmatprep.mubr.msk.f32.mxu1 %vm5549_vm4, %v5092_v12  ;;  %15445 = vmatprep.mubr.msk.f32.mxu0 %vm868_vm3, %v515_v11  ;;  %v518_v11 = vld [vmem:[%s17973_s22 + $0x558] sm:$0xff]  ;;  %v519_v12 = vld [vmem:[%s17973_s22 + $0x560] sm:$0xff] }
 0x162   : > { %16053 = vmatmul.mubr.msk.f32.gmra.mrb[106].mxu1 %vm5549_vm4, %v5093_v25  ;;  %v5095_v61 = vmax.f32 %v2781_v26, 0.0 }
 0x163   : > { %v5094_v52 = vmax.f32 %v2776_v41, 0.0  ;;  %v15288_v57 = vpop.f32.mrb[62].mxu0 }
 0x164   : > { %v2791_v1 = vadd.f32 %v15288_v57, %v18302_v40  ;;  %v2785_v6 = vpop.f32.mrb[63].mxu0  ;;  %15446 = vmatmul.mubr.msk.f32.gmra.mrb[168].mxu0 %vm868_vm3, %v516_v46 }
 0x165   : > { %v2786_v8 = vadd.f32 %v18302_v40, %v2785_v6  ;;  %16055 = vmatprep.mubr.msk.f32.mxu1 %vm5549_vm4, %v5094_v52  ;;  %15448 = vmatprep.mubr.msk.f32.mxu0 %vm868_vm3, %v517_v49  ;;  %v520_v49 = vld [vmem:[%s17973_s22 + $0x568] sm:$0xff]  ;;  %v521_v52 = vld [vmem:[%s17973_s22 + $0x570] sm:$0xff] }
 0x166   : > { %16056 = vmatmul.mubr.msk.f32.gmra.mrb[108].mxu1 %vm5549_vm4, %v5095_v61  ;;  %v5097_v26 = vmax.f32 %v2791_v1, 0.0 }
 0x167   : > { %v5096_v24 = vmax.f32 %v2786_v8, 0.0  ;;  %v15291_v25 = vpop.f32.mrb[64].mxu0 }
 0x168   : > { %v2801_v38 = vadd.f32 %v15291_v25, %v18302_v40  ;;  %v2795_v41 = vpop.f32.mrb[65].mxu0  ;;  %15449 = vmatmul.mubr.msk.f32.gmra.mrb[170].mxu0 %vm868_vm3, %v518_v11 }
 0x169   : > { %v2796_v46 = vadd.f32 %v18302_v40, %v2795_v41  ;;  %16058 = vmatprep.mubr.msk.f32.mxu1 %vm5549_vm4, %v5096_v24  ;;  %15451 = vmatprep.mubr.msk.f32.mxu0 %vm868_vm3, %v519_v12  ;;  %v522_v12 = vld [vmem:[%s17973_s22 + $0x578] sm:$0xff]  ;;  %v523_v24 = vld [vmem:[%s17973_s22 + $0x580] sm:$0xff]  ;;  %v13486_v41 = vld [vmem:[%s20733_s3 + $0x28] sm:$0xff] }
 0x16a   : > { %16059 = vmatmul.mubr.msk.f32.gmra.mrb[110].mxu1 %vm5549_vm4, %v5097_v26  ;;  %v5099_v1 = vmax.f32 %v2801_v38, 0.0  ;;  %v13485_v38 = vld [vmem:[%s20733_s3 + $0x20] sm:$0xff] }
 0x16b   : > { %v5098_v57 = vmax.f32 %v2796_v46, 0.0  ;;  %v15294_v61 = vpop.f32.mrb[66].mxu0 }
 0x16c   : > { %v2811_v6 = vadd.f32 %v15294_v61, %v18302_v40  ;;  %v2805_v8 = vpop.f32.mrb[67].mxu0  ;;  %15452 = vmatmul.mubr.msk.f32.gmra.mrb[172].mxu0 %vm868_vm3, %v520_v49 }
 0x16d   : > { %v2806_v11 = vadd.f32 %v18302_v40, %v2805_v8  ;;  %16061 = vmatprep.mubr.msk.f32.mxu1 %vm5549_vm4, %v5098_v57  ;;  %15454 = vmatprep.mubr.msk.f32.mxu0 %vm868_vm3, %v521_v52  ;;  %v18682_v57 = vpack.c.bf16 %v13486_v41, %v13485_v38  ;;  %v525_v8 = vld [vmem:[%s17973_s22 + $0x590] sm:$0xff]  ;;  %v527_v41 = vld [vmem:[%s17973_s22 + $0x5a0] sm:$0xff] }
 0x16e   : > { %16062 = vmatmul.mubr.msk.f32.gmra.mrb[112].mxu1 %vm5549_vm4, %v5099_v1  ;;  %v5101_v46 = vmax.f32 %v2811_v6, 0.0  ;;  %v524_v1 = vld [vmem:[%s17973_s22 + $0x588] sm:$0xff] }
 0x16f   : > { %v5100_v25 = vmax.f32 %v2806_v11, 0.0  ;;  %v15297_v26 = vpop.f32.mrb[68].mxu0  ;;  %17096 = vmatprep.subr.bf16.mxu1 %v18682_v57 }
 0x170   : > { %v2821_v49 = vadd.f32 %v15297_v26, %v18302_v40  ;;  %v2815_v52 = vpop.f32.mrb[69].mxu0  ;;  %15455 = vmatmul.mubr.msk.f32.gmra.mrb[174].mxu0 %vm868_vm3, %v522_v12 }
 0x171   : > { %v2816_v61 = vadd.f32 %v18302_v40, %v2815_v52  ;;  %16064 = vmatprep.mubr.msk.f32.mxu1 %vm5549_vm4, %v5100_v25  ;;  %15457 = vmatprep.mubr.msk.f32.mxu0 %vm868_vm3, %v523_v24  ;;  %v526_v24 = vld [vmem:[%s17973_s22 + $0x598] sm:$0xff] }
 0x172   : > { %16065 = vmatmul.mubr.msk.f32.gmra.mrb[114].mxu1 %vm5549_vm4, %v5101_v46  ;;  %v5103_v26 = vmax.f32 %v2821_v49, 0.0 }
 0x173   : > { %v5102_v6 = vmax.f32 %v2816_v61, 0.0  ;;  %v15300_v11 = vpop.f32.mrb[70].mxu0 }
 0x174   : > { %v2831_v12 = vadd.f32 %v15300_v11, %v18302_v40  ;;  %v2825_v38 = vpop.f32.mrb[71].mxu0  ;;  %15458 = vmatmul.mubr.msk.f32.gmra.mrb[176].mxu0 %vm868_vm3, %v524_v1 }
 0x175   : > { %v2826_v25 = vadd.f32 %v18302_v40, %v2825_v38  ;;  %16067 = vmatprep.mubr.msk.f32.mxu1 %vm5549_vm4, %v5102_v6  ;;  %15460 = vmatprep.mubr.msk.f32.mxu0 %vm868_vm3, %v525_v8  ;;  %v528_v8 = vld [vmem:[%s17973_s22 + $0x5a8] sm:$0xff]  ;;  %v529_v6 = vld [vmem:[%s17973_s22 + $0x5b0] sm:$0xff] }
 0x176   : > { %16068 = vmatmul.mubr.msk.f32.gmra.mrb[116].mxu1 %vm5549_vm4, %v5103_v26  ;;  %v5105_v49 = vmax.f32 %v2831_v12, 0.0 }
 0x177   : > { %v5104_v46 = vmax.f32 %v2826_v25, 0.0  ;;  %v15303_v52 = vpop.f32.mrb[72].mxu0 }
 0x178   : > { %v2841_v61 = vadd.f32 %v15303_v52, %v18302_v40  ;;  %v2835_v11 = vpop.f32.mrb[73].mxu0  ;;  %15461 = vmatmul.mubr.msk.f32.gmra.mrb[178].mxu0 %vm868_vm3, %v526_v24 }
 0x179   : > { %v2836_v1 = vadd.f32 %v18302_v40, %v2835_v11  ;;  %16070 = vmatprep.mubr.msk.f32.mxu1 %vm5549_vm4, %v5104_v46  ;;  %15463 = vmatprep.mubr.msk.f32.mxu0 %vm868_vm3, %v527_v41  ;;  %v530_v41 = vld [vmem:[%s17973_s22 + $0x5b8] sm:$0xff]  ;;  %v531_v46 = vld [vmem:[%s17973_s22 + $0x5c0] sm:$0xff] }
 0x17a   : > { %16071 = vmatmul.mubr.msk.f32.gmra.mrb[118].mxu1 %vm5549_vm4, %v5105_v49  ;;  %v5107_v12 = vmax.f32 %v2841_v61, 0.0 }
 0x17b   : > { %v5106_v26 = vmax.f32 %v2836_v1, 0.0  ;;  %v15306_v38 = vpop.f32.mrb[74].mxu0  ;;  %v18718_v1 = vld [vmem:[%s20732_s2] ss:$0 sm:$0xff] }
 0x17c   : > { %v2851_v25 = vadd.f32 %v15306_v38, %v18302_v40  ;;  %v2845_v52 = vpop.f32.mrb[75].mxu0  ;;  %15464 = vmatmul.mubr.msk.f32.gmra.mrb[180].mxu0 %vm868_vm3, %v528_v8  ;;  %v533_v38 = vld [vmem:[%s17973_s22 + $0x5d0] sm:$0xff] }
 0x17d   : > { %v2846_v24 = vadd.f32 %v18302_v40, %v2845_v52  ;;  %16073 = vmatprep.mubr.msk.f32.mxu1 %vm5549_vm4, %v5106_v26  ;;  %15466 = vmatprep.mubr.msk.f32.mxu0 %vm868_vm3, %v529_v6  ;;  %v532_v26 = vld [vmem:[%s17973_s22 + $0x5c8] sm:$0xff] }
 0x17e   : > { %16074 = vmatmul.mubr.msk.f32.gmra.mrb[120].mxu1 %vm5549_vm4, %v5107_v12  ;;  %v5109_v61 = vmax.f32 %v2851_v25, 0.0 }
 0x17f   : > { %v5108_v49 = vmax.f32 %v2846_v24, 0.0  ;;  %v15309_v11 = vpop.f32.mrb[76].mxu0 }
 0x180   : > { %v2861_v40 = vadd.f32 %v18718_v1, %v15309_v11  ;;  %v2855_v8 = vpop.f32.mrb[77].mxu0  ;;  %15467 = vmatmul.mubr.msk.f32.gmra.mrb[182].mxu0 %vm868_vm3, %v530_v41 }
 0x181   : > { %v2856_v6 = vadd.f32 %v18718_v1, %v2855_v8  ;;  %16076 = vmatprep.mubr.msk.f32.mxu1 %vm5549_vm4, %v5108_v49  ;;  %15469 = vmatprep.mubr.msk.f32.mxu0 %vm868_vm3, %v531_v46  ;;  %v534_v46 = vld [vmem:[%s17973_s22 + $0x5d8] sm:$0xff]  ;;  %v535_v49 = vld [vmem:[%s17973_s22 + $0x5e0] sm:$0xff] }
 0x182   : > { %16077 = vmatmul.mubr.msk.f32.gmra.mrb[122].mxu1 %vm5549_vm4, %v5109_v61  ;;  %v5111_v52 = vmax.f32 %v2861_v40, 0.0 }
 0x183   : > { %v5110_v12 = vmax.f32 %v2856_v6, 0.0  ;;  %v15312_v25 = vpop.f32.mrb[78].mxu0 }
 0x184   : > { %v2871_v24 = vadd.f32 %v18718_v1, %v15312_v25  ;;  %v2865_v11 = vpop.f32.mrb[79].mxu0  ;;  %15470 = vmatmul.mubr.msk.f32.gmra.mrb[184].mxu0 %vm868_vm3, %v532_v26 }
 0x185   : > { %v2866_v41 = vadd.f32 %v18718_v1, %v2865_v11  ;;  %16079 = vmatprep.mubr.msk.f32.mxu1 %vm5549_vm4, %v5110_v12  ;;  %15472 = vmatprep.mubr.msk.f32.mxu0 %vm868_vm3, %v533_v38  ;;  %v536_v38 = vld [vmem:[%s17973_s22 + $0x5e8] sm:$0xff]  ;;  %v537_v12 = vld [vmem:[%s17973_s22 + $0x5f0] sm:$0xff] }
 0x186   : > { %16080 = vmatmul.mubr.msk.f32.gmra.mrb[124].mxu1 %vm5549_vm4, %v5111_v52  ;;  %v5113_v40 = vmax.f32 %v2871_v24, 0.0 }
 0x187   : > { %v5112_v61 = vmax.f32 %v2866_v41, 0.0  ;;  %v15315_v8 = vpop.f32.mrb[80].mxu0 }
 0x188   : > { %v2881_v6 = vadd.f32 %v18718_v1, %v15315_v8  ;;  %v2875_v25 = vpop.f32.mrb[81].mxu0  ;;  %15473 = vmatmul.mubr.msk.f32.gmra.mrb[186].mxu0 %vm868_vm3, %v534_v46 }
 0x189   : > { %v2876_v26 = vadd.f32 %v18718_v1, %v2875_v25  ;;  %16082 = vmatprep.mubr.msk.f32.mxu1 %vm5549_vm4, %v5112_v61  ;;  %15475 = vmatprep.mubr.msk.f32.mxu0 %vm868_vm3, %v535_v49  ;;  %v538_v49 = vld [vmem:[%s17973_s22 + $0x5f8] sm:$0xff]  ;;  %v539_v61 = vld [vmem:[%s17973_s22 + $0x600] sm:$0xff] }
 0x18a   : > { %16083 = vmatmul.mubr.msk.f32.gmra.mrb[126].mxu1 %vm5549_vm4, %v5113_v40  ;;  %v5115_v24 = vmax.f32 %v2881_v6, 0.0 }
 0x18b   : > { %v5114_v52 = vmax.f32 %v2876_v26, 0.0  ;;  %v15318_v11 = vpop.f32.mrb[82].mxu0 }
 0x18c   : > { %v2891_v41 = vadd.f32 %v18718_v1, %v15318_v11  ;;  %v2885_v8 = vpop.f32.mrb[83].mxu0  ;;  %15476 = vmatmul.mubr.msk.f32.gmra.mrb[188].mxu0 %vm868_vm3, %v536_v38 }
 0x18d   : > { %v2886_v46 = vadd.f32 %v18718_v1, %v2885_v8  ;;  %16085 = vmatprep.mubr.msk.f32.mxu1 %vm5549_vm4, %v5114_v52  ;;  %15478 = vmatprep.mubr.msk.f32.mxu0 %vm868_vm3, %v537_v12  ;;  %v540_v12 = vld [vmem:[%s17973_s22 + $0x608] sm:$0xff]  ;;  %v541_v52 = vld [vmem:[%s17973_s22 + $0x610] sm:$0xff] }
 0x18e   : > { %16086 = vmatmul.mubr.msk.f32.gmra.mrb[128].mxu1 %vm5549_vm4, %v5115_v24  ;;  %v5117_v6 = vmax.f32 %v2891_v41, 0.0 }
 0x18f   : > { %v5116_v40 = vmax.f32 %v2886_v46, 0.0  ;;  %v15321_v25 = vpop.f32.mrb[84].mxu0 }
 0x190   : > { %v2901_v26 = vadd.f32 %v18718_v1, %v15321_v25  ;;  %v2895_v11 = vpop.f32.mrb[85].mxu0  ;;  %15479 = vmatmul.mubr.msk.f32.gmra.mrb[190].mxu0 %vm868_vm3, %v538_v49 }
 0x191   : > { %v2896_v38 = vadd.f32 %v18718_v1, %v2895_v11  ;;  %16088 = vmatprep.mubr.msk.f32.mxu1 %vm5549_vm4, %v5116_v40  ;;  %15481 = vmatprep.mubr.msk.f32.mxu0 %vm868_vm3, %v539_v61  ;;  %v542_v61 = vld [vmem:[%s17973_s22 + $0x618] sm:$0xff]  ;;  %v543_v40 = vld [vmem:[%s17973_s22 + $0x620] sm:$0xff] }
 0x192   : > { %16089 = vmatmul.mubr.msk.f32.gmra.mrb[130].mxu1 %vm5549_vm4, %v5117_v6  ;;  %v5119_v41 = vmax.f32 %v2901_v26, 0.0 }
 0x193   : > { %v5118_v24 = vmax.f32 %v2896_v38, 0.0  ;;  %v15324_v8 = vpop.f32.mrb[86].mxu0 }
 0x194   : > { %v2911_v46 = vadd.f32 %v18718_v1, %v15324_v8  ;;  %v2905_v25 = vpop.f32.mrb[87].mxu0  ;;  %15482 = vmatmul.mubr.msk.f32.gmra.mrb[192].mxu0 %vm868_vm3, %v540_v12 }
 0x195   : > { %v2906_v49 = vadd.f32 %v18718_v1, %v2905_v25  ;;  %16091 = vmatprep.mubr.msk.f32.mxu1 %vm5549_vm4, %v5118_v24  ;;  %15484 = vmatprep.mubr.msk.f32.mxu0 %vm868_vm3, %v541_v52  ;;  %v544_v52 = vld [vmem:[%s17973_s22 + $0x628] sm:$0xff]  ;;  %v545_v24 = vld [vmem:[%s17973_s22 + $0x630] sm:$0xff] }
 0x196   : > { %16092 = vmatmul.mubr.msk.f32.gmra.mrb[132].mxu1 %vm5549_vm4, %v5119_v41  ;;  %v5121_v26 = vmax.f32 %v2911_v46, 0.0 }
 0x197   : > { %v5120_v6 = vmax.f32 %v2906_v49, 0.0  ;;  %v15327_v11 = vpop.f32.mrb[88].mxu0 }
 0x198   : > { %v2921_v38 = vadd.f32 %v18718_v1, %v15327_v11  ;;  %v2915_v8 = vpop.f32.mrb[89].mxu0  ;;  %15485 = vmatmul.mubr.msk.f32.gmra.mrb[194].mxu0 %vm868_vm3, %v542_v61 }
 0x199   : > { %v2916_v12 = vadd.f32 %v18718_v1, %v2915_v8  ;;  %16094 = vmatprep.mubr.msk.f32.mxu1 %vm5549_vm4, %v5120_v6  ;;  %15487 = vmatprep.mubr.msk.f32.mxu0 %vm868_vm3, %v543_v40  ;;  %v546_v40 = vld [vmem:[%s17973_s22 + $0x638] sm:$0xff]  ;;  %v547_v6 = vld [vmem:[%s17973_s22 + $0x640] sm:$0xff] }
 0x19a   : > { %16095 = vmatmul.mubr.msk.f32.gmra.mrb[134].mxu1 %vm5549_vm4, %v5121_v26  ;;  %v5123_v46 = vmax.f32 %v2921_v38, 0.0 }
 0x19b   : > { %v5122_v41 = vmax.f32 %v2916_v12, 0.0  ;;  %v15330_v25 = vpop.f32.mrb[90].mxu0 }
 0x19c   : > { %v2931_v49 = vadd.f32 %v18718_v1, %v15330_v25  ;;  %v2925_v11 = vpop.f32.mrb[91].mxu0  ;;  %15488 = vmatmul.mubr.msk.f32.gmra.mrb[196].mxu0 %vm868_vm3, %v544_v52 }
 0x19d   : > { %v2926_v61 = vadd.f32 %v18718_v1, %v2925_v11  ;;  %16097 = vmatprep.mubr.msk.f32.mxu1 %vm5549_vm4, %v5122_v41  ;;  %15490 = vmatprep.mubr.msk.f32.mxu0 %vm868_vm3, %v545_v24  ;;  %v548_v24 = vld [vmem:[%s17973_s22 + $0x648] sm:$0xff]  ;;  %v549_v41 = vld [vmem:[%s17973_s22 + $0x650] sm:$0xff] }
 0x19e   : > { %16098 = vmatmul.mubr.msk.f32.gmra.mrb[136].mxu1 %vm5549_vm4, %v5123_v46  ;;  %v5125_v38 = vmax.f32 %v2931_v49, 0.0 }
 0x19f   : > { %v5124_v26 = vmax.f32 %v2926_v61, 0.0  ;;  %v15333_v8 = vpop.f32.mrb[92].mxu0 }
 0x1a0   : > { %v2941_v12 = vadd.f32 %v18718_v1, %v15333_v8  ;;  %v2935_v25 = vpop.f32.mrb[93].mxu0  ;;  %15491 = vmatmul.mubr.msk.f32.gmra.mrb[198].mxu0 %vm868_vm3, %v546_v40 }
 0x1a1   : > { %v2936_v52 = vadd.f32 %v18718_v1, %v2935_v25  ;;  %16100 = vmatprep.mubr.msk.f32.mxu1 %vm5549_vm4, %v5124_v26  ;;  %15493 = vmatprep.mubr.msk.f32.mxu0 %vm868_vm3, %v547_v6  ;;  %v550_v6 = vld [vmem:[%s17973_s22 + $0x658] sm:$0xff]  ;;  %v551_v26 = vld [vmem:[%s17973_s22 + $0x660] sm:$0xff] }
 0x1a2   : > { %16101 = vmatmul.mubr.msk.f32.gmra.mrb[138].mxu1 %vm5549_vm4, %v5125_v38  ;;  %v5127_v49 = vmax.f32 %v2941_v12, 0.0 }
 0x1a3   : > { %v5126_v46 = vmax.f32 %v2936_v52, 0.0  ;;  %v15336_v11 = vpop.f32.mrb[94].mxu0 }
 0x1a4   : > { %v2951_v61 = vadd.f32 %v18718_v1, %v15336_v11  ;;  %v2945_v8 = vpop.f32.mrb[95].mxu0  ;;  %15494 = vmatmul.mubr.msk.f32.gmra.mrb[200].mxu0 %vm868_vm3, %v548_v24 }
 0x1a5   : > { %v2946_v40 = vadd.f32 %v18718_v1, %v2945_v8  ;;  %16103 = vmatprep.mubr.msk.f32.mxu1 %vm5549_vm4, %v5126_v46  ;;  %15496 = vmatprep.mubr.msk.f32.mxu0 %vm868_vm3, %v549_v41  ;;  %v552_v41 = vld [vmem:[%s17973_s22 + $0x668] sm:$0xff]  ;;  %v553_v46 = vld [vmem:[%s17973_s22 + $0x670] sm:$0xff] }
 0x1a6   : > { %16104 = vmatmul.mubr.msk.f32.gmra.mrb[140].mxu1 %vm5549_vm4, %v5127_v49  ;;  %v5129_v12 = vmax.f32 %v2951_v61, 0.0 }
 0x1a7   : > { %v5128_v38 = vmax.f32 %v2946_v40, 0.0  ;;  %v15339_v25 = vpop.f32.mrb[96].mxu0 }
 0x1a8   : > { %v2961_v52 = vadd.f32 %v18718_v1, %v15339_v25  ;;  %v2955_v11 = vpop.f32.mrb[97].mxu0  ;;  %15497 = vmatmul.mubr.msk.f32.gmra.mrb[202].mxu0 %vm868_vm3, %v550_v6 }
 0x1a9   : > { %v2956_v24 = vadd.f32 %v18718_v1, %v2955_v11  ;;  %16106 = vmatprep.mubr.msk.f32.mxu1 %vm5549_vm4, %v5128_v38  ;;  %15499 = vmatprep.mubr.msk.f32.mxu0 %vm868_vm3, %v551_v26  ;;  %v554_v26 = vld [vmem:[%s17973_s22 + $0x678] sm:$0xff]  ;;  %v555_v38 = vld [vmem:[%s17973_s22 + $0x680] sm:$0xff] }
 0x1aa   : > { %16107 = vmatmul.mubr.msk.f32.gmra.mrb[142].mxu1 %vm5549_vm4, %v5129_v12  ;;  %v5131_v61 = vmax.f32 %v2961_v52, 0.0 }
 0x1ab   : > { %v5130_v49 = vmax.f32 %v2956_v24, 0.0  ;;  %v15342_v8 = vpop.f32.mrb[98].mxu0 }
 0x1ac   : > { %v2971_v40 = vadd.f32 %v18718_v1, %v15342_v8  ;;  %v2965_v25 = vpop.f32.mrb[99].mxu0  ;;  %15500 = vmatmul.mubr.msk.f32.gmra.mrb[204].mxu0 %vm868_vm3, %v552_v41 }
 0x1ad   : > { %v2966_v6 = vadd.f32 %v18718_v1, %v2965_v25  ;;  %16109 = vmatprep.mubr.msk.f32.mxu1 %vm5549_vm4, %v5130_v49  ;;  %15502 = vmatprep.mubr.msk.f32.mxu0 %vm868_vm3, %v553_v46  ;;  %v556_v46 = vld [vmem:[%s17973_s22 + $0x688] sm:$0xff]  ;;  %v557_v49 = vld [vmem:[%s17973_s22 + $0x690] sm:$0xff] }
 0x1ae   : > { %16110 = vmatmul.mubr.msk.f32.gmra.mrb[144].mxu1 %vm5549_vm4, %v5131_v61  ;;  %v5133_v52 = vmax.f32 %v2971_v40, 0.0 }
 0x1af   : > { %v5132_v12 = vmax.f32 %v2966_v6, 0.0  ;;  %v15345_v11 = vpop.f32.mrb[100].mxu0 }
 0x1b0   : > { %v2981_v24 = vadd.f32 %v18718_v1, %v15345_v11  ;;  %v2975_v8 = vpop.f32.mrb[101].mxu0  ;;  %15503 = vmatmul.mubr.msk.f32.gmra.mrb[206].mxu0 %vm868_vm3, %v554_v26 }
 0x1b1   : > { %v2976_v41 = vadd.f32 %v18718_v1, %v2975_v8  ;;  %16112 = vmatprep.mubr.msk.f32.mxu1 %vm5549_vm4, %v5132_v12  ;;  %15505 = vmatprep.mubr.msk.f32.mxu0 %vm868_vm3, %v555_v38  ;;  %v558_v38 = vld [vmem:[%s17973_s22 + $0x698] sm:$0xff]  ;;  %v559_v12 = vld [vmem:[%s17973_s22 + $0x6a0] sm:$0xff] }
 0x1b2   : > { %16113 = vmatmul.mubr.msk.f32.gmra.mrb[146].mxu1 %vm5549_vm4, %v5133_v52  ;;  %v5135_v40 = vmax.f32 %v2981_v24, 0.0 }
 0x1b3   : > { %v5134_v61 = vmax.f32 %v2976_v41, 0.0  ;;  %v15348_v25 = vpop.f32.mrb[102].mxu0 }
 0x1b4   : > { %v2991_v6 = vadd.f32 %v18718_v1, %v15348_v25  ;;  %v2985_v11 = vpop.f32.mrb[103].mxu0  ;;  %15506 = vmatmul.mubr.msk.f32.gmra.mrb[208].mxu0 %vm868_vm3, %v556_v46 }
 0x1b5   : > { %v2986_v26 = vadd.f32 %v18718_v1, %v2985_v11  ;;  %16115 = vmatprep.mubr.msk.f32.mxu1 %vm5549_vm4, %v5134_v61  ;;  %15508 = vmatprep.mubr.msk.f32.mxu0 %vm868_vm3, %v557_v49  ;;  %v560_v49 = vld [vmem:[%s17973_s22 + $0x6a8] sm:$0xff]  ;;  %v561_v61 = vld [vmem:[%s17973_s22 + $0x6b0] sm:$0xff] }
 0x1b6   : > { %16116 = vmatmul.mubr.msk.f32.gmra.mrb[148].mxu1 %vm5549_vm4, %v5135_v40  ;;  %v5137_v24 = vmax.f32 %v2991_v6, 0.0 }
 0x1b7   : > { %v5136_v52 = vmax.f32 %v2986_v26, 0.0  ;;  %v15351_v8 = vpop.f32.mrb[104].mxu0 }
 0x1b8   : > { %v3001_v41 = vadd.f32 %v18718_v1, %v15351_v8  ;;  %v2995_v25 = vpop.f32.mrb[105].mxu0  ;;  %15509 = vmatmul.mubr.msk.f32.gmra.mrb[210].mxu0 %vm868_vm3, %v558_v38 }
 0x1b9   : > { %v2996_v46 = vadd.f32 %v18718_v1, %v2995_v25  ;;  %16118 = vmatprep.mubr.msk.f32.mxu1 %vm5549_vm4, %v5136_v52  ;;  %15511 = vmatprep.mubr.msk.f32.mxu0 %vm868_vm3, %v559_v12  ;;  %v562_v12 = vld [vmem:[%s17973_s22 + $0x6b8] sm:$0xff]  ;;  %v563_v52 = vld [vmem:[%s17973_s22 + $0x6c0] sm:$0xff] }
 0x1ba   : > { %16119 = vmatmul.mubr.msk.f32.gmra.mrb[150].mxu1 %vm5549_vm4, %v5137_v24  ;;  %v5139_v6 = vmax.f32 %v3001_v41, 0.0 }
 0x1bb   : > { %v5138_v40 = vmax.f32 %v2996_v46, 0.0  ;;  %v15354_v11 = vpop.f32.mrb[106].mxu0 }
 0x1bc   : > { %v3011_v26 = vadd.f32 %v18718_v1, %v15354_v11  ;;  %v3005_v8 = vpop.f32.mrb[107].mxu0  ;;  %15512 = vmatmul.mubr.msk.f32.gmra.mrb[212].mxu0 %vm868_vm3, %v560_v49 }
 0x1bd   : > { %v3006_v38 = vadd.f32 %v18718_v1, %v3005_v8  ;;  %16121 = vmatprep.mubr.msk.f32.mxu1 %vm5549_vm4, %v5138_v40  ;;  %15514 = vmatprep.mubr.msk.f32.mxu0 %vm868_vm3, %v561_v61  ;;  %v564_v61 = vld [vmem:[%s17973_s22 + $0x6c8] sm:$0xff]  ;;  %v565_v40 = vld [vmem:[%s17973_s22 + $0x6d0] sm:$0xff] }
 0x1be   : > { %16122 = vmatmul.mubr.msk.f32.gmra.mrb[152].mxu1 %vm5549_vm4, %v5139_v6  ;;  %v5141_v41 = vmax.f32 %v3011_v26, 0.0 }
 0x1bf   : > { %v5140_v24 = vmax.f32 %v3006_v38, 0.0  ;;  %v15357_v25 = vpop.f32.mrb[108].mxu0 }
 0x1c0   : > { %v3021_v46 = vadd.f32 %v18718_v1, %v15357_v25  ;;  %v3015_v11 = vpop.f32.mrb[109].mxu0  ;;  %15515 = vmatmul.mubr.msk.f32.gmra.mrb[214].mxu0 %vm868_vm3, %v562_v12 }
 0x1c1   : > { %v3016_v49 = vadd.f32 %v18718_v1, %v3015_v11  ;;  %16124 = vmatprep.mubr.msk.f32.mxu1 %vm5549_vm4, %v5140_v24  ;;  %15517 = vmatprep.mubr.msk.f32.mxu0 %vm868_vm3, %v563_v52  ;;  %v566_v52 = vld [vmem:[%s17973_s22 + $0x6d8] sm:$0xff]  ;;  %v567_v24 = vld [vmem:[%s17973_s22 + $0x6e0] sm:$0xff] }
 0x1c2   : > { %16125 = vmatmul.mubr.msk.f32.gmra.mrb[154].mxu1 %vm5549_vm4, %v5141_v41  ;;  %v5143_v26 = vmax.f32 %v3021_v46, 0.0 }
 0x1c3   : > { %v5142_v6 = vmax.f32 %v3016_v49, 0.0  ;;  %v15360_v8 = vpop.f32.mrb[110].mxu0 }
 0x1c4   : > { %v3031_v38 = vadd.f32 %v18718_v1, %v15360_v8  ;;  %v3025_v25 = vpop.f32.mrb[111].mxu0  ;;  %15518 = vmatmul.mubr.msk.f32.gmra.mrb[216].mxu0 %vm868_vm3, %v564_v61 }
 0x1c5   : > { %v3026_v12 = vadd.f32 %v18718_v1, %v3025_v25  ;;  %16127 = vmatprep.mubr.msk.f32.mxu1 %vm5549_vm4, %v5142_v6  ;;  %15520 = vmatprep.mubr.msk.f32.mxu0 %vm868_vm3, %v565_v40  ;;  %v568_v40 = vld [vmem:[%s17973_s22 + $0x6e8] sm:$0xff]  ;;  %v569_v6 = vld [vmem:[%s17973_s22 + $0x6f0] sm:$0xff] }
 0x1c6   : > { %16128 = vmatmul.mubr.msk.f32.gmra.mrb[156].mxu1 %vm5549_vm4, %v5143_v26  ;;  %v5145_v46 = vmax.f32 %v3031_v38, 0.0 }
 0x1c7   : > { %v5144_v41 = vmax.f32 %v3026_v12, 0.0  ;;  %v15363_v11 = vpop.f32.mrb[112].mxu0 }
 0x1c8   : > { %v3041_v49 = vadd.f32 %v18718_v1, %v15363_v11  ;;  %v3035_v8 = vpop.f32.mrb[113].mxu0  ;;  %15521 = vmatmul.mubr.msk.f32.gmra.mrb[218].mxu0 %vm868_vm3, %v566_v52 }
 0x1c9   : > { %v3036_v61 = vadd.f32 %v18718_v1, %v3035_v8  ;;  %16130 = vmatprep.mubr.msk.f32.mxu1 %vm5549_vm4, %v5144_v41  ;;  %15523 = vmatprep.mubr.msk.f32.mxu0 %vm868_vm3, %v567_v24  ;;  %v570_v24 = vld [vmem:[%s17973_s22 + $0x6f8] sm:$0xff]  ;;  %v571_v41 = vld [vmem:[%s17973_s22 + $0x700] sm:$0xff] }
 0x1ca   : > { %16131 = vmatmul.mubr.msk.f32.gmra.mrb[158].mxu1 %vm5549_vm4, %v5145_v46  ;;  %v5147_v38 = vmax.f32 %v3041_v49, 0.0 }
 0x1cb   : > { %v5146_v26 = vmax.f32 %v3036_v61, 0.0  ;;  %v15366_v25 = vpop.f32.mrb[114].mxu0 }
 0x1cc   : > { %v3051_v12 = vadd.f32 %v18718_v1, %v15366_v25  ;;  %v3045_v11 = vpop.f32.mrb[115].mxu0  ;;  %15524 = vmatmul.mubr.msk.f32.gmra.mrb[220].mxu0 %vm868_vm3, %v568_v40 }
 0x1cd   : > { %v3046_v52 = vadd.f32 %v18718_v1, %v3045_v11  ;;  %16133 = vmatprep.mubr.msk.f32.mxu1 %vm5549_vm4, %v5146_v26  ;;  %15526 = vmatprep.mubr.msk.f32.mxu0 %vm868_vm3, %v569_v6  ;;  %v572_v6 = vld [vmem:[%s17973_s22 + $0x708] sm:$0xff]  ;;  %v573_v26 = vld [vmem:[%s17973_s22 + $0x710] sm:$0xff] }
 0x1ce   : > { %16134 = vmatmul.mubr.msk.f32.gmra.mrb[160].mxu1 %vm5549_vm4, %v5147_v38  ;;  %v5149_v49 = vmax.f32 %v3051_v12, 0.0 }
 0x1cf   : > { %v5148_v46 = vmax.f32 %v3046_v52, 0.0  ;;  %v15369_v8 = vpop.f32.mrb[116].mxu0 }
 0x1d0   : > { %v3061_v61 = vadd.f32 %v18718_v1, %v15369_v8  ;;  %v3055_v25 = vpop.f32.mrb[117].mxu0  ;;  %15527 = vmatmul.mubr.msk.f32.gmra.mrb[222].mxu0 %vm868_vm3, %v570_v24 }
 0x1d1   : > { %v3056_v40 = vadd.f32 %v18718_v1, %v3055_v25  ;;  %16136 = vmatprep.mubr.msk.f32.mxu1 %vm5549_vm4, %v5148_v46  ;;  %15529 = vmatprep.mubr.msk.f32.mxu0 %vm868_vm3, %v571_v41  ;;  %v574_v41 = vld [vmem:[%s17973_s22 + $0x718] sm:$0xff]  ;;  %v575_v46 = vld [vmem:[%s17973_s22 + $0x720] sm:$0xff] }
 0x1d2   : > { %16137 = vmatmul.mubr.msk.f32.gmra.mrb[162].mxu1 %vm5549_vm4, %v5149_v49  ;;  %v5151_v12 = vmax.f32 %v3061_v61, 0.0 }
 0x1d3   : > { %v5150_v38 = vmax.f32 %v3056_v40, 0.0  ;;  %v15372_v11 = vpop.f32.mrb[118].mxu0 }
 0x1d4   : > { %v3071_v52 = vadd.f32 %v18718_v1, %v15372_v11  ;;  %v3065_v8 = vpop.f32.mrb[119].mxu0  ;;  %15530 = vmatmul.mubr.msk.f32.gmra.mrb[224].mxu0 %vm868_vm3, %v572_v6 }
 0x1d5   : > { %v3066_v24 = vadd.f32 %v18718_v1, %v3065_v8  ;;  %16139 = vmatprep.mubr.msk.f32.mxu1 %vm5549_vm4, %v5150_v38  ;;  %15532 = vmatprep.mubr.msk.f32.mxu0 %vm868_vm3, %v573_v26  ;;  %v576_v26 = vld [vmem:[%s17973_s22 + $0x728] sm:$0xff]  ;;  %v577_v38 = vld [vmem:[%s17973_s22 + $0x730] sm:$0xff] }
 0x1d6   : > { %16140 = vmatmul.mubr.msk.f32.gmra.mrb[164].mxu1 %vm5549_vm4, %v5151_v12  ;;  %v5153_v61 = vmax.f32 %v3071_v52, 0.0 }
 0x1d7   : > { %v5152_v49 = vmax.f32 %v3066_v24, 0.0  ;;  %v15375_v25 = vpop.f32.mrb[120].mxu0 }
 0x1d8   : > { %v3081_v40 = vadd.f32 %v18718_v1, %v15375_v25  ;;  %v3075_v11 = vpop.f32.mrb[121].mxu0  ;;  %15533 = vmatmul.mubr.msk.f32.gmra.mrb[226].mxu0 %vm868_vm3, %v574_v41 }
 0x1d9   : > { %v3076_v6 = vadd.f32 %v18718_v1, %v3075_v11  ;;  %16142 = vmatprep.mubr.msk.f32.mxu1 %vm5549_vm4, %v5152_v49  ;;  %15535 = vmatprep.mubr.msk.f32.mxu0 %vm868_vm3, %v575_v46  ;;  %v578_v46 = vld [vmem:[%s17973_s22 + $0x738] sm:$0xff]  ;;  %v579_v49 = vld [vmem:[%s17973_s22 + $0x740] sm:$0xff] }
 0x1da   : > { %16143 = vmatmul.mubr.msk.f32.gmra.mrb[166].mxu1 %vm5549_vm4, %v5153_v61  ;;  %v5155_v52 = vmax.f32 %v3081_v40, 0.0 }
 0x1db   : > { %v5154_v12 = vmax.f32 %v3076_v6, 0.0  ;;  %v15378_v8 = vpop.f32.mrb[122].mxu0 }
 0x1dc   : > { %v3091_v24 = vadd.f32 %v18718_v1, %v15378_v8  ;;  %v3085_v25 = vpop.f32.mrb[123].mxu0  ;;  %15536 = vmatmul.mubr.msk.f32.gmra.mrb[228].mxu0 %vm868_vm3, %v576_v26 }
 0x1dd   : > { %v3086_v41 = vadd.f32 %v18718_v1, %v3085_v25  ;;  %16145 = vmatprep.mubr.msk.f32.mxu1 %vm5549_vm4, %v5154_v12  ;;  %15538 = vmatprep.mubr.msk.f32.mxu0 %vm868_vm3, %v577_v38  ;;  %v580_v38 = vld [vmem:[%s17973_s22 + $0x748] sm:$0xff]  ;;  %v581_v12 = vld [vmem:[%s17973_s22 + $0x750] sm:$0xff] }
 0x1de   : > { %16146 = vmatmul.mubr.msk.f32.gmra.mrb[168].mxu1 %vm5549_vm4, %v5155_v52  ;;  %v5157_v40 = vmax.f32 %v3091_v24, 0.0 }
 0x1df   : > { %v5156_v61 = vmax.f32 %v3086_v41, 0.0  ;;  %v15381_v11 = vpop.f32.mrb[124].mxu0 }
 0x1e0   : > { %v3101_v6 = vadd.f32 %v18718_v1, %v15381_v11  ;;  %v3095_v8 = vpop.f32.mrb[125].mxu0  ;;  %15539 = vmatmul.mubr.msk.f32.gmra.mrb[230].mxu0 %vm868_vm3, %v578_v46 }
 0x1e1   : > { %v3096_v26 = vadd.f32 %v18718_v1, %v3095_v8  ;;  %16148 = vmatprep.mubr.msk.f32.mxu1 %vm5549_vm4, %v5156_v61  ;;  %15541 = vmatprep.mubr.msk.f32.mxu0 %vm868_vm3, %v579_v49  ;;  %v582_v49 = vld [vmem:[%s17973_s22 + $0x758] sm:$0xff]  ;;  %v583_v61 = vld [vmem:[%s17973_s22 + $0x760] sm:$0xff] }
 0x1e2   : > { %16149 = vmatmul.mubr.msk.f32.gmra.mrb[170].mxu1 %vm5549_vm4, %v5157_v40  ;;  %v5159_v24 = vmax.f32 %v3101_v6, 0.0 }
 0x1e3   : > { %v5158_v52 = vmax.f32 %v3096_v26, 0.0  ;;  %v15384_v25 = vpop.f32.mrb[126].mxu0 }
 0x1e4   : > { %v3111_v41 = vadd.f32 %v18718_v1, %v15384_v25  ;;  %v3105_v11 = vpop.f32.mrb[127].mxu0  ;;  %15542 = vmatmul.mubr.msk.f32.gmra.mrb[232].mxu0 %vm868_vm3, %v580_v38 }
 0x1e5   : > { %v3106_v46 = vadd.f32 %v18718_v1, %v3105_v11  ;;  %16151 = vmatprep.mubr.msk.f32.mxu1 %vm5549_vm4, %v5158_v52  ;;  %15544 = vmatprep.mubr.msk.f32.mxu0 %vm868_vm3, %v581_v12  ;;  %v584_v12 = vld [vmem:[%s17973_s22 + $0x768] sm:$0xff]  ;;  %v585_v52 = vld [vmem:[%s17973_s22 + $0x770] sm:$0xff] }
 0x1e6   : > { %16152 = vmatmul.mubr.msk.f32.gmra.mrb[172].mxu1 %vm5549_vm4, %v5159_v24  ;;  %v5161_v6 = vmax.f32 %v3111_v41, 0.0 }
 0x1e7   : > { %v5160_v40 = vmax.f32 %v3106_v46, 0.0  ;;  %v15387_v8 = vpop.f32.mrb[128].mxu0 }
 0x1e8   : > { %v3121_v26 = vadd.f32 %v18718_v1, %v15387_v8  ;;  %v3115_v25 = vpop.f32.mrb[129].mxu0  ;;  %15545 = vmatmul.mubr.msk.f32.gmra.mrb[234].mxu0 %vm868_vm3, %v582_v49 }
 0x1e9   : > { %v3116_v38 = vadd.f32 %v18718_v1, %v3115_v25  ;;  %16154 = vmatprep.mubr.msk.f32.mxu1 %vm5549_vm4, %v5160_v40  ;;  %15547 = vmatprep.mubr.msk.f32.mxu0 %vm868_vm3, %v583_v61  ;;  %v586_v61 = vld [vmem:[%s17973_s22 + $0x778] sm:$0xff]  ;;  %v587_v40 = vld [vmem:[%s17973_s22 + $0x780] sm:$0xff] }
 0x1ea   : > { %16155 = vmatmul.mubr.msk.f32.gmra.mrb[174].mxu1 %vm5549_vm4, %v5161_v6  ;;  %v5163_v41 = vmax.f32 %v3121_v26, 0.0 }
 0x1eb   : > { %v5162_v24 = vmax.f32 %v3116_v38, 0.0  ;;  %v15390_v11 = vpop.f32.mrb[130].mxu0 }
 0x1ec   : > { %v3131_v46 = vadd.f32 %v18718_v1, %v15390_v11  ;;  %v3125_v8 = vpop.f32.mrb[131].mxu0  ;;  %15548 = vmatmul.mubr.msk.f32.gmra.mrb[236].mxu0 %vm868_vm3, %v584_v12  ;;  %v589_v11 = vld [vmem:[%s17973_s22 + $0x790] sm:$0xff] }
 0x1ed   : > { %v3126_v49 = vadd.f32 %v18718_v1, %v3125_v8  ;;  %16161 = vmatprep.mubr.msk.f32.mxu1 %vm5549_vm4, %v5162_v24  ;;  %15550 = vmatprep.mubr.msk.f32.mxu0 %vm868_vm3, %v585_v52  ;;  %v588_v52 = vld [vmem:[%s17973_s22 + $0x788] sm:$0xff] }
 0x1ee   : > { %16162 = vmatmul.mubr.msk.f32.vlgmr.msra.gmra.mrb[48].mxu1 %vm5549_vm4, %v5163_v41  ;;  %v5165_v25 = vmax.f32 %v3131_v46, 0.0 }
 0x1ef   : > { %v5164_v6 = vmax.f32 %v3126_v49, 0.0  ;;  %17098 = vmatpush3.bf16.msra.mxu1 %v18682_v57  ;;  %v15393_v26 = vpop.f32.mrb[132].mxu0 }
 0x1f0   : > { %v3141_v38 = vadd.f32 %v18718_v1, %v15393_v26  ;;  %v3135_v12 = vpop.f32.mrb[133].mxu0  ;;  %15551 = vmatmul.mubr.msk.f32.gmra.mrb[238].mxu0 %vm868_vm3, %v586_v61 }
 0x1f1   : > { %v3136_v24 = vadd.f32 %v18718_v1, %v3135_v12  ;;  %16164 = vmatprep.mubr.msk.f32.mxu1 %vm5549_vm4, %v5164_v6  ;;  %15553 = vmatprep.mubr.msk.f32.mxu0 %vm868_vm3, %v587_v40  ;;  %v590_v40 = vld [vmem:[%s17973_s22 + $0x798] sm:$0xff]  ;;  %v591_v6 = vld [vmem:[%s17973_s22 + $0x7a0] sm:$0xff] }
 0x1f2   : > { %16165 = vmatmul.mubr.msk.f32.gmra.mrb[50].mxu1 %vm5549_vm4, %v5165_v25  ;;  %v5167_v46 = vmax.f32 %v3141_v38, 0.0 }
 0x1f3   : > { %v5166_v57 = vmax.f32 %v3136_v24, 0.0  ;;  %v15396_v41 = vpop.f32.mrb[134].mxu0 }
 0x1f4   : > { %v3151_v8 = vadd.f32 %v18718_v1, %v15396_v41  ;;  %v3145_v49 = vpop.f32.mrb[135].mxu0  ;;  %15554 = vmatmul.mubr.msk.f32.gmra.mrb[240].mxu0 %vm868_vm3, %v588_v52 }
 0x1f5   : > { %v3146_v61 = vadd.f32 %v18718_v1, %v3145_v49  ;;  %16167 = vmatprep.mubr.msk.f32.mxu1 %vm5549_vm4, %v5166_v57  ;;  %15556 = vmatprep.mubr.msk.f32.mxu0 %vm868_vm3, %v589_v11  ;;  %v592_v11 = vld [vmem:[%s17973_s22 + $0x7a8] sm:$0xff]  ;;  %v593_v57 = vld [vmem:[%s17973_s22 + $0x7b0] sm:$0xff] }
 0x1f6   : > { %16168 = vmatmul.mubr.msk.f32.gmra.mrb[52].mxu1 %vm5549_vm4, %v5167_v46  ;;  %v5169_v38 = vmax.f32 %v3151_v8, 0.0 }
 0x1f7   : > { %v5168_v26 = vmax.f32 %v3146_v61, 0.0  ;;  %v15399_v25 = vpop.f32.mrb[136].mxu0 }
 0x1f8   : > { %v3161_v12 = vadd.f32 %v18718_v1, %v15399_v25  ;;  %v3155_v24 = vpop.f32.mrb[137].mxu0  ;;  %15557 = vmatmul.mubr.msk.f32.gmra.mrb[242].mxu0 %vm868_vm3, %v590_v40 }
 0x1f9   : > { %v3156_v52 = vadd.f32 %v18718_v1, %v3155_v24  ;;  %16170 = vmatprep.mubr.msk.f32.mxu1 %vm5549_vm4, %v5168_v26  ;;  %15559 = vmatprep.mubr.msk.f32.mxu0 %vm868_vm3, %v591_v6  ;;  %v594_v6 = vld [vmem:[%s17973_s22 + $0x7b8] sm:$0xff]  ;;  %v595_v26 = vld [vmem:[%s17973_s22 + $0x7c0] sm:$0xff] }
 0x1fa   : > { %16171 = vmatmul.mubr.msk.f32.gmra.mrb[54].mxu1 %vm5549_vm4, %v5169_v38  ;;  %v5171_v8 = vmax.f32 %v3161_v12, 0.0 }
 0x1fb   : > { %v5170_v41 = vmax.f32 %v3156_v52, 0.0  ;;  %v15402_v46 = vpop.f32.mrb[138].mxu0 }
 0x1fc   : > { %v3171_v49 = vadd.f32 %v18718_v1, %v15402_v46  ;;  %v3165_v61 = vpop.f32.mrb[139].mxu0  ;;  %15560 = vmatmul.mubr.msk.f32.gmra.mrb[244].mxu0 %vm868_vm3, %v592_v11 }
 0x1fd   : > { %v3166_v40 = vadd.f32 %v18718_v1, %v3165_v61  ;;  %16173 = vmatprep.mubr.msk.f32.mxu1 %vm5549_vm4, %v5170_v41  ;;  %15562 = vmatprep.mubr.msk.f32.mxu0 %vm868_vm3, %v593_v57  ;;  %v596_v57 = vld [vmem:[%s17973_s22 + $0x7c8] sm:$0xff]  ;;  %v597_v41 = vld [vmem:[%s17973_s22 + $0x7d0] sm:$0xff] }
 0x1fe   : > { %16174 = vmatmul.mubr.msk.f32.gmra.mrb[56].mxu1 %vm5549_vm4, %v5171_v8  ;;  %v5173_v12 = vmax.f32 %v3171_v49, 0.0 }
 0x1ff   : > { %v5172_v25 = vmax.f32 %v3166_v40, 0.0  ;;  %v15405_v38 = vpop.f32.mrb[140].mxu0 }
 0x200   : > { %v3181_v24 = vadd.f32 %v18718_v1, %v15405_v38  ;;  %v3175_v52 = vpop.f32.mrb[141].mxu0  ;;  %15563 = vmatmul.mubr.msk.f32.gmra.mrb[246].mxu0 %vm868_vm3, %v594_v6 }
 0x201   : > { %v3176_v11 = vadd.f32 %v18718_v1, %v3175_v52  ;;  %16176 = vmatprep.mubr.msk.f32.mxu1 %vm5549_vm4, %v5172_v25  ;;  %15565 = vmatprep.mubr.msk.f32.mxu0 %vm868_vm3, %v595_v26  ;;  %v598_v26 = vld [vmem:[%s17973_s22 + $0x7d8] sm:$0xff]  ;;  %v599_v25 = vld [vmem:[%s17973_s22 + $0x7e0] sm:$0xff] }
 0x202   : > { %16177 = vmatmul.mubr.msk.f32.gmra.mrb[58].mxu1 %vm5549_vm4, %v5173_v12  ;;  %v5175_v49 = vmax.f32 %v3181_v24, 0.0 }
 0x203   : > { %v5174_v46 = vmax.f32 %v3176_v11, 0.0  ;;  %v15408_v8 = vpop.f32.mrb[142].mxu0 }
 0x204   : > { %v3191_v61 = vadd.f32 %v18718_v1, %v15408_v8  ;;  %v3185_v40 = vpop.f32.mrb[143].mxu0  ;;  %15566 = vmatmul.mubr.msk.f32.gmra.mrb[248].mxu0 %vm868_vm3, %v596_v57 }
 0x205   : > { %v3186_v6 = vadd.f32 %v18718_v1, %v3185_v40  ;;  %16179 = vmatprep.mubr.msk.f32.mxu1 %vm5549_vm4, %v5174_v46  ;;  %15568 = vmatprep.mubr.msk.f32.mxu0 %vm868_vm3, %v597_v41  ;;  %v600_v41 = vld [vmem:[%s17973_s22 + $0x7e8] sm:$0xff]  ;;  %v601_v46 = vld [vmem:[%s17973_s22 + $0x7f0] sm:$0xff] }
 0x206   : > { %16180 = vmatmul.mubr.msk.f32.gmra.mrb[60].mxu1 %vm5549_vm4, %v5175_v49  ;;  %v5177_v24 = vmax.f32 %v3191_v61, 0.0 }
 0x207   : > { %v5176_v38 = vmax.f32 %v3186_v6, 0.0  ;;  %v15411_v12 = vpop.f32.mrb[144].mxu0 }
 0x208   : > { %v3201_v52 = vadd.f32 %v18718_v1, %v15411_v12  ;;  %v3195_v11 = vpop.f32.mrb[145].mxu0  ;;  %15569 = vmatmul.mubr.msk.f32.gmra.mrb[250].mxu0 %vm868_vm3, %v598_v26 }
 0x209   : > { %v3196_v57 = vadd.f32 %v18718_v1, %v3195_v11  ;;  %16182 = vmatprep.mubr.msk.f32.mxu1 %vm5549_vm4, %v5176_v38  ;;  %15571 = vmatprep.mubr.msk.f32.mxu0 %vm868_vm3, %v599_v25  ;;  %v602_v25 = vld [vmem:[%s17973_s22 + $0x7f8] sm:$0xff]  ;;  %v603_v38 = vld [vmem:[%s17973_s22 + $0x800] sm:$0xff] }
 0x20a   : > { %16183 = vmatmul.mubr.msk.f32.gmra.mrb[62].mxu1 %vm5549_vm4, %v5177_v24  ;;  %v5179_v61 = vmax.f32 %v3201_v52, 0.0 }
 0x20b   : > { %v5178_v8 = vmax.f32 %v3196_v57, 0.0  ;;  %v15414_v49 = vpop.f32.mrb[146].mxu0 }
 0x20c   : > { %v3211_v40 = vadd.f32 %v18718_v1, %v15414_v49  ;;  %v3205_v6 = vpop.f32.mrb[147].mxu0  ;;  %15572 = vmatmul.mubr.msk.f32.gmra.mrb[252].mxu0 %vm868_vm3, %v600_v41 }
 0x20d   : > { %v3206_v26 = vadd.f32 %v18718_v1, %v3205_v6  ;;  %16185 = vmatprep.mubr.msk.f32.mxu1 %vm5549_vm4, %v5178_v8  ;;  %15574 = vmatprep.mubr.msk.f32.mxu0 %vm868_vm3, %v601_v46  ;;  %v604_v46 = vld [vmem:[%s17973_s22 + $0x808] sm:$0xff]  ;;  %v605_v8 = vld [vmem:[%s17973_s22 + $0x810] sm:$0xff] }
 0x20e   : > { %16186 = vmatmul.mubr.msk.f32.gmra.mrb[64].mxu1 %vm5549_vm4, %v5179_v61  ;;  %v5181_v52 = vmax.f32 %v3211_v40, 0.0 }
 0x20f   : > { %v5180_v12 = vmax.f32 %v3206_v26, 0.0  ;;  %v15417_v24 = vpop.f32.mrb[148].mxu0 }
 0x210   : > { %v3221_v11 = vadd.f32 %v18718_v1, %v15417_v24  ;;  %v3215_v57 = vpop.f32.mrb[149].mxu0  ;;  %15575 = vmatmul.mubr.msk.f32.gmra.mrb[254].mxu0 %vm868_vm3, %v602_v25 }
 0x211   : > { %v3216_v41 = vadd.f32 %v18718_v1, %v3215_v57  ;;  %16188 = vmatprep.mubr.msk.f32.mxu1 %vm5549_vm4, %v5180_v12  ;;  %15577 = vmatprep.mubr.msk.f32.mxu0 %vm868_vm3, %v603_v38  ;;  %v606_v38 = vld [vmem:[%s17973_s22 + $0x818] sm:$0xff]  ;;  %v607_v12 = vld [vmem:[%s17973_s22 + $0x820] sm:$0xff] }
 0x212   : > { %16189 = vmatmul.mubr.msk.f32.gmra.mrb[66].mxu1 %vm5549_vm4, %v5181_v52  ;;  %v5183_v40 = vmax.f32 %v3221_v11, 0.0 }
 0x213   : > { %v5182_v49 = vmax.f32 %v3216_v41, 0.0  ;;  %v15420_v61 = vpop.f32.mrb[150].mxu0 }
 0x214   : > { %v3231_v6 = vadd.f32 %v18718_v1, %v15420_v61  ;;  %v3225_v26 = vpop.f32.mrb[151].mxu0  ;;  %15578 = vmatmul.mubr.msk.f32.gmra.mrb[0].mxu0 %vm868_vm3, %v604_v46 }
 0x215   : > { %v3226_v25 = vadd.f32 %v18718_v1, %v3225_v26  ;;  %16191 = vmatprep.mubr.msk.f32.mxu1 %vm5549_vm4, %v5182_v49  ;;  %15580 = vmatprep.mubr.msk.f32.mxu0 %vm868_vm3, %v605_v8  ;;  %v608_v8 = vld [vmem:[%s17973_s22 + $0x828] sm:$0xff]  ;;  %v609_v49 = vld [vmem:[%s17973_s22 + $0x830] sm:$0xff] }
 0x216   : > { %16192 = vmatmul.mubr.msk.f32.gmra.mrb[68].mxu1 %vm5549_vm4, %v5183_v40  ;;  %v5185_v11 = vmax.f32 %v3231_v6, 0.0 }
 0x217   : > { %v5184_v24 = vmax.f32 %v3226_v25, 0.0  ;;  %v15423_v52 = vpop.f32.mrb[152].mxu0 }
 0x218   : > { %v3241_v57 = vadd.f32 %v18718_v1, %v15423_v52  ;;  %v3235_v41 = vpop.f32.mrb[153].mxu0  ;;  %15581 = vmatmul.mubr.msk.f32.gmra.mrb[2].mxu0 %vm868_vm3, %v606_v38 }
 0x219   : > { %v3236_v46 = vadd.f32 %v18718_v1, %v3235_v41  ;;  %16194 = vmatprep.mubr.msk.f32.mxu1 %vm5549_vm4, %v5184_v24  ;;  %15583 = vmatprep.mubr.msk.f32.mxu0 %vm868_vm3, %v607_v12  ;;  %v610_v12 = vld [vmem:[%s17973_s22 + $0x838] sm:$0xff]  ;;  %v611_v24 = vld [vmem:[%s17973_s22 + $0x840] sm:$0xff] }
 0x21a   : > { %16195 = vmatmul.mubr.msk.f32.gmra.mrb[70].mxu1 %vm5549_vm4, %v5185_v11  ;;  %v5187_v6 = vmax.f32 %v3241_v57, 0.0 }
 0x21b   : > { %v5186_v61 = vmax.f32 %v3236_v46, 0.0  ;;  %v15426_v40 = vpop.f32.mrb[154].mxu0 }
 0x21c   : > { %v3251_v26 = vadd.f32 %v18718_v1, %v15426_v40  ;;  %v3245_v25 = vpop.f32.mrb[155].mxu0  ;;  %15584 = vmatmul.mubr.msk.f32.gmra.mrb[4].mxu0 %vm868_vm3, %v608_v8 }
 0x21d   : > { %v3246_v38 = vadd.f32 %v18718_v1, %v3245_v25  ;;  %16197 = vmatprep.mubr.msk.f32.mxu1 %vm5549_vm4, %v5186_v61  ;;  %15586 = vmatprep.mubr.msk.f32.mxu0 %vm868_vm3, %v609_v49  ;;  %v612_v49 = vld [vmem:[%s17973_s22 + $0x848] sm:$0xff]  ;;  %v613_v61 = vld [vmem:[%s17973_s22 + $0x850] sm:$0xff] }
 0x21e   : > { %16198 = vmatmul.mubr.msk.f32.gmra.mrb[72].mxu1 %vm5549_vm4, %v5187_v6  ;;  %v5189_v57 = vmax.f32 %v3251_v26, 0.0 }
 0x21f   : > { %v5188_v52 = vmax.f32 %v3246_v38, 0.0  ;;  %v15429_v11 = vpop.f32.mrb[156].mxu0 }
 0x220   : > { %v3261_v41 = vadd.f32 %v18718_v1, %v15429_v11  ;;  %v3255_v46 = vpop.f32.mrb[157].mxu0  ;;  %15587 = vmatmul.mubr.msk.f32.gmra.mrb[6].mxu0 %vm868_vm3, %v610_v12 }
 0x221   : > { %v3256_v8 = vadd.f32 %v18718_v1, %v3255_v46  ;;  %16200 = vmatprep.mubr.msk.f32.mxu1 %vm5549_vm4, %v5188_v52  ;;  %15589 = vmatprep.mubr.msk.f32.mxu0 %vm868_vm3, %v611_v24  ;;  %v614_v24 = vld [vmem:[%s17973_s22 + $0x858] sm:$0xff]  ;;  %v615_v52 = vld [vmem:[%s17973_s22 + $0x860] sm:$0xff] }
 0x222   : > { %16201 = vmatmul.mubr.msk.f32.gmra.mrb[74].mxu1 %vm5549_vm4, %v5189_v57  ;;  %v5191_v26 = vmax.f32 %v3261_v41, 0.0 }
 0x223   : > { %v5190_v40 = vmax.f32 %v3256_v8, 0.0  ;;  %v15432_v6 = vpop.f32.mrb[158].mxu0 }
 0x224   : > { %v3271_v25 = vadd.f32 %v18718_v1, %v15432_v6  ;;  %v3265_v38 = vpop.f32.mrb[159].mxu0  ;;  %15590 = vmatmul.mubr.msk.f32.gmra.mrb[8].mxu0 %vm868_vm3, %v612_v49 }
 0x225   : > { %v3266_v12 = vadd.f32 %v18718_v1, %v3265_v38  ;;  %16203 = vmatprep.mubr.msk.f32.mxu1 %vm5549_vm4, %v5190_v40  ;;  %15592 = vmatprep.mubr.msk.f32.mxu0 %vm868_vm3, %v613_v61  ;;  %v616_v61 = vld [vmem:[%s17973_s22 + $0x868] sm:$0xff]  ;;  %v617_v40 = vld [vmem:[%s17973_s22 + $0x870] sm:$0xff]  ;;  %v19068_v38 = vld [vmem:[%s20732_s2] ss:$0 sm:$0xff] }
 0x226   : > { %16204 = vmatmul.mubr.msk.f32.gmra.mrb[76].mxu1 %vm5549_vm4, %v5191_v26  ;;  %v5193_v41 = vmax.f32 %v3271_v25, 0.0 }
 0x227   : > { %v5192_v11 = vmax.f32 %v3266_v12, 0.0  ;;  %v15435_v57 = vpop.f32.mrb[160].mxu0 }
 0x228   : > { %v3281_v46 = vadd.f32 %v18718_v1, %v15435_v57  ;;  %v3275_v8 = vpop.f32.mrb[161].mxu0  ;;  %15593 = vmatmul.mubr.msk.f32.gmra.mrb[10].mxu0 %vm868_vm3, %v614_v24 }
 0x229   : > { %v3276_v49 = vadd.f32 %v18718_v1, %v3275_v8  ;;  %16206 = vmatprep.mubr.msk.f32.mxu1 %vm5549_vm4, %v5192_v11  ;;  %15595 = vmatprep.mubr.msk.f32.mxu0 %vm868_vm3, %v615_v52  ;;  %v618_v52 = vld [vmem:[%s17973_s22 + $0x878] sm:$0xff]  ;;  %v619_v11 = vld [vmem:[%s17973_s22 + $0x880] sm:$0xff] }
 0x22a   : > { %16207 = vmatmul.mubr.msk.f32.gmra.mrb[78].mxu1 %vm5549_vm4, %v5193_v41  ;;  %v5195_v25 = vmax.f32 %v3281_v46, 0.0 }
 0x22b   : > { %v5194_v6 = vmax.f32 %v3276_v49, 0.0  ;;  %v15438_v26 = vpop.f32.mrb[162].mxu0 }
 0x22c   : > { %v3291_v1 = vadd.f32 %v19068_v38, %v15438_v26  ;;  %v3285_v12 = vpop.f32.mrb[163].mxu0  ;;  %15596 = vmatmul.mubr.msk.f32.gmra.mrb[12].mxu0 %vm868_vm3, %v616_v61 }
 0x22d   : > { %v3286_v24 = vadd.f32 %v19068_v38, %v3285_v12  ;;  %16209 = vmatprep.mubr.msk.f32.mxu1 %vm5549_vm4, %v5194_v6  ;;  %15598 = vmatprep.mubr.msk.f32.mxu0 %vm868_vm3, %v617_v40  ;;  %v620_v40 = vld [vmem:[%s17973_s22 + $0x888] sm:$0xff]  ;;  %v621_v6 = vld [vmem:[%s17973_s22 + $0x890] sm:$0xff] }
 0x22e   : > { %16210 = vmatmul.mubr.msk.f32.gmra.mrb[80].mxu1 %vm5549_vm4, %v5195_v25  ;;  %v5197_v46 = vmax.f32 %v3291_v1, 0.0 }
 0x22f   : > { %v5196_v57 = vmax.f32 %v3286_v24, 0.0  ;;  %v15441_v41 = vpop.f32.mrb[164].mxu0 }
 0x230   : > { %v3301_v8 = vadd.f32 %v19068_v38, %v15441_v41  ;;  %v3295_v49 = vpop.f32.mrb[165].mxu0  ;;  %15599 = vmatmul.mubr.msk.f32.gmra.mrb[14].mxu0 %vm868_vm3, %v618_v52 }
 0x231   : > { %v3296_v61 = vadd.f32 %v19068_v38, %v3295_v49  ;;  %16212 = vmatprep.mubr.msk.f32.mxu1 %vm5549_vm4, %v5196_v57  ;;  %15601 = vmatprep.mubr.msk.f32.mxu0 %vm868_vm3, %v619_v11  ;;  %v622_v11 = vld [vmem:[%s17973_s22 + $0x898] sm:$0xff]  ;;  %v623_v57 = vld [vmem:[%s17973_s22 + $0x8a0] sm:$0xff] }
 0x232   : > { %16213 = vmatmul.mubr.msk.f32.gmra.mrb[82].mxu1 %vm5549_vm4, %v5197_v46  ;;  %v5199_v1 = vmax.f32 %v3301_v8, 0.0 }
 0x233   : > { %v5198_v26 = vmax.f32 %v3296_v61, 0.0  ;;  %v15444_v25 = vpop.f32.mrb[166].mxu0 }
 0x234   : > { %v3311_v12 = vadd.f32 %v19068_v38, %v15444_v25  ;;  %v3305_v24 = vpop.f32.mrb[167].mxu0  ;;  %15602 = vmatmul.mubr.msk.f32.gmra.mrb[16].mxu0 %vm868_vm3, %v620_v40 }
 0x235   : > { %v3306_v52 = vadd.f32 %v19068_v38, %v3305_v24  ;;  %16215 = vmatprep.mubr.msk.f32.mxu1 %vm5549_vm4, %v5198_v26  ;;  %15604 = vmatprep.mubr.msk.f32.mxu0 %vm868_vm3, %v621_v6  ;;  %v624_v6 = vld [vmem:[%s17973_s22 + $0x8a8] sm:$0xff]  ;;  %v625_v26 = vld [vmem:[%s17973_s22 + $0x8b0] sm:$0xff] }
 0x236   : > { %16216 = vmatmul.mubr.msk.f32.gmra.mrb[84].mxu1 %vm5549_vm4, %v5199_v1  ;;  %v5201_v8 = vmax.f32 %v3311_v12, 0.0 }
 0x237   : > { %v5200_v41 = vmax.f32 %v3306_v52, 0.0  ;;  %v15447_v46 = vpop.f32.mrb[168].mxu0 }
 0x238   : > { %v3321_v49 = vadd.f32 %v19068_v38, %v15447_v46  ;;  %v3315_v61 = vpop.f32.mrb[169].mxu0  ;;  %15605 = vmatmul.mubr.msk.f32.gmra.mrb[18].mxu0 %vm868_vm3, %v622_v11 }
 0x239   : > { %v3316_v40 = vadd.f32 %v19068_v38, %v3315_v61  ;;  %16218 = vmatprep.mubr.msk.f32.mxu1 %vm5549_vm4, %v5200_v41  ;;  %15607 = vmatprep.mubr.msk.f32.mxu0 %vm868_vm3, %v623_v57  ;;  %v626_v57 = vld [vmem:[%s17973_s22 + $0x8b8] sm:$0xff]  ;;  %v627_v41 = vld [vmem:[%s17973_s22 + $0x8c0] sm:$0xff] }
 0x23a   : > { %16219 = vmatmul.mubr.msk.f32.gmra.mrb[86].mxu1 %vm5549_vm4, %v5201_v8  ;;  %v5203_v12 = vmax.f32 %v3321_v49, 0.0 }
 0x23b   : > { %v5202_v25 = vmax.f32 %v3316_v40, 0.0  ;;  %v15450_v1 = vpop.f32.mrb[170].mxu0 }
 0x23c   : > { %v3331_v24 = vadd.f32 %v19068_v38, %v15450_v1  ;;  %v3325_v52 = vpop.f32.mrb[171].mxu0  ;;  %15608 = vmatmul.mubr.msk.f32.gmra.mrb[20].mxu0 %vm868_vm3, %v624_v6 }
 0x23d   : > { %v3326_v11 = vadd.f32 %v19068_v38, %v3325_v52  ;;  %16221 = vmatprep.mubr.msk.f32.mxu1 %vm5549_vm4, %v5202_v25  ;;  %15610 = vmatprep.mubr.msk.f32.mxu0 %vm868_vm3, %v625_v26  ;;  %v628_v26 = vld [vmem:[%s17973_s22 + $0x8c8] sm:$0xff]  ;;  %v629_v25 = vld [vmem:[%s17973_s22 + $0x8d0] sm:$0xff] }
 0x23e   : > { %16222 = vmatmul.mubr.msk.f32.gmra.mrb[88].mxu1 %vm5549_vm4, %v5203_v12  ;;  %v5205_v49 = vmax.f32 %v3331_v24, 0.0 }
 0x23f   : > { %v5204_v46 = vmax.f32 %v3326_v11, 0.0  ;;  %v15453_v8 = vpop.f32.mrb[172].mxu0 }
 0x240   : > { %v3341_v61 = vadd.f32 %v19068_v38, %v15453_v8  ;;  %v3335_v40 = vpop.f32.mrb[173].mxu0  ;;  %15611 = vmatmul.mubr.msk.f32.gmra.mrb[22].mxu0 %vm868_vm3, %v626_v57 }
 0x241   : > { %v3336_v6 = vadd.f32 %v19068_v38, %v3335_v40  ;;  %16224 = vmatprep.mubr.msk.f32.mxu1 %vm5549_vm4, %v5204_v46  ;;  %15613 = vmatprep.mubr.msk.f32.mxu0 %vm868_vm3, %v627_v41  ;;  %v630_v41 = vld [vmem:[%s17973_s22 + $0x8d8] sm:$0xff]  ;;  %v631_v46 = vld [vmem:[%s17973_s22 + $0x8e0] sm:$0xff] }
 0x242   : > { %16225 = vmatmul.mubr.msk.f32.gmra.mrb[90].mxu1 %vm5549_vm4, %v5205_v49  ;;  %v5207_v24 = vmax.f32 %v3341_v61, 0.0 }
 0x243   : > { %v5206_v1 = vmax.f32 %v3336_v6, 0.0  ;;  %v15456_v12 = vpop.f32.mrb[174].mxu0 }
 0x244   : > { %v3351_v52 = vadd.f32 %v19068_v38, %v15456_v12  ;;  %v3345_v11 = vpop.f32.mrb[175].mxu0  ;;  %15614 = vmatmul.mubr.msk.f32.gmra.mrb[24].mxu0 %vm868_vm3, %v628_v26 }
 0x245   : > { %v3346_v57 = vadd.f32 %v19068_v38, %v3345_v11  ;;  %16227 = vmatprep.mubr.msk.f32.mxu1 %vm5549_vm4, %v5206_v1  ;;  %15616 = vmatprep.mubr.msk.f32.mxu0 %vm868_vm3, %v629_v25  ;;  %v632_v25 = vld [vmem:[%s17973_s22 + $0x8e8] sm:$0xff]  ;;  %v633_v1 = vld [vmem:[%s17973_s22 + $0x8f0] sm:$0xff] }
 0x246   : > { %16228 = vmatmul.mubr.msk.f32.gmra.mrb[92].mxu1 %vm5549_vm4, %v5207_v24  ;;  %v5209_v61 = vmax.f32 %v3351_v52, 0.0 }
 0x247   : > { %v5208_v8 = vmax.f32 %v3346_v57, 0.0  ;;  %v15459_v49 = vpop.f32.mrb[176].mxu0 }
 0x248   : > { %v3361_v40 = vadd.f32 %v19068_v38, %v15459_v49  ;;  %v3355_v6 = vpop.f32.mrb[177].mxu0  ;;  %15617 = vmatmul.mubr.msk.f32.gmra.mrb[26].mxu0 %vm868_vm3, %v630_v41 }
 0x249   : > { %v3356_v26 = vadd.f32 %v19068_v38, %v3355_v6  ;;  %16230 = vmatprep.mubr.msk.f32.mxu1 %vm5549_vm4, %v5208_v8  ;;  %15619 = vmatprep.mubr.msk.f32.mxu0 %vm868_vm3, %v631_v46  ;;  %v634_v46 = vld [vmem:[%s17973_s22 + $0x8f8] sm:$0xff]  ;;  %v635_v8 = vld [vmem:[%s17973_s22 + $0x900] sm:$0xff] }
 0x24a   : > { %16231 = vmatmul.mubr.msk.f32.gmra.mrb[94].mxu1 %vm5549_vm4, %v5209_v61  ;;  %v5211_v52 = vmax.f32 %v3361_v40, 0.0 }
 0x24b   : > { %v5210_v12 = vmax.f32 %v3356_v26, 0.0  ;;  %v15462_v24 = vpop.f32.mrb[178].mxu0 }
 0x24c   : > { %v3371_v11 = vadd.f32 %v19068_v38, %v15462_v24  ;;  %v3365_v57 = vpop.f32.mrb[179].mxu0  ;;  %15620 = vmatmul.mubr.msk.f32.gmra.mrb[28].mxu0 %vm868_vm3, %v632_v25 }
 0x24d   : > { %v3366_v41 = vadd.f32 %v19068_v38, %v3365_v57  ;;  %16233 = vmatprep.mubr.msk.f32.mxu1 %vm5549_vm4, %v5210_v12  ;;  %15622 = vmatprep.mubr.msk.f32.mxu0 %vm868_vm3, %v633_v1  ;;  %v636_v1 = vld [vmem:[%s17973_s22 + $0x908] sm:$0xff]  ;;  %v637_v12 = vld [vmem:[%s17973_s22 + $0x910] sm:$0xff] }
 0x24e   : > { %16234 = vmatmul.mubr.msk.f32.gmra.mrb[96].mxu1 %vm5549_vm4, %v5211_v52  ;;  %v5213_v40 = vmax.f32 %v3371_v11, 0.0 }
 0x24f   : > { %v5212_v49 = vmax.f32 %v3366_v41, 0.0  ;;  %v15465_v61 = vpop.f32.mrb[180].mxu0 }
 0x250   : > { %v3381_v6 = vadd.f32 %v19068_v38, %v15465_v61  ;;  %v3375_v26 = vpop.f32.mrb[181].mxu0  ;;  %15623 = vmatmul.mubr.msk.f32.gmra.mrb[30].mxu0 %vm868_vm3, %v634_v46 }
 0x251   : > { %v3376_v25 = vadd.f32 %v19068_v38, %v3375_v26  ;;  %16236 = vmatprep.mubr.msk.f32.mxu1 %vm5549_vm4, %v5212_v49  ;;  %15625 = vmatprep.mubr.msk.f32.mxu0 %vm868_vm3, %v635_v8  ;;  %v638_v8 = vld [vmem:[%s17973_s22 + $0x918] sm:$0xff]  ;;  %v639_v49 = vld [vmem:[%s17973_s22 + $0x920] sm:$0xff] }
 0x252   : > { %16237 = vmatmul.mubr.msk.f32.gmra.mrb[98].mxu1 %vm5549_vm4, %v5213_v40  ;;  %v5215_v11 = vmax.f32 %v3381_v6, 0.0 }
 0x253   : > { %v5214_v24 = vmax.f32 %v3376_v25, 0.0  ;;  %v15468_v52 = vpop.f32.mrb[182].mxu0 }
 0x254   : > { %v3391_v57 = vadd.f32 %v19068_v38, %v15468_v52  ;;  %v3385_v41 = vpop.f32.mrb[183].mxu0  ;;  %15626 = vmatmul.mubr.msk.f32.gmra.mrb[32].mxu0 %vm868_vm3, %v636_v1 }
 0x255   : > { %v3386_v46 = vadd.f32 %v19068_v38, %v3385_v41  ;;  %16239 = vmatprep.mubr.msk.f32.mxu1 %vm5549_vm4, %v5214_v24  ;;  %15628 = vmatprep.mubr.msk.f32.mxu0 %vm868_vm3, %v637_v12  ;;  %v640_v12 = vld [vmem:[%s17973_s22 + $0x928] sm:$0xff]  ;;  %v641_v24 = vld [vmem:[%s17973_s22 + $0x930] sm:$0xff] }
 0x256   : > { %16240 = vmatmul.mubr.msk.f32.gmra.mrb[100].mxu1 %vm5549_vm4, %v5215_v11  ;;  %v5217_v6 = vmax.f32 %v3391_v57, 0.0 }
 0x257   : > { %v5216_v61 = vmax.f32 %v3386_v46, 0.0  ;;  %v15471_v40 = vpop.f32.mrb[184].mxu0 }
 0x258   : > { %v3401_v26 = vadd.f32 %v19068_v38, %v15471_v40  ;;  %v3395_v25 = vpop.f32.mrb[185].mxu0  ;;  %15629 = vmatmul.mubr.msk.f32.gmra.mrb[34].mxu0 %vm868_vm3, %v638_v8 }
 0x259   : > { %v3396_v1 = vadd.f32 %v19068_v38, %v3395_v25  ;;  %16242 = vmatprep.mubr.msk.f32.mxu1 %vm5549_vm4, %v5216_v61  ;;  %15631 = vmatprep.mubr.msk.f32.mxu0 %vm868_vm3, %v639_v49  ;;  %v642_v49 = vld [vmem:[%s17973_s22 + $0x938] sm:$0xff]  ;;  %v643_v61 = vld [vmem:[%s17973_s22 + $0x940] sm:$0xff] }
 0x25a   : > { %16243 = vmatmul.mubr.msk.f32.gmra.mrb[102].mxu1 %vm5549_vm4, %v5217_v6  ;;  %v5219_v57 = vmax.f32 %v3401_v26, 0.0 }
 0x25b   : > { %v5218_v52 = vmax.f32 %v3396_v1, 0.0  ;;  %v15474_v11 = vpop.f32.mrb[186].mxu0 }
 0x25c   : > { %v3411_v41 = vadd.f32 %v19068_v38, %v15474_v11  ;;  %v3405_v46 = vpop.f32.mrb[187].mxu0  ;;  %15632 = vmatmul.mubr.msk.f32.gmra.mrb[36].mxu0 %vm868_vm3, %v640_v12 }
 0x25d   : > { %v3406_v8 = vadd.f32 %v19068_v38, %v3405_v46  ;;  %16245 = vmatprep.mubr.msk.f32.mxu1 %vm5549_vm4, %v5218_v52  ;;  %15634 = vmatprep.mubr.msk.f32.mxu0 %vm868_vm3, %v641_v24  ;;  %v644_v24 = vld [vmem:[%s17973_s22 + $0x948] sm:$0xff]  ;;  %v645_v52 = vld [vmem:[%s17973_s22 + $0x950] sm:$0xff] }
 0x25e   : > { %16246 = vmatmul.mubr.msk.f32.gmra.mrb[104].mxu1 %vm5549_vm4, %v5219_v57  ;;  %v5221_v26 = vmax.f32 %v3411_v41, 0.0 }
 0x25f   : > { %v5220_v40 = vmax.f32 %v3406_v8, 0.0  ;;  %v15477_v6 = vpop.f32.mrb[188].mxu0 }
 0x260   : > { %v3421_v25 = vadd.f32 %v19068_v38, %v15477_v6  ;;  %v3415_v1 = vpop.f32.mrb[189].mxu0  ;;  %15635 = vmatmul.mubr.msk.f32.gmra.mrb[38].mxu0 %vm868_vm3, %v642_v49 }
 0x261   : > { %v3416_v12 = vadd.f32 %v19068_v38, %v3415_v1  ;;  %16248 = vmatprep.mubr.msk.f32.mxu1 %vm5549_vm4, %v5220_v40  ;;  %15637 = vmatprep.mubr.msk.f32.mxu0 %vm868_vm3, %v643_v61  ;;  %v646_v61 = vld [vmem:[%s17973_s22 + $0x958] sm:$0xff]  ;;  %v647_v40 = vld [vmem:[%s17973_s22 + $0x960] sm:$0xff] }
 0x262   : > { %16249 = vmatmul.mubr.msk.f32.gmra.mrb[106].mxu1 %vm5549_vm4, %v5221_v26  ;;  %v5223_v41 = vmax.f32 %v3421_v25, 0.0 }
 0x263   : > { %v5222_v11 = vmax.f32 %v3416_v12, 0.0  ;;  %v15480_v57 = vpop.f32.mrb[190].mxu0 }
 0x264   : > { %v3431_v46 = vadd.f32 %v19068_v38, %v15480_v57  ;;  %v3425_v8 = vpop.f32.mrb[191].mxu0  ;;  %15638 = vmatmul.mubr.msk.f32.gmra.mrb[40].mxu0 %vm868_vm3, %v644_v24 }
 0x265   : > { %v3426_v49 = vadd.f32 %v19068_v38, %v3425_v8  ;;  %16251 = vmatprep.mubr.msk.f32.mxu1 %vm5549_vm4, %v5222_v11  ;;  %15640 = vmatprep.mubr.msk.f32.mxu0 %vm868_vm3, %v645_v52  ;;  %v648_v52 = vld [vmem:[%s17973_s22 + $0x968] sm:$0xff]  ;;  %v649_v11 = vld [vmem:[%s17973_s22 + $0x970] sm:$0xff] }
 0x266   : > { %16252 = vmatmul.mubr.msk.f32.gmra.mrb[108].mxu1 %vm5549_vm4, %v5223_v41  ;;  %v5225_v25 = vmax.f32 %v3431_v46, 0.0 }
 0x267   : > { %v5224_v6 = vmax.f32 %v3426_v49, 0.0  ;;  %v15483_v26 = vpop.f32.mrb[192].mxu0 }
 0x268   : > { %v3441_v1 = vadd.f32 %v19068_v38, %v15483_v26  ;;  %v3435_v12 = vpop.f32.mrb[193].mxu0  ;;  %15641 = vmatmul.mubr.msk.f32.gmra.mrb[42].mxu0 %vm868_vm3, %v646_v61 }
 0x269   : > { %v3436_v24 = vadd.f32 %v19068_v38, %v3435_v12  ;;  %16254 = vmatprep.mubr.msk.f32.mxu1 %vm5549_vm4, %v5224_v6  ;;  %15643 = vmatprep.mubr.msk.f32.mxu0 %vm868_vm3, %v647_v40  ;;  %v650_v40 = vld [vmem:[%s17973_s22 + $0x978] sm:$0xff]  ;;  %v651_v6 = vld [vmem:[%s17973_s22 + $0x980] sm:$0xff] }
 0x26a   : > { %16255 = vmatmul.mubr.msk.f32.gmra.mrb[110].mxu1 %vm5549_vm4, %v5225_v25  ;;  %v5227_v46 = vmax.f32 %v3441_v1, 0.0  ;;  %v13615_v1 = vld [vmem:[%s20733_s3 + $0x30] sm:$0xff]  ;;  %v13616_v12 = vld [vmem:[%s20733_s3 + $0x38] sm:$0xff] }
 0x26b   : > { %v5226_v57 = vmax.f32 %v3436_v24, 0.0  ;;  %v15486_v41 = vpop.f32.mrb[194].mxu0 }
 0x26c   : > { %v3451_v8 = vadd.f32 %v19068_v38, %v15486_v41  ;;  %v3445_v49 = vpop.f32.mrb[195].mxu0  ;;  %15644 = vmatmul.mubr.msk.f32.gmra.mrb[44].mxu0 %vm868_vm3, %v648_v52 }
 0x26d   : > { %v3446_v61 = vadd.f32 %v19068_v38, %v3445_v49  ;;  %16257 = vmatprep.mubr.msk.f32.mxu1 %vm5549_vm4, %v5226_v57  ;;  %15646 = vmatprep.mubr.msk.f32.mxu0 %vm868_vm3, %v649_v11  ;;  %v19214_v57 = vpack.c.bf16 %v13616_v12, %v13615_v1  ;;  %v653_v49 = vld [vmem:[%s17973_s22 + $0x990] sm:$0xff]  ;;  %v655_v12 = vld [vmem:[%s17973_s22 + $0x9a0] sm:$0xff] }
 0x26e   : > { %16258 = vmatmul.mubr.msk.f32.gmra.mrb[112].mxu1 %vm5549_vm4, %v5227_v46  ;;  %v5229_v24 = vmax.f32 %v3451_v8, 0.0  ;;  %v652_v46 = vld [vmem:[%s17973_s22 + $0x988] sm:$0xff] }
 0x26f   : > { %v5228_v26 = vmax.f32 %v3446_v61, 0.0  ;;  %v15489_v25 = vpop.f32.mrb[196].mxu0  ;;  %17100 = vmatprep.subr.bf16.mxu1 %v19214_v57 }
 0x270   : > { %v3461_v52 = vadd.f32 %v19068_v38, %v15489_v25  ;;  %v3455_v11 = vpop.f32.mrb[197].mxu0  ;;  %15647 = vmatmul.mubr.msk.f32.gmra.mrb[46].mxu0 %vm868_vm3, %v650_v40 }
 0x271   : > { %v3456_v41 = vadd.f32 %v19068_v38, %v3455_v11  ;;  %16260 = vmatprep.mubr.msk.f32.mxu1 %vm5549_vm4, %v5228_v26  ;;  %15649 = vmatprep.mubr.msk.f32.mxu0 %vm868_vm3, %v651_v6  ;;  %v654_v6 = vld [vmem:[%s17973_s22 + $0x998] sm:$0xff] }
 0x272   : > { %16261 = vmatmul.mubr.msk.f32.gmra.mrb[114].mxu1 %vm5549_vm4, %v5229_v24  ;;  %v5231_v25 = vmax.f32 %v3461_v52, 0.0 }
 0x273   : > { %v5230_v8 = vmax.f32 %v3456_v41, 0.0  ;;  %v15492_v61 = vpop.f32.mrb[198].mxu0 }
 0x274   : > { %v3471_v40 = vadd.f32 %v19068_v38, %v15492_v61  ;;  %v3465_v1 = vpop.f32.mrb[199].mxu0  ;;  %15650 = vmatmul.mubr.msk.f32.gmra.mrb[48].mxu0 %vm868_vm3, %v652_v46 }
 0x275   : > { %v3466_v26 = vadd.f32 %v19068_v38, %v3465_v1  ;;  %16263 = vmatprep.mubr.msk.f32.mxu1 %vm5549_vm4, %v5230_v8  ;;  %15652 = vmatprep.mubr.msk.f32.mxu0 %vm868_vm3, %v653_v49  ;;  %v656_v49 = vld [vmem:[%s17973_s22 + $0x9a8] sm:$0xff]  ;;  %v657_v8 = vld [vmem:[%s17973_s22 + $0x9b0] sm:$0xff] }
 0x276   : > { %16264 = vmatmul.mubr.msk.f32.gmra.mrb[116].mxu1 %vm5549_vm4, %v5231_v25  ;;  %v5233_v52 = vmax.f32 %v3471_v40, 0.0  ;;  %v10564_v25 = vld [vmem:[%s20735_s5 + $0x10] sm:$0xff]  ;;  %v10565_v40 = vld [vmem:[%s20735_s5 + $0x18] sm:$0xff] }
 0x277   : > { %v5232_v24 = vmax.f32 %v3466_v26, 0.0  ;;  %v15495_v11 = vpop.f32.mrb[200].mxu0 }
 0x278   : > { %v3481_v41 = vadd.f32 %v19068_v38, %v15495_v11  ;;  %v3475_v61 = vpop.f32.mrb[201].mxu0  ;;  %15653 = vmatmul.mubr.msk.f32.gmra.mrb[50].mxu0 %vm868_vm3, %v654_v6  ;;  %v17107_v6 = vpack.c.bf16 %v10565_v40, %v10564_v25 }
 0x279   : > { %v3476_v46 = vadd.f32 %v19068_v38, %v3475_v61  ;;  %16266 = vmatprep.mubr.msk.f32.mxu1 %vm5549_vm4, %v5232_v24  ;;  %15655 = vmatprep.mubr.msk.f32.mxu0 %vm868_vm3, %v655_v12  ;;  %v658_v61 = vld [vmem:[%s17973_s22 + $0x9b8] sm:$0xff] }
 0x27a   : > { %16267 = vmatmul.mubr.msk.f32.gmra.mrb[118].mxu1 %vm5549_vm4, %v5233_v52  ;;  %v5235_v24 = vmax.f32 %v3481_v41, 0.0  ;;  %17108 = vmatprep.subr.bf16.mxu0 %v17107_v6 }
 0x27b   : > { %v5234_v1 = vmax.f32 %v3476_v46, 0.0  ;;  %v15498_v26 = vpop.f32.mrb[202].mxu0  ;;  %v659_v46 = vld [vmem:[%s17973_s22 + $0x9c0] sm:$0xff]  ;;  %17110 = vmatpush3.bf16.msra.mxu0 %v17107_v6 }
 0x27c   : > { %v3491_v12 = vadd.f32 %v19068_v38, %v15498_v26  ;;  %v3485_v11 = vpop.f32.mrb[203].mxu0  ;;  %15656 = vmatmul.mubr.msk.f32.gmra.mrb[52].mxu0 %vm868_vm3, %v656_v49 }
 0x27d   : > { %v3486_v52 = vadd.f32 %v19068_v38, %v3485_v11  ;;  %16269 = vmatprep.mubr.msk.f32.mxu1 %vm5549_vm4, %v5234_v1  ;;  %15658 = vmatprep.mubr.msk.f32.mxu0 %vm868_vm3, %v657_v8  ;;  %v660_v8 = vld [vmem:[%s17973_s22 + $0x9c8] sm:$0xff] }
 0x27e   : > { %16270 = vmatmul.mubr.msk.f32.gmra.mrb[120].mxu1 %vm5549_vm4, %v5235_v24  ;;  %v5237_v40 = vmax.f32 %v3491_v12, 0.0  ;;  %v661_v24 = vld [vmem:[%s17973_s22 + $0x9d0] sm:$0xff] }
 0x27f   : > { %v5236_v25 = vmax.f32 %v3486_v52, 0.0  ;;  %v15501_v41 = vpop.f32.mrb[204].mxu0 }
 0x280   : > { %v3501_v26 = vadd.f32 %v19068_v38, %v15501_v41  ;;  %v3495_v49 = vpop.f32.mrb[205].mxu0  ;;  %15659 = vmatmul.mubr.msk.f32.gmra.mrb[54].mxu0 %vm868_vm3, %v658_v61 }
 0x281   : > { %v3496_v1 = vadd.f32 %v19068_v38, %v3495_v49  ;;  %16272 = vmatprep.mubr.msk.f32.mxu1 %vm5549_vm4, %v5236_v25  ;;  %15661 = vmatprep.mubr.msk.f32.mxu0 %vm868_vm3, %v659_v46  ;;  %v662_v46 = vld [vmem:[%s17973_s22 + $0x9d8] sm:$0xff]  ;;  %v663_v25 = vld [vmem:[%s17973_s22 + $0x9e0] sm:$0xff] }
 0x282   : > { %16273 = vmatmul.mubr.msk.f32.gmra.mrb[122].mxu1 %vm5549_vm4, %v5237_v40  ;;  %v5239_v12 = vmax.f32 %v3501_v26, 0.0 }
 0x283   : > { %v5238_v11 = vmax.f32 %v3496_v1, 0.0  ;;  %v15504_v6 = vpop.f32.mrb[206].mxu0 }
 0x284   : > { %v3511_v52 = vadd.f32 %v19068_v38, %v15504_v6  ;;  %v3505_v41 = vpop.f32.mrb[207].mxu0  ;;  %15662 = vmatmul.mubr.msk.f32.gmra.mrb[56].mxu0 %vm868_vm3, %v660_v8  ;;  %v665_v6 = vld [vmem:[%s17973_s22 + $0x9f0] sm:$0xff] }
 0x285   : > { %v3506_v61 = vadd.f32 %v19068_v38, %v3505_v41  ;;  %16275 = vmatprep.mubr.msk.f32.mxu1 %vm5549_vm4, %v5238_v11  ;;  %15664 = vmatprep.mubr.msk.f32.mxu0 %vm868_vm3, %v661_v24  ;;  %v664_v11 = vld [vmem:[%s17973_s22 + $0x9e8] sm:$0xff] }
 0x286   : > { %16276 = vmatmul.mubr.msk.f32.gmra.mrb[124].mxu1 %vm5549_vm4, %v5239_v12  ;;  %v5241_v26 = vmax.f32 %v3511_v52, 0.0 }
 0x287   : > { %v5240_v40 = vmax.f32 %v3506_v61, 0.0  ;;  %v15507_v49 = vpop.f32.mrb[208].mxu0 }
 0x288   : > { %v3515_v1 = vpop.f32.mrb[209].mxu0  ;;  %15665 = vmatmul.mubr.msk.f32.gmra.mrb[58].mxu0 %vm868_vm3, %v662_v46  ;;  %v3521_v8 = vadd.f32 %v19068_v38, %v15507_v49  ;;  %v667_v49 = vld [vmem:[%s17973_s22 + $0xa00] sm:$0xff] }
 0x289   : > { %16278 = vmatprep.mubr.msk.f32.mxu1 %vm5549_vm4, %v5240_v40  ;;  %15667 = vmatprep.mubr.msk.f32.mxu0 %vm868_vm3, %v663_v25  ;;  %v3516_v24 = vadd.f32 %v19068_v38, %v3515_v1  ;;  %v666_v25 = vld [vmem:[%s17973_s22 + $0x9f8] sm:$0xff] }
 0x28a   : > { %16279 = vmatmul.mubr.msk.f32.gmra.mrb[126].mxu1 %vm5549_vm4, %v5241_v26  ;;  %v5243_v61 = vmax.f32 %v3521_v8, 0.0 }
 0x28b   : > { %v15510_v12 = vpop.f32.mrb[210].mxu0  ;;  %v5242_v41 = vmax.f32 %v3516_v24, 0.0 }
 0x28c   : > { %v3525_v52 = vpop.f32.mrb[211].mxu0  ;;  %15668 = vmatmul.mubr.msk.f32.gmra.mrb[60].mxu0 %vm868_vm3, %v664_v11  ;;  %v3531_v46 = vadd.f32 %v19068_v38, %v15510_v12 }
 0x28d   : > { %16281 = vmatprep.mubr.msk.f32.mxu1 %vm5549_vm4, %v5242_v41  ;;  %15670 = vmatprep.mubr.msk.f32.mxu0 %vm868_vm3, %v665_v6  ;;  %v3526_v40 = vadd.f32 %v19068_v38, %v3525_v52  ;;  %v668_v6 = vld [vmem:[%s17973_s22 + $0xa08] sm:$0xff]  ;;  %v669_v41 = vld [vmem:[%s17973_s22 + $0xa10] sm:$0xff] }
 0x28e   : > { %16282 = vmatmul.mubr.msk.f32.gmra.mrb[128].mxu1 %vm5549_vm4, %v5243_v61  ;;  %v5245_v8 = vmax.f32 %v3531_v46, 0.0 }
 0x28f   : > { %v15513_v26 = vpop.f32.mrb[212].mxu0  ;;  %v5244_v1 = vmax.f32 %v3526_v40, 0.0 }
 0x290   : > { %v3535_v24 = vpop.f32.mrb[213].mxu0  ;;  %15671 = vmatmul.mubr.msk.f32.gmra.mrb[62].mxu0 %vm868_vm3, %v666_v25  ;;  %v3541_v11 = vadd.f32 %v19068_v38, %v15513_v26 }
 0x291   : > { %16284 = vmatprep.mubr.msk.f32.mxu1 %vm5549_vm4, %v5244_v1  ;;  %15673 = vmatprep.mubr.msk.f32.mxu0 %vm868_vm3, %v667_v49  ;;  %v3536_v12 = vadd.f32 %v19068_v38, %v3535_v24  ;;  %v670_v49 = vld [vmem:[%s17973_s22 + $0xa18] sm:$0xff]  ;;  %v671_v1 = vld [vmem:[%s17973_s22 + $0xa20] sm:$0xff] }
 0x292   : > { %16285 = vmatmul.mubr.msk.f32.gmra.mrb[130].mxu1 %vm5549_vm4, %v5245_v8  ;;  %v5247_v46 = vmax.f32 %v3541_v11, 0.0 }
 0x293   : > { %v15516_v52 = vpop.f32.mrb[214].mxu0  ;;  %v5246_v61 = vmax.f32 %v3536_v12, 0.0 }
 0x294   : > { %v3545_v40 = vpop.f32.mrb[215].mxu0  ;;  %15674 = vmatmul.mubr.msk.f32.gmra.mrb[64].mxu0 %vm868_vm3, %v668_v6  ;;  %v3551_v25 = vadd.f32 %v19068_v38, %v15516_v52 }
 0x295   : > { %16287 = vmatprep.mubr.msk.f32.mxu1 %vm5549_vm4, %v5246_v61  ;;  %15676 = vmatprep.mubr.msk.f32.mxu0 %vm868_vm3, %v669_v41  ;;  %v3546_v26 = vadd.f32 %v19068_v38, %v3545_v40  ;;  %v672_v41 = vld [vmem:[%s17973_s22 + $0xa28] sm:$0xff]  ;;  %v673_v61 = vld [vmem:[%s17973_s22 + $0xa30] sm:$0xff] }
 0x296   : > { %16288 = vmatmul.mubr.msk.f32.gmra.mrb[132].mxu1 %vm5549_vm4, %v5247_v46  ;;  %v5249_v11 = vmax.f32 %v3551_v25, 0.0 }
 0x297   : > { %v15519_v24 = vpop.f32.mrb[216].mxu0  ;;  %v5248_v8 = vmax.f32 %v3546_v26, 0.0 }
 0x298   : > { %v3555_v12 = vpop.f32.mrb[217].mxu0  ;;  %15677 = vmatmul.mubr.msk.f32.gmra.mrb[66].mxu0 %vm868_vm3, %v670_v49  ;;  %v3561_v6 = vadd.f32 %v19068_v38, %v15519_v24 }
 0x299   : > { %16290 = vmatprep.mubr.msk.f32.mxu1 %vm5549_vm4, %v5248_v8  ;;  %15679 = vmatprep.mubr.msk.f32.mxu0 %vm868_vm3, %v671_v1  ;;  %v3556_v52 = vadd.f32 %v19068_v38, %v3555_v12  ;;  %v674_v1 = vld [vmem:[%s17973_s22 + $0xa38] sm:$0xff]  ;;  %v675_v8 = vld [vmem:[%s17973_s22 + $0xa40] sm:$0xff] }
 0x29a   : > { %16291 = vmatmul.mubr.msk.f32.gmra.mrb[134].mxu1 %vm5549_vm4, %v5249_v11  ;;  %v5251_v25 = vmax.f32 %v3561_v6, 0.0 }
 0x29b   : > { %v15522_v40 = vpop.f32.mrb[218].mxu0  ;;  %v5250_v46 = vmax.f32 %v3556_v52, 0.0 }
 0x29c   : > { %v3565_v26 = vpop.f32.mrb[219].mxu0  ;;  %15680 = vmatmul.mubr.msk.f32.gmra.mrb[68].mxu0 %vm868_vm3, %v672_v41  ;;  %v3571_v49 = vadd.f32 %v19068_v38, %v15522_v40 }
 0x29d   : > { %16293 = vmatprep.mubr.msk.f32.mxu1 %vm5549_vm4, %v5250_v46  ;;  %15682 = vmatprep.mubr.msk.f32.mxu0 %vm868_vm3, %v673_v61  ;;  %v3566_v24 = vadd.f32 %v19068_v38, %v3565_v26  ;;  %v676_v61 = vld [vmem:[%s17973_s22 + $0xa48] sm:$0xff]  ;;  %v677_v46 = vld [vmem:[%s17973_s22 + $0xa50] sm:$0xff] }
 0x29e   : > { %16294 = vmatmul.mubr.msk.f32.gmra.mrb[136].mxu1 %vm5549_vm4, %v5251_v25  ;;  %v5253_v6 = vmax.f32 %v3571_v49, 0.0 }
 0x29f   : > { %v15525_v12 = vpop.f32.mrb[220].mxu0  ;;  %v5252_v11 = vmax.f32 %v3566_v24, 0.0 }
 0x2a0   : > { %v3575_v52 = vpop.f32.mrb[221].mxu0  ;;  %15683 = vmatmul.mubr.msk.f32.gmra.mrb[70].mxu0 %vm868_vm3, %v674_v1  ;;  %v3581_v41 = vadd.f32 %v19068_v38, %v15525_v12 }
 0x2a1   : > { %16296 = vmatprep.mubr.msk.f32.mxu1 %vm5549_vm4, %v5252_v11  ;;  %15685 = vmatprep.mubr.msk.f32.mxu0 %vm868_vm3, %v675_v8  ;;  %v3576_v40 = vadd.f32 %v19068_v38, %v3575_v52  ;;  %v678_v8 = vld [vmem:[%s17973_s22 + $0xa58] sm:$0xff]  ;;  %v679_v11 = vld [vmem:[%s17973_s22 + $0xa60] sm:$0xff] }
 0x2a2   : > { %16297 = vmatmul.mubr.msk.f32.gmra.mrb[138].mxu1 %vm5549_vm4, %v5253_v6  ;;  %v5255_v49 = vmax.f32 %v3581_v41, 0.0 }
 0x2a3   : > { %v15528_v26 = vpop.f32.mrb[222].mxu0  ;;  %v5254_v25 = vmax.f32 %v3576_v40, 0.0 }
 0x2a4   : > { %v3585_v24 = vpop.f32.mrb[223].mxu0  ;;  %15686 = vmatmul.mubr.msk.f32.gmra.mrb[72].mxu0 %vm868_vm3, %v676_v61  ;;  %v3591_v1 = vadd.f32 %v19068_v38, %v15528_v26 }
 0x2a5   : > { %16299 = vmatprep.mubr.msk.f32.mxu1 %vm5549_vm4, %v5254_v25  ;;  %15688 = vmatprep.mubr.msk.f32.mxu0 %vm868_vm3, %v677_v46  ;;  %v3586_v12 = vadd.f32 %v19068_v38, %v3585_v24  ;;  %v680_v46 = vld [vmem:[%s17973_s22 + $0xa68] sm:$0xff]  ;;  %v681_v25 = vld [vmem:[%s17973_s22 + $0xa70] sm:$0xff] }
 0x2a6   : > { %16300 = vmatmul.mubr.msk.f32.gmra.mrb[140].mxu1 %vm5549_vm4, %v5255_v49  ;;  %v5257_v41 = vmax.f32 %v3591_v1, 0.0 }
 0x2a7   : > { %v15531_v52 = vpop.f32.mrb[224].mxu0  ;;  %v5256_v6 = vmax.f32 %v3586_v12, 0.0 }
 0x2a8   : > { %v3595_v40 = vpop.f32.mrb[225].mxu0  ;;  %15689 = vmatmul.mubr.msk.f32.gmra.mrb[74].mxu0 %vm868_vm3, %v678_v8  ;;  %v3601_v61 = vadd.f32 %v19068_v38, %v15531_v52 }
 0x2a9   : > { %16302 = vmatprep.mubr.msk.f32.mxu1 %vm5549_vm4, %v5256_v6  ;;  %15691 = vmatprep.mubr.msk.f32.mxu0 %vm868_vm3, %v679_v11  ;;  %v3596_v26 = vadd.f32 %v19068_v38, %v3595_v40  ;;  %v682_v11 = vld [vmem:[%s17973_s22 + $0xa78] sm:$0xff]  ;;  %v683_v6 = vld [vmem:[%s17973_s22 + $0xa80] sm:$0xff] }
 0x2aa   : > { %16303 = vmatmul.mubr.msk.f32.gmra.mrb[142].mxu1 %vm5549_vm4, %v5257_v41  ;;  %v5259_v1 = vmax.f32 %v3601_v61, 0.0 }
 0x2ab   : > { %v15534_v24 = vpop.f32.mrb[226].mxu0  ;;  %v5258_v49 = vmax.f32 %v3596_v26, 0.0 }
 0x2ac   : > { %v3605_v12 = vpop.f32.mrb[227].mxu0  ;;  %15692 = vmatmul.mubr.msk.f32.gmra.mrb[76].mxu0 %vm868_vm3, %v680_v46  ;;  %v3611_v8 = vadd.f32 %v19068_v38, %v15534_v24 }
 0x2ad   : > { %16305 = vmatprep.mubr.msk.f32.mxu1 %vm5549_vm4, %v5258_v49  ;;  %15694 = vmatprep.mubr.msk.f32.mxu0 %vm868_vm3, %v681_v25  ;;  %v3606_v52 = vadd.f32 %v19068_v38, %v3605_v12  ;;  %v684_v25 = vld [vmem:[%s17973_s22 + $0xa88] sm:$0xff]  ;;  %v685_v49 = vld [vmem:[%s17973_s22 + $0xa90] sm:$0xff] }
 0x2ae   : > { %16306 = vmatmul.mubr.msk.f32.gmra.mrb[144].mxu1 %vm5549_vm4, %v5259_v1  ;;  %v5261_v61 = vmax.f32 %v3611_v8, 0.0 }
 0x2af   : > { %v15537_v40 = vpop.f32.mrb[228].mxu0  ;;  %v5260_v41 = vmax.f32 %v3606_v52, 0.0 }
 0x2b0   : > { %v3615_v26 = vpop.f32.mrb[229].mxu0  ;;  %15695 = vmatmul.mubr.msk.f32.gmra.mrb[78].mxu0 %vm868_vm3, %v682_v11  ;;  %v3621_v46 = vadd.f32 %v19068_v38, %v15537_v40 }
 0x2b1   : > { %16308 = vmatprep.mubr.msk.f32.mxu1 %vm5549_vm4, %v5260_v41  ;;  %15697 = vmatprep.mubr.msk.f32.mxu0 %vm868_vm3, %v683_v6  ;;  %v3616_v24 = vadd.f32 %v19068_v38, %v3615_v26  ;;  %v686_v6 = vld [vmem:[%s17973_s22 + $0xa98] sm:$0xff]  ;;  %v687_v41 = vld [vmem:[%s17973_s22 + $0xaa0] sm:$0xff] }
 0x2b2   : > { %16309 = vmatmul.mubr.msk.f32.gmra.mrb[146].mxu1 %vm5549_vm4, %v5261_v61  ;;  %v5263_v8 = vmax.f32 %v3621_v46, 0.0 }
 0x2b3   : > { %v15540_v12 = vpop.f32.mrb[230].mxu0  ;;  %v5262_v1 = vmax.f32 %v3616_v24, 0.0 }
 0x2b4   : > { %v3625_v52 = vpop.f32.mrb[231].mxu0  ;;  %15698 = vmatmul.mubr.msk.f32.gmra.mrb[80].mxu0 %vm868_vm3, %v684_v25  ;;  %v3631_v11 = vadd.f32 %v19068_v38, %v15540_v12 }
 0x2b5   : > { %16311 = vmatprep.mubr.msk.f32.mxu1 %vm5549_vm4, %v5262_v1  ;;  %15700 = vmatprep.mubr.msk.f32.mxu0 %vm868_vm3, %v685_v49  ;;  %v3626_v40 = vadd.f32 %v19068_v38, %v3625_v52  ;;  %v688_v49 = vld [vmem:[%s17973_s22 + $0xaa8] sm:$0xff]  ;;  %v689_v1 = vld [vmem:[%s17973_s22 + $0xab0] sm:$0xff] }
 0x2b6   : > { %16312 = vmatmul.mubr.msk.f32.gmra.mrb[148].mxu1 %vm5549_vm4, %v5263_v8  ;;  %v5265_v46 = vmax.f32 %v3631_v11, 0.0 }
 0x2b7   : > { %v15543_v26 = vpop.f32.mrb[232].mxu0  ;;  %v5264_v61 = vmax.f32 %v3626_v40, 0.0 }
 0x2b8   : > { %v3635_v24 = vpop.f32.mrb[233].mxu0  ;;  %15701 = vmatmul.mubr.msk.f32.gmra.mrb[82].mxu0 %vm868_vm3, %v686_v6  ;;  %v3641_v25 = vadd.f32 %v19068_v38, %v15543_v26 }
 0x2b9   : > { %16314 = vmatprep.mubr.msk.f32.mxu1 %vm5549_vm4, %v5264_v61  ;;  %15703 = vmatprep.mubr.msk.f32.mxu0 %vm868_vm3, %v687_v41  ;;  %v3636_v12 = vadd.f32 %v19068_v38, %v3635_v24  ;;  %v690_v41 = vld [vmem:[%s17973_s22 + $0xab8] sm:$0xff]  ;;  %v691_v61 = vld [vmem:[%s17973_s22 + $0xac0] sm:$0xff] }
 0x2ba   : > { %16315 = vmatmul.mubr.msk.f32.gmra.mrb[150].mxu1 %vm5549_vm4, %v5265_v46  ;;  %v5267_v11 = vmax.f32 %v3641_v25, 0.0 }
 0x2bb   : > { %v15546_v52 = vpop.f32.mrb[234].mxu0  ;;  %v5266_v8 = vmax.f32 %v3636_v12, 0.0 }
 0x2bc   : > { %v3645_v40 = vpop.f32.mrb[235].mxu0  ;;  %15704 = vmatmul.mubr.msk.f32.gmra.mrb[84].mxu0 %vm868_vm3, %v688_v49  ;;  %v3651_v6 = vadd.f32 %v19068_v38, %v15546_v52 }
 0x2bd   : > { %16317 = vmatprep.mubr.msk.f32.mxu1 %vm5549_vm4, %v5266_v8  ;;  %15706 = vmatprep.mubr.msk.f32.mxu0 %vm868_vm3, %v689_v1  ;;  %v3646_v26 = vadd.f32 %v19068_v38, %v3645_v40  ;;  %v692_v1 = vld [vmem:[%s17973_s22 + $0xac8] sm:$0xff]  ;;  %v693_v8 = vld [vmem:[%s17973_s22 + $0xad0] sm:$0xff] }
 0x2be   : > { %16318 = vmatmul.mubr.msk.f32.gmra.mrb[152].mxu1 %vm5549_vm4, %v5267_v11  ;;  %v5269_v25 = vmax.f32 %v3651_v6, 0.0 }
 0x2bf   : > { %v15549_v24 = vpop.f32.mrb[236].mxu0  ;;  %v5268_v46 = vmax.f32 %v3646_v26, 0.0 }
 0x2c0   : > { %v3655_v12 = vpop.f32.mrb[237].mxu0  ;;  %15707 = vmatmul.mubr.msk.f32.gmra.mrb[86].mxu0 %vm868_vm3, %v690_v41  ;;  %v3661_v49 = vadd.f32 %v19068_v38, %v15549_v24 }
 0x2c1   : > { %16320 = vmatprep.mubr.msk.f32.mxu1 %vm5549_vm4, %v5268_v46  ;;  %15709 = vmatprep.mubr.msk.f32.mxu0 %vm868_vm3, %v691_v61  ;;  %v3656_v52 = vadd.f32 %v19068_v38, %v3655_v12  ;;  %v694_v61 = vld [vmem:[%s17973_s22 + $0xad8] sm:$0xff]  ;;  %v695_v46 = vld [vmem:[%s17973_s22 + $0xae0] sm:$0xff] }
 0x2c2   : > { %16321 = vmatmul.mubr.msk.f32.gmra.mrb[154].mxu1 %vm5549_vm4, %v5269_v25  ;;  %v5271_v6 = vmax.f32 %v3661_v49, 0.0 }
 0x2c3   : > { %v15552_v40 = vpop.f32.mrb[238].mxu0  ;;  %v5270_v11 = vmax.f32 %v3656_v52, 0.0 }
 0x2c4   : > { %v3665_v26 = vpop.f32.mrb[239].mxu0  ;;  %15710 = vmatmul.mubr.msk.f32.gmra.mrb[88].mxu0 %vm868_vm3, %v692_v1  ;;  %v3671_v41 = vadd.f32 %v19068_v38, %v15552_v40 }
 0x2c5   : > { %16323 = vmatprep.mubr.msk.f32.mxu1 %vm5549_vm4, %v5270_v11  ;;  %15712 = vmatprep.mubr.msk.f32.mxu0 %vm868_vm3, %v693_v8  ;;  %v3666_v24 = vadd.f32 %v19068_v38, %v3665_v26  ;;  %v696_v8 = vld [vmem:[%s17973_s22 + $0xae8] sm:$0xff]  ;;  %v697_v11 = vld [vmem:[%s17973_s22 + $0xaf0] sm:$0xff] }
 0x2c6   : > { %16324 = vmatmul.mubr.msk.f32.gmra.mrb[156].mxu1 %vm5549_vm4, %v5271_v6  ;;  %v5273_v49 = vmax.f32 %v3671_v41, 0.0 }
 0x2c7   : > { %v15555_v12 = vpop.f32.mrb[240].mxu0  ;;  %v5272_v25 = vmax.f32 %v3666_v24, 0.0 }
 0x2c8   : > { %v3681_v52 = vadd.f32 %v19068_v38, %v15555_v12  ;;  %v3675_v1 = vpop.f32.mrb[241].mxu0  ;;  %15713 = vmatmul.mubr.msk.f32.gmra.mrb[90].mxu0 %vm868_vm3, %v694_v61  ;;  %v698_v61 = vld [vmem:[%s17973_s22 + $0xaf8] sm:$0xff] }
 0x2c9   : > { %v3676_v40 = vadd.f32 %v19068_v38, %v3675_v1  ;;  %16326 = vmatprep.mubr.msk.f32.mxu1 %vm5549_vm4, %v5272_v25  ;;  %15715 = vmatprep.mubr.msk.f32.mxu0 %vm868_vm3, %v695_v46  ;;  %v699_v46 = vld [vmem:[%s17973_s22 + $0xb00] sm:$0xff] }
 0x2ca   : > { %16327 = vmatmul.mubr.msk.f32.gmra.mrb[158].mxu1 %vm5549_vm4, %v5273_v49  ;;  %v5275_v24 = vmax.f32 %v3681_v52, 0.0 }
 0x2cb   : > { %v5274_v26 = vmax.f32 %v3676_v40, 0.0  ;;  %v15558_v6 = vpop.f32.mrb[242].mxu0 }
 0x2cc   : > { %v3691_v12 = vadd.f32 %v19068_v38, %v15558_v6  ;;  %v3685_v16 = vpop.f32.mrb[243].mxu0  ;;  %15716 = vmatmul.mubr.msk.f32.gmra.mrb[92].mxu0 %vm868_vm3, %v696_v8 }
 0x2cd   : > { %v3686_v41 = vadd.f32 %v19068_v38, %v3685_v16  ;;  %16329 = vmatprep.mubr.msk.f32.mxu1 %vm5549_vm4, %v5274_v26  ;;  %15718 = vmatprep.mubr.msk.f32.mxu0 %vm868_vm3, %v697_v11  ;;  %v700_v16 = vld [vmem:[%s17973_s22 + $0xb08] sm:$0xff]  ;;  %v701_v11 = vld [vmem:[%s17973_s22 + $0xb10] sm:$0xff] }
 0x2ce   : > { %16330 = vmatmul.mubr.msk.f32.gmra.mrb[160].mxu1 %vm5549_vm4, %v5275_v24  ;;  %v5277_v52 = vmax.f32 %v3691_v12, 0.0  ;;  %v19424_v12 = vld [vmem:[%s20732_s2] ss:$0 sm:$0xff] }
 0x2cf   : > { %v5276_v25 = vmax.f32 %v3686_v41, 0.0  ;;  %v15561_v1 = vpop.f32.mrb[244].mxu0 }
 0x2d0   : > { %v3701_v49 = vadd.f32 %v19068_v38, %v15561_v1  ;;  %v3695_v40 = vpop.f32.mrb[245].mxu0  ;;  %15719 = vmatmul.mubr.msk.f32.gmra.mrb[94].mxu0 %vm868_vm3, %v698_v61 }
 0x2d1   : > { %v3696_v8 = vadd.f32 %v19068_v38, %v3695_v40  ;;  %16332 = vmatprep.mubr.msk.f32.mxu1 %vm5549_vm4, %v5276_v25  ;;  %15721 = vmatprep.mubr.msk.f32.mxu0 %vm868_vm3, %v699_v46  ;;  %v702_v46 = vld [vmem:[%s17973_s22 + $0xb18] sm:$0xff]  ;;  %v703_v25 = vld [vmem:[%s17973_s22 + $0xb20] sm:$0xff] }
 0x2d2   : > { %16333 = vmatmul.mubr.msk.f32.gmra.mrb[162].mxu1 %vm5549_vm4, %v5277_v52  ;;  %v5279_v24 = vmax.f32 %v3701_v49, 0.0 }
 0x2d3   : > { %v5278_v26 = vmax.f32 %v3696_v8, 0.0  ;;  %v15564_v6 = vpop.f32.mrb[246].mxu0 }
 0x2d4   : > { %v3711_v38 = vadd.f32 %v19424_v12, %v15564_v6  ;;  %v3705_v41 = vpop.f32.mrb[247].mxu0  ;;  %15722 = vmatmul.mubr.msk.f32.gmra.mrb[96].mxu0 %vm868_vm3, %v700_v16 }
 0x2d5   : > { %v3706_v61 = vadd.f32 %v19424_v12, %v3705_v41  ;;  %16335 = vmatprep.mubr.msk.f32.mxu1 %vm5549_vm4, %v5278_v26  ;;  %15724 = vmatprep.mubr.msk.f32.mxu0 %vm868_vm3, %v701_v11  ;;  %v704_v11 = vld [vmem:[%s17973_s22 + $0xb28] sm:$0xff]  ;;  %v705_v26 = vld [vmem:[%s17973_s22 + $0xb30] sm:$0xff] }
 0x2d6   : > { %16336 = vmatmul.mubr.msk.f32.gmra.mrb[164].mxu1 %vm5549_vm4, %v5279_v24  ;;  %v5281_v49 = vmax.f32 %v3711_v38, 0.0 }
 0x2d7   : > { %v5280_v1 = vmax.f32 %v3706_v61, 0.0  ;;  %v15567_v52 = vpop.f32.mrb[248].mxu0 }
 0x2d8   : > { %v3721_v40 = vadd.f32 %v19424_v12, %v15567_v52  ;;  %v3715_v8 = vpop.f32.mrb[249].mxu0  ;;  %15725 = vmatmul.mubr.msk.f32.gmra.mrb[98].mxu0 %vm868_vm3, %v702_v46 }
 0x2d9   : > { %v3716_v16 = vadd.f32 %v19424_v12, %v3715_v8  ;;  %16338 = vmatprep.mubr.msk.f32.mxu1 %vm5549_vm4, %v5280_v1  ;;  %15727 = vmatprep.mubr.msk.f32.mxu0 %vm868_vm3, %v703_v25  ;;  %v706_v25 = vld [vmem:[%s17973_s22 + $0xb38] sm:$0xff]  ;;  %v707_v1 = vld [vmem:[%s17973_s22 + $0xb40] sm:$0xff] }
 0x2da   : > { %16339 = vmatmul.mubr.msk.f32.gmra.mrb[166].mxu1 %vm5549_vm4, %v5281_v49  ;;  %v5283_v38 = vmax.f32 %v3721_v40, 0.0 }
 0x2db   : > { %v5282_v6 = vmax.f32 %v3716_v16, 0.0  ;;  %v15570_v24 = vpop.f32.mrb[250].mxu0 }
 0x2dc   : > { %v3731_v41 = vadd.f32 %v19424_v12, %v15570_v24  ;;  %v3725_v61 = vpop.f32.mrb[251].mxu0  ;;  %15728 = vmatmul.mubr.msk.f32.gmra.mrb[100].mxu0 %vm868_vm3, %v704_v11 }
 0x2dd   : > { %v3726_v46 = vadd.f32 %v19424_v12, %v3725_v61  ;;  %16341 = vmatprep.mubr.msk.f32.mxu1 %vm5549_vm4, %v5282_v6  ;;  %15730 = vmatprep.mubr.msk.f32.mxu0 %vm868_vm3, %v705_v26  ;;  %v708_v26 = vld [vmem:[%s17973_s22 + $0xb48] sm:$0xff]  ;;  %v709_v6 = vld [vmem:[%s17973_s22 + $0xb50] sm:$0xff] }
 0x2de   : > { %16342 = vmatmul.mubr.msk.f32.gmra.mrb[168].mxu1 %vm5549_vm4, %v5283_v38  ;;  %v5285_v40 = vmax.f32 %v3731_v41, 0.0 }
 0x2df   : > { %v5284_v52 = vmax.f32 %v3726_v46, 0.0  ;;  %v15573_v49 = vpop.f32.mrb[252].mxu0 }
 0x2e0   : > { %v3741_v8 = vadd.f32 %v19424_v12, %v15573_v49  ;;  %v3735_v16 = vpop.f32.mrb[253].mxu0  ;;  %15731 = vmatmul.mubr.msk.f32.gmra.mrb[102].mxu0 %vm868_vm3, %v706_v25 }
 0x2e1   : > { %v3736_v11 = vadd.f32 %v19424_v12, %v3735_v16  ;;  %16344 = vmatprep.mubr.msk.f32.mxu1 %vm5549_vm4, %v5284_v52  ;;  %15733 = vmatprep.mubr.msk.f32.mxu0 %vm868_vm3, %v707_v1  ;;  %v710_v1 = vld [vmem:[%s17973_s22 + $0xb58] sm:$0xff]  ;;  %v711_v52 = vld [vmem:[%s17973_s22 + $0xb60] sm:$0xff] }
 0x2e2   : > { %16345 = vmatmul.mubr.msk.f32.gmra.mrb[170].mxu1 %vm5549_vm4, %v5285_v40  ;;  %v5287_v41 = vmax.f32 %v3741_v8, 0.0 }
 0x2e3   : > { %v5286_v24 = vmax.f32 %v3736_v11, 0.0  ;;  %v15576_v38 = vpop.f32.mrb[254].mxu0 }
 0x2e4   : > { %v3751_v61 = vadd.f32 %v19424_v12, %v15576_v38  ;;  %v3745_v46 = vpop.f32.mrb[255].mxu0  ;;  %15734 = vmatmul.mubr.msk.f32.gmra.mrb[104].mxu0 %vm868_vm3, %v708_v26 }
 0x2e5   : > { %v3746_v25 = vadd.f32 %v19424_v12, %v3745_v46  ;;  %16347 = vmatprep.mubr.msk.f32.mxu1 %vm5549_vm4, %v5286_v24  ;;  %15736 = vmatprep.mubr.msk.f32.mxu0 %vm868_vm3, %v709_v6  ;;  %v712_v6 = vld [vmem:[%s17973_s22 + $0xb68] sm:$0xff]  ;;  %v713_v24 = vld [vmem:[%s17973_s22 + $0xb70] sm:$0xff] }
 0x2e6   : > { %16348 = vmatmul.mubr.msk.f32.gmra.mrb[172].mxu1 %vm5549_vm4, %v5287_v41  ;;  %v5289_v8 = vmax.f32 %v3751_v61, 0.0 }
 0x2e7   : > { %v5288_v49 = vmax.f32 %v3746_v25, 0.0  ;;  %v15579_v40 = vpop.f32.mrb[0].mxu0 }
 0x2e8   : > { %v3761_v16 = vadd.f32 %v19424_v12, %v15579_v40  ;;  %v3755_v11 = vpop.f32.mrb[1].mxu0  ;;  %15737 = vmatmul.mubr.msk.f32.gmra.mrb[106].mxu0 %vm868_vm3, %v710_v1 }
 0x2e9   : > { %v3756_v26 = vadd.f32 %v19424_v12, %v3755_v11  ;;  %16350 = vmatprep.mubr.msk.f32.mxu1 %vm5549_vm4, %v5288_v49  ;;  %15739 = vmatprep.mubr.msk.f32.mxu0 %vm868_vm3, %v711_v52  ;;  %v714_v52 = vld [vmem:[%s17973_s22 + $0xb78] sm:$0xff]  ;;  %v715_v49 = vld [vmem:[%s17973_s22 + $0xb80] sm:$0xff] }
 0x2ea   : > { %16351 = vmatmul.mubr.msk.f32.gmra.mrb[174].mxu1 %vm5549_vm4, %v5289_v8  ;;  %v5291_v61 = vmax.f32 %v3761_v16, 0.0 }
 0x2eb   : > { %v5290_v38 = vmax.f32 %v3756_v26, 0.0  ;;  %v15582_v41 = vpop.f32.mrb[2].mxu0 }
 0x2ec   : > { %v3771_v46 = vadd.f32 %v19424_v12, %v15582_v41  ;;  %v3765_v25 = vpop.f32.mrb[3].mxu0  ;;  %15740 = vmatmul.mubr.msk.f32.gmra.mrb[108].mxu0 %vm868_vm3, %v712_v6 }
 0x2ed   : > { %v3766_v1 = vadd.f32 %v19424_v12, %v3765_v25  ;;  %16357 = vmatprep.mubr.msk.f32.mxu1 %vm5549_vm4, %v5290_v38  ;;  %15742 = vmatprep.mubr.msk.f32.mxu0 %vm868_vm3, %v713_v24  ;;  %v716_v24 = vld [vmem:[%s17973_s22 + $0xb88] sm:$0xff]  ;;  %v717_v38 = vld [vmem:[%s17973_s22 + $0xb90] sm:$0xff] }
 0x2ee   : > { %16358 = vmatmul.mubr.msk.f32.vlgmr.msra.gmra.mrb[48].mxu1 %vm5549_vm4, %v5291_v61  ;;  %v5293_v16 = vmax.f32 %v3771_v46, 0.0 }
 0x2ef   : > { %v5292_v40 = vmax.f32 %v3766_v1, 0.0  ;;  %17102 = vmatpush3.bf16.msra.mxu1 %v19214_v57  ;;  %v15585_v8 = vpop.f32.mrb[4].mxu0 }
 0x2f0   : > { %v3781_v11 = vadd.f32 %v19424_v12, %v15585_v8  ;;  %v3775_v26 = vpop.f32.mrb[5].mxu0  ;;  %15743 = vmatmul.mubr.msk.f32.gmra.mrb[110].mxu0 %vm868_vm3, %v714_v52  ;;  %v718_v52 = vld [vmem:[%s17973_s22 + $0xb98] sm:$0xff] }
 0x2f1   : > { %v3776_v6 = vadd.f32 %v19424_v12, %v3775_v26  ;;  %16360 = vmatprep.mubr.msk.f32.mxu1 %vm5549_vm4, %v5292_v40  ;;  %15745 = vmatprep.mubr.msk.f32.mxu0 %vm868_vm3, %v715_v49  ;;  %v719_v49 = vld [vmem:[%s17973_s22 + $0xba0] sm:$0xff] }
 0x2f2   : > { %16361 = vmatmul.mubr.msk.f32.gmra.mrb[50].mxu1 %vm5549_vm4, %v5293_v16  ;;  %v5295_v61 = vmax.f32 %v3781_v11, 0.0 }
 0x2f3   : > { %v5294_v57 = vmax.f32 %v3776_v6, 0.0  ;;  %v15588_v41 = vpop.f32.mrb[6].mxu0 }
 0x2f4   : > { %v3791_v46 = vadd.f32 %v19424_v12, %v15588_v41  ;;  %v3785_v25 = vpop.f32.mrb[7].mxu0  ;;  %15746 = vmatmul.mubr.msk.f32.gmra.mrb[112].mxu0 %vm868_vm3, %v716_v24  ;;  %v720_v24 = vld [vmem:[%s17973_s22 + $0xba8] sm:$0xff] }
 0x2f5   : > { %v3786_v1 = vadd.f32 %v19424_v12, %v3785_v25  ;;  %16363 = vmatprep.mubr.msk.f32.mxu1 %vm5549_vm4, %v5294_v57  ;;  %15748 = vmatprep.mubr.msk.f32.mxu0 %vm868_vm3, %v717_v38  ;;  %v721_v38 = vld [vmem:[%s17973_s22 + $0xbb0] sm:$0xff] }
 0x2f6   : > { %16364 = vmatmul.mubr.msk.f32.gmra.mrb[52].mxu1 %vm5549_vm4, %v5295_v61  ;;  %v5297_v16 = vmax.f32 %v3791_v46, 0.0 }
 0x2f7   : > { %v5296_v40 = vmax.f32 %v3786_v1, 0.0  ;;  %v15591_v8 = vpop.f32.mrb[8].mxu0 }
 0x2f8   : > { %v3801_v11 = vadd.f32 %v19424_v12, %v15591_v8  ;;  %v3795_v26 = vpop.f32.mrb[9].mxu0  ;;  %15749 = vmatmul.mubr.msk.f32.gmra.mrb[114].mxu0 %vm868_vm3, %v718_v52  ;;  %v722_v52 = vld [vmem:[%s17973_s22 + $0xbb8] sm:$0xff] }
 0x2f9   : > { %v3796_v6 = vadd.f32 %v19424_v12, %v3795_v26  ;;  %16366 = vmatprep.mubr.msk.f32.mxu1 %vm5549_vm4, %v5296_v40  ;;  %15751 = vmatprep.mubr.msk.f32.mxu0 %vm868_vm3, %v719_v49  ;;  %v723_v49 = vld [vmem:[%s17973_s22 + $0xbc0] sm:$0xff] }
 0x2fa   : > { %16367 = vmatmul.mubr.msk.f32.gmra.mrb[54].mxu1 %vm5549_vm4, %v5297_v16  ;;  %v5299_v61 = vmax.f32 %v3801_v11, 0.0 }
 0x2fb   : > { %v5298_v57 = vmax.f32 %v3796_v6, 0.0  ;;  %v15594_v41 = vpop.f32.mrb[10].mxu0 }
 0x2fc   : > { %v3811_v46 = vadd.f32 %v19424_v12, %v15594_v41  ;;  %v3805_v25 = vpop.f32.mrb[11].mxu0  ;;  %15752 = vmatmul.mubr.msk.f32.gmra.mrb[116].mxu0 %vm868_vm3, %v720_v24  ;;  %v724_v24 = vld [vmem:[%s17973_s22 + $0xbc8] sm:$0xff] }
 0x2fd   : > { %v3806_v1 = vadd.f32 %v19424_v12, %v3805_v25  ;;  %16369 = vmatprep.mubr.msk.f32.mxu1 %vm5549_vm4, %v5298_v57  ;;  %15754 = vmatprep.mubr.msk.f32.mxu0 %vm868_vm3, %v721_v38  ;;  %v725_v38 = vld [vmem:[%s17973_s22 + $0xbd0] sm:$0xff] }
 0x2fe   : > { %16370 = vmatmul.mubr.msk.f32.gmra.mrb[56].mxu1 %vm5549_vm4, %v5299_v61  ;;  %v5301_v16 = vmax.f32 %v3811_v46, 0.0 }
 0x2ff   : > { %v5300_v40 = vmax.f32 %v3806_v1, 0.0  ;;  %v15597_v8 = vpop.f32.mrb[12].mxu0 }
 0x300   : > { %v3821_v11 = vadd.f32 %v19424_v12, %v15597_v8  ;;  %v3815_v26 = vpop.f32.mrb[13].mxu0  ;;  %15755 = vmatmul.mubr.msk.f32.gmra.mrb[118].mxu0 %vm868_vm3, %v722_v52  ;;  %v726_v52 = vld [vmem:[%s17973_s22 + $0xbd8] sm:$0xff] }
 0x301   : > { %v3816_v6 = vadd.f32 %v19424_v12, %v3815_v26  ;;  %16372 = vmatprep.mubr.msk.f32.mxu1 %vm5549_vm4, %v5300_v40  ;;  %15757 = vmatprep.mubr.msk.f32.mxu0 %vm868_vm3, %v723_v49  ;;  %v727_v49 = vld [vmem:[%s17973_s22 + $0xbe0] sm:$0xff] }
 0x302   : > { %16373 = vmatmul.mubr.msk.f32.gmra.mrb[58].mxu1 %vm5549_vm4, %v5301_v16  ;;  %v5303_v61 = vmax.f32 %v3821_v11, 0.0 }
 0x303   : > { %v5302_v57 = vmax.f32 %v3816_v6, 0.0  ;;  %v15600_v41 = vpop.f32.mrb[14].mxu0 }
 0x304   : > { %v3831_v46 = vadd.f32 %v19424_v12, %v15600_v41  ;;  %v3825_v25 = vpop.f32.mrb[15].mxu0  ;;  %15758 = vmatmul.mubr.msk.f32.gmra.mrb[120].mxu0 %vm868_vm3, %v724_v24  ;;  %v728_v24 = vld [vmem:[%s17973_s22 + $0xbe8] sm:$0xff] }
 0x305   : > { %v3826_v1 = vadd.f32 %v19424_v12, %v3825_v25  ;;  %16375 = vmatprep.mubr.msk.f32.mxu1 %vm5549_vm4, %v5302_v57  ;;  %15760 = vmatprep.mubr.msk.f32.mxu0 %vm868_vm3, %v725_v38  ;;  %v729_v38 = vld [vmem:[%s17973_s22 + $0xbf0] sm:$0xff] }
 0x306   : > { %16376 = vmatmul.mubr.msk.f32.gmra.mrb[60].mxu1 %vm5549_vm4, %v5303_v61  ;;  %v5305_v16 = vmax.f32 %v3831_v46, 0.0 }
 0x307   : > { %v5304_v40 = vmax.f32 %v3826_v1, 0.0  ;;  %v15603_v8 = vpop.f32.mrb[16].mxu0 }
 0x308   : > { %v3841_v11 = vadd.f32 %v19424_v12, %v15603_v8  ;;  %v3835_v26 = vpop.f32.mrb[17].mxu0  ;;  %15761 = vmatmul.mubr.msk.f32.gmra.mrb[122].mxu0 %vm868_vm3, %v726_v52  ;;  %v730_v52 = vld [vmem:[%s17973_s22 + $0xbf8] sm:$0xff] }
 0x309   : > { %v3836_v6 = vadd.f32 %v19424_v12, %v3835_v26  ;;  %16378 = vmatprep.mubr.msk.f32.mxu1 %vm5549_vm4, %v5304_v40  ;;  %15763 = vmatprep.mubr.msk.f32.mxu0 %vm868_vm3, %v727_v49  ;;  %v731_v49 = vld [vmem:[%s17973_s22 + $0xc00] sm:$0xff] }
 0x30a   : > { %16379 = vmatmul.mubr.msk.f32.gmra.mrb[62].mxu1 %vm5549_vm4, %v5305_v16  ;;  %v5307_v61 = vmax.f32 %v3841_v11, 0.0 }
 0x30b   : > { %v5306_v57 = vmax.f32 %v3836_v6, 0.0  ;;  %v15606_v41 = vpop.f32.mrb[18].mxu0 }
 0x30c   : > { %v3851_v46 = vadd.f32 %v19424_v12, %v15606_v41  ;;  %v3845_v25 = vpop.f32.mrb[19].mxu0  ;;  %15764 = vmatmul.mubr.msk.f32.gmra.mrb[124].mxu0 %vm868_vm3, %v728_v24  ;;  %v732_v24 = vld [vmem:[%s17973_s22 + $0xc08] sm:$0xff] }
 0x30d   : > { %v3846_v1 = vadd.f32 %v19424_v12, %v3845_v25  ;;  %16381 = vmatprep.mubr.msk.f32.mxu1 %vm5549_vm4, %v5306_v57  ;;  %15766 = vmatprep.mubr.msk.f32.mxu0 %vm868_vm3, %v729_v38  ;;  %v733_v38 = vld [vmem:[%s17973_s22 + $0xc10] sm:$0xff] }
 0x30e   : > { %16382 = vmatmul.mubr.msk.f32.gmra.mrb[64].mxu1 %vm5549_vm4, %v5307_v61  ;;  %v5309_v16 = vmax.f32 %v3851_v46, 0.0 }
 0x30f   : > { %v5308_v40 = vmax.f32 %v3846_v1, 0.0  ;;  %v15609_v8 = vpop.f32.mrb[20].mxu0 }
 0x310   : > { %v3861_v11 = vadd.f32 %v19424_v12, %v15609_v8  ;;  %v3855_v26 = vpop.f32.mrb[21].mxu0  ;;  %15767 = vmatmul.mubr.msk.f32.gmra.mrb[126].mxu0 %vm868_vm3, %v730_v52  ;;  %v734_v52 = vld [vmem:[%s17973_s22 + $0xc18] sm:$0xff] }
 0x311   : > { %v3856_v6 = vadd.f32 %v19424_v12, %v3855_v26  ;;  %16384 = vmatprep.mubr.msk.f32.mxu1 %vm5549_vm4, %v5308_v40  ;;  %15769 = vmatprep.mubr.msk.f32.mxu0 %vm868_vm3, %v731_v49  ;;  %v735_v49 = vld [vmem:[%s17973_s22 + $0xc20] sm:$0xff] }
 0x312   : > { %16385 = vmatmul.mubr.msk.f32.gmra.mrb[66].mxu1 %vm5549_vm4, %v5309_v16  ;;  %v5311_v61 = vmax.f32 %v3861_v11, 0.0 }
 0x313   : > { %v5310_v57 = vmax.f32 %v3856_v6, 0.0  ;;  %v15612_v41 = vpop.f32.mrb[22].mxu0 }
 0x314   : > { %v3871_v46 = vadd.f32 %v19424_v12, %v15612_v41  ;;  %v3865_v25 = vpop.f32.mrb[23].mxu0  ;;  %15770 = vmatmul.mubr.msk.f32.gmra.mrb[128].mxu0 %vm868_vm3, %v732_v24  ;;  %v736_v24 = vld [vmem:[%s17973_s22 + $0xc28] sm:$0xff] }
 0x315   : > { %v3866_v1 = vadd.f32 %v19424_v12, %v3865_v25  ;;  %16387 = vmatprep.mubr.msk.f32.mxu1 %vm5549_vm4, %v5310_v57  ;;  %15772 = vmatprep.mubr.msk.f32.mxu0 %vm868_vm3, %v733_v38  ;;  %v737_v38 = vld [vmem:[%s17973_s22 + $0xc30] sm:$0xff] }
 0x316   : > { %16388 = vmatmul.mubr.msk.f32.gmra.mrb[68].mxu1 %vm5549_vm4, %v5311_v61  ;;  %v5313_v16 = vmax.f32 %v3871_v46, 0.0 }
 0x317   : > { %v5312_v40 = vmax.f32 %v3866_v1, 0.0  ;;  %v15615_v8 = vpop.f32.mrb[24].mxu0 }
 0x318   : > { %v3881_v11 = vadd.f32 %v19424_v12, %v15615_v8  ;;  %v3875_v26 = vpop.f32.mrb[25].mxu0  ;;  %15773 = vmatmul.mubr.msk.f32.gmra.mrb[130].mxu0 %vm868_vm3, %v734_v52  ;;  %v738_v52 = vld [vmem:[%s17973_s22 + $0xc38] sm:$0xff] }
 0x319   : > { %v3876_v6 = vadd.f32 %v19424_v12, %v3875_v26  ;;  %16390 = vmatprep.mubr.msk.f32.mxu1 %vm5549_vm4, %v5312_v40  ;;  %15775 = vmatprep.mubr.msk.f32.mxu0 %vm868_vm3, %v735_v49  ;;  %v739_v49 = vld [vmem:[%s17973_s22 + $0xc40] sm:$0xff] }
 0x31a   : > { %16391 = vmatmul.mubr.msk.f32.gmra.mrb[70].mxu1 %vm5549_vm4, %v5313_v16  ;;  %v5315_v61 = vmax.f32 %v3881_v11, 0.0 }
 0x31b   : > { %v5314_v57 = vmax.f32 %v3876_v6, 0.0  ;;  %v15618_v41 = vpop.f32.mrb[26].mxu0 }
 0x31c   : > { %v3891_v46 = vadd.f32 %v19424_v12, %v15618_v41  ;;  %v3885_v25 = vpop.f32.mrb[27].mxu0  ;;  %15776 = vmatmul.mubr.msk.f32.gmra.mrb[132].mxu0 %vm868_vm3, %v736_v24  ;;  %v740_v24 = vld [vmem:[%s17973_s22 + $0xc48] sm:$0xff] }
 0x31d   : > { %v3886_v1 = vadd.f32 %v19424_v12, %v3885_v25  ;;  %16393 = vmatprep.mubr.msk.f32.mxu1 %vm5549_vm4, %v5314_v57  ;;  %15778 = vmatprep.mubr.msk.f32.mxu0 %vm868_vm3, %v737_v38  ;;  %v741_v38 = vld [vmem:[%s17973_s22 + $0xc50] sm:$0xff] }
 0x31e   : > { %16394 = vmatmul.mubr.msk.f32.gmra.mrb[72].mxu1 %vm5549_vm4, %v5315_v61  ;;  %v5317_v16 = vmax.f32 %v3891_v46, 0.0 }
 0x31f   : > { %v5316_v40 = vmax.f32 %v3886_v1, 0.0  ;;  %v15621_v8 = vpop.f32.mrb[28].mxu0 }
 0x320   : > { %v3901_v11 = vadd.f32 %v19424_v12, %v15621_v8  ;;  %v3895_v26 = vpop.f32.mrb[29].mxu0  ;;  %15779 = vmatmul.mubr.msk.f32.gmra.mrb[134].mxu0 %vm868_vm3, %v738_v52  ;;  %v742_v52 = vld [vmem:[%s17973_s22 + $0xc58] sm:$0xff] }
 0x321   : > { %v3896_v6 = vadd.f32 %v19424_v12, %v3895_v26  ;;  %16396 = vmatprep.mubr.msk.f32.mxu1 %vm5549_vm4, %v5316_v40  ;;  %15781 = vmatprep.mubr.msk.f32.mxu0 %vm868_vm3, %v739_v49  ;;  %v743_v49 = vld [vmem:[%s17973_s22 + $0xc60] sm:$0xff] }
 0x322   : > { %16397 = vmatmul.mubr.msk.f32.gmra.mrb[74].mxu1 %vm5549_vm4, %v5317_v16  ;;  %v5319_v61 = vmax.f32 %v3901_v11, 0.0 }
 0x323   : > { %v5318_v57 = vmax.f32 %v3896_v6, 0.0  ;;  %v15624_v41 = vpop.f32.mrb[30].mxu0 }
 0x324   : > { %v3911_v46 = vadd.f32 %v19424_v12, %v15624_v41  ;;  %v3905_v25 = vpop.f32.mrb[31].mxu0  ;;  %15782 = vmatmul.mubr.msk.f32.gmra.mrb[136].mxu0 %vm868_vm3, %v740_v24  ;;  %v744_v24 = vld [vmem:[%s17973_s22 + $0xc68] sm:$0xff] }
 0x325   : > { %v3906_v1 = vadd.f32 %v19424_v12, %v3905_v25  ;;  %16399 = vmatprep.mubr.msk.f32.mxu1 %vm5549_vm4, %v5318_v57  ;;  %15784 = vmatprep.mubr.msk.f32.mxu0 %vm868_vm3, %v741_v38  ;;  %v745_v38 = vld [vmem:[%s17973_s22 + $0xc70] sm:$0xff] }
 0x326   : > { %16400 = vmatmul.mubr.msk.f32.gmra.mrb[76].mxu1 %vm5549_vm4, %v5319_v61  ;;  %v5321_v16 = vmax.f32 %v3911_v46, 0.0 }
 0x327   : > { %v5320_v40 = vmax.f32 %v3906_v1, 0.0  ;;  %v15627_v8 = vpop.f32.mrb[32].mxu0 }
 0x328   : > { %v3921_v11 = vadd.f32 %v19424_v12, %v15627_v8  ;;  %v3915_v26 = vpop.f32.mrb[33].mxu0  ;;  %15785 = vmatmul.mubr.msk.f32.gmra.mrb[138].mxu0 %vm868_vm3, %v742_v52  ;;  %v746_v52 = vld [vmem:[%s17973_s22 + $0xc78] sm:$0xff] }
 0x329   : > { %v3916_v6 = vadd.f32 %v19424_v12, %v3915_v26  ;;  %16402 = vmatprep.mubr.msk.f32.mxu1 %vm5549_vm4, %v5320_v40  ;;  %15787 = vmatprep.mubr.msk.f32.mxu0 %vm868_vm3, %v743_v49  ;;  %v747_v49 = vld [vmem:[%s17973_s22 + $0xc80] sm:$0xff] }
 0x32a   : > { %16403 = vmatmul.mubr.msk.f32.gmra.mrb[78].mxu1 %vm5549_vm4, %v5321_v16  ;;  %v5323_v61 = vmax.f32 %v3921_v11, 0.0 }
 0x32b   : > { %v5322_v57 = vmax.f32 %v3916_v6, 0.0  ;;  %v15630_v41 = vpop.f32.mrb[34].mxu0 }
 0x32c   : > { %v3931_v46 = vadd.f32 %v19424_v12, %v15630_v41  ;;  %v3925_v25 = vpop.f32.mrb[35].mxu0  ;;  %15788 = vmatmul.mubr.msk.f32.gmra.mrb[140].mxu0 %vm868_vm3, %v744_v24  ;;  %v748_v24 = vld [vmem:[%s17973_s22 + $0xc88] sm:$0xff] }
 0x32d   : > { %v3926_v1 = vadd.f32 %v19424_v12, %v3925_v25  ;;  %16405 = vmatprep.mubr.msk.f32.mxu1 %vm5549_vm4, %v5322_v57  ;;  %15790 = vmatprep.mubr.msk.f32.mxu0 %vm868_vm3, %v745_v38  ;;  %v749_v38 = vld [vmem:[%s17973_s22 + $0xc90] sm:$0xff] }
 0x32e   : > { %16406 = vmatmul.mubr.msk.f32.gmra.mrb[80].mxu1 %vm5549_vm4, %v5323_v61  ;;  %v5325_v16 = vmax.f32 %v3931_v46, 0.0 }
 0x32f   : > { %v5324_v40 = vmax.f32 %v3926_v1, 0.0  ;;  %v15633_v8 = vpop.f32.mrb[36].mxu0 }
 0x330   : > { %v3941_v11 = vadd.f32 %v19424_v12, %v15633_v8  ;;  %v3935_v26 = vpop.f32.mrb[37].mxu0  ;;  %15791 = vmatmul.mubr.msk.f32.gmra.mrb[142].mxu0 %vm868_vm3, %v746_v52  ;;  %v750_v52 = vld [vmem:[%s17973_s22 + $0xc98] sm:$0xff] }
 0x331   : > { %v3936_v6 = vadd.f32 %v19424_v12, %v3935_v26  ;;  %16408 = vmatprep.mubr.msk.f32.mxu1 %vm5549_vm4, %v5324_v40  ;;  %15793 = vmatprep.mubr.msk.f32.mxu0 %vm868_vm3, %v747_v49  ;;  %v751_v49 = vld [vmem:[%s17973_s22 + $0xca0] sm:$0xff] }
 0x332   : > { %16409 = vmatmul.mubr.msk.f32.gmra.mrb[82].mxu1 %vm5549_vm4, %v5325_v16  ;;  %v5327_v61 = vmax.f32 %v3941_v11, 0.0 }
 0x333   : > { %v5326_v57 = vmax.f32 %v3936_v6, 0.0  ;;  %v15636_v41 = vpop.f32.mrb[38].mxu0 }
 0x334   : > { %v3951_v46 = vadd.f32 %v19424_v12, %v15636_v41  ;;  %v3945_v25 = vpop.f32.mrb[39].mxu0  ;;  %15794 = vmatmul.mubr.msk.f32.gmra.mrb[144].mxu0 %vm868_vm3, %v748_v24  ;;  %v752_v24 = vld [vmem:[%s17973_s22 + $0xca8] sm:$0xff] }
 0x335   : > { %v3946_v1 = vadd.f32 %v19424_v12, %v3945_v25  ;;  %16411 = vmatprep.mubr.msk.f32.mxu1 %vm5549_vm4, %v5326_v57  ;;  %15796 = vmatprep.mubr.msk.f32.mxu0 %vm868_vm3, %v749_v38  ;;  %v753_v38 = vld [vmem:[%s17973_s22 + $0xcb0] sm:$0xff] }
 0x336   : > { %16412 = vmatmul.mubr.msk.f32.gmra.mrb[84].mxu1 %vm5549_vm4, %v5327_v61  ;;  %v5329_v16 = vmax.f32 %v3951_v46, 0.0 }
 0x337   : > { %v5328_v40 = vmax.f32 %v3946_v1, 0.0  ;;  %v15639_v8 = vpop.f32.mrb[40].mxu0 }
 0x338   : > { %v3961_v11 = vadd.f32 %v19424_v12, %v15639_v8  ;;  %v3955_v26 = vpop.f32.mrb[41].mxu0  ;;  %15797 = vmatmul.mubr.msk.f32.gmra.mrb[146].mxu0 %vm868_vm3, %v750_v52  ;;  %v754_v52 = vld [vmem:[%s17973_s22 + $0xcb8] sm:$0xff] }
 0x339   : > { %v3956_v6 = vadd.f32 %v19424_v12, %v3955_v26  ;;  %16414 = vmatprep.mubr.msk.f32.mxu1 %vm5549_vm4, %v5328_v40  ;;  %15799 = vmatprep.mubr.msk.f32.mxu0 %vm868_vm3, %v751_v49  ;;  %v755_v49 = vld [vmem:[%s17973_s22 + $0xcc0] sm:$0xff] }
 0x33a   : > { %16415 = vmatmul.mubr.msk.f32.gmra.mrb[86].mxu1 %vm5549_vm4, %v5329_v16  ;;  %v5331_v61 = vmax.f32 %v3961_v11, 0.0 }
 0x33b   : > { %v5330_v57 = vmax.f32 %v3956_v6, 0.0  ;;  %v15642_v41 = vpop.f32.mrb[42].mxu0 }
 0x33c   : > { %v3971_v46 = vadd.f32 %v19424_v12, %v15642_v41  ;;  %v3965_v25 = vpop.f32.mrb[43].mxu0  ;;  %15800 = vmatmul.mubr.msk.f32.gmra.mrb[148].mxu0 %vm868_vm3, %v752_v24  ;;  %v756_v24 = vld [vmem:[%s17973_s22 + $0xcc8] sm:$0xff] }
 0x33d   : > { %v3966_v1 = vadd.f32 %v19424_v12, %v3965_v25  ;;  %16417 = vmatprep.mubr.msk.f32.mxu1 %vm5549_vm4, %v5330_v57  ;;  %15802 = vmatprep.mubr.msk.f32.mxu0 %vm868_vm3, %v753_v38  ;;  %v757_v38 = vld [vmem:[%s17973_s22 + $0xcd0] sm:$0xff] }
 0x33e   : > { %16418 = vmatmul.mubr.msk.f32.gmra.mrb[88].mxu1 %vm5549_vm4, %v5331_v61  ;;  %v5333_v16 = vmax.f32 %v3971_v46, 0.0 }
 0x33f   : > { %v5332_v40 = vmax.f32 %v3966_v1, 0.0  ;;  %v15645_v8 = vpop.f32.mrb[44].mxu0 }
 0x340   : > { %v3981_v11 = vadd.f32 %v19424_v12, %v15645_v8  ;;  %v3975_v26 = vpop.f32.mrb[45].mxu0  ;;  %15803 = vmatmul.mubr.msk.f32.gmra.mrb[150].mxu0 %vm868_vm3, %v754_v52  ;;  %v758_v52 = vld [vmem:[%s17973_s22 + $0xcd8] sm:$0xff] }
 0x341   : > { %v3976_v6 = vadd.f32 %v19424_v12, %v3975_v26  ;;  %16420 = vmatprep.mubr.msk.f32.mxu1 %vm5549_vm4, %v5332_v40  ;;  %15805 = vmatprep.mubr.msk.f32.mxu0 %vm868_vm3, %v755_v49  ;;  %v759_v49 = vld [vmem:[%s17973_s22 + $0xce0] sm:$0xff] }
 0x342   : > { %16421 = vmatmul.mubr.msk.f32.gmra.mrb[90].mxu1 %vm5549_vm4, %v5333_v16  ;;  %v5335_v61 = vmax.f32 %v3981_v11, 0.0 }
 0x343   : > { %v5334_v57 = vmax.f32 %v3976_v6, 0.0  ;;  %v15648_v41 = vpop.f32.mrb[46].mxu0 }
 0x344   : > { %v3991_v46 = vadd.f32 %v19424_v12, %v15648_v41  ;;  %v3985_v25 = vpop.f32.mrb[47].mxu0  ;;  %15806 = vmatmul.mubr.msk.f32.gmra.mrb[152].mxu0 %vm868_vm3, %v756_v24  ;;  %v760_v24 = vld [vmem:[%s17973_s22 + $0xce8] sm:$0xff] }
 0x345   : > { %v3986_v1 = vadd.f32 %v19424_v12, %v3985_v25  ;;  %16423 = vmatprep.mubr.msk.f32.mxu1 %vm5549_vm4, %v5334_v57  ;;  %15808 = vmatprep.mubr.msk.f32.mxu0 %vm868_vm3, %v757_v38  ;;  %v761_v38 = vld [vmem:[%s17973_s22 + $0xcf0] sm:$0xff] }
 0x346   : > { %16424 = vmatmul.mubr.msk.f32.gmra.mrb[92].mxu1 %vm5549_vm4, %v5335_v61  ;;  %v5337_v16 = vmax.f32 %v3991_v46, 0.0 }
 0x347   : > { %v5336_v40 = vmax.f32 %v3986_v1, 0.0  ;;  %v15651_v8 = vpop.f32.mrb[48].mxu0 }
 0x348   : > { %v4001_v11 = vadd.f32 %v19424_v12, %v15651_v8  ;;  %v3995_v26 = vpop.f32.mrb[49].mxu0  ;;  %15809 = vmatmul.mubr.msk.f32.gmra.mrb[154].mxu0 %vm868_vm3, %v758_v52  ;;  %v762_v52 = vld [vmem:[%s17973_s22 + $0xcf8] sm:$0xff] }
 0x349   : > { %v3996_v6 = vadd.f32 %v19424_v12, %v3995_v26  ;;  %16426 = vmatprep.mubr.msk.f32.mxu1 %vm5549_vm4, %v5336_v40  ;;  %15811 = vmatprep.mubr.msk.f32.mxu0 %vm868_vm3, %v759_v49  ;;  %v763_v49 = vld [vmem:[%s17973_s22 + $0xd00] sm:$0xff] }
 0x34a   : > { %16427 = vmatmul.mubr.msk.f32.gmra.mrb[94].mxu1 %vm5549_vm4, %v5337_v16  ;;  %v5339_v61 = vmax.f32 %v4001_v11, 0.0 }
 0x34b   : > { %v5338_v57 = vmax.f32 %v3996_v6, 0.0  ;;  %v15654_v41 = vpop.f32.mrb[50].mxu0 }
 0x34c   : > { %v4011_v46 = vadd.f32 %v19424_v12, %v15654_v41  ;;  %v4005_v25 = vpop.f32.mrb[51].mxu0  ;;  %15812 = vmatmul.mubr.msk.f32.gmra.mrb[156].mxu0 %vm868_vm3, %v760_v24  ;;  %v764_v24 = vld [vmem:[%s17973_s22 + $0xd08] sm:$0xff] }
 0x34d   : > { %v4006_v1 = vadd.f32 %v19424_v12, %v4005_v25  ;;  %16429 = vmatprep.mubr.msk.f32.mxu1 %vm5549_vm4, %v5338_v57  ;;  %15814 = vmatprep.mubr.msk.f32.mxu0 %vm868_vm3, %v761_v38  ;;  %v765_v38 = vld [vmem:[%s17973_s22 + $0xd10] sm:$0xff] }
 0x34e   : > { %16430 = vmatmul.mubr.msk.f32.gmra.mrb[96].mxu1 %vm5549_vm4, %v5339_v61  ;;  %v5341_v16 = vmax.f32 %v4011_v46, 0.0 }
 0x34f   : > { %v5340_v40 = vmax.f32 %v4006_v1, 0.0  ;;  %v15657_v8 = vpop.f32.mrb[52].mxu0 }
 0x350   : > { %v4021_v11 = vadd.f32 %v19424_v12, %v15657_v8  ;;  %v4015_v26 = vpop.f32.mrb[53].mxu0  ;;  %15815 = vmatmul.mubr.msk.f32.gmra.mrb[158].mxu0 %vm868_vm3, %v762_v52  ;;  %v766_v52 = vld [vmem:[%s17973_s22 + $0xd18] sm:$0xff] }
 0x351   : > { %v4016_v6 = vadd.f32 %v19424_v12, %v4015_v26  ;;  %16432 = vmatprep.mubr.msk.f32.mxu1 %vm5549_vm4, %v5340_v40  ;;  %15817 = vmatprep.mubr.msk.f32.mxu0 %vm868_vm3, %v763_v49  ;;  %v767_v49 = vld [vmem:[%s17973_s22 + $0xd20] sm:$0xff] }
 0x352   : > { %16433 = vmatmul.mubr.msk.f32.gmra.mrb[98].mxu1 %vm5549_vm4, %v5341_v16  ;;  %v5343_v61 = vmax.f32 %v4021_v11, 0.0 }
 0x353   : > { %v5342_v57 = vmax.f32 %v4016_v6, 0.0  ;;  %v15660_v41 = vpop.f32.mrb[54].mxu0 }
 0x354   : > { %v4031_v46 = vadd.f32 %v19424_v12, %v15660_v41  ;;  %v4025_v25 = vpop.f32.mrb[55].mxu0  ;;  %15818 = vmatmul.mubr.msk.f32.gmra.mrb[160].mxu0 %vm868_vm3, %v764_v24  ;;  %v768_v24 = vld [vmem:[%s17973_s22 + $0xd28] sm:$0xff] }
 0x355   : > { %v4026_v1 = vadd.f32 %v19424_v12, %v4025_v25  ;;  %16435 = vmatprep.mubr.msk.f32.mxu1 %vm5549_vm4, %v5342_v57  ;;  %15820 = vmatprep.mubr.msk.f32.mxu0 %vm868_vm3, %v765_v38  ;;  %v769_v38 = vld [vmem:[%s17973_s22 + $0xd30] sm:$0xff] }
 0x356   : > { %16436 = vmatmul.mubr.msk.f32.gmra.mrb[100].mxu1 %vm5549_vm4, %v5343_v61  ;;  %v5345_v16 = vmax.f32 %v4031_v46, 0.0 }
 0x357   : > { %v5344_v40 = vmax.f32 %v4026_v1, 0.0  ;;  %v15663_v8 = vpop.f32.mrb[56].mxu0 }
 0x358   : > { %v4041_v11 = vadd.f32 %v19424_v12, %v15663_v8  ;;  %v4035_v26 = vpop.f32.mrb[57].mxu0  ;;  %15821 = vmatmul.mubr.msk.f32.gmra.mrb[162].mxu0 %vm868_vm3, %v766_v52  ;;  %v770_v52 = vld [vmem:[%s17973_s22 + $0xd38] sm:$0xff] }
 0x359   : > { %v4036_v6 = vadd.f32 %v19424_v12, %v4035_v26  ;;  %16438 = vmatprep.mubr.msk.f32.mxu1 %vm5549_vm4, %v5344_v40  ;;  %15823 = vmatprep.mubr.msk.f32.mxu0 %vm868_vm3, %v767_v49  ;;  %v771_v49 = vld [vmem:[%s17973_s22 + $0xd40] sm:$0xff] }
 0x35a   : > { %16439 = vmatmul.mubr.msk.f32.gmra.mrb[102].mxu1 %vm5549_vm4, %v5345_v16  ;;  %v5347_v61 = vmax.f32 %v4041_v11, 0.0 }
 0x35b   : > { %v5346_v57 = vmax.f32 %v4036_v6, 0.0  ;;  %v15666_v41 = vpop.f32.mrb[58].mxu0 }
 0x35c   : > { %v4051_v46 = vadd.f32 %v19424_v12, %v15666_v41  ;;  %v4045_v25 = vpop.f32.mrb[59].mxu0  ;;  %15824 = vmatmul.mubr.msk.f32.gmra.mrb[164].mxu0 %vm868_vm3, %v768_v24  ;;  %v772_v24 = vld [vmem:[%s17973_s22 + $0xd48] sm:$0xff] }
 0x35d   : > { %v4046_v1 = vadd.f32 %v19424_v12, %v4045_v25  ;;  %16441 = vmatprep.mubr.msk.f32.mxu1 %vm5549_vm4, %v5346_v57  ;;  %15826 = vmatprep.mubr.msk.f32.mxu0 %vm868_vm3, %v769_v38  ;;  %v773_v38 = vld [vmem:[%s17973_s22 + $0xd50] sm:$0xff] }
 0x35e   : > { %16442 = vmatmul.mubr.msk.f32.gmra.mrb[104].mxu1 %vm5549_vm4, %v5347_v61  ;;  %v5349_v16 = vmax.f32 %v4051_v46, 0.0 }
 0x35f   : > { %v5348_v40 = vmax.f32 %v4046_v1, 0.0  ;;  %v15669_v8 = vpop.f32.mrb[60].mxu0 }
 0x360   : > { %v4061_v11 = vadd.f32 %v19424_v12, %v15669_v8  ;;  %v4055_v26 = vpop.f32.mrb[61].mxu0  ;;  %15827 = vmatmul.mubr.msk.f32.gmra.mrb[166].mxu0 %vm868_vm3, %v770_v52  ;;  %v774_v52 = vld [vmem:[%s17973_s22 + $0xd58] sm:$0xff] }
 0x361   : > { %v4056_v6 = vadd.f32 %v19424_v12, %v4055_v26  ;;  %16444 = vmatprep.mubr.msk.f32.mxu1 %vm5549_vm4, %v5348_v40  ;;  %15829 = vmatprep.mubr.msk.f32.mxu0 %vm868_vm3, %v771_v49  ;;  %v775_v49 = vld [vmem:[%s17973_s22 + $0xd60] sm:$0xff] }
 0x362   : > { %16445 = vmatmul.mubr.msk.f32.gmra.mrb[106].mxu1 %vm5549_vm4, %v5349_v16  ;;  %v5351_v61 = vmax.f32 %v4061_v11, 0.0 }
 0x363   : > { %v5350_v57 = vmax.f32 %v4056_v6, 0.0  ;;  %v15672_v41 = vpop.f32.mrb[62].mxu0 }
 0x364   : > { %v4071_v46 = vadd.f32 %v19424_v12, %v15672_v41  ;;  %v4065_v25 = vpop.f32.mrb[63].mxu0  ;;  %15830 = vmatmul.mubr.msk.f32.gmra.mrb[168].mxu0 %vm868_vm3, %v772_v24  ;;  %v776_v24 = vld [vmem:[%s17973_s22 + $0xd68] sm:$0xff] }
 0x365   : > { %v4066_v1 = vadd.f32 %v19424_v12, %v4065_v25  ;;  %16447 = vmatprep.mubr.msk.f32.mxu1 %vm5549_vm4, %v5350_v57  ;;  %15832 = vmatprep.mubr.msk.f32.mxu0 %vm868_vm3, %v773_v38  ;;  %v777_v38 = vld [vmem:[%s17973_s22 + $0xd70] sm:$0xff] }
 0x366   : > { %16448 = vmatmul.mubr.msk.f32.gmra.mrb[108].mxu1 %vm5549_vm4, %v5351_v61  ;;  %v5353_v16 = vmax.f32 %v4071_v46, 0.0 }
 0x367   : > { %v5352_v40 = vmax.f32 %v4066_v1, 0.0  ;;  %v15675_v8 = vpop.f32.mrb[64].mxu0 }
 0x368   : > { %v4081_v11 = vadd.f32 %v19424_v12, %v15675_v8  ;;  %v4075_v26 = vpop.f32.mrb[65].mxu0  ;;  %15833 = vmatmul.mubr.msk.f32.gmra.mrb[170].mxu0 %vm868_vm3, %v774_v52  ;;  %v778_v52 = vld [vmem:[%s17973_s22 + $0xd78] sm:$0xff] }
 0x369   : > { %v4076_v6 = vadd.f32 %v19424_v12, %v4075_v26  ;;  %16450 = vmatprep.mubr.msk.f32.mxu1 %vm5549_vm4, %v5352_v40  ;;  %15835 = vmatprep.mubr.msk.f32.mxu0 %vm868_vm3, %v775_v49  ;;  %v779_v49 = vld [vmem:[%s17973_s22 + $0xd80] sm:$0xff] }
 0x36a   : > { %16451 = vmatmul.mubr.msk.f32.gmra.mrb[110].mxu1 %vm5549_vm4, %v5353_v16  ;;  %v5355_v61 = vmax.f32 %v4081_v11, 0.0 }
 0x36b   : > { %v5354_v57 = vmax.f32 %v4076_v6, 0.0  ;;  %v15678_v41 = vpop.f32.mrb[66].mxu0 }
 0x36c   : > { %v4091_v46 = vadd.f32 %v19424_v12, %v15678_v41  ;;  %v4085_v25 = vpop.f32.mrb[67].mxu0  ;;  %15836 = vmatmul.mubr.msk.f32.gmra.mrb[172].mxu0 %vm868_vm3, %v776_v24  ;;  %v780_v24 = vld [vmem:[%s17973_s22 + $0xd88] sm:$0xff] }
 0x36d   : > { %v4086_v1 = vadd.f32 %v19424_v12, %v4085_v25  ;;  %16453 = vmatprep.mubr.msk.f32.mxu1 %vm5549_vm4, %v5354_v57  ;;  %15838 = vmatprep.mubr.msk.f32.mxu0 %vm868_vm3, %v777_v38  ;;  %v781_v38 = vld [vmem:[%s17973_s22 + $0xd90] sm:$0xff] }
 0x36e   : > { %16454 = vmatmul.mubr.msk.f32.gmra.mrb[112].mxu1 %vm5549_vm4, %v5355_v61  ;;  %v5357_v16 = vmax.f32 %v4091_v46, 0.0 }
 0x36f   : > { %v5356_v40 = vmax.f32 %v4086_v1, 0.0  ;;  %v15681_v8 = vpop.f32.mrb[68].mxu0 }
 0x370   : > { %v4101_v11 = vadd.f32 %v19424_v12, %v15681_v8  ;;  %v4095_v26 = vpop.f32.mrb[69].mxu0  ;;  %15839 = vmatmul.mubr.msk.f32.gmra.mrb[174].mxu0 %vm868_vm3, %v778_v52  ;;  %v782_v52 = vld [vmem:[%s17973_s22 + $0xd98] sm:$0xff] }
 0x371   : > { %v4096_v6 = vadd.f32 %v19424_v12, %v4095_v26  ;;  %16456 = vmatprep.mubr.msk.f32.mxu1 %vm5549_vm4, %v5356_v40  ;;  %15841 = vmatprep.mubr.msk.f32.mxu0 %vm868_vm3, %v779_v49  ;;  %v783_v49 = vld [vmem:[%s17973_s22 + $0xda0] sm:$0xff] }
 0x372   : > { %16457 = vmatmul.mubr.msk.f32.gmra.mrb[114].mxu1 %vm5549_vm4, %v5357_v16  ;;  %v5359_v61 = vmax.f32 %v4101_v11, 0.0 }
 0x373   : > { %v5358_v57 = vmax.f32 %v4096_v6, 0.0  ;;  %v15684_v41 = vpop.f32.mrb[70].mxu0 }
 0x374   : > { %v4111_v46 = vadd.f32 %v19424_v12, %v15684_v41  ;;  %v4105_v25 = vpop.f32.mrb[71].mxu0  ;;  %15842 = vmatmul.mubr.msk.f32.gmra.mrb[176].mxu0 %vm868_vm3, %v780_v24  ;;  %v784_v24 = vld [vmem:[%s17973_s22 + $0xda8] sm:$0xff] }
 0x375   : > { %v4106_v1 = vadd.f32 %v19424_v12, %v4105_v25  ;;  %16459 = vmatprep.mubr.msk.f32.mxu1 %vm5549_vm4, %v5358_v57  ;;  %15844 = vmatprep.mubr.msk.f32.mxu0 %vm868_vm3, %v781_v38  ;;  %v785_v38 = vld [vmem:[%s17973_s22 + $0xdb0] sm:$0xff] }
 0x376   : > { %16460 = vmatmul.mubr.msk.f32.gmra.mrb[116].mxu1 %vm5549_vm4, %v5359_v61  ;;  %v5361_v16 = vmax.f32 %v4111_v46, 0.0 }
 0x377   : > { %v5360_v40 = vmax.f32 %v4106_v1, 0.0  ;;  %v15687_v8 = vpop.f32.mrb[72].mxu0 }
 0x378   : > { %v4121_v11 = vadd.f32 %v19424_v12, %v15687_v8  ;;  %v4115_v26 = vpop.f32.mrb[73].mxu0  ;;  %15845 = vmatmul.mubr.msk.f32.gmra.mrb[178].mxu0 %vm868_vm3, %v782_v52  ;;  %v786_v52 = vld [vmem:[%s17973_s22 + $0xdb8] sm:$0xff] }
 0x379   : > { %v4116_v6 = vadd.f32 %v19424_v12, %v4115_v26  ;;  %16462 = vmatprep.mubr.msk.f32.mxu1 %vm5549_vm4, %v5360_v40  ;;  %15847 = vmatprep.mubr.msk.f32.mxu0 %vm868_vm3, %v783_v49  ;;  %v787_v49 = vld [vmem:[%s17973_s22 + $0xdc0] sm:$0xff] }
 0x37a   : > { %16463 = vmatmul.mubr.msk.f32.gmra.mrb[118].mxu1 %vm5549_vm4, %v5361_v16  ;;  %v5363_v61 = vmax.f32 %v4121_v11, 0.0  ;;  %v19774_v11 = vld [vmem:[%s20732_s2] ss:$0 sm:$0xff] }
 0x37b   : > { %v5362_v57 = vmax.f32 %v4116_v6, 0.0  ;;  %v15690_v41 = vpop.f32.mrb[74].mxu0 }
 0x37c   : > { %v4131_v46 = vadd.f32 %v19424_v12, %v15690_v41  ;;  %v4125_v25 = vpop.f32.mrb[75].mxu0  ;;  %15848 = vmatmul.mubr.msk.f32.gmra.mrb[180].mxu0 %vm868_vm3, %v784_v24  ;;  %v788_v24 = vld [vmem:[%s17973_s22 + $0xdc8] sm:$0xff] }
 0x37d   : > { %v4126_v1 = vadd.f32 %v19424_v12, %v4125_v25  ;;  %16465 = vmatprep.mubr.msk.f32.mxu1 %vm5549_vm4, %v5362_v57  ;;  %15850 = vmatprep.mubr.msk.f32.mxu0 %vm868_vm3, %v785_v38  ;;  %v789_v38 = vld [vmem:[%s17973_s22 + $0xdd0] sm:$0xff] }
 0x37e   : > { %16466 = vmatmul.mubr.msk.f32.gmra.mrb[120].mxu1 %vm5549_vm4, %v5363_v61  ;;  %v5365_v16 = vmax.f32 %v4131_v46, 0.0 }
 0x37f   : > { %v5364_v40 = vmax.f32 %v4126_v1, 0.0  ;;  %v15693_v8 = vpop.f32.mrb[76].mxu0 }
 0x380   : > { %v4141_v12 = vadd.f32 %v19774_v11, %v15693_v8  ;;  %v4135_v26 = vpop.f32.mrb[77].mxu0  ;;  %15851 = vmatmul.mubr.msk.f32.gmra.mrb[182].mxu0 %vm868_vm3, %v786_v52  ;;  %v790_v52 = vld [vmem:[%s17973_s22 + $0xdd8] sm:$0xff] }
 0x381   : > { %v4136_v6 = vadd.f32 %v19774_v11, %v4135_v26  ;;  %16468 = vmatprep.mubr.msk.f32.mxu1 %vm5549_vm4, %v5364_v40  ;;  %15853 = vmatprep.mubr.msk.f32.mxu0 %vm868_vm3, %v787_v49  ;;  %v791_v49 = vld [vmem:[%s17973_s22 + $0xde0] sm:$0xff] }
 0x382   : > { %16469 = vmatmul.mubr.msk.f32.gmra.mrb[122].mxu1 %vm5549_vm4, %v5365_v16  ;;  %v5367_v61 = vmax.f32 %v4141_v12, 0.0 }
 0x383   : > { %v5366_v57 = vmax.f32 %v4136_v6, 0.0  ;;  %v15696_v41 = vpop.f32.mrb[78].mxu0 }
 0x384   : > { %v4151_v46 = vadd.f32 %v19774_v11, %v15696_v41  ;;  %v4145_v25 = vpop.f32.mrb[79].mxu0  ;;  %15854 = vmatmul.mubr.msk.f32.gmra.mrb[184].mxu0 %vm868_vm3, %v788_v24  ;;  %v792_v24 = vld [vmem:[%s17973_s22 + $0xde8] sm:$0xff] }
 0x385   : > { %v4146_v1 = vadd.f32 %v19774_v11, %v4145_v25  ;;  %16471 = vmatprep.mubr.msk.f32.mxu1 %vm5549_vm4, %v5366_v57  ;;  %15856 = vmatprep.mubr.msk.f32.mxu0 %vm868_vm3, %v789_v38  ;;  %v793_v38 = vld [vmem:[%s17973_s22 + $0xdf0] sm:$0xff] }
 0x386   : > { %16472 = vmatmul.mubr.msk.f32.gmra.mrb[124].mxu1 %vm5549_vm4, %v5367_v61  ;;  %v5369_v16 = vmax.f32 %v4151_v46, 0.0 }
 0x387   : > { %v5368_v40 = vmax.f32 %v4146_v1, 0.0  ;;  %v15699_v8 = vpop.f32.mrb[80].mxu0 }
 0x388   : > { %v4161_v12 = vadd.f32 %v19774_v11, %v15699_v8  ;;  %v4155_v26 = vpop.f32.mrb[81].mxu0  ;;  %15857 = vmatmul.mubr.msk.f32.gmra.mrb[186].mxu0 %vm868_vm3, %v790_v52  ;;  %v794_v52 = vld [vmem:[%s17973_s22 + $0xdf8] sm:$0xff] }
 0x389   : > { %v4156_v6 = vadd.f32 %v19774_v11, %v4155_v26  ;;  %16474 = vmatprep.mubr.msk.f32.mxu1 %vm5549_vm4, %v5368_v40  ;;  %15859 = vmatprep.mubr.msk.f32.mxu0 %vm868_vm3, %v791_v49  ;;  %v795_v49 = vld [vmem:[%s17973_s22 + $0xe00] sm:$0xff] }
 0x38a   : > { %16475 = vmatmul.mubr.msk.f32.gmra.mrb[126].mxu1 %vm5549_vm4, %v5369_v16  ;;  %v5371_v61 = vmax.f32 %v4161_v12, 0.0 }
 0x38b   : > { %v5370_v57 = vmax.f32 %v4156_v6, 0.0  ;;  %v15702_v41 = vpop.f32.mrb[82].mxu0 }
 0x38c   : > { %v4171_v46 = vadd.f32 %v19774_v11, %v15702_v41  ;;  %v4165_v25 = vpop.f32.mrb[83].mxu0  ;;  %15860 = vmatmul.mubr.msk.f32.gmra.mrb[188].mxu0 %vm868_vm3, %v792_v24  ;;  %v796_v24 = vld [vmem:[%s17973_s22 + $0xe08] sm:$0xff] }
 0x38d   : > { %v4166_v1 = vadd.f32 %v19774_v11, %v4165_v25  ;;  %16477 = vmatprep.mubr.msk.f32.mxu1 %vm5549_vm4, %v5370_v57  ;;  %15862 = vmatprep.mubr.msk.f32.mxu0 %vm868_vm3, %v793_v38  ;;  %v797_v38 = vld [vmem:[%s17973_s22 + $0xe10] sm:$0xff] }
 0x38e   : > { %16478 = vmatmul.mubr.msk.f32.gmra.mrb[128].mxu1 %vm5549_vm4, %v5371_v61  ;;  %v5373_v16 = vmax.f32 %v4171_v46, 0.0 }
 0x38f   : > { %v5372_v40 = vmax.f32 %v4166_v1, 0.0  ;;  %v15705_v8 = vpop.f32.mrb[84].mxu0 }
 0x390   : > { %v4181_v12 = vadd.f32 %v19774_v11, %v15705_v8  ;;  %v4175_v26 = vpop.f32.mrb[85].mxu0  ;;  %15863 = vmatmul.mubr.msk.f32.gmra.mrb[190].mxu0 %vm868_vm3, %v794_v52  ;;  %v798_v52 = vld [vmem:[%s17973_s22 + $0xe18] sm:$0xff] }
 0x391   : > { %v4176_v6 = vadd.f32 %v19774_v11, %v4175_v26  ;;  %16480 = vmatprep.mubr.msk.f32.mxu1 %vm5549_vm4, %v5372_v40  ;;  %15865 = vmatprep.mubr.msk.f32.mxu0 %vm868_vm3, %v795_v49  ;;  %v799_v49 = vld [vmem:[%s17973_s22 + $0xe20] sm:$0xff] }
 0x392   : > { %16481 = vmatmul.mubr.msk.f32.gmra.mrb[130].mxu1 %vm5549_vm4, %v5373_v16  ;;  %v5375_v61 = vmax.f32 %v4181_v12, 0.0 }
 0x393   : > { %v5374_v57 = vmax.f32 %v4176_v6, 0.0  ;;  %v15708_v41 = vpop.f32.mrb[86].mxu0 }
 0x394   : > { %v4191_v46 = vadd.f32 %v19774_v11, %v15708_v41  ;;  %v4185_v25 = vpop.f32.mrb[87].mxu0  ;;  %15866 = vmatmul.mubr.msk.f32.gmra.mrb[192].mxu0 %vm868_vm3, %v796_v24  ;;  %v800_v24 = vld [vmem:[%s17973_s22 + $0xe28] sm:$0xff] }
 0x395   : > { %v4186_v1 = vadd.f32 %v19774_v11, %v4185_v25  ;;  %16483 = vmatprep.mubr.msk.f32.mxu1 %vm5549_vm4, %v5374_v57  ;;  %15868 = vmatprep.mubr.msk.f32.mxu0 %vm868_vm3, %v797_v38  ;;  %v801_v38 = vld [vmem:[%s17973_s22 + $0xe30] sm:$0xff] }
 0x396   : > { %16484 = vmatmul.mubr.msk.f32.gmra.mrb[132].mxu1 %vm5549_vm4, %v5375_v61  ;;  %v5377_v16 = vmax.f32 %v4191_v46, 0.0 }
 0x397   : > { %v5376_v40 = vmax.f32 %v4186_v1, 0.0  ;;  %v15711_v8 = vpop.f32.mrb[88].mxu0 }
 0x398   : > { %v4201_v12 = vadd.f32 %v19774_v11, %v15711_v8  ;;  %v4195_v26 = vpop.f32.mrb[89].mxu0  ;;  %15869 = vmatmul.mubr.msk.f32.gmra.mrb[194].mxu0 %vm868_vm3, %v798_v52  ;;  %v802_v52 = vld [vmem:[%s17973_s22 + $0xe38] sm:$0xff] }
 0x399   : > { %v4196_v6 = vadd.f32 %v19774_v11, %v4195_v26  ;;  %16486 = vmatprep.mubr.msk.f32.mxu1 %vm5549_vm4, %v5376_v40  ;;  %15871 = vmatprep.mubr.msk.f32.mxu0 %vm868_vm3, %v799_v49  ;;  %v803_v49 = vld [vmem:[%s17973_s22 + $0xe40] sm:$0xff] }
 0x39a   : > { %16487 = vmatmul.mubr.msk.f32.gmra.mrb[134].mxu1 %vm5549_vm4, %v5377_v16  ;;  %v5379_v61 = vmax.f32 %v4201_v12, 0.0 }
 0x39b   : > { %v5378_v57 = vmax.f32 %v4196_v6, 0.0  ;;  %v15714_v41 = vpop.f32.mrb[90].mxu0 }
 0x39c   : > { %v4211_v46 = vadd.f32 %v19774_v11, %v15714_v41  ;;  %v4205_v25 = vpop.f32.mrb[91].mxu0  ;;  %15872 = vmatmul.mubr.msk.f32.gmra.mrb[196].mxu0 %vm868_vm3, %v800_v24  ;;  %v804_v24 = vld [vmem:[%s17973_s22 + $0xe48] sm:$0xff] }
 0x39d   : > { %v4206_v1 = vadd.f32 %v19774_v11, %v4205_v25  ;;  %16489 = vmatprep.mubr.msk.f32.mxu1 %vm5549_vm4, %v5378_v57  ;;  %15874 = vmatprep.mubr.msk.f32.mxu0 %vm868_vm3, %v801_v38  ;;  %v805_v38 = vld [vmem:[%s17973_s22 + $0xe50] sm:$0xff] }
 0x39e   : > { %16490 = vmatmul.mubr.msk.f32.gmra.mrb[136].mxu1 %vm5549_vm4, %v5379_v61  ;;  %v5381_v16 = vmax.f32 %v4211_v46, 0.0 }
 0x39f   : > { %v5380_v40 = vmax.f32 %v4206_v1, 0.0  ;;  %v15717_v8 = vpop.f32.mrb[92].mxu0 }
 0x3a0   : > { %v4221_v12 = vadd.f32 %v19774_v11, %v15717_v8  ;;  %v4215_v26 = vpop.f32.mrb[93].mxu0  ;;  %15875 = vmatmul.mubr.msk.f32.gmra.mrb[198].mxu0 %vm868_vm3, %v802_v52  ;;  %v806_v52 = vld [vmem:[%s17973_s22 + $0xe58] sm:$0xff] }
 0x3a1   : > { %v4216_v6 = vadd.f32 %v19774_v11, %v4215_v26  ;;  %16492 = vmatprep.mubr.msk.f32.mxu1 %vm5549_vm4, %v5380_v40  ;;  %15877 = vmatprep.mubr.msk.f32.mxu0 %vm868_vm3, %v803_v49  ;;  %v807_v49 = vld [vmem:[%s17973_s22 + $0xe60] sm:$0xff] }
 0x3a2   : > { %16493 = vmatmul.mubr.msk.f32.gmra.mrb[138].mxu1 %vm5549_vm4, %v5381_v16  ;;  %v5383_v61 = vmax.f32 %v4221_v12, 0.0 }
 0x3a3   : > { %v5382_v57 = vmax.f32 %v4216_v6, 0.0  ;;  %v15720_v41 = vpop.f32.mrb[94].mxu0 }
 0x3a4   : > { %v4231_v46 = vadd.f32 %v19774_v11, %v15720_v41  ;;  %v4225_v25 = vpop.f32.mrb[95].mxu0  ;;  %15878 = vmatmul.mubr.msk.f32.gmra.mrb[200].mxu0 %vm868_vm3, %v804_v24  ;;  %v808_v24 = vld [vmem:[%s17973_s22 + $0xe68] sm:$0xff] }
 0x3a5   : > { %v4226_v1 = vadd.f32 %v19774_v11, %v4225_v25  ;;  %16495 = vmatprep.mubr.msk.f32.mxu1 %vm5549_vm4, %v5382_v57  ;;  %15880 = vmatprep.mubr.msk.f32.mxu0 %vm868_vm3, %v805_v38  ;;  %v809_v38 = vld [vmem:[%s17973_s22 + $0xe70] sm:$0xff] }
 0x3a6   : > { %16496 = vmatmul.mubr.msk.f32.gmra.mrb[140].mxu1 %vm5549_vm4, %v5383_v61  ;;  %v5385_v16 = vmax.f32 %v4231_v46, 0.0 }
 0x3a7   : > { %v5384_v40 = vmax.f32 %v4226_v1, 0.0  ;;  %v15723_v8 = vpop.f32.mrb[96].mxu0 }
 0x3a8   : > { %v4241_v12 = vadd.f32 %v19774_v11, %v15723_v8  ;;  %v4235_v26 = vpop.f32.mrb[97].mxu0  ;;  %15881 = vmatmul.mubr.msk.f32.gmra.mrb[202].mxu0 %vm868_vm3, %v806_v52  ;;  %v810_v52 = vld [vmem:[%s17973_s22 + $0xe78] sm:$0xff] }
 0x3a9   : > { %v4236_v6 = vadd.f32 %v19774_v11, %v4235_v26  ;;  %16498 = vmatprep.mubr.msk.f32.mxu1 %vm5549_vm4, %v5384_v40  ;;  %15883 = vmatprep.mubr.msk.f32.mxu0 %vm868_vm3, %v807_v49 }
 0x3aa   : > { %16499 = vmatmul.mubr.msk.f32.gmra.mrb[142].mxu1 %vm5549_vm4, %v5385_v16  ;;  %v5387_v61 = vmax.f32 %v4241_v12, 0.0 }
 0x3ab   : > { %v5386_v57 = vmax.f32 %v4236_v6, 0.0  ;;  %v15726_v41 = vpop.f32.mrb[98].mxu0 }
 0x3ac   : > { %v4251_v46 = vadd.f32 %v19774_v11, %v15726_v41  ;;  %v4245_v25 = vpop.f32.mrb[99].mxu0  ;;  %15884 = vmatmul.mubr.msk.f32.gmra.mrb[204].mxu0 %vm868_vm3, %v808_v24 }
 0x3ad   : > { %v4246_v1 = vadd.f32 %v19774_v11, %v4245_v25  ;;  %16501 = vmatprep.mubr.msk.f32.mxu1 %vm5549_vm4, %v5386_v57  ;;  %15886 = vmatprep.mubr.msk.f32.mxu0 %vm868_vm3, %v809_v38 }
 0x3ae   : > { %16502 = vmatmul.mubr.msk.f32.gmra.mrb[144].mxu1 %vm5549_vm4, %v5387_v61  ;;  %v5389_v8 = vmax.f32 %v4251_v46, 0.0 }
 0x3af   : > { %v5388_v49 = vmax.f32 %v4246_v1, 0.0  ;;  %v15729_v40 = vpop.f32.mrb[100].mxu0 }
 0x3b0   : > { %v4261_v16 = vadd.f32 %v19774_v11, %v15729_v40  ;;  %v4255_v12 = vpop.f32.mrb[101].mxu0  ;;  %15887 = vmatmul.mubr.msk.f32.gmra.mrb[206].mxu0 %vm868_vm3, %v810_v52 }
 0x3b1   : > { %v4256_v26 = vadd.f32 %v19774_v11, %v4255_v12  ;;  %16504 = vmatprep.mubr.msk.f32.mxu1 %vm5549_vm4, %v5388_v49 }
 0x3b2   : > { %16505 = vmatmul.mubr.msk.f32.gmra.mrb[146].mxu1 %vm5549_vm4, %v5389_v8  ;;  %v5391_v38 = vmax.f32 %v4261_v16, 0.0 }
 0x3b3   : > { %v5390_v6 = vmax.f32 %v4256_v26, 0.0  ;;  %v15732_v24 = vpop.f32.mrb[102].mxu0 }
 0x3b4   : > { %v4271_v57 = vadd.f32 %v19774_v11, %v15732_v24  ;;  %v4265_v41 = vpop.f32.mrb[103].mxu0 }
 0x3b5   : > { %v4266_v61 = vadd.f32 %v19774_v11, %v4265_v41  ;;  %16507 = vmatprep.mubr.msk.f32.mxu1 %vm5549_vm4, %v5390_v6 }
 0x3b6   : > { %16508 = vmatmul.mubr.msk.f32.gmra.mrb[148].mxu1 %vm5549_vm4, %v5391_v38  ;;  %v5393_v1 = vmax.f32 %v4271_v57, 0.0 }
 0x3b7   : > { %v5392_v46 = vmax.f32 %v4266_v61, 0.0  ;;  %v15735_v25 = vpop.f32.mrb[104].mxu0 }
 0x3b8   : > { %v4281_v52 = vadd.f32 %v19774_v11, %v15735_v25  ;;  %v4275_v49 = vpop.f32.mrb[105].mxu0 }
 0x3b9   : > { %v4276_v40 = vadd.f32 %v19774_v11, %v4275_v49  ;;  %16510 = vmatprep.mubr.msk.f32.mxu1 %vm5549_vm4, %v5392_v46 }
 0x3ba   : > { %16511 = vmatmul.mubr.msk.f32.gmra.mrb[150].mxu1 %vm5549_vm4, %v5393_v1  ;;  %v5395_v12 = vmax.f32 %v4281_v52, 0.0 }
 0x3bb   : > { %v5394_v8 = vmax.f32 %v4276_v40, 0.0  ;;  %v15738_v16 = vpop.f32.mrb[106].mxu0 }
 0x3bc   : > { %v4291_v26 = vadd.f32 %v19774_v11, %v15738_v16  ;;  %v4285_v6 = vpop.f32.mrb[107].mxu0 }
 0x3bd   : > { %v4286_v24 = vadd.f32 %v19774_v11, %v4285_v6  ;;  %16513 = vmatprep.mubr.msk.f32.mxu1 %vm5549_vm4, %v5394_v8 }
 0x3be   : > { %16514 = vmatmul.mubr.msk.f32.gmra.mrb[152].mxu1 %vm5549_vm4, %v5395_v12  ;;  %v5397_v41 = vmax.f32 %v4291_v26, 0.0 }
 0x3bf   : > { %v5396_v38 = vmax.f32 %v4286_v24, 0.0  ;;  %v15741_v57 = vpop.f32.mrb[108].mxu0 }
 0x3c0   : > { %v4301_v61 = vadd.f32 %v19774_v11, %v15741_v57  ;;  %v4295_v46 = vpop.f32.mrb[109].mxu0 }
 0x3c1   : > { %v4296_v25 = vadd.f32 %v19774_v11, %v4295_v46  ;;  %16516 = vmatprep.mubr.msk.f32.mxu1 %vm5549_vm4, %v5396_v38 }
 0x3c2   : > { %16517 = vmatmul.mubr.msk.f32.gmra.mrb[154].mxu1 %vm5549_vm4, %v5397_v41  ;;  %v5399_v49 = vmax.f32 %v4301_v61, 0.0 }
 0x3c3   : > { %v5398_v1 = vmax.f32 %v4296_v25, 0.0  ;;  %v15744_v52 = vpop.f32.mrb[110].mxu0 }
 0x3c4   : > { %v4311_v40 = vadd.f32 %v19774_v11, %v15744_v52  ;;  %v4305_v8 = vpop.f32.mrb[111].mxu0 }
 0x3c5   : > { %v4306_v16 = vadd.f32 %v19774_v11, %v4305_v8  ;;  %16519 = vmatprep.mubr.msk.f32.mxu1 %vm5549_vm4, %v5398_v1 }
 0x3c6   : > { %16520 = vmatmul.mubr.msk.f32.gmra.mrb[156].mxu1 %vm5549_vm4, %v5399_v49  ;;  %v5401_v6 = vmax.f32 %v4311_v40, 0.0 }
 0x3c7   : > { %v5400_v12 = vmax.f32 %v4306_v16, 0.0  ;;  %v15747_v26 = vpop.f32.mrb[112].mxu0 }
 0x3c8   : > { %v4321_v24 = vadd.f32 %v19774_v11, %v15747_v26  ;;  %v4315_v38 = vpop.f32.mrb[113].mxu0 }
 0x3c9   : > { %v4316_v57 = vadd.f32 %v19774_v11, %v4315_v38  ;;  %16522 = vmatprep.mubr.msk.f32.mxu1 %vm5549_vm4, %v5400_v12 }
 0x3ca   : > { %16523 = vmatmul.mubr.msk.f32.gmra.mrb[158].mxu1 %vm5549_vm4, %v5401_v6  ;;  %v5403_v46 = vmax.f32 %v4321_v24, 0.0 }
 0x3cb   : > { %v5402_v41 = vmax.f32 %v4316_v57, 0.0  ;;  %v15750_v61 = vpop.f32.mrb[114].mxu0 }
 0x3cc   : > { %v4331_v25 = vadd.f32 %v19774_v11, %v15750_v61  ;;  %v4325_v1 = vpop.f32.mrb[115].mxu0 }
 0x3cd   : > { %v4326_v52 = vadd.f32 %v19774_v11, %v4325_v1  ;;  %16525 = vmatprep.mubr.msk.f32.mxu1 %vm5549_vm4, %v5402_v41 }
 0x3ce   : > { %16526 = vmatmul.mubr.msk.f32.gmra.mrb[160].mxu1 %vm5549_vm4, %v5403_v46  ;;  %v5405_v8 = vmax.f32 %v4331_v25, 0.0 }
 0x3cf   : > { %v5404_v49 = vmax.f32 %v4326_v52, 0.0  ;;  %v15753_v40 = vpop.f32.mrb[116].mxu0 }
 0x3d0   : > { %v4341_v16 = vadd.f32 %v19774_v11, %v15753_v40  ;;  %v4335_v12 = vpop.f32.mrb[117].mxu0 }
 0x3d1   : > { %v4336_v26 = vadd.f32 %v19774_v11, %v4335_v12  ;;  %16528 = vmatprep.mubr.msk.f32.mxu1 %vm5549_vm4, %v5404_v49 }
 0x3d2   : > { %16529 = vmatmul.mubr.msk.f32.gmra.mrb[162].mxu1 %vm5549_vm4, %v5405_v8  ;;  %v5407_v38 = vmax.f32 %v4341_v16, 0.0 }
 0x3d3   : > { %v5406_v6 = vmax.f32 %v4336_v26, 0.0  ;;  %v15756_v24 = vpop.f32.mrb[118].mxu0 }
 0x3d4   : > { %v4351_v57 = vadd.f32 %v19774_v11, %v15756_v24  ;;  %v4345_v41 = vpop.f32.mrb[119].mxu0 }
 0x3d5   : > { %v4346_v61 = vadd.f32 %v19774_v11, %v4345_v41  ;;  %16531 = vmatprep.mubr.msk.f32.mxu1 %vm5549_vm4, %v5406_v6 }
 0x3d6   : > { %16532 = vmatmul.mubr.msk.f32.gmra.mrb[164].mxu1 %vm5549_vm4, %v5407_v38  ;;  %v5409_v1 = vmax.f32 %v4351_v57, 0.0 }
 0x3d7   : > { %v5408_v46 = vmax.f32 %v4346_v61, 0.0  ;;  %v15759_v25 = vpop.f32.mrb[120].mxu0 }
 0x3d8   : > { %v4361_v52 = vadd.f32 %v19774_v11, %v15759_v25  ;;  %v4355_v49 = vpop.f32.mrb[121].mxu0 }
 0x3d9   : > { %v4356_v40 = vadd.f32 %v19774_v11, %v4355_v49  ;;  %16534 = vmatprep.mubr.msk.f32.mxu1 %vm5549_vm4, %v5408_v46 }
 0x3da   : > { %16535 = vmatmul.mubr.msk.f32.gmra.mrb[166].mxu1 %vm5549_vm4, %v5409_v1  ;;  %v5411_v12 = vmax.f32 %v4361_v52, 0.0 }
 0x3db   : > { %v5410_v8 = vmax.f32 %v4356_v40, 0.0  ;;  %v15762_v16 = vpop.f32.mrb[122].mxu0 }
 0x3dc   : > { %v4371_v26 = vadd.f32 %v19774_v11, %v15762_v16  ;;  %v4365_v6 = vpop.f32.mrb[123].mxu0 }
 0x3dd   : > { %v4366_v24 = vadd.f32 %v19774_v11, %v4365_v6  ;;  %16537 = vmatprep.mubr.msk.f32.mxu1 %vm5549_vm4, %v5410_v8 }
 0x3de   : > { %16538 = vmatmul.mubr.msk.f32.gmra.mrb[168].mxu1 %vm5549_vm4, %v5411_v12  ;;  %v5413_v41 = vmax.f32 %v4371_v26, 0.0 }
 0x3df   : > { %v5412_v38 = vmax.f32 %v4366_v24, 0.0  ;;  %v15765_v57 = vpop.f32.mrb[124].mxu0 }
 0x3e0   : > { %v4381_v61 = vadd.f32 %v19774_v11, %v15765_v57  ;;  %v4375_v46 = vpop.f32.mrb[125].mxu0 }
 0x3e1   : > { %v4376_v25 = vadd.f32 %v19774_v11, %v4375_v46  ;;  %16540 = vmatprep.mubr.msk.f32.mxu1 %vm5549_vm4, %v5412_v38 }
 0x3e2   : > { %16541 = vmatmul.mubr.msk.f32.gmra.mrb[170].mxu1 %vm5549_vm4, %v5413_v41  ;;  %v5415_v49 = vmax.f32 %v4381_v61, 0.0 }
 0x3e3   : > { %v5414_v1 = vmax.f32 %v4376_v25, 0.0  ;;  %v15768_v52 = vpop.f32.mrb[126].mxu0 }
 0x3e4   : > { %v4391_v40 = vadd.f32 %v19774_v11, %v15768_v52  ;;  %v4385_v8 = vpop.f32.mrb[127].mxu0 }
 0x3e5   : > { %v4386_v16 = vadd.f32 %v19774_v11, %v4385_v8  ;;  %16543 = vmatprep.mubr.msk.f32.mxu1 %vm5549_vm4, %v5414_v1 }
 0x3e6   : > { %16544 = vmatmul.mubr.msk.f32.gmra.mrb[172].mxu1 %vm5549_vm4, %v5415_v49  ;;  %v5417_v6 = vmax.f32 %v4391_v40, 0.0 }
 0x3e7   : > { %v5416_v12 = vmax.f32 %v4386_v16, 0.0  ;;  %v15771_v26 = vpop.f32.mrb[128].mxu0 }
 0x3e8   : > { %v4401_v24 = vadd.f32 %v19774_v11, %v15771_v26  ;;  %v4395_v38 = vpop.f32.mrb[129].mxu0 }
 0x3e9   : > { %v4396_v57 = vadd.f32 %v19774_v11, %v4395_v38  ;;  %16546 = vmatprep.mubr.msk.f32.mxu1 %vm5549_vm4, %v5416_v12 }
 0x3ea   : > { %16547 = vmatmul.mubr.msk.f32.gmra.mrb[174].mxu1 %vm5549_vm4, %v5417_v6  ;;  %v5419_v46 = vmax.f32 %v4401_v24, 0.0 }
 0x3eb   : > { %v5418_v41 = vmax.f32 %v4396_v57, 0.0  ;;  %v15774_v61 = vpop.f32.mrb[130].mxu0 }
 0x3ec   : > { %v4411_v25 = vadd.f32 %v19774_v11, %v15774_v61  ;;  %v4405_v1 = vpop.f32.mrb[131].mxu0 }
 0x3ed   : > { %v4406_v52 = vadd.f32 %v19774_v11, %v4405_v1  ;;  %16553 = vmatprep.mubr.msk.f32.mxu1 %vm5549_vm4, %v5418_v41 }
 0x3ee   : > { %16554 = vmatmul.mubr.msk.f32.vlgmr.msra.gmra.mrb[48].mxu1 %vm5549_vm4, %v5419_v46  ;;  %v5421_v8 = vmax.f32 %v4411_v25, 0.0 }
 0x3ef   : > { %v5420_v49 = vmax.f32 %v4406_v52, 0.0  ;;  %v15777_v40 = vpop.f32.mrb[132].mxu0 }
 0x3f0   : > { %v4421_v16 = vadd.f32 %v19774_v11, %v15777_v40  ;;  %v4415_v12 = vpop.f32.mrb[133].mxu0 }
 0x3f1   : > { %v4416_v26 = vadd.f32 %v19774_v11, %v4415_v12  ;;  %16556 = vmatprep.mubr.msk.f32.mxu1 %vm5549_vm4, %v5420_v49 }
 0x3f2   : > { %16557 = vmatmul.mubr.msk.f32.gmra.mrb[50].mxu1 %vm5549_vm4, %v5421_v8  ;;  %v5423_v38 = vmax.f32 %v4421_v16, 0.0 }
 0x3f3   : > { %v5422_v6 = vmax.f32 %v4416_v26, 0.0  ;;  %v15780_v24 = vpop.f32.mrb[134].mxu0 }
 0x3f4   : > { %v4431_v57 = vadd.f32 %v19774_v11, %v15780_v24  ;;  %v4425_v41 = vpop.f32.mrb[135].mxu0 }
 0x3f5   : > { %v4426_v61 = vadd.f32 %v19774_v11, %v4425_v41  ;;  %16559 = vmatprep.mubr.msk.f32.mxu1 %vm5549_vm4, %v5422_v6 }
 0x3f6   : > { %16560 = vmatmul.mubr.msk.f32.gmra.mrb[52].mxu1 %vm5549_vm4, %v5423_v38  ;;  %v5425_v1 = vmax.f32 %v4431_v57, 0.0 }
 0x3f7   : > { %v5424_v46 = vmax.f32 %v4426_v61, 0.0  ;;  %v15783_v25 = vpop.f32.mrb[136].mxu0 }
 0x3f8   : > { %v4441_v52 = vadd.f32 %v19774_v11, %v15783_v25  ;;  %v4435_v49 = vpop.f32.mrb[137].mxu0 }
 0x3f9   : > { %v4436_v40 = vadd.f32 %v19774_v11, %v4435_v49  ;;  %16562 = vmatprep.mubr.msk.f32.mxu1 %vm5549_vm4, %v5424_v46 }
 0x3fa   : > { %16563 = vmatmul.mubr.msk.f32.gmra.mrb[54].mxu1 %vm5549_vm4, %v5425_v1  ;;  %v5427_v12 = vmax.f32 %v4441_v52, 0.0 }
 0x3fb   : > { %v5426_v8 = vmax.f32 %v4436_v40, 0.0  ;;  %v15786_v16 = vpop.f32.mrb[138].mxu0 }
 0x3fc   : > { %v4451_v26 = vadd.f32 %v19774_v11, %v15786_v16  ;;  %v4445_v6 = vpop.f32.mrb[139].mxu0 }
 0x3fd   : > { %v4446_v24 = vadd.f32 %v19774_v11, %v4445_v6  ;;  %16565 = vmatprep.mubr.msk.f32.mxu1 %vm5549_vm4, %v5426_v8 }
 0x3fe   : > { %16566 = vmatmul.mubr.msk.f32.gmra.mrb[56].mxu1 %vm5549_vm4, %v5427_v12  ;;  %v5429_v41 = vmax.f32 %v4451_v26, 0.0 }
 0x3ff   : > { %v5428_v38 = vmax.f32 %v4446_v24, 0.0  ;;  %v15789_v57 = vpop.f32.mrb[140].mxu0 }
 0x400   : > { %v4461_v61 = vadd.f32 %v19774_v11, %v15789_v57  ;;  %v4455_v46 = vpop.f32.mrb[141].mxu0 }
 0x401   : > { %v4456_v25 = vadd.f32 %v19774_v11, %v4455_v46  ;;  %16568 = vmatprep.mubr.msk.f32.mxu1 %vm5549_vm4, %v5428_v38 }
 0x402   : > { %16569 = vmatmul.mubr.msk.f32.gmra.mrb[58].mxu1 %vm5549_vm4, %v5429_v41  ;;  %v5431_v49 = vmax.f32 %v4461_v61, 0.0 }
 0x403   : > { %v5430_v1 = vmax.f32 %v4456_v25, 0.0  ;;  %v15792_v52 = vpop.f32.mrb[142].mxu0 }
 0x404   : > { %v4471_v40 = vadd.f32 %v19774_v11, %v15792_v52  ;;  %v4465_v8 = vpop.f32.mrb[143].mxu0 }
 0x405   : > { %v4466_v16 = vadd.f32 %v19774_v11, %v4465_v8  ;;  %16571 = vmatprep.mubr.msk.f32.mxu1 %vm5549_vm4, %v5430_v1 }
 0x406   : > { %16572 = vmatmul.mubr.msk.f32.gmra.mrb[60].mxu1 %vm5549_vm4, %v5431_v49  ;;  %v5433_v6 = vmax.f32 %v4471_v40, 0.0 }
 0x407   : > { %v5432_v12 = vmax.f32 %v4466_v16, 0.0  ;;  %v15795_v26 = vpop.f32.mrb[144].mxu0 }
 0x408   : > { %v4481_v24 = vadd.f32 %v19774_v11, %v15795_v26  ;;  %v4475_v38 = vpop.f32.mrb[145].mxu0 }
 0x409   : > { %v4476_v57 = vadd.f32 %v19774_v11, %v4475_v38  ;;  %16574 = vmatprep.mubr.msk.f32.mxu1 %vm5549_vm4, %v5432_v12 }
 0x40a   : > { %16575 = vmatmul.mubr.msk.f32.gmra.mrb[62].mxu1 %vm5549_vm4, %v5433_v6  ;;  %v5435_v46 = vmax.f32 %v4481_v24, 0.0 }
 0x40b   : > { %v5434_v41 = vmax.f32 %v4476_v57, 0.0  ;;  %v15798_v61 = vpop.f32.mrb[146].mxu0 }
 0x40c   : > { %v4491_v25 = vadd.f32 %v19774_v11, %v15798_v61  ;;  %v4485_v1 = vpop.f32.mrb[147].mxu0 }
 0x40d   : > { %v4486_v52 = vadd.f32 %v19774_v11, %v4485_v1  ;;  %16577 = vmatprep.mubr.msk.f32.mxu1 %vm5549_vm4, %v5434_v41 }
 0x40e   : > { %16578 = vmatmul.mubr.msk.f32.gmra.mrb[64].mxu1 %vm5549_vm4, %v5435_v46  ;;  %v5437_v8 = vmax.f32 %v4491_v25, 0.0 }
 0x40f   : > { %v5436_v49 = vmax.f32 %v4486_v52, 0.0  ;;  %v15801_v40 = vpop.f32.mrb[148].mxu0 }
 0x410   : > { %v4501_v16 = vadd.f32 %v19774_v11, %v15801_v40  ;;  %v4495_v12 = vpop.f32.mrb[149].mxu0 }
 0x411   : > { %v4496_v26 = vadd.f32 %v19774_v11, %v4495_v12  ;;  %16580 = vmatprep.mubr.msk.f32.mxu1 %vm5549_vm4, %v5436_v49 }
 0x412   : > { %16581 = vmatmul.mubr.msk.f32.gmra.mrb[66].mxu1 %vm5549_vm4, %v5437_v8  ;;  %v5439_v38 = vmax.f32 %v4501_v16, 0.0 }
 0x413   : > { %v5438_v6 = vmax.f32 %v4496_v26, 0.0  ;;  %v15804_v24 = vpop.f32.mrb[150].mxu0 }
 0x414   : > { %v4511_v57 = vadd.f32 %v19774_v11, %v15804_v24  ;;  %v4505_v41 = vpop.f32.mrb[151].mxu0 }
 0x415   : > { %v4506_v61 = vadd.f32 %v19774_v11, %v4505_v41  ;;  %16583 = vmatprep.mubr.msk.f32.mxu1 %vm5549_vm4, %v5438_v6 }
 0x416   : > { %16584 = vmatmul.mubr.msk.f32.gmra.mrb[68].mxu1 %vm5549_vm4, %v5439_v38  ;;  %v5441_v1 = vmax.f32 %v4511_v57, 0.0 }
 0x417   : > { %v5440_v46 = vmax.f32 %v4506_v61, 0.0  ;;  %v15807_v25 = vpop.f32.mrb[152].mxu0 }
 0x418   : > { %v4521_v52 = vadd.f32 %v19774_v11, %v15807_v25  ;;  %v4515_v49 = vpop.f32.mrb[153].mxu0 }
 0x419   : > { %v4516_v40 = vadd.f32 %v19774_v11, %v4515_v49  ;;  %16586 = vmatprep.mubr.msk.f32.mxu1 %vm5549_vm4, %v5440_v46 }
 0x41a   : > { %16587 = vmatmul.mubr.msk.f32.gmra.mrb[70].mxu1 %vm5549_vm4, %v5441_v1  ;;  %v5443_v12 = vmax.f32 %v4521_v52, 0.0 }
 0x41b   : > { %v5442_v8 = vmax.f32 %v4516_v40, 0.0  ;;  %v15810_v16 = vpop.f32.mrb[154].mxu0 }
 0x41c   : > { %v4531_v26 = vadd.f32 %v19774_v11, %v15810_v16  ;;  %v4525_v6 = vpop.f32.mrb[155].mxu0 }
 0x41d   : > { %v4526_v24 = vadd.f32 %v19774_v11, %v4525_v6  ;;  %16589 = vmatprep.mubr.msk.f32.mxu1 %vm5549_vm4, %v5442_v8 }
 0x41e   : > { %16590 = vmatmul.mubr.msk.f32.gmra.mrb[72].mxu1 %vm5549_vm4, %v5443_v12  ;;  %v5445_v41 = vmax.f32 %v4531_v26, 0.0 }
 0x41f   : > { %v5444_v38 = vmax.f32 %v4526_v24, 0.0  ;;  %v15813_v57 = vpop.f32.mrb[156].mxu0 }
 0x420   : > { %v4541_v61 = vadd.f32 %v19774_v11, %v15813_v57  ;;  %v4535_v46 = vpop.f32.mrb[157].mxu0 }
 0x421   : > { %v4536_v25 = vadd.f32 %v19774_v11, %v4535_v46  ;;  %16592 = vmatprep.mubr.msk.f32.mxu1 %vm5549_vm4, %v5444_v38 }
 0x422   : > { %16593 = vmatmul.mubr.msk.f32.gmra.mrb[74].mxu1 %vm5549_vm4, %v5445_v41  ;;  %v5447_v49 = vmax.f32 %v4541_v61, 0.0 }
 0x423   : > { %v5446_v1 = vmax.f32 %v4536_v25, 0.0  ;;  %v15816_v52 = vpop.f32.mrb[158].mxu0 }
 0x424   : > { %v4551_v40 = vadd.f32 %v19774_v11, %v15816_v52  ;;  %v4545_v8 = vpop.f32.mrb[159].mxu0 }
 0x425   : > { %v4546_v16 = vadd.f32 %v19774_v11, %v4545_v8  ;;  %16595 = vmatprep.mubr.msk.f32.mxu1 %vm5549_vm4, %v5446_v1 }
 0x426   : > { %16596 = vmatmul.mubr.msk.f32.gmra.mrb[76].mxu1 %vm5549_vm4, %v5447_v49  ;;  %v5449_v6 = vmax.f32 %v4551_v40, 0.0 }
 0x427   : > { %v5448_v12 = vmax.f32 %v4546_v16, 0.0  ;;  %v15819_v26 = vpop.f32.mrb[160].mxu0 }
 0x428   : > { %v4561_v24 = vadd.f32 %v19774_v11, %v15819_v26  ;;  %v4555_v38 = vpop.f32.mrb[161].mxu0 }
 0x429   : > { %v4556_v57 = vadd.f32 %v19774_v11, %v4555_v38  ;;  %16598 = vmatprep.mubr.msk.f32.mxu1 %vm5549_vm4, %v5448_v12 }
 0x42a   : > { %16599 = vmatmul.mubr.msk.f32.gmra.mrb[78].mxu1 %vm5549_vm4, %v5449_v6  ;;  %v5451_v46 = vmax.f32 %v4561_v24, 0.0 }
 0x42b   : > { %v5450_v41 = vmax.f32 %v4556_v57, 0.0  ;;  %v15822_v61 = vpop.f32.mrb[162].mxu0 }
 0x42c   : > { %v4571_v25 = vadd.f32 %v19774_v11, %v15822_v61  ;;  %v4565_v1 = vpop.f32.mrb[163].mxu0 }
 0x42d   : > { %v4566_v52 = vadd.f32 %v19774_v11, %v4565_v1  ;;  %16601 = vmatprep.mubr.msk.f32.mxu1 %vm5549_vm4, %v5450_v41 }
 0x42e   : > { %16602 = vmatmul.mubr.msk.f32.gmra.mrb[80].mxu1 %vm5549_vm4, %v5451_v46  ;;  %v5453_v8 = vmax.f32 %v4571_v25, 0.0 }
 0x42f   : > { %v5452_v49 = vmax.f32 %v4566_v52, 0.0  ;;  %v15825_v40 = vpop.f32.mrb[164].mxu0 }
 0x430   : > { %v4581_v16 = vadd.f32 %v19774_v11, %v15825_v40  ;;  %v4575_v12 = vpop.f32.mrb[165].mxu0 }
 0x431   : > { %v4576_v26 = vadd.f32 %v19774_v11, %v4575_v12  ;;  %16604 = vmatprep.mubr.msk.f32.mxu1 %vm5549_vm4, %v5452_v49 }
 0x432   : > { %16605 = vmatmul.mubr.msk.f32.gmra.mrb[82].mxu1 %vm5549_vm4, %v5453_v8  ;;  %v5455_v38 = vmax.f32 %v4581_v16, 0.0 }
 0x433   : > { %v5454_v6 = vmax.f32 %v4576_v26, 0.0  ;;  %v15828_v24 = vpop.f32.mrb[166].mxu0 }
 0x434   : > { %v4591_v57 = vadd.f32 %v19774_v11, %v15828_v24  ;;  %v4585_v41 = vpop.f32.mrb[167].mxu0 }
 0x435   : > { %v4586_v61 = vadd.f32 %v19774_v11, %v4585_v41  ;;  %16607 = vmatprep.mubr.msk.f32.mxu1 %vm5549_vm4, %v5454_v6 }
 0x436   : > { %16608 = vmatmul.mubr.msk.f32.gmra.mrb[84].mxu1 %vm5549_vm4, %v5455_v38  ;;  %v5457_v1 = vmax.f32 %v4591_v57, 0.0 }
 0x437   : > { %v5456_v46 = vmax.f32 %v4586_v61, 0.0  ;;  %v15831_v25 = vpop.f32.mrb[168].mxu0 }
 0x438   : > { %v4601_v52 = vadd.f32 %v19774_v11, %v15831_v25  ;;  %v4595_v49 = vpop.f32.mrb[169].mxu0 }
 0x439   : > { %v4596_v40 = vadd.f32 %v19774_v11, %v4595_v49  ;;  %16610 = vmatprep.mubr.msk.f32.mxu1 %vm5549_vm4, %v5456_v46 }
 0x43a   : > { %16611 = vmatmul.mubr.msk.f32.gmra.mrb[86].mxu1 %vm5549_vm4, %v5457_v1  ;;  %v5459_v12 = vmax.f32 %v4601_v52, 0.0 }
 0x43b   : > { %v5458_v8 = vmax.f32 %v4596_v40, 0.0  ;;  %v15834_v16 = vpop.f32.mrb[170].mxu0 }
 0x43c   : > { %v4611_v26 = vadd.f32 %v19774_v11, %v15834_v16  ;;  %v4605_v6 = vpop.f32.mrb[171].mxu0 }
 0x43d   : > { %v4606_v24 = vadd.f32 %v19774_v11, %v4605_v6  ;;  %16613 = vmatprep.mubr.msk.f32.mxu1 %vm5549_vm4, %v5458_v8 }
 0x43e   : > { %16614 = vmatmul.mubr.msk.f32.gmra.mrb[88].mxu1 %vm5549_vm4, %v5459_v12  ;;  %v5461_v41 = vmax.f32 %v4611_v26, 0.0 }
 0x43f   : > { %v5460_v38 = vmax.f32 %v4606_v24, 0.0  ;;  %v15837_v57 = vpop.f32.mrb[172].mxu0 }
 0x440   : > { %v4621_v61 = vadd.f32 %v19774_v11, %v15837_v57  ;;  %v4615_v46 = vpop.f32.mrb[173].mxu0 }
 0x441   : > { %v4616_v25 = vadd.f32 %v19774_v11, %v4615_v46  ;;  %16616 = vmatprep.mubr.msk.f32.mxu1 %vm5549_vm4, %v5460_v38 }
 0x442   : > { %16617 = vmatmul.mubr.msk.f32.gmra.mrb[90].mxu1 %vm5549_vm4, %v5461_v41  ;;  %v5463_v49 = vmax.f32 %v4621_v61, 0.0  ;;  %v13778_v41 = vld [vmem:[%s20735_s5 + $0x20] sm:$0xff]  ;;  %v13779_v61 = vld [vmem:[%s20735_s5 + $0x28] sm:$0xff] }
 0x443   : > { %v5462_v1 = vmax.f32 %v4616_v25, 0.0  ;;  %v15840_v52 = vpop.f32.mrb[174].mxu0  ;;  %v20034_v46 = vpack.c.bf16 %v13779_v61, %v13778_v41 }
 0x444   : > { %v4631_v40 = vadd.f32 %v19774_v11, %v15840_v52  ;;  %v4625_v8 = vpop.f32.mrb[175].mxu0 }
 0x445   : > { %v4626_v16 = vadd.f32 %v19774_v11, %v4625_v8  ;;  %16619 = vmatprep.mubr.msk.f32.mxu1 %vm5549_vm4, %v5462_v1  ;;  %17112 = vmatprep.subr.bf16.mxu0 %v20034_v46 }
 0x446   : > { %16620 = vmatmul.mubr.msk.f32.gmra.mrb[92].mxu1 %vm5549_vm4, %v5463_v49  ;;  %v5465_v6 = vmax.f32 %v4631_v40, 0.0 }
 0x447   : > { %v5464_v12 = vmax.f32 %v4626_v16, 0.0  ;;  %v15843_v26 = vpop.f32.mrb[176].mxu0 }
 0x448   : > { %v4641_v24 = vadd.f32 %v19774_v11, %v15843_v26  ;;  %v4635_v38 = vpop.f32.mrb[177].mxu0 }
 0x449   : > { %v4636_v57 = vadd.f32 %v19774_v11, %v4635_v38  ;;  %16622 = vmatprep.mubr.msk.f32.mxu1 %vm5549_vm4, %v5464_v12 }
 0x44a   : > { %16623 = vmatmul.mubr.msk.f32.gmra.mrb[94].mxu1 %vm5549_vm4, %v5465_v6  ;;  %v5467_v52 = vmax.f32 %v4641_v24, 0.0 }
 0x44b   : > { %v5466_v25 = vmax.f32 %v4636_v57, 0.0  ;;  %v15846_v1 = vpop.f32.mrb[178].mxu0 }
 0x44c   : > { %v4651_v49 = vadd.f32 %v19774_v11, %v15846_v1  ;;  %v4645_v40 = vpop.f32.mrb[179].mxu0 }
 0x44d   : > { %v4646_v8 = vadd.f32 %v19774_v11, %v4645_v40  ;;  %16625 = vmatprep.mubr.msk.f32.mxu1 %vm5549_vm4, %v5466_v25 }
 0x44e   : > { %16626 = vmatmul.mubr.msk.f32.gmra.mrb[96].mxu1 %vm5549_vm4, %v5467_v52  ;;  %v5469_v26 = vmax.f32 %v4651_v49, 0.0 }
 0x44f   : > { %v5468_v16 = vmax.f32 %v4646_v8, 0.0  ;;  %v15849_v12 = vpop.f32.mrb[180].mxu0 }
 0x450   : > { %v4661_v6 = vadd.f32 %v19774_v11, %v15849_v12  ;;  %v4655_v38 = vpop.f32.mrb[181].mxu0 }
 0x451   : > { %v4656_v57 = vadd.f32 %v19774_v11, %v4655_v38  ;;  %16628 = vmatprep.mubr.msk.f32.mxu1 %vm5549_vm4, %v5468_v16 }
 0x452   : > { %16629 = vmatmul.mubr.msk.f32.gmra.mrb[98].mxu1 %vm5549_vm4, %v5469_v26  ;;  %v5471_v61 = vmax.f32 %v4661_v6, 0.0 }
 0x453   : > { %v5470_v24 = vmax.f32 %v4656_v57, 0.0  ;;  %v15852_v41 = vpop.f32.mrb[182].mxu0 }
 0x454   : > { %v4671_v1 = vadd.f32 %v19774_v11, %v15852_v41  ;;  %v4665_v25 = vpop.f32.mrb[183].mxu0 }
 0x455   : > { %v4666_v52 = vadd.f32 %v19774_v11, %v4665_v25  ;;  %16631 = vmatprep.mubr.msk.f32.mxu1 %vm5549_vm4, %v5470_v24 }
 0x456   : > { %16632 = vmatmul.mubr.msk.f32.gmra.mrb[100].mxu1 %vm5549_vm4, %v5471_v61  ;;  %v5473_v8 = vmax.f32 %v4671_v1, 0.0 }
 0x457   : > { %v5472_v49 = vmax.f32 %v4666_v52, 0.0  ;;  %v15855_v40 = vpop.f32.mrb[184].mxu0 }
 0x458   : > { %v4681_v12 = vadd.f32 %v19774_v11, %v15855_v40  ;;  %v4675_v16 = vpop.f32.mrb[185].mxu0 }
 0x459   : > { %v4676_v26 = vadd.f32 %v19774_v11, %v4675_v16  ;;  %16634 = vmatprep.mubr.msk.f32.mxu1 %vm5549_vm4, %v5472_v49 }
 0x45a   : > { %16635 = vmatmul.mubr.msk.f32.gmra.mrb[102].mxu1 %vm5549_vm4, %v5473_v8  ;;  %v5475_v57 = vmax.f32 %v4681_v12, 0.0 }
 0x45b   : > { %v5474_v6 = vmax.f32 %v4676_v26, 0.0  ;;  %v15858_v38 = vpop.f32.mrb[186].mxu0 }
 0x45c   : > { %v4691_v41 = vadd.f32 %v19774_v11, %v15858_v38  ;;  %v4685_v24 = vpop.f32.mrb[187].mxu0 }
 0x45d   : > { %v4686_v61 = vadd.f32 %v19774_v11, %v4685_v24  ;;  %16637 = vmatprep.mubr.msk.f32.mxu1 %vm5549_vm4, %v5474_v6 }
 0x45e   : > { %16638 = vmatmul.mubr.msk.f32.gmra.mrb[104].mxu1 %vm5549_vm4, %v5475_v57  ;;  %v5477_v52 = vmax.f32 %v4691_v41, 0.0 }
 0x45f   : > { %v5476_v1 = vmax.f32 %v4686_v61, 0.0  ;;  %v15861_v25 = vpop.f32.mrb[188].mxu0 }
 0x460   : > { %v4701_v40 = vadd.f32 %v19774_v11, %v15861_v25  ;;  %v4695_v49 = vpop.f32.mrb[189].mxu0 }
 0x461   : > { %v4696_v8 = vadd.f32 %v19774_v11, %v4695_v49  ;;  %16640 = vmatprep.mubr.msk.f32.mxu1 %vm5549_vm4, %v5476_v1  ;;  %v20068_v1 = vld [vmem:[%s20732_s2] ss:$0 sm:$0xff] }
 0x462   : > { %16641 = vmatmul.mubr.msk.f32.gmra.mrb[106].mxu1 %vm5549_vm4, %v5477_v52  ;;  %v5479_v26 = vmax.f32 %v4701_v40, 0.0 }
 0x463   : > { %v5478_v12 = vmax.f32 %v4696_v8, 0.0  ;;  %v15864_v16 = vpop.f32.mrb[190].mxu0 }
 0x464   : > { %v4711_v38 = vadd.f32 %v19774_v11, %v15864_v16  ;;  %v4705_v6 = vpop.f32.mrb[191].mxu0 }
 0x465   : > { %v4706_v57 = vadd.f32 %v19774_v11, %v4705_v6  ;;  %16643 = vmatprep.mubr.msk.f32.mxu1 %vm5549_vm4, %v5478_v12 }
 0x466   : > { %16644 = vmatmul.mubr.msk.f32.gmra.mrb[108].mxu1 %vm5549_vm4, %v5479_v26  ;;  %v5481_v61 = vmax.f32 %v4711_v38, 0.0 }
 0x467   : > { %v5480_v41 = vmax.f32 %v4706_v57, 0.0  ;;  %v15867_v24 = vpop.f32.mrb[192].mxu0 }
 0x468   : > { %v4721_v25 = vadd.f32 %v20068_v1, %v15867_v24  ;;  %v4715_v52 = vpop.f32.mrb[193].mxu0 }
 0x469   : > { %v4716_v40 = vadd.f32 %v20068_v1, %v4715_v52  ;;  %16646 = vmatprep.mubr.msk.f32.mxu1 %vm5549_vm4, %v5480_v41 }
 0x46a   : > { %16647 = vmatmul.mubr.msk.f32.gmra.mrb[110].mxu1 %vm5549_vm4, %v5481_v61  ;;  %v5483_v8 = vmax.f32 %v4721_v25, 0.0 }
 0x46b   : > { %v5482_v11 = vmax.f32 %v4716_v40, 0.0  ;;  %v15870_v49 = vpop.f32.mrb[194].mxu0 }
 0x46c   : > { %v4731_v12 = vadd.f32 %v20068_v1, %v15870_v49  ;;  %v4725_v16 = vpop.f32.mrb[195].mxu0 }
 0x46d   : > { %v4726_v26 = vadd.f32 %v20068_v1, %v4725_v16  ;;  %16649 = vmatprep.mubr.msk.f32.mxu1 %vm5549_vm4, %v5482_v11 }
 0x46e   : > { %16650 = vmatmul.mubr.msk.f32.gmra.mrb[112].mxu1 %vm5549_vm4, %v5483_v8  ;;  %v5485_v57 = vmax.f32 %v4731_v12, 0.0 }
 0x46f   : > { %v5484_v38 = vmax.f32 %v4726_v26, 0.0  ;;  %v15873_v6 = vpop.f32.mrb[196].mxu0 }
 0x470   : > { %v4741_v24 = vadd.f32 %v20068_v1, %v15873_v6  ;;  %v4735_v41 = vpop.f32.mrb[197].mxu0 }
 0x471   : > { %v4736_v61 = vadd.f32 %v20068_v1, %v4735_v41  ;;  %16652 = vmatprep.mubr.msk.f32.mxu1 %vm5549_vm4, %v5484_v38 }
 0x472   : > { %16653 = vmatmul.mubr.msk.f32.gmra.mrb[114].mxu1 %vm5549_vm4, %v5485_v57  ;;  %v5487_v40 = vmax.f32 %v4741_v24, 0.0 }
 0x473   : > { %v5486_v25 = vmax.f32 %v4736_v61, 0.0  ;;  %v15876_v52 = vpop.f32.mrb[198].mxu0 }
 0x474   : > { %v4751_v49 = vadd.f32 %v20068_v1, %v15876_v52  ;;  %v4745_v11 = vpop.f32.mrb[199].mxu0 }
 0x475   : > { %v4746_v8 = vadd.f32 %v20068_v1, %v4745_v11  ;;  %16655 = vmatprep.mubr.msk.f32.mxu1 %vm5549_vm4, %v5486_v25 }
 0x476   : > { %16656 = vmatmul.mubr.msk.f32.gmra.mrb[116].mxu1 %vm5549_vm4, %v5487_v40  ;;  %v5489_v26 = vmax.f32 %v4751_v49, 0.0 }
 0x477   : > { %v5488_v12 = vmax.f32 %v4746_v8, 0.0  ;;  %v15879_v16 = vpop.f32.mrb[200].mxu0 }
 0x478   : > { %v4761_v6 = vadd.f32 %v20068_v1, %v15879_v16  ;;  %v4755_v38 = vpop.f32.mrb[201].mxu0 }
 0x479   : > { %v4756_v57 = vadd.f32 %v20068_v1, %v4755_v38  ;;  %16658 = vmatprep.mubr.msk.f32.mxu1 %vm5549_vm4, %v5488_v12 }
 0x47a   : > { %16659 = vmatmul.mubr.msk.f32.gmra.mrb[118].mxu1 %vm5549_vm4, %v5489_v26  ;;  %v5491_v61 = vmax.f32 %v4761_v6, 0.0 }
 0x47b   : > { %v5490_v24 = vmax.f32 %v4756_v57, 0.0  ;;  %v15882_v41 = vpop.f32.mrb[202].mxu0 }
 0x47c   : > { %v4771_v52 = vadd.f32 %v20068_v1, %v15882_v41  ;;  %v4765_v25 = vpop.f32.mrb[203].mxu0 }
 0x47d   : > { %v4766_v40 = vadd.f32 %v20068_v1, %v4765_v25  ;;  %16661 = vmatprep.mubr.msk.f32.mxu1 %vm5549_vm4, %v5490_v24 }
 0x47e   : > { %16662 = vmatmul.mubr.msk.f32.gmra.mrb[120].mxu1 %vm5549_vm4, %v5491_v61  ;;  %v5493_v8 = vmax.f32 %v4771_v52, 0.0  ;;  %v4796_v61 = vadd.f32 %v20068_v1, %v18350_v22 }
 0x47f   : > { %v5492_v49 = vmax.f32 %v4766_v40, 0.0  ;;  %v15885_v11 = vpop.f32.mrb[204].mxu0  ;;  %v4801_v40 = vadd.f32 %v20068_v1, %v18346_v18 }
 0x480   : > { %v4781_v16 = vadd.f32 %v20068_v1, %v15885_v11  ;;  %v4775_v12 = vpop.f32.mrb[205].mxu0  ;;  %v5498_v11 = vmax.f32 %v4796_v61, 0.0  ;;  %v4846_v61 = vadd.f32 %v20068_v1, %v18410_v9  ;;  %v4861_v9 = vadd.f32 %v20068_v1, %v18418_v15 }
 0x481   : > { %v4776_v26 = vadd.f32 %v20068_v1, %v4775_v12  ;;  %16664 = vmatprep.mubr.msk.f32.mxu1 %vm5549_vm4, %v5492_v49  ;;  %v5499_v22 = vmax.f32 %v4801_v40, 0.0 }
 0x482   : > { %16665 = vmatmul.mubr.msk.f32.gmra.mrb[122].mxu1 %vm5549_vm4, %v5493_v8  ;;  %v5495_v57 = vmax.f32 %v4781_v16, 0.0  ;;  %v4806_v8 = vadd.f32 %v20068_v1, %v18362_v33  ;;  %v4811_v16 = vadd.f32 %v20068_v1, %v18358_v28  ;;  %v4821_v33 = vadd.f32 %v20068_v1, %v18370_v39 }
 0x483   : > { %v5494_v6 = vmax.f32 %v4776_v26, 0.0  ;;  %v15888_v38 = vpop.f32.mrb[206].mxu0  ;;  %v4816_v26 = vadd.f32 %v20068_v1, %v18374_v44  ;;  %v4831_v44 = vadd.f32 %v20068_v1, %v18382_v50 }
 0x484   : > { %v4791_v41 = vadd.f32 %v20068_v1, %v15888_v38  ;;  %v4785_v24 = vpop.f32.mrb[207].mxu0  ;;  %v5500_v12 = vmax.f32 %v4806_v8, 0.0  ;;  %v5501_v18 = vmax.f32 %v4811_v16, 0.0  ;;  %v4826_v38 = vadd.f32 %v20068_v1, %v18386_v54 }
 0x485   : > { %v4786_v52 = vadd.f32 %v20068_v1, %v4785_v24  ;;  %16667 = vmatprep.mubr.msk.f32.mxu1 %vm5549_vm4, %v5494_v6  ;;  %v5502_v6 = vmax.f32 %v4816_v26, 0.0  ;;  %v5503_v28 = vmax.f32 %v4821_v33, 0.0  ;;  %v5505_v39 = vmax.f32 %v4831_v44, 0.0 }
 0x486   : > { %16668 = vmatmul.mubr.msk.f32.gmra.mrb[124].mxu1 %vm5549_vm4, %v5495_v57  ;;  %v5497_v49 = vmax.f32 %v4791_v41, 0.0  ;;  %v5504_v57 = vmax.f32 %v4826_v38, 0.0  ;;  %v4836_v41 = vadd.f32 %v20068_v1, %v18398_v0  ;;  %v4841_v54 = vadd.f32 %v20068_v1, %v18394_v60 }
 0x487   : > { %v5496_v25 = vmax.f32 %v4786_v52, 0.0  ;;  %v4851_v0 = vadd.f32 %v20068_v1, %v18406_v5  ;;  %v5508_v52 = vmax.f32 %v4846_v61, 0.0  ;;  %v5511_v5 = vmax.f32 %v4861_v9, 0.0 }
 0x488   : > { %v5506_v24 = vmax.f32 %v4836_v41, 0.0  ;;  %v5507_v50 = vmax.f32 %v4841_v54, 0.0  ;;  %v4876_v8 = vadd.f32 %v20068_v1, %v18446_v47  ;;  %v4886_v16 = vadd.f32 %v20068_v1, %v18458_v59 }
 0x489   : > { %16670 = vmatprep.mubr.msk.f32.mxu1 %vm5549_vm4, %v5496_v25  ;;  %v4856_v25 = vadd.f32 %v20068_v1, %v18422_v20  ;;  %v5509_v60 = vmax.f32 %v4851_v0, 0.0  ;;  %v4871_v20 = vadd.f32 %v20068_v1, %v18430_v27  ;;  %v4891_v47 = vadd.f32 %v20068_v1, %v18454_v55  ;;  %v13780_v0 = vld [vmem:[%s20735_s5 + $0x30] sm:$0xff] }
 0x48a   : > { %16671 = vmatmul.mubr.msk.f32.gmra.mrb[126].mxu1 %vm5549_vm4, %v5497_v49  ;;  %v4866_v49 = vadd.f32 %v20068_v1, %v18434_v34  ;;  %v4881_v34 = vadd.f32 %v20068_v1, %v18442_v42  ;;  %v4896_v26 = vadd.f32 %v20068_v1, %v18470_v7  ;;  %v4901_v59 = vadd.f32 %v20068_v1, %v18466_v2 }
 0x48b   : > { %16673 = vmatprep.mubr.msk.f32.mxu1 %vm5549_vm4, %v5498_v11  ;;  %v5510_v40 = vmax.f32 %v4856_v25, 0.0  ;;  %v5513_v15 = vmax.f32 %v4871_v20, 0.0  ;;  %v5517_v42 = vmax.f32 %v4891_v47, 0.0  ;;  %v4906_v33 = vadd.f32 %v20068_v1, %v18482_v21 }
 0x48c   : > { %v5512_v11 = vmax.f32 %v4866_v49, 0.0  ;;  %v5515_v27 = vmax.f32 %v4881_v34, 0.0  ;;  %v5519_v55 = vmax.f32 %v4901_v59, 0.0  ;;  %v4911_v7 = vadd.f32 %v20068_v1, %v18478_v14 }
 0x48d   : > { %v4916_v38 = vadd.f32 %v20068_v1, %v18494_v37  ;;  %v4921_v21 = vadd.f32 %v20068_v1, %v18490_v30  ;;  %v4926_v44 = vadd.f32 %v20068_v1, %v18506_v53  ;;  %v4931_v37 = vadd.f32 %v20068_v1, %v18502_v48  ;;  %v20196_v53 = vld [vmem:[%s20189_s24] ss:$0 sm:$0xff] }
 0x48e   : > { %16674 = vmatmul.mubr.msk.f32.gmra.mrb[128].mxu1 %vm5549_vm4, %v5499_v22  ;;  %v5514_v22 = vmax.f32 %v4876_v8, 0.0  ;;  %v5521_v2 = vmax.f32 %v4911_v7, 0.0  ;;  %v4936_v30 = vadd.f32 %v20068_v1, %v18518_v4  ;;  %v4941_v48 = vadd.f32 %v20068_v1, %v18514_v63  ;;  %v13781_v63 = vld [vmem:[%s20735_s5 + $0x38] sm:$0xff] }
 0x48f   : > { %16676 = vmatprep.mubr.msk.f32.mxu1 %vm5549_vm4, %v5500_v12  ;;  %v5516_v12 = vmax.f32 %v4886_v16, 0.0  ;;  %v5523_v14 = vmax.f32 %v4921_v21, 0.0  ;;  %v5525_v41 = vmax.f32 %v4931_v37, 0.0  ;;  %v4946_v54 = vadd.f32 %v20068_v1, %v18530_v23 }
 0x490   : > { %v4951_v23 = vadd.f32 %v20068_v1, %v18526_v13  ;;  %v13814_v13 = vld [vmem:[%s20735_s5 + $0x40] sm:$0xff]  ;;  %v4961_v34 = vadd.f32 %v20068_v1, %v18538_v35  ;;  %v4966_v16 = vadd.f32 %v20068_v1, %v18554_v62 }
 0x491   : > { %v5528_v25 = vmax.f32 %v4946_v54, 0.0  ;;  %v4996_v54 = vadd.f32 %v20068_v1, %v18590_v3 }
 0x492   : > { %16677 = vmatmul.mubr.msk.f32.gmra.mrb[130].mxu1 %vm5549_vm4, %v5501_v18  ;;  %v5518_v18 = vmax.f32 %v4896_v26, 0.0  ;;  %v5531_v62 = vmax.f32 %v4961_v34, 0.0 }
 0x493   : > { %16679 = vmatprep.mubr.msk.f32.mxu1 %vm5549_vm4, %v5502_v6  ;;  %v5520_v6 = vmax.f32 %v4906_v33, 0.0  ;;  %v4976_v33 = vadd.f32 %v20068_v1, %v18566_v17  ;;  %v4981_v17 = vadd.f32 %v20068_v1, %v18562_v10  ;;  %v5538_v3 = vmax.f32 %v4996_v54, 0.0 }
 0x495   : > { %v5535_v10 = vmax.f32 %v4981_v17, 0.0 }
 0x496   : > { %16680 = vmatmul.mubr.msk.f32.gmra.mrb[132].mxu1 %vm5549_vm4, %v5503_v28  ;;  %v5522_v28 = vmax.f32 %v4916_v38, 0.0 }
 0x497   : > { %16682 = vmatprep.mubr.msk.f32.mxu1 %vm5549_vm4, %v5504_v57  ;;  %v5524_v57 = vmax.f32 %v4926_v44, 0.0  ;;  %v4986_v44 = vadd.f32 %v20068_v1, %v18578_v45 }
 0x499   : > { %v5536_v45 = vmax.f32 %v4986_v44, 0.0 }
 0x49a   : > { %16683 = vmatmul.mubr.msk.f32.gmra.mrb[134].mxu1 %vm5549_vm4, %v5505_v39  ;;  %v5526_v39 = vmax.f32 %v4936_v30, 0.0 }
 0x49b   : > { %16685 = vmatprep.mubr.msk.f32.mxu1 %vm5549_vm4, %v5506_v24 }
 0x49e   : > { %16686 = vmatmul.mubr.msk.f32.gmra.mrb[136].mxu1 %vm5549_vm4, %v5507_v50 }
 0x49f   : > { %16688 = vmatprep.mubr.msk.f32.mxu1 %vm5549_vm4, %v5508_v52  ;;  %v5527_v52 = vmax.f32 %v4941_v48, 0.0 }
 0x4a2   : > { %16689 = vmatmul.mubr.msk.f32.gmra.mrb[138].mxu1 %vm5549_vm4, %v5509_v60  ;;  %v4956_v60 = vadd.f32 %v20068_v1, %v18542_v43  ;;  %v13815_v43 = vld [vmem:[%s20735_s5 + $0x48] sm:$0xff] }
 0x4a3   : > { %16691 = vmatprep.mubr.msk.f32.mxu1 %vm5549_vm4, %v5510_v40  ;;  %v20235_v59 = vpack.c.bf16 %v13815_v43, %v13814_v13 }
 0x4a6   : > { %16692 = vmatmul.mubr.msk.f32.gmra.mrb[140].mxu1 %vm5549_vm4, %v5511_v5 }
 0x4a7   : > { %16694 = vmatprep.mubr.msk.f32.mxu1 %vm5549_vm4, %v5512_v11  ;;  %v17115_v11 = vpack.c.bf16 %v13781_v63, %v13780_v0 }
 0x4aa   : > { %16695 = vmatmul.mubr.msk.f32.gmra.mrb[142].mxu1 %vm5549_vm4, %v5513_v15  ;;  %v5529_v15 = vmax.f32 %v4951_v23, 0.0  ;;  %v5006_v23 = vadd.f32 %v20068_v1, %v18602_v29 }
 0x4ab   : > { %16697 = vmatprep.mubr.msk.f32.mxu1 %vm5549_vm4, %v5514_v22  ;;  %v5530_v22 = vmax.f32 %v4956_v60, 0.0 }
 0x4ac   : > { %v5540_v29 = vmax.f32 %v5006_v23, 0.0 }
 0x4ae   : > { %16698 = vmatmul.mubr.msk.f32.gmra.mrb[144].mxu1 %vm5549_vm4, %v5515_v27 }
 0x4af   : > { %16700 = vmatprep.mubr.msk.f32.mxu1 %vm5549_vm4, %v5516_v12 }
 0x4b2   : > { %16701 = vmatmul.mubr.msk.f32.gmra.mrb[146].mxu1 %vm5549_vm4, %v5517_v42 }
 0x4b3   : > { %16703 = vmatprep.mubr.msk.f32.mxu1 %vm5549_vm4, %v5518_v18  ;;  %v5532_v18 = vmax.f32 %v4966_v16, 0.0  ;;  %v5021_v16 = vadd.f32 %v20068_v1, %v18610_v51 }
 0x4b5   : > { %v5543_v51 = vmax.f32 %v5021_v16, 0.0 }
 0x4b6   : > { %16704 = vmatmul.mubr.msk.f32.gmra.mrb[148].mxu1 %vm5549_vm4, %v5519_v55 }
 0x4b7   : > { %16706 = vmatprep.mubr.msk.f32.mxu1 %vm5549_vm4, %v5520_v6 }
 0x4ba   : > { %16707 = vmatmul.mubr.msk.f32.gmra.mrb[150].mxu1 %vm5549_vm4, %v5521_v2 }
 0x4bb   : > { %16709 = vmatprep.mubr.msk.f32.mxu1 %vm5549_vm4, %v5522_v28  ;;  %v5534_v28 = vmax.f32 %v4976_v33, 0.0  ;;  %v12034_v33 = vld [vmem:[%s20737_s7 + $0x8] sm:$0xff] }
 0x4be   : > { %16710 = vmatmul.mubr.msk.f32.gmra.mrb[152].mxu1 %vm5549_vm4, %v5523_v14 }
 0x4bf   : > { %16712 = vmatprep.mubr.msk.f32.mxu1 %vm5549_vm4, %v5524_v57 }
 0x4c1   : > { %v16555_v24 = vpop.f32.mrb[48].mxu1 }
 0x4c2   : > { %v17201_v61 = vadd.f32 %v16555_v24, %v20196_v53  ;;  %v9666_v50 = vpop.f32.mrb[49].mxu1  ;;  %16713 = vmatmul.mubr.msk.f32.gmra.mrb[154].mxu1 %vm5549_vm4, %v5525_v41 }
 0x4c3   : > { %v17202_v4 = vadd.f32 %v20196_v53, %v9666_v50  ;;  %16715 = vmatprep.mubr.msk.f32.mxu1 %vm5549_vm4, %v5526_v39  ;;  %v4991_v39 = vadd.f32 %v20068_v1, %v18574_v31 }
 0x4c4   : > { %v10434_v49 = vmax.f32 %v17201_v61, 0.0 }
 0x4c5   : > { %v10433_v9 = vmax.f32 %v17202_v4, 0.0  ;;  %v16558_v40 = vpop.f32.mrb[50].mxu1  ;;  %v5537_v31 = vmax.f32 %v4991_v39, 0.0 }
 0x4c6   : > { %v17203_v5 = vadd.f32 %v16558_v40, %v20196_v53  ;;  %v9676_v20 = vpop.f32.mrb[51].mxu1  ;;  %16716 = vmatmul.mubr.msk.f32.gmra.mrb[156].mxu1 %vm5549_vm4, %v5527_v52  ;;  %v5001_v52 = vadd.f32 %v20068_v1, %v18586_v58 }
 0x4c7   : > { %v17204_v8 = vadd.f32 %v20196_v53, %v9676_v20  ;;  %16718 = vmatprep.mubr.msk.f32.mxu1 %vm5549_vm4, %v5528_v25  ;;  %16753 = vmatprep.mubr.msk.f32.mxu0 %vm10566_vm5, %v10433_v9  ;;  %v5011_v20 = vadd.f32 %v20068_v1, %v18598_v19 }
 0x4c8   : > { %16754 = vmatmul.mubr.msk.f32.vlgmr.msra.gmra.mrb[208].mxu0 %vm10566_vm5, %v10434_v49  ;;  %v10436_v12 = vmax.f32 %v17203_v5, 0.0  ;;  %v5539_v58 = vmax.f32 %v5001_v52, 0.0 }
 0x4c9   : > { %v10435_v27 = vmax.f32 %v17204_v8, 0.0  ;;  %17114 = vmatpush3.bf16.msra.mxu0 %v20034_v46  ;;  %v16561_v47 = vpop.f32.mrb[52].mxu1  ;;  %v4971_v46 = vadd.f32 %v20068_v1, %v18550_v56  ;;  %v5541_v19 = vmax.f32 %v5011_v20, 0.0 }
 0x4ca   : > { %v17205_v26 = vadd.f32 %v16561_v47, %v20196_v53  ;;  %v9686_v42 = vpop.f32.mrb[53].mxu1  ;;  %16719 = vmatmul.mubr.msk.f32.gmra.mrb[158].mxu1 %vm5549_vm4, %v5529_v15  ;;  %17116 = vmatprep.subr.bf16.mxu0 %v17115_v11 }
 0x4cb   : > { %v17206_v35 = vadd.f32 %v20196_v53, %v9686_v42  ;;  %16721 = vmatprep.mubr.msk.f32.mxu1 %vm5549_vm4, %v5530_v22  ;;  %16756 = vmatprep.mubr.msk.f32.mxu0 %vm10566_vm5, %v10435_v27  ;;  %v5533_v56 = vmax.f32 %v4971_v46, 0.0  ;;  %v5026_v27 = vadd.f32 %v20068_v1, %v18626_v36  ;;  %v20741_v46 = vld [vmem:[#allocation2_spill] sm:$0xff]  ;;  %v12033_v36 = vld [vmem:[%s20737_s7] sm:$0xff] }
 0x4cc   : > { %16757 = vmatmul.mubr.msk.f32.gmra.mrb[210].mxu0 %vm10566_vm5, %v10436_v12  ;;  %v10438_v6 = vmax.f32 %v17205_v26, 0.0 }
 0x4cd   : > { %v10437_v55 = vmax.f32 %v17206_v35, 0.0  ;;  %v16564_v7 = vpop.f32.mrb[54].mxu1  ;;  %17118 = vmatpush3.bf16.msra.mxu0 %v17115_v11  ;;  %v5016_v11 = vadd.f32 %v20068_v1, %v18614_v32 }
 0x4ce   : > { %v17207_v38 = vadd.f32 %v16564_v7, %v20196_v53  ;;  %v9696_v2 = vpop.f32.mrb[55].mxu1  ;;  %16722 = vmatmul.mubr.msk.f32.gmra.mrb[160].mxu1 %vm5549_vm4, %v5531_v62  ;;  %17120 = vmatprep.subr.bf16.mxu0 %v20235_v59 }
 0x4cf   : > { %v17208_v21 = vadd.f32 %v20196_v53, %v9696_v2  ;;  %16724 = vmatprep.mubr.msk.f32.mxu1 %vm5549_vm4, %v5532_v18  ;;  %16759 = vmatprep.mubr.msk.f32.mxu0 %vm10566_vm5, %v10437_v55  ;;  %v5542_v32 = vmax.f32 %v5016_v11, 0.0  ;;  %v5031_v18 = vadd.f32 %v20068_v1, %v20741_v46  ;;  %v5544_v55 = vmax.f32 %v5026_v27, 0.0 }
 0x4d0   : > { %16760 = vmatmul.mubr.msk.f32.gmra.mrb[212].mxu0 %vm10566_vm5, %v10438_v6  ;;  %v10440_v57 = vmax.f32 %v17207_v38, 0.0  ;;  %v17135_v38 = vpack.c.bf16 %v12034_v33, %v12033_v36  ;;  %v13850_v36 = vld [vmem:[%s20735_s5 + $0x60] sm:$0xff]  ;;  %v13851_v33 = vld [vmem:[%s20735_s5 + $0x68] sm:$0xff] }
 0x4d1   : > { %v10439_v14 = vmax.f32 %v17208_v21, 0.0  ;;  %v16567_v37 = vpop.f32.mrb[56].mxu1  ;;  %v5545_v17 = vmax.f32 %v5031_v18, 0.0 }
 0x4d2   : > { %v17209_v30 = vadd.f32 %v16567_v37, %v20196_v53  ;;  %v9706_v41 = vpop.f32.mrb[57].mxu1  ;;  %16725 = vmatmul.mubr.msk.f32.gmra.mrb[162].mxu1 %vm5549_vm4, %v5533_v56  ;;  %17136 = vmatprep.subr.bf16.mxu1 %v17135_v38 }
 0x4d3   : > { %v17210_v48 = vadd.f32 %v20196_v53, %v9706_v41  ;;  %16727 = vmatprep.mubr.msk.f32.mxu1 %vm5549_vm4, %v5534_v28  ;;  %16762 = vmatprep.mubr.msk.f32.mxu0 %vm10566_vm5, %v10439_v14 }
 0x4d4   : > { %16763 = vmatmul.mubr.msk.f32.gmra.mrb[214].mxu0 %vm10566_vm5, %v10440_v57  ;;  %v10442_v50 = vmax.f32 %v17209_v30, 0.0  ;;  %17138 = vmatpush3.bf16.msra.mxu1 %v17135_v38 }
 0x4d5   : > { %v10441_v24 = vmax.f32 %v17210_v48, 0.0  ;;  %v16570_v61 = vpop.f32.mrb[58].mxu1 }
 0x4d6   : > { %v17211_v4 = vadd.f32 %v16570_v61, %v20196_v53  ;;  %v9716_v0 = vpop.f32.mrb[59].mxu1  ;;  %16728 = vmatmul.mubr.msk.f32.gmra.mrb[164].mxu1 %vm5549_vm4, %v5535_v10 }
 0x4d7   : > { %v17212_v63 = vadd.f32 %v20196_v53, %v9716_v0  ;;  %16730 = vmatprep.mubr.msk.f32.mxu1 %vm5549_vm4, %v5536_v45  ;;  %16765 = vmatprep.mubr.msk.f32.mxu0 %vm10566_vm5, %v10441_v24 }
 0x4d8   : > { %16766 = vmatmul.mubr.msk.f32.gmra.mrb[216].mxu0 %vm10566_vm5, %v10442_v50  ;;  %v10444_v9 = vmax.f32 %v17211_v4, 0.0 }
 0x4d9   : > { %v10443_v25 = vmax.f32 %v17212_v63, 0.0  ;;  %v16573_v60 = vpop.f32.mrb[60].mxu1 }
 0x4da   : > { %v17213_v40 = vadd.f32 %v16573_v60, %v20196_v53  ;;  %v9726_v49 = vpop.f32.mrb[61].mxu1  ;;  %16731 = vmatmul.mubr.msk.f32.gmra.mrb[166].mxu1 %vm5549_vm4, %v5537_v31 }
 0x4db   : > { %v17214_v5 = vadd.f32 %v20196_v53, %v9726_v49  ;;  %16733 = vmatprep.mubr.msk.f32.mxu1 %vm5549_vm4, %v5538_v3  ;;  %16768 = vmatprep.mubr.msk.f32.mxu0 %vm10566_vm5, %v10443_v25 }
 0x4dc   : > { %16769 = vmatmul.mubr.msk.f32.gmra.mrb[218].mxu0 %vm10566_vm5, %v10444_v9  ;;  %v10446_v43 = vmax.f32 %v17213_v40, 0.0 }
 0x4dd   : > { %v10445_v8 = vmax.f32 %v17214_v5, 0.0  ;;  %v16576_v13 = vpop.f32.mrb[62].mxu1 }
 0x4de   : > { %v17215_v15 = vadd.f32 %v16576_v13, %v20196_v53  ;;  %v9736_v34 = vpop.f32.mrb[63].mxu1  ;;  %16734 = vmatmul.mubr.msk.f32.gmra.mrb[168].mxu1 %vm5549_vm4, %v5539_v58 }
 0x4df   : > { %v17216_v22 = vadd.f32 %v20196_v53, %v9736_v34  ;;  %16736 = vmatprep.mubr.msk.f32.mxu1 %vm5549_vm4, %v5540_v29  ;;  %16771 = vmatprep.mubr.msk.f32.mxu0 %vm10566_vm5, %v10445_v8 }
 0x4e0   : > { %16772 = vmatmul.mubr.msk.f32.gmra.mrb[220].mxu0 %vm10566_vm5, %v10446_v43  ;;  %v10448_v26 = vmax.f32 %v17215_v15, 0.0 }
 0x4e1   : > { %v10447_v47 = vmax.f32 %v17216_v22, 0.0  ;;  %v16579_v12 = vpop.f32.mrb[64].mxu1 }
 0x4e2   : > { %v17217_v42 = vadd.f32 %v16579_v12, %v20196_v53  ;;  %v9746_v35 = vpop.f32.mrb[65].mxu1  ;;  %16737 = vmatmul.mubr.msk.f32.gmra.mrb[170].mxu1 %vm5549_vm4, %v5541_v19  ;;  %v13817_v12 = vld [vmem:[%s20735_s5 + $0x58] sm:$0xff] }
 0x4e3   : > { %v17218_v62 = vadd.f32 %v20196_v53, %v9746_v35  ;;  %16739 = vmatprep.mubr.msk.f32.mxu1 %vm5549_vm4, %v5542_v32  ;;  %16774 = vmatprep.mubr.msk.f32.mxu0 %vm10566_vm5, %v10447_v47  ;;  %v13816_v47 = vld [vmem:[%s20735_s5 + $0x50] sm:$0xff] }
 0x4e4   : > { %16775 = vmatmul.mubr.msk.f32.gmra.mrb[222].mxu0 %vm10566_vm5, %v10448_v26  ;;  %v10450_v2 = vmax.f32 %v17217_v42, 0.0  ;;  %v17123_v46 = vpack.c.bf16 %v13817_v12, %v13816_v47 }
 0x4e5   : > { %v10449_v7 = vmax.f32 %v17218_v62, 0.0  ;;  %v16582_v6 = vpop.f32.mrb[66].mxu1 }
 0x4e6   : > { %v17219_v21 = vadd.f32 %v16582_v6, %v20196_v53  ;;  %v9756_v56 = vpop.f32.mrb[67].mxu1  ;;  %16740 = vmatmul.mubr.msk.f32.gmra.mrb[172].mxu1 %vm5549_vm4, %v5543_v51 }
 0x4e7   : > { %v17220_v1 = vadd.f32 %v20196_v53, %v9756_v56  ;;  %16742 = vmatprep.mubr.msk.f32.mxu1 %vm5549_vm4, %v5544_v55  ;;  %16777 = vmatprep.mubr.msk.f32.mxu0 %vm10566_vm5, %v10449_v7 }
 0x4e8   : > { %16778 = vmatmul.mubr.msk.f32.gmra.mrb[224].mxu0 %vm10566_vm5, %v10450_v2  ;;  %v10452_v14 = vmax.f32 %v17219_v21, 0.0  ;;  %v20363_v21 = vpack.c.bf16 %v13851_v33, %v13850_v36 }
 0x4e9   : > { %v10451_v28 = vmax.f32 %v17220_v1, 0.0  ;;  %v16585_v44 = vpop.f32.mrb[68].mxu1 }
 0x4ea   : > { %v17221_v37 = vadd.f32 %v16585_v44, %v20196_v53  ;;  %v9766_v57 = vpop.f32.mrb[69].mxu1  ;;  %16743 = vmatmul.mubr.msk.f32.gmra.mrb[174].mxu1 %vm5549_vm4, %v5545_v17 }
 0x4eb   : > { %v17222_v30 = vadd.f32 %v20196_v53, %v9766_v57  ;;  %16780 = vmatprep.mubr.msk.f32.mxu0 %vm10566_vm5, %v10451_v28 }
 0x4ec   : > { %16781 = vmatmul.mubr.msk.f32.gmra.mrb[226].mxu0 %vm10566_vm5, %v10452_v14  ;;  %v10454_v10 = vmax.f32 %v17221_v37, 0.0 }
 0x4ed   : > { %v10453_v41 = vmax.f32 %v17222_v30, 0.0  ;;  %v16588_v48 = vpop.f32.mrb[70].mxu1 }
 0x4ee   : > { %v17223_v39 = vadd.f32 %v16588_v48, %v20196_v53  ;;  %v9776_v45 = vpop.f32.mrb[71].mxu1 }
 0x4ef   : > { %v17224_v54 = vadd.f32 %v20196_v53, %v9776_v45  ;;  %16783 = vmatprep.mubr.msk.f32.mxu0 %vm10566_vm5, %v10453_v41 }
 0x4f0   : > { %16784 = vmatmul.mubr.msk.f32.gmra.mrb[228].mxu0 %vm10566_vm5, %v10454_v10  ;;  %v10456_v50 = vmax.f32 %v17223_v39, 0.0 }
 0x4f1   : > { %v10455_v24 = vmax.f32 %v17224_v54, 0.0  ;;  %v16591_v61 = vpop.f32.mrb[72].mxu1 }
 0x4f2   : > { %v17225_v4 = vadd.f32 %v16591_v61, %v20196_v53  ;;  %v9786_v0 = vpop.f32.mrb[73].mxu1 }
 0x4f3   : > { %v17226_v63 = vadd.f32 %v20196_v53, %v9786_v0  ;;  %16786 = vmatprep.mubr.msk.f32.mxu0 %vm10566_vm5, %v10455_v24 }
 0x4f4   : > { %16787 = vmatmul.mubr.msk.f32.gmra.mrb[230].mxu0 %vm10566_vm5, %v10456_v50  ;;  %v10458_v3 = vmax.f32 %v17225_v4, 0.0 }
 0x4f5   : > { %v10457_v31 = vmax.f32 %v17226_v63, 0.0  ;;  %v16594_v52 = vpop.f32.mrb[74].mxu1 }
 0x4f6   : > { %v17227_v23 = vadd.f32 %v16594_v52, %v20196_v53  ;;  %v9796_v25 = vpop.f32.mrb[75].mxu1 }
 0x4f7   : > { %v17228_v60 = vadd.f32 %v20196_v53, %v9796_v25  ;;  %16789 = vmatprep.mubr.msk.f32.mxu0 %vm10566_vm5, %v10457_v31 }
 0x4f8   : > { %16790 = vmatmul.mubr.msk.f32.gmra.mrb[232].mxu0 %vm10566_vm5, %v10458_v3  ;;  %v10460_v49 = vmax.f32 %v17227_v23, 0.0 }
 0x4f9   : > { %v10459_v9 = vmax.f32 %v17228_v60, 0.0  ;;  %v16597_v40 = vpop.f32.mrb[76].mxu1 }
 0x4fa   : > { %v17229_v5 = vadd.f32 %v16597_v40, %v20196_v53  ;;  %v9806_v58 = vpop.f32.mrb[77].mxu1 }
 0x4fb   : > { %v17230_v20 = vadd.f32 %v20196_v53, %v9806_v58  ;;  %16792 = vmatprep.mubr.msk.f32.mxu0 %vm10566_vm5, %v10459_v9 }
 0x4fc   : > { %16793 = vmatmul.mubr.msk.f32.gmra.mrb[234].mxu0 %vm10566_vm5, %v10460_v49  ;;  %v10462_v8 = vmax.f32 %v17229_v5, 0.0 }
 0x4fd   : > { %v10461_v29 = vmax.f32 %v17230_v20, 0.0  ;;  %v16600_v11 = vpop.f32.mrb[78].mxu1 }
 0x4fe   : > { %v17231_v13 = vadd.f32 %v16600_v11, %v20196_v53  ;;  %v9816_v43 = vpop.f32.mrb[79].mxu1 }
 0x4ff   : > { %v17232_v15 = vadd.f32 %v20196_v53, %v9816_v43  ;;  %16795 = vmatprep.mubr.msk.f32.mxu0 %vm10566_vm5, %v10461_v29  ;;  %v12036_v43 = vld [vmem:[%s20737_s7 + $0x18] sm:$0xff] }
 0x500   : > { %16796 = vmatmul.mubr.msk.f32.gmra.mrb[236].mxu0 %vm10566_vm5, %v10462_v8  ;;  %v10464_v19 = vmax.f32 %v17231_v13, 0.0  ;;  %v12035_v13 = vld [vmem:[%s20737_s7 + $0x10] sm:$0xff] }
 0x501   : > { %v10463_v34 = vmax.f32 %v17232_v15, 0.0  ;;  %v16603_v22 = vpop.f32.mrb[80].mxu1 }
 0x502   : > { %v17233_v16 = vadd.f32 %v16603_v22, %v20196_v53  ;;  %v9826_v32 = vpop.f32.mrb[81].mxu1  ;;  %v17139_v22 = vpack.c.bf16 %v12036_v43, %v12035_v13 }
 0x503   : > { %v17234_v27 = vadd.f32 %v20196_v53, %v9826_v32  ;;  %16798 = vmatprep.mubr.msk.f32.mxu0 %vm10566_vm5, %v10463_v34 }
 0x504   : > { %16799 = vmatmul.mubr.msk.f32.gmra.mrb[238].mxu0 %vm10566_vm5, %v10464_v19  ;;  %v10466_v35 = vmax.f32 %v17233_v16, 0.0  ;;  %17140 = vmatprep.subr.bf16.mxu1 %v17139_v22 }
 0x505   : > { %v10465_v26 = vmax.f32 %v17234_v27, 0.0  ;;  %v16606_v42 = vpop.f32.mrb[82].mxu1  ;;  %17142 = vmatpush3.bf16.msra.mxu1 %v17139_v22 }
 0x506   : > { %v17235_v62 = vadd.f32 %v16606_v42, %v20196_v53  ;;  %v9836_v51 = vpop.f32.mrb[83].mxu1 }
 0x507   : > { %v17236_v18 = vadd.f32 %v20196_v53, %v9836_v51  ;;  %16809 = vmatprep.mubr.msk.f32.mxu0 %vm10566_vm5, %v10465_v26 }
 0x508   : > { %16810 = vmatmul.mubr.msk.f32.vlgmr.msra.gmra.mrb[208].mxu0 %vm10566_vm5, %v10466_v35  ;;  %v10468_v6 = vmax.f32 %v17235_v62, 0.0 }
 0x509   : > { %v10467_v55 = vmax.f32 %v17236_v18, 0.0  ;;  %17122 = vmatpush3.bf16.msra.mxu0 %v20235_v59  ;;  %v16609_v7 = vpop.f32.mrb[84].mxu1 }
 0x50a   : > { %v17237_v38 = vadd.f32 %v16609_v7, %v20196_v53  ;;  %v9846_v2 = vpop.f32.mrb[85].mxu1  ;;  %17124 = vmatprep.subr.bf16.mxu0 %v17123_v46 }
 0x50b   : > { %v17238_v56 = vadd.f32 %v20196_v53, %v9846_v2  ;;  %16812 = vmatprep.mubr.msk.f32.mxu0 %vm10566_vm5, %v10467_v55 }
 0x50c   : > { %16813 = vmatmul.mubr.msk.f32.gmra.mrb[210].mxu0 %vm10566_vm5, %v10468_v6  ;;  %v10470_v28 = vmax.f32 %v17237_v38, 0.0 }
 0x50d   : > { %v10469_v1 = vmax.f32 %v17238_v56, 0.0  ;;  %v16612_v17 = vpop.f32.mrb[86].mxu1  ;;  %17126 = vmatpush3.bf16.msra.mxu0 %v17123_v46 }
 0x50e   : > { %v17239_v59 = vadd.f32 %v16612_v17, %v20196_v53  ;;  %v9856_v44 = vpop.f32.mrb[87].mxu1  ;;  %17128 = vmatprep.subr.bf16.mxu0 %v20363_v21 }
 0x50f   : > { %v17240_v14 = vadd.f32 %v20196_v53, %v9856_v44  ;;  %16815 = vmatprep.mubr.msk.f32.mxu0 %vm10566_vm5, %v10469_v1 }
 0x510   : > { %16816 = vmatmul.mubr.msk.f32.gmra.mrb[212].mxu0 %vm10566_vm5, %v10470_v28  ;;  %v10472_v30 = vmax.f32 %v17239_v59, 0.0 }
 0x511   : > { %v10471_v37 = vmax.f32 %v17240_v14, 0.0  ;;  %v16615_v57 = vpop.f32.mrb[88].mxu1 }
 0x512   : > { %v17241_v41 = vadd.f32 %v16615_v57, %v20196_v53  ;;  %v9866_v48 = vpop.f32.mrb[89].mxu1 }
 0x513   : > { %v17242_v10 = vadd.f32 %v20196_v53, %v9866_v48  ;;  %16818 = vmatprep.mubr.msk.f32.mxu0 %vm10566_vm5, %v10471_v37 }
 0x514   : > { %16819 = vmatmul.mubr.msk.f32.gmra.mrb[214].mxu0 %vm10566_vm5, %v10472_v30  ;;  %v10474_v54 = vmax.f32 %v17241_v41, 0.0 }
 0x515   : > { %v10473_v39 = vmax.f32 %v17242_v10, 0.0  ;;  %v16618_v45 = vpop.f32.mrb[90].mxu1 }
 0x516   : > { %v17243_v24 = vadd.f32 %v16618_v45, %v20196_v53  ;;  %v9876_v61 = vpop.f32.mrb[91].mxu1 }
 0x517   : > { %v17244_v50 = vadd.f32 %v20196_v53, %v9876_v61  ;;  %16821 = vmatprep.mubr.msk.f32.mxu0 %vm10566_vm5, %v10473_v39 }
 0x518   : > { %16822 = vmatmul.mubr.msk.f32.gmra.mrb[216].mxu0 %vm10566_vm5, %v10474_v54  ;;  %v10476_v63 = vmax.f32 %v17243_v24, 0.0 }
 0x519   : > { %v10475_v4 = vmax.f32 %v17244_v50, 0.0  ;;  %v16621_v0 = vpop.f32.mrb[92].mxu1 }
 0x51a   : > { %v17245_v31 = vadd.f32 %v16621_v0, %v20196_v53  ;;  %v9886_v52 = vpop.f32.mrb[93].mxu1 }
 0x51b   : > { %v17246_v3 = vadd.f32 %v20196_v53, %v9886_v52  ;;  %16824 = vmatprep.mubr.msk.f32.mxu0 %vm10566_vm5, %v10475_v4 }
 0x51c   : > { %16825 = vmatmul.mubr.msk.f32.gmra.mrb[218].mxu0 %vm10566_vm5, %v10476_v63  ;;  %v10478_v60 = vmax.f32 %v17245_v31, 0.0 }
 0x51d   : > { %v10477_v23 = vmax.f32 %v17246_v3, 0.0  ;;  %v16624_v25 = vpop.f32.mrb[94].mxu1 }
 0x51e   : > { %v17247_v9 = vadd.f32 %v16624_v25, %v20196_v53  ;;  %v9896_v40 = vpop.f32.mrb[95].mxu1  ;;  %v13852_v25 = vld [vmem:[%s20735_s5 + $0x70] sm:$0xff] }
 0x51f   : > { %v17248_v49 = vadd.f32 %v20196_v53, %v9896_v40  ;;  %16827 = vmatprep.mubr.msk.f32.mxu0 %vm10566_vm5, %v10477_v23  ;;  %v12038_v40 = vld [vmem:[%s20737_s7 + $0x28] sm:$0xff] }
 0x520   : > { %16828 = vmatmul.mubr.msk.f32.gmra.mrb[220].mxu0 %vm10566_vm5, %v10478_v60  ;;  %v10480_v20 = vmax.f32 %v17247_v9, 0.0  ;;  %v13853_v60 = vld [vmem:[%s20735_s5 + $0x78] sm:$0xff]  ;;  %v12037_v9 = vld [vmem:[%s20737_s7 + $0x20] sm:$0xff] }
 0x521   : > { %v10479_v5 = vmax.f32 %v17248_v49, 0.0  ;;  %v16627_v58 = vpop.f32.mrb[96].mxu1  ;;  %v12039_v49 = vld [vmem:[%s20737_s7 + $0x30] sm:$0xff]  ;;  %v17131_v43 = vpack.c.bf16 %v13853_v60, %v13852_v25 }
 0x522   : > { %v17249_v29 = vadd.f32 %v16627_v58, %v20196_v53  ;;  %v9906_v11 = vpop.f32.mrb[97].mxu1 }
 0x523   : > { %v17250_v8 = vadd.f32 %v20196_v53, %v9906_v11  ;;  %16830 = vmatprep.mubr.msk.f32.mxu0 %vm10566_vm5, %v10479_v5 }
 0x524   : > { %16831 = vmatmul.mubr.msk.f32.gmra.mrb[222].mxu0 %vm10566_vm5, %v10480_v20  ;;  %v10482_v19 = vmax.f32 %v17249_v29, 0.0  ;;  %v17143_v20 = vpack.c.bf16 %v12038_v40, %v12037_v9  ;;  %v12040_v29 = vld [vmem:[%s20737_s7 + $0x38] sm:$0xff] }
 0x525   : > { %v10481_v15 = vmax.f32 %v17250_v8, 0.0  ;;  %v16630_v34 = vpop.f32.mrb[98].mxu1 }
 0x526   : > { %v17251_v16 = vadd.f32 %v16630_v34, %v20196_v53  ;;  %v9916_v32 = vpop.f32.mrb[99].mxu1  ;;  %17144 = vmatprep.subr.bf16.mxu1 %v17143_v20 }
 0x527   : > { %v17252_v27 = vadd.f32 %v20196_v53, %v9916_v32  ;;  %16833 = vmatprep.mubr.msk.f32.mxu0 %vm10566_vm5, %v10481_v15  ;;  %v17147_v15 = vpack.c.bf16 %v12040_v29, %v12039_v49  ;;  %17146 = vmatpush3.bf16.msra.mxu1 %v17143_v20 }
 0x528   : > { %16834 = vmatmul.mubr.msk.f32.gmra.mrb[224].mxu0 %vm10566_vm5, %v10482_v19  ;;  %v10484_v26 = vmax.f32 %v17251_v16, 0.0 }
 0x529   : > { %v10483_v47 = vmax.f32 %v17252_v27, 0.0  ;;  %v16633_v12 = vpop.f32.mrb[100].mxu1  ;;  %17148 = vmatprep.subr.bf16.mxu1 %v17147_v15 }
 0x52a   : > { %v17253_v42 = vadd.f32 %v16633_v12, %v20196_v53  ;;  %v9926_v35 = vpop.f32.mrb[101].mxu1 }
 0x52b   : > { %v17254_v62 = vadd.f32 %v20196_v53, %v9926_v35  ;;  %16836 = vmatprep.mubr.msk.f32.mxu0 %vm10566_vm5, %v10483_v47  ;;  %17150 = vmatpush3.bf16.msra.mxu1 %v17147_v15 }
 0x52c   : > { %16837 = vmatmul.mubr.msk.f32.gmra.mrb[226].mxu0 %vm10566_vm5, %v10484_v26  ;;  %v10486_v18 = vmax.f32 %v17253_v42, 0.0 }
 0x52d   : > { %v10485_v51 = vmax.f32 %v17254_v62, 0.0  ;;  %v16636_v46 = vpop.f32.mrb[102].mxu1 }
 0x52e   : > { %v17255_v36 = vadd.f32 %v16636_v46, %v20196_v53  ;;  %v9936_v33 = vpop.f32.mrb[103].mxu1 }
 0x52f   : > { %v17256_v55 = vadd.f32 %v20196_v53, %v9936_v33  ;;  %16839 = vmatprep.mubr.msk.f32.mxu0 %vm10566_vm5, %v10485_v51 }
 0x530   : > { %16840 = vmatmul.mubr.msk.f32.gmra.mrb[228].mxu0 %vm10566_vm5, %v10486_v18  ;;  %v10488_v38 = vmax.f32 %v17255_v36, 0.0 }
 0x531   : > { %v10487_v7 = vmax.f32 %v17256_v55, 0.0  ;;  %v16639_v6 = vpop.f32.mrb[104].mxu1 }
 0x532   : > { %v17257_v2 = vadd.f32 %v16639_v6, %v20196_v53  ;;  %v9946_v56 = vpop.f32.mrb[105].mxu1 }
 0x533   : > { %v17258_v1 = vadd.f32 %v20196_v53, %v9946_v56  ;;  %16842 = vmatprep.mubr.msk.f32.mxu0 %vm10566_vm5, %v10487_v7 }
 0x534   : > { %16843 = vmatmul.mubr.msk.f32.gmra.mrb[230].mxu0 %vm10566_vm5, %v10488_v38  ;;  %v10490_v59 = vmax.f32 %v17257_v2, 0.0 }
 0x535   : > { %v10489_v17 = vmax.f32 %v17258_v1, 0.0  ;;  %v16642_v28 = vpop.f32.mrb[106].mxu1 }
 0x536   : > { %v17259_v44 = vadd.f32 %v16642_v28, %v20196_v53  ;;  %v9956_v14 = vpop.f32.mrb[107].mxu1 }
 0x537   : > { %v17260_v37 = vadd.f32 %v20196_v53, %v9956_v14  ;;  %16845 = vmatprep.mubr.msk.f32.mxu0 %vm10566_vm5, %v10489_v17 }
 0x538   : > { %16846 = vmatmul.mubr.msk.f32.gmra.mrb[232].mxu0 %vm10566_vm5, %v10490_v59  ;;  %v10492_v41 = vmax.f32 %v17259_v44, 0.0 }
 0x539   : > { %v10491_v57 = vmax.f32 %v17260_v37, 0.0  ;;  %v16645_v30 = vpop.f32.mrb[108].mxu1 }
 0x53a   : > { %v17261_v48 = vadd.f32 %v16645_v30, %v20196_v53  ;;  %v9966_v10 = vpop.f32.mrb[109].mxu1 }
 0x53b   : > { %v17262_v39 = vadd.f32 %v20196_v53, %v9966_v10  ;;  %16848 = vmatprep.mubr.msk.f32.mxu0 %vm10566_vm5, %v10491_v57 }
 0x53c   : > { %16849 = vmatmul.mubr.msk.f32.gmra.mrb[234].mxu0 %vm10566_vm5, %v10492_v41  ;;  %v10494_v24 = vmax.f32 %v17261_v48, 0.0 }
 0x53d   : > { %v10493_v45 = vmax.f32 %v17262_v39, 0.0  ;;  %v16648_v54 = vpop.f32.mrb[110].mxu1 }
 0x53e   : > { %v17263_v61 = vadd.f32 %v16648_v54, %v20196_v53  ;;  %v9976_v50 = vpop.f32.mrb[111].mxu1 }
 0x53f   : > { %v17264_v4 = vadd.f32 %v20196_v53, %v9976_v50  ;;  %16851 = vmatprep.mubr.msk.f32.mxu0 %vm10566_vm5, %v10493_v45 }
 0x540   : > { %16852 = vmatmul.mubr.msk.f32.gmra.mrb[236].mxu0 %vm10566_vm5, %v10494_v24  ;;  %v10496_v31 = vmax.f32 %v17263_v61, 0.0 }
 0x541   : > { %v10495_v0 = vmax.f32 %v17264_v4, 0.0  ;;  %v16651_v63 = vpop.f32.mrb[112].mxu1 }
 0x542   : > { %v17265_v52 = vadd.f32 %v16651_v63, %v20196_v53  ;;  %v9986_v3 = vpop.f32.mrb[113].mxu1 }
 0x543   : > { %v17266_v23 = vadd.f32 %v20196_v53, %v9986_v3  ;;  %16854 = vmatprep.mubr.msk.f32.mxu0 %vm10566_vm5, %v10495_v0 }
 0x544   : > { %16855 = vmatmul.mubr.msk.f32.gmra.mrb[238].mxu0 %vm10566_vm5, %v10496_v31  ;;  %v10498_v11 = vmax.f32 %v17265_v52, 0.0 }
 0x545   : > { %v10497_v5 = vmax.f32 %v17266_v23, 0.0  ;;  %v16654_v58 = vpop.f32.mrb[114].mxu1 }
 0x546   : > { %v17267_v8 = vadd.f32 %v16654_v58, %v20196_v53  ;;  %v9996_v13 = vpop.f32.mrb[115].mxu1 }
 0x547   : > { %v17268_v34 = vadd.f32 %v20196_v53, %v9996_v13  ;;  %16865 = vmatprep.mubr.msk.f32.mxu0 %vm10566_vm5, %v10497_v5 }
 0x548   : > { %16866 = vmatmul.mubr.msk.f32.vlgmr.msra.gmra.mrb[208].mxu0 %vm10566_vm5, %v10498_v11  ;;  %v10500_v16 = vmax.f32 %v17267_v8, 0.0 }
 0x549   : > { %v10499_v22 = vmax.f32 %v17268_v34, 0.0  ;;  %17130 = vmatpush3.bf16.msra.mxu0 %v20363_v21  ;;  %v16657_v19 = vpop.f32.mrb[116].mxu1 }
 0x54a   : > { %v17269_v32 = vadd.f32 %v16657_v19, %v20196_v53  ;;  %v10006_v27 = vpop.f32.mrb[117].mxu1  ;;  %17132 = vmatprep.subr.bf16.mxu0 %v17131_v43 }
 0x54b   : > { %v17270_v47 = vadd.f32 %v20196_v53, %v10006_v27  ;;  %16868 = vmatprep.mubr.msk.f32.mxu0 %vm10566_vm5, %v10499_v22 }
 0x54c   : > { %16869 = vmatmul.mubr.msk.f32.gmra.mrb[210].mxu0 %vm10566_vm5, %v10500_v16  ;;  %v10502_v42 = vmax.f32 %v17269_v32, 0.0 }
 0x54d   : > { %v10501_v12 = vmax.f32 %v17270_v47, 0.0  ;;  %v16660_v26 = vpop.f32.mrb[118].mxu1  ;;  %17134 = vmatpush3.bf16.msra.mxu0 %v17131_v43 }
 0x54e   : > { %v17271_v21 = vadd.f32 %v16660_v26, %v20196_v53  ;;  %v10016_v35 = vpop.f32.mrb[119].mxu1 }
 0x54f   : > { %v17272_v62 = vadd.f32 %v20196_v53, %v10016_v35  ;;  %16871 = vmatprep.mubr.msk.f32.mxu0 %vm10566_vm5, %v10501_v12 }
 0x550   : > { %16872 = vmatmul.mubr.msk.f32.gmra.mrb[212].mxu0 %vm10566_vm5, %v10502_v42  ;;  %v10504_v18 = vmax.f32 %v17271_v21, 0.0 }
 0x551   : > { %v10503_v51 = vmax.f32 %v17272_v62, 0.0  ;;  %v16663_v46 = vpop.f32.mrb[120].mxu1 }
 0x552   : > { %v17273_v36 = vadd.f32 %v16663_v46, %v20196_v53  ;;  %v10026_v33 = vpop.f32.mrb[121].mxu1 }
 0x553   : > { %v17274_v55 = vadd.f32 %v20196_v53, %v10026_v33  ;;  %16874 = vmatprep.mubr.msk.f32.mxu0 %vm10566_vm5, %v10503_v51 }
 0x554   : > { %16875 = vmatmul.mubr.msk.f32.gmra.mrb[214].mxu0 %vm10566_vm5, %v10504_v18  ;;  %v10506_v38 = vmax.f32 %v17273_v36, 0.0 }
 0x555   : > { %v10505_v7 = vmax.f32 %v17274_v55, 0.0  ;;  %v16666_v6 = vpop.f32.mrb[122].mxu1 }
 0x556   : > { %v17275_v2 = vadd.f32 %v16666_v6, %v20196_v53  ;;  %v10036_v56 = vpop.f32.mrb[123].mxu1 }
 0x557   : > { %v17276_v1 = vadd.f32 %v20196_v53, %v10036_v56  ;;  %16877 = vmatprep.mubr.msk.f32.mxu0 %vm10566_vm5, %v10505_v7 }
 0x558   : > { %16878 = vmatmul.mubr.msk.f32.gmra.mrb[216].mxu0 %vm10566_vm5, %v10506_v38  ;;  %v10508_v59 = vmax.f32 %v17275_v2, 0.0 }
 0x559   : > { %v10507_v17 = vmax.f32 %v17276_v1, 0.0  ;;  %v16669_v28 = vpop.f32.mrb[124].mxu1 }
 0x55a   : > { %v17277_v44 = vadd.f32 %v16669_v28, %v20196_v53  ;;  %v10046_v14 = vpop.f32.mrb[125].mxu1 }
 0x55b   : > { %v17278_v37 = vadd.f32 %v20196_v53, %v10046_v14  ;;  %16880 = vmatprep.mubr.msk.f32.mxu0 %vm10566_vm5, %v10507_v17 }
 0x55c   : > { %16881 = vmatmul.mubr.msk.f32.gmra.mrb[218].mxu0 %vm10566_vm5, %v10508_v59  ;;  %v10510_v41 = vmax.f32 %v17277_v44, 0.0 }
 0x55d   : > { %v10509_v57 = vmax.f32 %v17278_v37, 0.0  ;;  %v16672_v30 = vpop.f32.mrb[126].mxu1 }
 0x55e   : > { %v17279_v48 = vadd.f32 %v16672_v30, %v20196_v53  ;;  %v10056_v10 = vpop.f32.mrb[127].mxu1 }
 0x55f   : > { %v17280_v39 = vadd.f32 %v20196_v53, %v10056_v10  ;;  %16883 = vmatprep.mubr.msk.f32.mxu0 %vm10566_vm5, %v10509_v57 }
 0x560   : > { %16884 = vmatmul.mubr.msk.f32.gmra.mrb[220].mxu0 %vm10566_vm5, %v10510_v41  ;;  %v10512_v24 = vmax.f32 %v17279_v48, 0.0 }
 0x561   : > { %v10511_v45 = vmax.f32 %v17280_v39, 0.0  ;;  %v16675_v54 = vpop.f32.mrb[128].mxu1 }
 0x562   : > { %v17281_v61 = vadd.f32 %v16675_v54, %v20196_v53  ;;  %v10066_v50 = vpop.f32.mrb[129].mxu1 }
 0x563   : > { %v17282_v4 = vadd.f32 %v20196_v53, %v10066_v50  ;;  %16886 = vmatprep.mubr.msk.f32.mxu0 %vm10566_vm5, %v10511_v45 }
 0x564   : > { %16887 = vmatmul.mubr.msk.f32.gmra.mrb[222].mxu0 %vm10566_vm5, %v10512_v24  ;;  %v10514_v31 = vmax.f32 %v17281_v61, 0.0 }
 0x565   : > { %v10513_v0 = vmax.f32 %v17282_v4, 0.0  ;;  %v16678_v63 = vpop.f32.mrb[130].mxu1 }
 0x566   : > { %v17283_v52 = vadd.f32 %v16678_v63, %v20196_v53  ;;  %v10076_v3 = vpop.f32.mrb[131].mxu1 }
 0x567   : > { %v17284_v23 = vadd.f32 %v20196_v53, %v10076_v3  ;;  %16889 = vmatprep.mubr.msk.f32.mxu0 %vm10566_vm5, %v10513_v0  ;;  %v20523_v0 = vld [vmem:[%s20189_s24] ss:$0 sm:$0xff] }
 0x568   : > { %16890 = vmatmul.mubr.msk.f32.gmra.mrb[224].mxu0 %vm10566_vm5, %v10514_v31  ;;  %v10516_v9 = vmax.f32 %v17283_v52, 0.0 }
 0x569   : > { %v10515_v25 = vmax.f32 %v17284_v23, 0.0  ;;  %v16681_v60 = vpop.f32.mrb[132].mxu1 }
 0x56a   : > { %v17285_v40 = vadd.f32 %v16681_v60, %v20196_v53  ;;  %v10086_v49 = vpop.f32.mrb[133].mxu1 }
 0x56b   : > { %v17286_v5 = vadd.f32 %v20196_v53, %v10086_v49  ;;  %16892 = vmatprep.mubr.msk.f32.mxu0 %vm10566_vm5, %v10515_v25 }
 0x56c   : > { %16893 = vmatmul.mubr.msk.f32.gmra.mrb[226].mxu0 %vm10566_vm5, %v10516_v9  ;;  %v10518_v29 = vmax.f32 %v17285_v40, 0.0 }
 0x56d   : > { %v10517_v58 = vmax.f32 %v17286_v5, 0.0  ;;  %v16684_v20 = vpop.f32.mrb[134].mxu1 }
 0x56e   : > { %v17287_v11 = vadd.f32 %v16684_v20, %v20196_v53  ;;  %v10096_v8 = vpop.f32.mrb[135].mxu1 }
 0x56f   : > { %v17288_v13 = vadd.f32 %v20196_v53, %v10096_v8  ;;  %16895 = vmatprep.mubr.msk.f32.mxu0 %vm10566_vm5, %v10517_v58 }
 0x570   : > { %16896 = vmatmul.mubr.msk.f32.gmra.mrb[228].mxu0 %vm10566_vm5, %v10518_v29  ;;  %v10520_v34 = vmax.f32 %v17287_v11, 0.0 }
 0x571   : > { %v10519_v43 = vmax.f32 %v17288_v13, 0.0  ;;  %v16687_v15 = vpop.f32.mrb[136].mxu1 }
 0x572   : > { %v17289_v22 = vadd.f32 %v16687_v15, %v20196_v53  ;;  %v10106_v19 = vpop.f32.mrb[137].mxu1 }
 0x573   : > { %v17290_v16 = vadd.f32 %v20196_v53, %v10106_v19  ;;  %16898 = vmatprep.mubr.msk.f32.mxu0 %vm10566_vm5, %v10519_v43 }
 0x574   : > { %16899 = vmatmul.mubr.msk.f32.gmra.mrb[230].mxu0 %vm10566_vm5, %v10520_v34  ;;  %v10522_v47 = vmax.f32 %v17289_v22, 0.0 }
 0x575   : > { %v10521_v32 = vmax.f32 %v17290_v16, 0.0  ;;  %v16690_v27 = vpop.f32.mrb[138].mxu1 }
 0x576   : > { %v17291_v12 = vadd.f32 %v16690_v27, %v20196_v53  ;;  %v10116_v26 = vpop.f32.mrb[139].mxu1 }
 0x577   : > { %v17292_v42 = vadd.f32 %v20196_v53, %v10116_v26  ;;  %16901 = vmatprep.mubr.msk.f32.mxu0 %vm10566_vm5, %v10521_v32 }
 0x578   : > { %16902 = vmatmul.mubr.msk.f32.gmra.mrb[232].mxu0 %vm10566_vm5, %v10522_v47  ;;  %v10524_v62 = vmax.f32 %v17291_v12, 0.0 }
 0x579   : > { %v10523_v21 = vmax.f32 %v17292_v42, 0.0  ;;  %v16693_v35 = vpop.f32.mrb[140].mxu1 }
 0x57a   : > { %v17293_v51 = vadd.f32 %v16693_v35, %v20196_v53  ;;  %v10126_v46 = vpop.f32.mrb[141].mxu1 }
 0x57b   : > { %v17294_v18 = vadd.f32 %v20196_v53, %v10126_v46  ;;  %16904 = vmatprep.mubr.msk.f32.mxu0 %vm10566_vm5, %v10523_v21 }
 0x57c   : > { %16905 = vmatmul.mubr.msk.f32.gmra.mrb[234].mxu0 %vm10566_vm5, %v10524_v62  ;;  %v10526_v55 = vmax.f32 %v17293_v51, 0.0 }
 0x57d   : > { %v10525_v36 = vmax.f32 %v17294_v18, 0.0  ;;  %v16696_v33 = vpop.f32.mrb[142].mxu1 }
 0x57e   : > { %v17295_v7 = vadd.f32 %v16696_v33, %v20196_v53  ;;  %v10136_v6 = vpop.f32.mrb[143].mxu1 }
 0x57f   : > { %v17296_v38 = vadd.f32 %v20196_v53, %v10136_v6  ;;  %16907 = vmatprep.mubr.msk.f32.mxu0 %vm10566_vm5, %v10525_v36 }
 0x580   : > { %16908 = vmatmul.mubr.msk.f32.gmra.mrb[236].mxu0 %vm10566_vm5, %v10526_v55  ;;  %v10528_v1 = vmax.f32 %v17295_v7, 0.0 }
 0x581   : > { %v10527_v2 = vmax.f32 %v17296_v38, 0.0  ;;  %v16699_v56 = vpop.f32.mrb[144].mxu1 }
 0x582   : > { %v17297_v17 = vadd.f32 %v16699_v56, %v20196_v53  ;;  %v10146_v28 = vpop.f32.mrb[145].mxu1 }
 0x583   : > { %v17298_v59 = vadd.f32 %v20196_v53, %v10146_v28  ;;  %16910 = vmatprep.mubr.msk.f32.mxu0 %vm10566_vm5, %v10527_v2 }
 0x584   : > { %16911 = vmatmul.mubr.msk.f32.gmra.mrb[238].mxu0 %vm10566_vm5, %v10528_v1  ;;  %v10530_v37 = vmax.f32 %v17297_v17, 0.0 }
 0x585   : > { %v10529_v44 = vmax.f32 %v17298_v59, 0.0  ;;  %v16702_v14 = vpop.f32.mrb[146].mxu1 }
 0x586   : > { %v17299_v57 = vadd.f32 %v16702_v14, %v20196_v53  ;;  %v10156_v30 = vpop.f32.mrb[147].mxu1 }
 0x587   : > { %v17300_v41 = vadd.f32 %v20196_v53, %v10156_v30  ;;  %16921 = vmatprep.mubr.msk.f32.mxu0 %vm10566_vm5, %v10529_v44 }
 0x588   : > { %16922 = vmatmul.mubr.msk.f32.vlgmr.msra.gmra.mrb[208].mxu0 %vm10566_vm5, %v10530_v37  ;;  %v10532_v39 = vmax.f32 %v17299_v57, 0.0 }
 0x589   : > { %v10531_v48 = vmax.f32 %v17300_v41, 0.0  ;;  %v16705_v10 = vpop.f32.mrb[148].mxu1 }
 0x58a   : > { %v17301_v45 = vadd.f32 %v16705_v10, %v20196_v53  ;;  %v10166_v54 = vpop.f32.mrb[149].mxu1 }
 0x58b   : > { %v17302_v24 = vadd.f32 %v20196_v53, %v10166_v54  ;;  %16924 = vmatprep.mubr.msk.f32.mxu0 %vm10566_vm5, %v10531_v48 }
 0x58c   : > { %16925 = vmatmul.mubr.msk.f32.gmra.mrb[210].mxu0 %vm10566_vm5, %v10532_v39  ;;  %v10534_v4 = vmax.f32 %v17301_v45, 0.0 }
 0x58d   : > { %v10533_v61 = vmax.f32 %v17302_v24, 0.0  ;;  %v16708_v50 = vpop.f32.mrb[150].mxu1 }
 0x58e   : > { %v17303_v63 = vadd.f32 %v20523_v0, %v16708_v50  ;;  %v10176_v31 = vpop.f32.mrb[151].mxu1 }
 0x58f   : > { %v17304_v52 = vadd.f32 %v20523_v0, %v10176_v31  ;;  %16927 = vmatprep.mubr.msk.f32.mxu0 %vm10566_vm5, %v10533_v61 }
 0x590   : > { %16928 = vmatmul.mubr.msk.f32.gmra.mrb[212].mxu0 %vm10566_vm5, %v10534_v4  ;;  %v10536_v23 = vmax.f32 %v17303_v63, 0.0 }
 0x591   : > { %v10535_v3 = vmax.f32 %v17304_v52, 0.0  ;;  %v16711_v53 = vpop.f32.mrb[152].mxu1 }
 0x592   : > { %v17305_v25 = vadd.f32 %v20523_v0, %v16711_v53  ;;  %v10186_v60 = vpop.f32.mrb[153].mxu1 }
 0x593   : > { %v17306_v9 = vadd.f32 %v20523_v0, %v10186_v60  ;;  %16930 = vmatprep.mubr.msk.f32.mxu0 %vm10566_vm5, %v10535_v3 }
 0x594   : > { %16931 = vmatmul.mubr.msk.f32.gmra.mrb[214].mxu0 %vm10566_vm5, %v10536_v23  ;;  %v10538_v5 = vmax.f32 %v17305_v25, 0.0 }
 0x595   : > { %v10537_v40 = vmax.f32 %v17306_v9, 0.0  ;;  %v16714_v49 = vpop.f32.mrb[154].mxu1 }
 0x596   : > { %v17307_v58 = vadd.f32 %v20523_v0, %v16714_v49  ;;  %v10196_v20 = vpop.f32.mrb[155].mxu1 }
 0x597   : > { %v17308_v29 = vadd.f32 %v20523_v0, %v10196_v20  ;;  %16933 = vmatprep.mubr.msk.f32.mxu0 %vm10566_vm5, %v10537_v40 }
 0x598   : > { %16934 = vmatmul.mubr.msk.f32.gmra.mrb[216].mxu0 %vm10566_vm5, %v10538_v5  ;;  %v10540_v13 = vmax.f32 %v17307_v58, 0.0 }
 0x599   : > { %v10539_v11 = vmax.f32 %v17308_v29, 0.0  ;;  %v16717_v8 = vpop.f32.mrb[156].mxu1  ;;  %v13895_v29 = vld [vmem:[%s20737_s7 + $0x40] sm:$0xff] }
 0x59a   : > { %v17309_v43 = vadd.f32 %v20523_v0, %v16717_v8  ;;  %v10206_v15 = vpop.f32.mrb[157].mxu1 }
 0x59b   : > { %v17310_v34 = vadd.f32 %v20523_v0, %v10206_v15  ;;  %16936 = vmatprep.mubr.msk.f32.mxu0 %vm10566_vm5, %v10539_v11  ;;  %v13896_v11 = vld [vmem:[%s20737_s7 + $0x48] sm:$0xff] }
 0x59c   : > { %16937 = vmatmul.mubr.msk.f32.gmra.mrb[218].mxu0 %vm10566_vm5, %v10540_v13  ;;  %v10542_v16 = vmax.f32 %v17309_v43, 0.0  ;;  %v17151_v8 = vpack.c.bf16 %v13896_v11, %v13895_v29 }
 0x59d   : > { %v10541_v22 = vmax.f32 %v17310_v34, 0.0  ;;  %v16720_v19 = vpop.f32.mrb[158].mxu1 }
 0x59e   : > { %v17311_v32 = vadd.f32 %v20523_v0, %v16720_v19  ;;  %v10216_v27 = vpop.f32.mrb[159].mxu1  ;;  %17152 = vmatprep.subr.bf16.mxu1 %v17151_v8  ;;  %v13898_v19 = vld [vmem:[%s20737_s7 + $0x58] sm:$0xff] }
 0x59f   : > { %v17312_v47 = vadd.f32 %v20523_v0, %v10216_v27  ;;  %16939 = vmatprep.mubr.msk.f32.mxu0 %vm10566_vm5, %v10541_v22  ;;  %v13897_v22 = vld [vmem:[%s20737_s7 + $0x50] sm:$0xff] }
 0x5a0   : > { %16940 = vmatmul.mubr.msk.f32.gmra.mrb[220].mxu0 %vm10566_vm5, %v10542_v16  ;;  %v10544_v42 = vmax.f32 %v17311_v32, 0.0 }
 0x5a1   : > { %v10543_v12 = vmax.f32 %v17312_v47, 0.0  ;;  %v16723_v26 = vpop.f32.mrb[160].mxu1 }
 0x5a2   : > { %v17313_v21 = vadd.f32 %v20523_v0, %v16723_v26  ;;  %v10226_v35 = vpop.f32.mrb[161].mxu1  ;;  %v17155_v26 = vpack.c.bf16 %v13898_v19, %v13897_v22  ;;  %v13927_v22 = vld [vmem:[%s20737_s7 + $0xc0] sm:$0xff]  ;;  %v13928_v19 = vld [vmem:[%s20737_s7 + $0xc8] sm:$0xff] }
 0x5a3   : > { %v17314_v62 = vadd.f32 %v20523_v0, %v10226_v35  ;;  %16942 = vmatprep.mubr.msk.f32.mxu0 %vm10566_vm5, %v10543_v12  ;;  %v13900_v35 = vld [vmem:[%s20737_s7 + $0x68] sm:$0xff] }
 0x5a4   : > { %16943 = vmatmul.mubr.msk.f32.gmra.mrb[222].mxu0 %vm10566_vm5, %v10544_v42  ;;  %v10546_v18 = vmax.f32 %v17313_v21, 0.0  ;;  %v13899_v21 = vld [vmem:[%s20737_s7 + $0x60] sm:$0xff] }
 0x5a5   : > { %v10545_v51 = vmax.f32 %v17314_v62, 0.0  ;;  %v16726_v46 = vpop.f32.mrb[162].mxu1 }
 0x5a6   : > { %v17315_v36 = vadd.f32 %v20523_v0, %v16726_v46  ;;  %v10236_v33 = vpop.f32.mrb[163].mxu1 }
 0x5a7   : > { %v17316_v55 = vadd.f32 %v20523_v0, %v10236_v33  ;;  %16945 = vmatprep.mubr.msk.f32.mxu0 %vm10566_vm5, %v10545_v51  ;;  %v17159_v33 = vpack.c.bf16 %v13900_v35, %v13899_v21  ;;  %v13929_v21 = vld [vmem:[%s20737_s7 + $0xd0] sm:$0xff]  ;;  %v13930_v35 = vld [vmem:[%s20737_s7 + $0xd8] sm:$0xff] }
 0x5a8   : > { %16946 = vmatmul.mubr.msk.f32.gmra.mrb[224].mxu0 %vm10566_vm5, %v10546_v18  ;;  %v10548_v38 = vmax.f32 %v17315_v36, 0.0 }
 0x5a9   : > { %v10547_v7 = vmax.f32 %v17316_v55, 0.0  ;;  %v16729_v6 = vpop.f32.mrb[164].mxu1 }
 0x5aa   : > { %v17317_v2 = vadd.f32 %v20523_v0, %v16729_v6  ;;  %v10246_v56 = vpop.f32.mrb[165].mxu1  ;;  %v13902_v6 = vld [vmem:[%s20737_s7 + $0x78] sm:$0xff] }
 0x5ab   : > { %v17318_v1 = vadd.f32 %v20523_v0, %v10246_v56  ;;  %16948 = vmatprep.mubr.msk.f32.mxu0 %vm10566_vm5, %v10547_v7  ;;  %v13901_v7 = vld [vmem:[%s20737_s7 + $0x70] sm:$0xff] }
 0x5ac   : > { %16949 = vmatmul.mubr.msk.f32.gmra.mrb[226].mxu0 %vm10566_vm5, %v10548_v38  ;;  %v10550_v59 = vmax.f32 %v17317_v2, 0.0 }
 0x5ad   : > { %v10549_v17 = vmax.f32 %v17318_v1, 0.0  ;;  %v16732_v28 = vpop.f32.mrb[166].mxu1 }
 0x5ae   : > { %v17319_v44 = vadd.f32 %v20523_v0, %v16732_v28  ;;  %v10256_v14 = vpop.f32.mrb[167].mxu1  ;;  %v17163_v28 = vpack.c.bf16 %v13902_v6, %v13901_v7  ;;  %v13931_v7 = vld [vmem:[%s20737_s7 + $0xe0] sm:$0xff]  ;;  %v13932_v6 = vld [vmem:[%s20737_s7 + $0xe8] sm:$0xff] }
 0x5af   : > { %v17320_v37 = vadd.f32 %v20523_v0, %v10256_v14  ;;  %16951 = vmatprep.mubr.msk.f32.mxu0 %vm10566_vm5, %v10549_v17  ;;  %v13912_v14 = vld [vmem:[%s20737_s7 + $0x88] sm:$0xff] }
 0x5b0   : > { %16952 = vmatmul.mubr.msk.f32.gmra.mrb[228].mxu0 %vm10566_vm5, %v10550_v59  ;;  %v10552_v41 = vmax.f32 %v17319_v44, 0.0  ;;  %v13911_v44 = vld [vmem:[%s20737_s7 + $0x80] sm:$0xff] }
 0x5b1   : > { %v10551_v57 = vmax.f32 %v17320_v37, 0.0  ;;  %v16735_v30 = vpop.f32.mrb[168].mxu1 }
 0x5b2   : > { %v17321_v48 = vadd.f32 %v20523_v0, %v16735_v30  ;;  %v10266_v10 = vpop.f32.mrb[169].mxu1 }
 0x5b3   : > { %v17322_v39 = vadd.f32 %v20523_v0, %v10266_v10  ;;  %16954 = vmatprep.mubr.msk.f32.mxu0 %vm10566_vm5, %v10551_v57  ;;  %v17167_v10 = vpack.c.bf16 %v13912_v14, %v13911_v44  ;;  %v13933_v44 = vld [vmem:[%s20737_s7 + $0xf0] sm:$0xff]  ;;  %v13934_v14 = vld [vmem:[%s20737_s7 + $0xf8] sm:$0xff] }
 0x5b4   : > { %16955 = vmatmul.mubr.msk.f32.gmra.mrb[230].mxu0 %vm10566_vm5, %v10552_v41  ;;  %v10554_v24 = vmax.f32 %v17321_v48, 0.0 }
 0x5b5   : > { %v10553_v45 = vmax.f32 %v17322_v39, 0.0  ;;  %v16738_v54 = vpop.f32.mrb[170].mxu1 }
 0x5b6   : > { %v17323_v61 = vadd.f32 %v20523_v0, %v16738_v54  ;;  %v10276_v50 = vpop.f32.mrb[171].mxu1  ;;  %v13914_v54 = vld [vmem:[%s20737_s7 + $0x98] sm:$0xff] }
 0x5b7   : > { %v17324_v4 = vadd.f32 %v20523_v0, %v10276_v50  ;;  %16957 = vmatprep.mubr.msk.f32.mxu0 %vm10566_vm5, %v10553_v45  ;;  %v13913_v45 = vld [vmem:[%s20737_s7 + $0x90] sm:$0xff] }
 0x5b8   : > { %16958 = vmatmul.mubr.msk.f32.gmra.mrb[232].mxu0 %vm10566_vm5, %v10554_v24  ;;  %v10556_v52 = vmax.f32 %v17323_v61, 0.0 }
 0x5b9   : > { %v10555_v63 = vmax.f32 %v17324_v4, 0.0  ;;  %v16741_v31 = vpop.f32.mrb[172].mxu1 }
 0x5ba   : > { %v17325_v3 = vadd.f32 %v20523_v0, %v16741_v31  ;;  %v10286_v53 = vpop.f32.mrb[173].mxu1  ;;  %v17171_v31 = vpack.c.bf16 %v13914_v54, %v13913_v45 }
 0x5bb   : > { %v17326_v23 = vadd.f32 %v20523_v0, %v10286_v53  ;;  %16960 = vmatprep.mubr.msk.f32.mxu0 %vm10566_vm5, %v10555_v63  ;;  %v13916_v53 = vld [vmem:[%s20737_s7 + $0xa8] sm:$0xff] }
 0x5bc   : > { %16961 = vmatmul.mubr.msk.f32.gmra.mrb[234].mxu0 %vm10566_vm5, %v10556_v52  ;;  %v10558_v9 = vmax.f32 %v17325_v3, 0.0  ;;  %v13915_v3 = vld [vmem:[%s20737_s7 + $0xa0] sm:$0xff] }
 0x5bd   : > { %v10557_v25 = vmax.f32 %v17326_v23, 0.0  ;;  %v16744_v60 = vpop.f32.mrb[174].mxu1 }
 0x5be   : > { %v17327_v40 = vadd.f32 %v20523_v0, %v16744_v60  ;;  %v10296_v49 = vpop.f32.mrb[175].mxu1 }
 0x5bf   : > { %v17328_v5 = vadd.f32 %v20523_v0, %v10296_v49  ;;  %16963 = vmatprep.mubr.msk.f32.mxu0 %vm10566_vm5, %v10557_v25  ;;  %v20588_v0 = vld [vmem:[%s20736_s6] ss:$0 sm:$0xff]  ;;  %v17175_v49 = vpack.c.bf16 %v13916_v53, %v13915_v3 }
 0x5c0   : > { %16964 = vmatmul.mubr.msk.f32.gmra.mrb[236].mxu0 %vm10566_vm5, %v10558_v9  ;;  %v10560_v20 = vmax.f32 %v17327_v40, 0.0 }
 0x5c1   : > { %v10559_v58 = vmax.f32 %v17328_v5, 0.0 }
 0x5c3   : > { %16966 = vmatprep.mubr.msk.f32.mxu0 %vm10566_vm5, %v10559_v58  ;;  %v13917_v58 = vld [vmem:[%s20737_s7 + $0xb0] sm:$0xff] }
 0x5c4   : > { %16967 = vmatmul.mubr.msk.f32.gmra.mrb[238].mxu0 %vm10566_vm5, %v10560_v20  ;;  %v13918_v20 = vld [vmem:[%s20737_s7 + $0xb8] sm:$0xff] }
 0x65b   : > { %v16923_v13 = vpop.f32.mrb[208].mxu0 }
 0x65c   : > { %v17329_v43 = vadd.f32 %v16923_v13, %v20588_v0  ;;  %v11809_v15 = vpop.f32.mrb[209].mxu0 }
 0x65d   : > { %v17330_v34 = vadd.f32 %v20588_v0, %v11809_v15  ;;  %v17179_v15 = vpack.c.bf16 %v13918_v20, %v13917_v58 }
 0x65e   : > { %v12001_v27 = vmax.f32 %v17329_v43, 0.0 }
 0x65f   : > { %v12000_v16 = vmax.f32 %v17330_v34, 0.0  ;;  %v16926_v32 = vpop.f32.mrb[210].mxu0 }
 0x660   : > { %v17331_v47 = vadd.f32 %v16926_v32, %v20588_v0  ;;  %v11819_v12 = vpop.f32.mrb[211].mxu0 }
 0x661   : > { %v17332_v42 = vadd.f32 %v20588_v0, %v11819_v12  ;;  %16985 = vmatprep.mubr.msk.f32.mxu1 %vm12041_vm6, %v12000_v16 }
 0x662   : > { %16986 = vmatmul.mubr.msk.f32.vlgmr.msra.gmra.mrb[176].mxu1 %vm12041_vm6, %v12001_v27  ;;  %v12003_v46 = vmax.f32 %v17331_v47, 0.0 }
 0x663   : > { %v12002_v62 = vmax.f32 %v17332_v42, 0.0  ;;  %17154 = vmatpush3.bf16.msra.mxu1 %v17151_v8  ;;  %v16929_v51 = vpop.f32.mrb[212].mxu0 }
 0x664   : > { %v17333_v18 = vadd.f32 %v16929_v51, %v20588_v0  ;;  %v11829_v36 = vpop.f32.mrb[213].mxu0  ;;  %17156 = vmatprep.subr.bf16.mxu1 %v17155_v26 }
 0x665   : > { %v17334_v55 = vadd.f32 %v20588_v0, %v11829_v36  ;;  %16988 = vmatprep.mubr.msk.f32.mxu1 %vm12041_vm6, %v12002_v62 }
 0x666   : > { %16989 = vmatmul.mubr.msk.f32.gmra.mrb[178].mxu1 %vm12041_vm6, %v12003_v46  ;;  %v12005_v56 = vmax.f32 %v17333_v18, 0.0 }
 0x667   : > { %v12004_v38 = vmax.f32 %v17334_v55, 0.0  ;;  %17158 = vmatpush3.bf16.msra.mxu1 %v17155_v26  ;;  %v16932_v2 = vpop.f32.mrb[214].mxu0  ;;  %v17183_v26 = vpack.c.bf16 %v13928_v19, %v13927_v22 }
 0x668   : > { %v17335_v1 = vadd.f32 %v16932_v2, %v20588_v0  ;;  %v11839_v17 = vpop.f32.mrb[215].mxu0  ;;  %17160 = vmatprep.subr.bf16.mxu1 %v17159_v33 }
 0x669   : > { %v17336_v59 = vadd.f32 %v20588_v0, %v11839_v17  ;;  %16991 = vmatprep.mubr.msk.f32.mxu1 %vm12041_vm6, %v12004_v38 }
 0x66a   : > { %16992 = vmatmul.mubr.msk.f32.gmra.mrb[180].mxu1 %vm12041_vm6, %v12005_v56  ;;  %v12007_v30 = vmax.f32 %v17335_v1, 0.0 }
 0x66b   : > { %v12006_v37 = vmax.f32 %v17336_v59, 0.0  ;;  %17162 = vmatpush3.bf16.msra.mxu1 %v17159_v33  ;;  %v16935_v57 = vpop.f32.mrb[216].mxu0  ;;  %v17187_v33 = vpack.c.bf16 %v13930_v35, %v13929_v21 }
 0x66c   : > { %v17337_v41 = vadd.f32 %v16935_v57, %v20588_v0  ;;  %v11849_v48 = vpop.f32.mrb[217].mxu0  ;;  %17164 = vmatprep.subr.bf16.mxu1 %v17163_v28 }
 0x66d   : > { %v17338_v39 = vadd.f32 %v20588_v0, %v11849_v48  ;;  %16994 = vmatprep.mubr.msk.f32.mxu1 %vm12041_vm6, %v12006_v37 }
 0x66e   : > { %16995 = vmatmul.mubr.msk.f32.gmra.mrb[182].mxu1 %vm12041_vm6, %v12007_v30  ;;  %v12009_v50 = vmax.f32 %v17337_v41, 0.0 }
 0x66f   : > { %v12008_v24 = vmax.f32 %v17338_v39, 0.0  ;;  %17166 = vmatpush3.bf16.msra.mxu1 %v17163_v28  ;;  %v16938_v61 = vpop.f32.mrb[218].mxu0  ;;  %v17191_v28 = vpack.c.bf16 %v13932_v6, %v13931_v7 }
 0x670   : > { %v17339_v4 = vadd.f32 %v16938_v61, %v20588_v0  ;;  %v11859_v63 = vpop.f32.mrb[219].mxu0  ;;  %17168 = vmatprep.subr.bf16.mxu1 %v17167_v10 }
 0x671   : > { %v17340_v52 = vadd.f32 %v20588_v0, %v11859_v63  ;;  %17013 = vmatprep.mubr.msk.f32.mxu1 %vm12041_vm6, %v12008_v24 }
 0x672   : > { %17014 = vmatmul.mubr.msk.f32.vlgmr.msra.gmra.mrb[176].mxu1 %vm12041_vm6, %v12009_v50  ;;  %v12011_v60 = vmax.f32 %v17339_v4, 0.0 }
 0x673   : > { %v12010_v23 = vmax.f32 %v17340_v52, 0.0  ;;  %17170 = vmatpush3.bf16.msra.mxu1 %v17167_v10  ;;  %v16941_v25 = vpop.f32.mrb[220].mxu0  ;;  %v17195_v10 = vpack.c.bf16 %v13934_v14, %v13933_v44 }
 0x674   : > { %v17341_v9 = vadd.f32 %v16941_v25, %v20588_v0  ;;  %v11869_v40 = vpop.f32.mrb[221].mxu0  ;;  %17172 = vmatprep.subr.bf16.mxu1 %v17171_v31 }
 0x675   : > { %v17342_v5 = vadd.f32 %v20588_v0, %v11869_v40  ;;  %17016 = vmatprep.mubr.msk.f32.mxu1 %vm12041_vm6, %v12010_v23 }
 0x676   : > { %17017 = vmatmul.mubr.msk.f32.gmra.mrb[178].mxu1 %vm12041_vm6, %v12011_v60  ;;  %v12013_v8 = vmax.f32 %v17341_v9, 0.0 }
 0x677   : > { %v12012_v29 = vmax.f32 %v17342_v5, 0.0  ;;  %17174 = vmatpush3.bf16.msra.mxu1 %v17171_v31  ;;  %v16944_v11 = vpop.f32.mrb[222].mxu0 }
 0x678   : > { %v17343_v13 = vadd.f32 %v16944_v11, %v20588_v0  ;;  %v11879_v43 = vpop.f32.mrb[223].mxu0  ;;  %17176 = vmatprep.subr.bf16.mxu1 %v17175_v49 }
 0x679   : > { %v17344_v34 = vadd.f32 %v20588_v0, %v11879_v43  ;;  %17019 = vmatprep.mubr.msk.f32.mxu1 %vm12041_vm6, %v12012_v29 }
 0x67a   : > { %17020 = vmatmul.mubr.msk.f32.gmra.mrb[180].mxu1 %vm12041_vm6, %v12013_v8  ;;  %v12015_v27 = vmax.f32 %v17343_v13, 0.0 }
 0x67b   : > { %v12014_v16 = vmax.f32 %v17344_v34, 0.0  ;;  %17178 = vmatpush3.bf16.msra.mxu1 %v17175_v49  ;;  %v16947_v32 = vpop.f32.mrb[224].mxu0  ;;  %v13894_v34 = vld [vmem:[%s20738_s8] ss:$0 sm:$0xff] }
 0x67c   : > { %v17345_v47 = vadd.f32 %v16947_v32, %v20588_v0  ;;  %v11889_v12 = vpop.f32.mrb[225].mxu0  ;;  %17180 = vmatprep.subr.bf16.mxu1 %v17179_v15 }
 0x67d   : > { %v17346_v42 = vadd.f32 %v20588_v0, %v11889_v12  ;;  %17022 = vmatprep.mubr.msk.f32.mxu1 %vm12041_vm6, %v12014_v16 }
 0x67e   : > { %17023 = vmatmul.mubr.msk.f32.gmra.mrb[182].mxu1 %vm12041_vm6, %v12015_v27  ;;  %v12017_v46 = vmax.f32 %v17345_v47, 0.0 }
 0x67f   : > { %v12016_v62 = vmax.f32 %v17346_v42, 0.0  ;;  %17182 = vmatpush3.bf16.msra.mxu1 %v17179_v15  ;;  %v16950_v51 = vpop.f32.mrb[226].mxu0 }
 0x680   : > { %v17347_v18 = vadd.f32 %v16950_v51, %v20588_v0  ;;  %v11899_v36 = vpop.f32.mrb[227].mxu0  ;;  %17184 = vmatprep.subr.bf16.mxu1 %v17183_v26 }
 0x681   : > { %v17348_v55 = vadd.f32 %v20588_v0, %v11899_v36  ;;  %17041 = vmatprep.mubr.msk.f32.mxu1 %vm12041_vm6, %v12016_v62 }
 0x682   : > { %17042 = vmatmul.mubr.msk.f32.vlgmr.msra.gmra.mrb[176].mxu1 %vm12041_vm6, %v12017_v46  ;;  %v12019_v56 = vmax.f32 %v17347_v18, 0.0 }
 0x683   : > { %v12018_v38 = vmax.f32 %v17348_v55, 0.0  ;;  %17186 = vmatpush3.bf16.msra.mxu1 %v17183_v26  ;;  %v16953_v2 = vpop.f32.mrb[228].mxu0 }
 0x684   : > { %v17349_v1 = vadd.f32 %v16953_v2, %v20588_v0  ;;  %v11909_v17 = vpop.f32.mrb[229].mxu0  ;;  %17188 = vmatprep.subr.bf16.mxu1 %v17187_v33 }
 0x685   : > { %v17350_v59 = vadd.f32 %v20588_v0, %v11909_v17  ;;  %17044 = vmatprep.mubr.msk.f32.mxu1 %vm12041_vm6, %v12018_v38 }
 0x686   : > { %17045 = vmatmul.mubr.msk.f32.gmra.mrb[178].mxu1 %vm12041_vm6, %v12019_v56  ;;  %v12021_v30 = vmax.f32 %v17349_v1, 0.0 }
 0x687   : > { %v12020_v37 = vmax.f32 %v17350_v59, 0.0  ;;  %17190 = vmatpush3.bf16.msra.mxu1 %v17187_v33  ;;  %v16956_v57 = vpop.f32.mrb[230].mxu0 }
 0x688   : > { %v17351_v41 = vadd.f32 %v16956_v57, %v20588_v0  ;;  %v11919_v48 = vpop.f32.mrb[231].mxu0  ;;  %17192 = vmatprep.subr.bf16.mxu1 %v17191_v28 }
 0x689   : > { %v17352_v39 = vadd.f32 %v20588_v0, %v11919_v48  ;;  %17047 = vmatprep.mubr.msk.f32.mxu1 %vm12041_vm6, %v12020_v37 }
 0x68a   : > { %17048 = vmatmul.mubr.msk.f32.gmra.mrb[180].mxu1 %vm12041_vm6, %v12021_v30  ;;  %v12023_v24 = vmax.f32 %v17351_v41, 0.0 }
 0x68b   : > { %v12022_v45 = vmax.f32 %v17352_v39, 0.0  ;;  %17194 = vmatpush3.bf16.msra.mxu1 %v17191_v28  ;;  %v16959_v54 = vpop.f32.mrb[232].mxu0 }
 0x68c   : > { %v17353_v61 = vadd.f32 %v16959_v54, %v20588_v0  ;;  %v11929_v50 = vpop.f32.mrb[233].mxu0  ;;  %17196 = vmatprep.subr.bf16.mxu1 %v17195_v10 }
 0x68d   : > { %v17354_v4 = vadd.f32 %v20588_v0, %v11929_v50  ;;  %17050 = vmatprep.mubr.msk.f32.mxu1 %vm12041_vm6, %v12022_v45 }
 0x68e   : > { %17051 = vmatmul.mubr.msk.f32.gmra.mrb[182].mxu1 %vm12041_vm6, %v12023_v24  ;;  %v12025_v52 = vmax.f32 %v17353_v61, 0.0 }
 0x68f   : > { %v12024_v63 = vmax.f32 %v17354_v4, 0.0  ;;  %17198 = vmatpush3.bf16.msra.mxu1 %v17195_v10  ;;  %v16962_v31 = vpop.f32.mrb[234].mxu0 }
 0x690   : > { %v17355_v3 = vadd.f32 %v16962_v31, %v20588_v0  ;;  %v11939_v53 = vpop.f32.mrb[235].mxu0 }
 0x691   : > { %v17356_v23 = vadd.f32 %v20588_v0, %v11939_v53  ;;  %17069 = vmatprep.mubr.msk.f32.mxu1 %vm12041_vm6, %v12024_v63 }
 0x692   : > { %17070 = vmatmul.mubr.msk.f32.vlgmr.msra.gmra.mrb[176].mxu1 %vm12041_vm6, %v12025_v52  ;;  %v12027_v9 = vmax.f32 %v17355_v3, 0.0 }
 0x693   : > { %v12026_v25 = vmax.f32 %v17356_v23, 0.0  ;;  %v16965_v60 = vpop.f32.mrb[236].mxu0 }
 0x694   : > { %v17357_v40 = vadd.f32 %v16965_v60, %v20588_v0  ;;  %v11949_v49 = vpop.f32.mrb[237].mxu0 }
 0x695   : > { %v17358_v5 = vadd.f32 %v20588_v0, %v11949_v49  ;;  %17072 = vmatprep.mubr.msk.f32.mxu1 %vm12041_vm6, %v12026_v25 }
 0x696   : > { %17073 = vmatmul.mubr.msk.f32.gmra.mrb[178].mxu1 %vm12041_vm6, %v12027_v9  ;;  %v12029_v29 = vmax.f32 %v17357_v40, 0.0 }
 0x697   : > { %v12028_v58 = vmax.f32 %v17358_v5, 0.0  ;;  %v16968_v20 = vpop.f32.mrb[238].mxu0 }
 0x698   : > { %v17359_v11 = vadd.f32 %v16968_v20, %v20588_v0  ;;  %v11959_v8 = vpop.f32.mrb[239].mxu0 }
 0x699   : > { %v17360_v13 = vadd.f32 %v20588_v0, %v11959_v8  ;;  %17075 = vmatprep.mubr.msk.f32.mxu1 %vm12041_vm6, %v12028_v58 }
 0x69a   : > { %17076 = vmatmul.mubr.msk.f32.gmra.mrb[180].mxu1 %vm12041_vm6, %v12029_v29  ;;  %v12031_v15 = vmax.f32 %v17359_v11, 0.0 }
 0x69b   : > { %v12030_v43 = vmax.f32 %v17360_v13, 0.0 }
 0x69d   : > { %17078 = vmatprep.mubr.msk.f32.mxu1 %vm12041_vm6, %v12030_v43 }
 0x69e   : > { %17079 = vmatmul.mubr.msk.f32.gmra.mrb[182].mxu1 %vm12041_vm6, %v12031_v15 }
 0x765   : > { %v17071_v22 = vpop.f32.mrb[176].mxu1 }
 0x766   : > { %v17361_v19 = vadd.f32 %v17071_v22, %v13894_v34  ;;  %v12576_v16 = vpop.f32.mrb[177].mxu1 }
 0x767   : > { %v17362_v0 = vadd.f32 %v13894_v34, %v12576_v16 }
 0x768   : > { %v12624_v32 = vmax.f32 %v17361_v19, 0.0 }
 0x769   : > { %v12623_v27 = vmax.f32 %v17362_v0, 0.0  ;;  %v17074_v47 = vpop.f32.mrb[178].mxu1 }
 0x76a   : > { %12632 = vst [vmem:[%s346_s21 + $0x8] sm:$0xff] %v12624_v32  ;;  %v17363_v12 = vadd.f32 %v17074_v47, %v13894_v34  ;;  %v12586_v26 = vpop.f32.mrb[179].mxu1 }
 0x76b   : > { %12631 = vst [vmem:[%s346_s21] sm:$0xff] %v12623_v27  ;;  %v17364_v42 = vadd.f32 %v13894_v34, %v12586_v26 }
 0x76c   : > { %v12626_v21 = vmax.f32 %v17363_v12, 0.0 }
 0x76d   : > { %v12625_v35 = vmax.f32 %v17364_v42, 0.0  ;;  %v17077_v62 = vpop.f32.mrb[180].mxu1 }
 0x76e   : > { %12634 = vst [vmem:[%s346_s21 + $0x18] sm:$0xff] %v12626_v21  ;;  %v17365_v51 = vadd.f32 %v17077_v62, %v13894_v34  ;;  %v12596_v46 = vpop.f32.mrb[181].mxu1 }
 0x76f   : > { %12633 = vst [vmem:[%s346_s21 + $0x10] sm:$0xff] %v12625_v35  ;;  %v17366_v18 = vadd.f32 %v13894_v34, %v12596_v46 }
 0x770   : > { %v12628_v36 = vmax.f32 %v17365_v51, 0.0 }
 0x771   : > { %v12627_v33 = vmax.f32 %v17366_v18, 0.0  ;;  %v17080_v55 = vpop.f32.mrb[182].mxu1 }
 0x772   : > { %12636 = vst [vmem:[%s346_s21 + $0x28] sm:$0xff] %v12628_v36  ;;  %v17367_v7 = vadd.f32 %v17080_v55, %v13894_v34  ;;  %v12606_v6 = vpop.f32.mrb[183].mxu1 }
 0x773   : > { %12635 = vst [vmem:[%s346_s21 + $0x20] sm:$0xff] %v12627_v33  ;;  %v17368_v38 = vadd.f32 %v13894_v34, %v12606_v6 }
 0x774   : > { %v12630_v2 = vmax.f32 %v17367_v7, 0.0 }
 0x775   : > { %v12629_v56 = vmax.f32 %v17368_v38, 0.0 }
 0x776   : > { %12638 = vst [vmem:[%s346_s21 + $0x38] sm:$0xff] %v12630_v2 }
 0x777   : > { %12637 = vst [vmem:[%s346_s21 + $0x30] sm:$0xff] %v12629_v56 }
 0x778 PF: > { %s19_s30 = sadd.s32 1, %s17894_s30  }
 0x779   : > { %p16_p4 = scmp.ge.s32.totalorder %s19_s30, 4  }
 0x77b   :  { %18 = sbr.rel (!%p16_p4) target bundleno = 1 (0x1), region = 98 }

</bundles_post_ra>
